<compile_context>
chip_gen: v5e
topology: v5e:2x2
jax: 0.10.0
libtpu: 0.0.40
codegen_flags: <defaults>
</compile_context>

<pallas_src>
import math

import jax
import jax.numpy as jnp
from jax.experimental import pallas as pl
from jax.experimental.pallas import tpu as pltpu

d_k = d_v = 128
d_model = 64
n_heads = 6
d_ff = 256
n_layers = 6
IN_FEAT = 10
LN_EPS = 1e-5
_SCALE = 1.0 / math.sqrt(d_k)


# ------------------------------ fused kernel -------------------------------

def _encoder_kernel(x_ref, pe_ref, ew1_ref, ew2_ref, ew3_ref,
                    wqkv_ref, wo_ref, wf1_ref, wf2_ref,
                    out_ref, attn_ref):
    """One grid step == one batch element pushed through the whole encoder.

    x_ref    : (1, S, IN_FEAT)
    pe_ref   : (S, d_model)
    ew*_ref  : ini_embedding weights
    wqkv_ref : (n_layers, d_model, 3*n_heads*d_k)   [W_Q | W_K | W_V]
    wo_ref   : (n_layers, n_heads*d_v, d_model)
    wf1_ref  : (n_layers, d_model, d_ff)
    wf2_ref  : (n_layers, d_ff, d_model)
    out_ref  : (1, S, d_model)
    attn_ref : (1, n_layers*n_heads*S, S)   (row block (l, h) holds that head's attn)
    """
    S = x_ref.shape[1]

    def layer_norm(y):
        # fresh nn.LayerNorm(d_model): gamma=1, beta=0
        mean = jnp.mean(y, axis=-1, keepdims=True)
        var = jnp.mean((y - mean) ** 2, axis=-1, keepdims=True)
        return (y - mean) * jax.lax.rsqrt(var + LN_EPS)

    # --- ini_embedding: Linear(10,16)-tanh-Linear(16,32)-tanh-Linear(32,64) ---
    h = jnp.tanh(jnp.dot(x_ref[0], ew1_ref[...],
                         preferred_element_type=jnp.float32))
    h = jnp.tanh(jnp.dot(h, ew2_ref[...], preferred_element_type=jnp.float32))
    h = jnp.dot(h, ew3_ref[...], preferred_element_type=jnp.float32)  # (S, d_model)

    # --- positional encoding (dropout == identity in eval mode) ---
    h = h + pe_ref[...]

    # --- encoder layers (unrolled; everything stays in VMEM/vregs) ---
    for l in range(n_layers):
        resid = h

        # fused QKV projection: (S, d_model) @ (d_model, 3*H*d_k)
        qkv = jnp.dot(h, wqkv_ref[l], preferred_element_type=jnp.float32)

        ctx_heads = []
        for hd in range(n_heads):
            q = qkv[:, hd * d_k:(hd + 1) * d_k]                       # (S, d_k)
            k = qkv[:, n_heads * d_k + hd * d_k:
                       n_heads * d_k + (hd + 1) * d_k]                # (S, d_k)
            v = qkv[:, 2 * n_heads * d_k + hd * d_v:
                       2 * n_heads * d_k + (hd + 1) * d_v]            # (S, d_v)

            # scores = Q @ K^T / sqrt(d_k)
            scores = jax.lax.dot_general(
                q, k, (((1,), (1,)), ((), ())),
                preferred_element_type=jnp.float32) * _SCALE          # (S, S)

            m = jnp.max(scores, axis=-1, keepdims=True)
            e = jnp.exp(scores - m)
            denom = jnp.sum(e, axis=-1, keepdims=True)
            attn = e * pl.reciprocal(denom, approx=True)              # softmax

            row0 = (l * n_heads + hd) * S
            attn_ref[0, row0:row0 + S, :] = attn

            ctx_heads.append(jnp.dot(attn, v,
                                     preferred_element_type=jnp.float32))

        ctx = jnp.concatenate(ctx_heads, axis=-1)                     # (S, H*d_v)
        attn_out = jnp.dot(ctx, wo_ref[l],
                           preferred_element_type=jnp.float32)        # (S, d_model)
        h = layer_norm(attn_out + resid)

        # position-wise FFN: Linear(d_model,d_ff)-ReLU-Linear(d_ff,d_model)
        ff = jnp.dot(h, wf1_ref[l], preferred_element_type=jnp.float32)
        ff = jnp.maximum(ff, 0.0)
        ff = jnp.dot(ff, wf2_ref[l], preferred_element_type=jnp.float32)
        h = layer_norm(ff + h)

    out_ref[0] = h


# ------------------------------- wrapper ------------------------------------

def encoder_forward(enc_inputs, params):
    """enc_inputs: [B, S, IN_FEAT] -> (enc_outputs [B,S,d_model], list of attn)."""
    B, S, F = enc_inputs.shape
    x = enc_inputs.astype(jnp.float32)
    pe = params["pe"][:S]                                            # (S, d_model)

    out, attn_packed = pl.pallas_call(
        _encoder_kernel,
        grid=(B,),
        out_shape=(
            jax.ShapeDtypeStruct((B, S, d_model), jnp.float32),
            jax.ShapeDtypeStruct((B, n_layers * n_heads * S, S), jnp.float32),
        ),
        in_specs=[
            pl.BlockSpec((1, S, F), lambda b: (b, 0, 0)),
            pl.BlockSpec((S, d_model), lambda b: (0, 0)),
            pl.BlockSpec((IN_FEAT, 16), lambda b: (0, 0)),
            pl.BlockSpec((16, 32), lambda b: (0, 0)),
            pl.BlockSpec((32, d_model), lambda b: (0, 0)),
            pl.BlockSpec((n_layers, d_model, 3 * n_heads * d_k),
                         lambda b: (0, 0, 0)),
            pl.BlockSpec((n_layers, n_heads * d_v, d_model),
                         lambda b: (0, 0, 0)),
            pl.BlockSpec((n_layers, d_model, d_ff), lambda b: (0, 0, 0)),
            pl.BlockSpec((n_layers, d_ff, d_model), lambda b: (0, 0, 0)),
        ],
        out_specs=(
            pl.BlockSpec((1, S, d_model), lambda b: (b, 0, 0)),
            pl.BlockSpec((1, n_layers * n_heads * S, S), lambda b: (b, 0, 0)),
        ),
        compiler_params=pltpu.CompilerParams(
            dimension_semantics=("parallel",),        # batch -> 2 TCs on v7x
            vmem_limit_bytes=48 * 1024 * 1024,        # ~17 MB actually needed
        ),
    )(x, pe,
      params["emb_w1"], params["emb_w2"], params["emb_w3"],
      params["W_qkv"], params["W_O"], params["W_ff1"], params["W_ff2"])

    attn_all = attn_packed.reshape(B, n_layers, n_heads, S, S)
    enc_self_attns = [attn_all[:, l] for l in range(n_layers)]
    return out, enc_self_attns


# ------------------------------ param init ----------------------------------

def make_positional_encoding(max_len=300):
    position = jnp.arange(max_len, dtype=jnp.float32)[:, None]
    div_term = jnp.exp(jnp.arange(0, d_model, 2, dtype=jnp.float32)
                       * (-math.log(200.0) / d_model))
    pe = jnp.zeros((max_len, d_model), dtype=jnp.float32)
    pe = pe.at[:, 0::2].set(jnp.sin(position * div_term))
    pe = pe.at[:, 1::2].set(jnp.cos(position * div_term))
    return pe


def init_linear(key, fan_in, fan_out):
    bound = 1.0 / math.sqrt(fan_in)
    return jax.random.uniform(key, (fan_in, fan_out), jnp.float32,
                              minval=-bound, maxval=bound)


def init_params(key):
    keys = jax.random.split(key, 3 + 6 * n_layers)
    params = {
        "emb_w1": init_linear(keys[0], IN_FEAT, 16),
        "emb_w2": init_linear(keys[1], 16, 32),
        "emb_w3": init_linear(keys[2], 32, d_model),
        "pe": make_positional_encoding(),
    }
    wqkv, wo, wf1, wf2 = [], [], [], []
    k = 3
    for _ in range(n_layers):
        wq = init_linear(keys[k + 0], d_model, n_heads * d_k)
        wk = init_linear(keys[k + 1], d_model, n_heads * d_k)
        wv = init_linear(keys[k + 2], d_model, n_heads * d_v)
        wqkv.append(jnp.concatenate([wq, wk, wv], axis=1))   # [d_model, 3*H*d_k]
        wo.append(init_linear(keys[k + 3], n_heads * d_v, d_model))
        wf1.append(init_linear(keys[k + 4], d_model, d_ff))
        wf2.append(init_linear(keys[k + 5], d_ff, d_model))
        k += 6
    params["W_qkv"] = jnp.stack(wqkv)     # [n_layers, d_model, 3*H*d_k]
    params["W_O"] = jnp.stack(wo)         # [n_layers, H*d_v, d_model]
    params["W_ff1"] = jnp.stack(wf1)      # [n_layers, d_model, d_ff]
    params["W_ff2"] = jnp.stack(wf2)      # [n_layers, d_ff, d_model]
    return params


# --------------------------------- main --------------------------------------

if __name__ == "__main__":
    key = jax.random.PRNGKey(0)
    pkey, xkey = jax.random.split(key)
    params = init_params(pkey)

    batch, src_len = 2, 8
    enc_inputs = jax.random.normal(xkey, (batch, src_len, IN_FEAT), jnp.float32)

    enc_outputs, enc_self_attns = jax.jit(encoder_forward)(enc_inputs, params)
    jax.block_until_ready(enc_outputs)
    jax.block_until_ready(enc_self_attns)

    assert enc_outputs.shape == (batch, src_len, d_model)
    assert len(enc_self_attns) == n_layers
    assert enc_self_attns[0].shape == (batch, n_heads, src_len, src_len)
    assert bool(jnp.all(jnp.isfinite(enc_outputs)))
    print("KERNEL_OK")
</pallas_src>

<mosaic_0001>
module attributes {stable_mosaic.version = 11 : i64} {
  func.func @_encoder_kernel(%arg0: i32, %arg1: memref<1x8x10xf32, #tpu.memory_space<vmem>>, %arg2: memref<8x64xf32, #tpu.memory_space<vmem>>, %arg3: memref<10x16xf32, #tpu.memory_space<vmem>>, %arg4: memref<16x32xf32, #tpu.memory_space<vmem>>, %arg5: memref<32x64xf32, #tpu.memory_space<vmem>>, %arg6: memref<6x64x2304xf32, #tpu.memory_space<vmem>>, %arg7: memref<6x768x64xf32, #tpu.memory_space<vmem>>, %arg8: memref<6x64x256xf32, #tpu.memory_space<vmem>>, %arg9: memref<6x256x64xf32, #tpu.memory_space<vmem>>, %arg10: memref<1x8x64xf32, #tpu.memory_space<vmem>>, %arg11: memref<1x288x8xf32, #tpu.memory_space<vmem>>) attributes {dimension_semantics = [#tpu.dimension_semantics<parallel>], iteration_bounds = array<i64: 2>, scalar_prefetch = 0 : i64, scratch_operands = 0 : i64, tpu.core_type = #tpu.core_type<tc>, window_params = [{transform_indices = @transform_0, window_bounds = array<i64: 1, 8, 10>}, {pipeline_mode = #tpu.pipeline_mode<synchronous>, transform_indices = @transform_1, window_bounds = array<i64: 8, 64>}, {pipeline_mode = #tpu.pipeline_mode<synchronous>, transform_indices = @transform_2, window_bounds = array<i64: 10, 16>}, {pipeline_mode = #tpu.pipeline_mode<synchronous>, transform_indices = @transform_3, window_bounds = array<i64: 16, 32>}, {pipeline_mode = #tpu.pipeline_mode<synchronous>, transform_indices = @transform_4, window_bounds = array<i64: 32, 64>}, {pipeline_mode = #tpu.pipeline_mode<synchronous>, transform_indices = @transform_5, window_bounds = array<i64: 6, 64, 2304>}, {pipeline_mode = #tpu.pipeline_mode<synchronous>, transform_indices = @transform_6, window_bounds = array<i64: 6, 768, 64>}, {pipeline_mode = #tpu.pipeline_mode<synchronous>, transform_indices = @transform_7, window_bounds = array<i64: 6, 64, 256>}, {pipeline_mode = #tpu.pipeline_mode<synchronous>, transform_indices = @transform_8, window_bounds = array<i64: 6, 256, 64>}, {transform_indices = @transform_9, window_bounds = array<i64: 1, 8, 64>}, {transform_indices = @transform_10, window_bounds = array<i64: 1, 288, 8>}]} {
    %c0 = arith.constant 0 : index
    %c0_0 = arith.constant 0 : index
    %c0_1 = arith.constant 0 : index
    %0 = vector.load %arg1[%c0, %c0_0, %c0_1] : memref<1x8x10xf32, #tpu.memory_space<vmem>>, vector<1x8x10xf32>
    %1 = vector.shape_cast %0 : vector<1x8x10xf32> to vector<8x10xf32>
    %c0_2 = arith.constant 0 : index
    %c0_3 = arith.constant 0 : index
    %2 = vector.load %arg3[%c0_2, %c0_3] : memref<10x16xf32, #tpu.memory_space<vmem>>, vector<10x16xf32>
    %cst = arith.constant dense<0.000000e+00> : vector<8x16xf32>
    %3 = tpu.matmul %1, %2, %cst {dimension_numbers = #tpu.dot_dimension_numbers<[1], [0], [0], [1], [0, 0, 1, 1], [], []>} : vector<8x10xf32>, vector<10x16xf32>, vector<8x16xf32> -> vector<8x16xf32>
    %4 = math.tanh %3 : vector<8x16xf32>
    %c0_4 = arith.constant 0 : index
    %c0_5 = arith.constant 0 : index
    %5 = vector.load %arg4[%c0_4, %c0_5] : memref<16x32xf32, #tpu.memory_space<vmem>>, vector<16x32xf32>
    %cst_6 = arith.constant dense<0.000000e+00> : vector<8x32xf32>
    %6 = tpu.matmul %4, %5, %cst_6 {dimension_numbers = #tpu.dot_dimension_numbers<[1], [0], [0], [1], [0, 0, 1, 1], [], []>} : vector<8x16xf32>, vector<16x32xf32>, vector<8x32xf32> -> vector<8x32xf32>
    %7 = math.tanh %6 : vector<8x32xf32>
    %c0_7 = arith.constant 0 : index
    %c0_8 = arith.constant 0 : index
    %8 = vector.load %arg5[%c0_7, %c0_8] : memref<32x64xf32, #tpu.memory_space<vmem>>, vector<32x64xf32>
    %cst_9 = arith.constant dense<0.000000e+00> : vector<8x64xf32>
    %9 = tpu.matmul %7, %8, %cst_9 {dimension_numbers = #tpu.dot_dimension_numbers<[1], [0], [0], [1], [0, 0, 1, 1], [], []>} : vector<8x32xf32>, vector<32x64xf32>, vector<8x64xf32> -> vector<8x64xf32>
    %c0_10 = arith.constant 0 : index
    %c0_11 = arith.constant 0 : index
    %10 = vector.load %arg2[%c0_10, %c0_11] : memref<8x64xf32, #tpu.memory_space<vmem>>, vector<8x64xf32>
    %11 = arith.addf %9, %10 : vector<8x64xf32>
    %c0_12 = arith.constant 0 : index
    %c0_13 = arith.constant 0 : index
    %c0_14 = arith.constant 0 : index
    %12 = vector.load %arg6[%c0_12, %c0_13, %c0_14] : memref<6x64x2304xf32, #tpu.memory_space<vmem>>, vector<1x64x2304xf32>
    %13 = vector.shape_cast %12 : vector<1x64x2304xf32> to vector<64x2304xf32>
    %cst_15 = arith.constant dense<0.000000e+00> : vector<8x2304xf32>
    %14 = tpu.matmul %11, %13, %cst_15 {dimension_numbers = #tpu.dot_dimension_numbers<[1], [0], [0], [1], [0, 0, 1, 1], [], []>} : vector<8x64xf32>, vector<64x2304xf32>, vector<8x2304xf32> -> vector<8x2304xf32>
    %15 = vector.extract_strided_slice %14 {offsets = [0, 0], sizes = [8, 128], strides = [1, 1]} : vector<8x2304xf32> to vector<8x128xf32>
    %16 = vector.extract_strided_slice %14 {offsets = [0, 768], sizes = [8, 128], strides = [1, 1]} : vector<8x2304xf32> to vector<8x128xf32>
    %17 = vector.extract_strided_slice %14 {offsets = [0, 1536], sizes = [8, 128], strides = [1, 1]} : vector<8x2304xf32> to vector<8x128xf32>
    %cst_16 = arith.constant dense<0.000000e+00> : vector<8x8xf32>
    %18 = tpu.matmul %15, %16, %cst_16 {dimension_numbers = #tpu.dot_dimension_numbers<[1], [1], [0], [0], [0, 0, 1, 0], [], []>} : vector<8x128xf32>, vector<8x128xf32>, vector<8x8xf32> -> vector<8x8xf32>
    %cst_17 = arith.constant 0.0883883461 : f32
    %19 = vector.broadcast %cst_17 : f32 to vector<8x8xf32>
    %20 = arith.mulf %18, %19 : vector<8x8xf32>
    %cst_18 = arith.constant dense<0xFF800000> : vector<8xf32>
    %21 = vector.multi_reduction <maximumf>, %20, %cst_18 [1] : vector<8x8xf32> to vector<8xf32>
    %22 = vector.shape_cast %21 : vector<8xf32> to vector<8x1xf32>
    %23 = vector.broadcast %22 : vector<8x1xf32> to vector<8x8xf32>
    %24 = arith.subf %20, %23 : vector<8x8xf32>
    %25 = math.exp %24 : vector<8x8xf32>
    %cst_19 = arith.constant dense<0.000000e+00> : vector<8xf32>
    %26 = vector.multi_reduction <add>, %25, %cst_19 [1] : vector<8x8xf32> to vector<8xf32>
    %27 = vector.shape_cast %26 : vector<8xf32> to vector<8x1xf32>
    %28 = tpu.reciprocal %27 {approx = true} : vector<8x1xf32> -> vector<8x1xf32>
    %29 = vector.broadcast %28 : vector<8x1xf32> to vector<8x8xf32>
    %30 = arith.mulf %25, %29 : vector<8x8xf32>
    %c0_20 = arith.constant 0 : index
    %c0_21 = arith.constant 0 : index
    %c0_22 = arith.constant 0 : index
    %31 = vector.load %arg11[%c0_20, %c0_21, %c0_22] : memref<1x288x8xf32, #tpu.memory_space<vmem>>, vector<1x8x8xf32>
    %32 = vector.shape_cast %31 : vector<1x8x8xf32> to vector<8x8xf32>
    %33 = vector.shape_cast %30 : vector<8x8xf32> to vector<1x8x8xf32>
    tpu.vector_store %arg11[%c0_20, %c0_21, %c0_22], %33 {strides = array<i32>} : memref<1x288x8xf32, #tpu.memory_space<vmem>>, vector<1x8x8xf32>,
    %cst_23 = arith.constant dense<0.000000e+00> : vector<8x128xf32>
    %34 = tpu.matmul %30, %17, %cst_23 {dimension_numbers = #tpu.dot_dimension_numbers<[1], [0], [0], [1], [0, 0, 1, 1], [], []>} : vector<8x8xf32>, vector<8x128xf32>, vector<8x128xf32> -> vector<8x128xf32>
    %35 = vector.extract_strided_slice %14 {offsets = [0, 128], sizes = [8, 128], strides = [1, 1]} : vector<8x2304xf32> to vector<8x128xf32>
    %36 = vector.extract_strided_slice %14 {offsets = [0, 896], sizes = [8, 128], strides = [1, 1]} : vector<8x2304xf32> to vector<8x128xf32>
    %37 = vector.extract_strided_slice %14 {offsets = [0, 1664], sizes = [8, 128], strides = [1, 1]} : vector<8x2304xf32> to vector<8x128xf32>
    %cst_24 = arith.constant dense<0.000000e+00> : vector<8x8xf32>
    %38 = tpu.matmul %35, %36, %cst_24 {dimension_numbers = #tpu.dot_dimension_numbers<[1], [1], [0], [0], [0, 0, 1, 0], [], []>} : vector<8x128xf32>, vector<8x128xf32>, vector<8x8xf32> -> vector<8x8xf32>
    %cst_25 = arith.constant 0.0883883461 : f32
    %39 = vector.broadcast %cst_25 : f32 to vector<8x8xf32>
    %40 = arith.mulf %38, %39 : vector<8x8xf32>
    %cst_26 = arith.constant dense<0xFF800000> : vector<8xf32>
    %41 = vector.multi_reduction <maximumf>, %40, %cst_26 [1] : vector<8x8xf32> to vector<8xf32>
    %42 = vector.shape_cast %41 : vector<8xf32> to vector<8x1xf32>
    %43 = vector.broadcast %42 : vector<8x1xf32> to vector<8x8xf32>
    %44 = arith.subf %40, %43 : vector<8x8xf32>
    %45 = math.exp %44 : vector<8x8xf32>
    %cst_27 = arith.constant dense<0.000000e+00> : vector<8xf32>
    %46 = vector.multi_reduction <add>, %45, %cst_27 [1] : vector<8x8xf32> to vector<8xf32>
    %47 = vector.shape_cast %46 : vector<8xf32> to vector<8x1xf32>
    %48 = tpu.reciprocal %47 {approx = true} : vector<8x1xf32> -> vector<8x1xf32>
    %49 = vector.broadcast %48 : vector<8x1xf32> to vector<8x8xf32>
    %50 = arith.mulf %45, %49 : vector<8x8xf32>
    %c0_28 = arith.constant 0 : index
    %c8 = arith.constant 8 : index
    %c0_29 = arith.constant 0 : index
    %51 = vector.load %arg11[%c0_28, %c8, %c0_29] : memref<1x288x8xf32, #tpu.memory_space<vmem>>, vector<1x8x8xf32>
    %52 = vector.shape_cast %51 : vector<1x8x8xf32> to vector<8x8xf32>
    %53 = vector.shape_cast %50 : vector<8x8xf32> to vector<1x8x8xf32>
    tpu.vector_store %arg11[%c0_28, %c8, %c0_29], %53 {strides = array<i32>} : memref<1x288x8xf32, #tpu.memory_space<vmem>>, vector<1x8x8xf32>,
    %cst_30 = arith.constant dense<0.000000e+00> : vector<8x128xf32>
    %54 = tpu.matmul %50, %37, %cst_30 {dimension_numbers = #tpu.dot_dimension_numbers<[1], [0], [0], [1], [0, 0, 1, 1], [], []>} : vector<8x8xf32>, vector<8x128xf32>, vector<8x128xf32> -> vector<8x128xf32>
    %55 = vector.extract_strided_slice %14 {offsets = [0, 256], sizes = [8, 128], strides = [1, 1]} : vector<8x2304xf32> to vector<8x128xf32>
    %56 = vector.extract_strided_slice %14 {offsets = [0, 1024], sizes = [8, 128], strides = [1, 1]} : vector<8x2304xf32> to vector<8x128xf32>
    %57 = vector.extract_strided_slice %14 {offsets = [0, 1792], sizes = [8, 128], strides = [1, 1]} : vector<8x2304xf32> to vector<8x128xf32>
    %cst_31 = arith.constant dense<0.000000e+00> : vector<8x8xf32>
    %58 = tpu.matmul %55, %56, %cst_31 {dimension_numbers = #tpu.dot_dimension_numbers<[1], [1], [0], [0], [0, 0, 1, 0], [], []>} : vector<8x128xf32>, vector<8x128xf32>, vector<8x8xf32> -> vector<8x8xf32>
    %cst_32 = arith.constant 0.0883883461 : f32
    %59 = vector.broadcast %cst_32 : f32 to vector<8x8xf32>
    %60 = arith.mulf %58, %59 : vector<8x8xf32>
    %cst_33 = arith.constant dense<0xFF800000> : vector<8xf32>
    %61 = vector.multi_reduction <maximumf>, %60, %cst_33 [1] : vector<8x8xf32> to vector<8xf32>
    %62 = vector.shape_cast %61 : vector<8xf32> to vector<8x1xf32>
    %63 = vector.broadcast %62 : vector<8x1xf32> to vector<8x8xf32>
    %64 = arith.subf %60, %63 : vector<8x8xf32>
    %65 = math.exp %64 : vector<8x8xf32>
    %cst_34 = arith.constant dense<0.000000e+00> : vector<8xf32>
    %66 = vector.multi_reduction <add>, %65, %cst_34 [1] : vector<8x8xf32> to vector<8xf32>
    %67 = vector.shape_cast %66 : vector<8xf32> to vector<8x1xf32>
    %68 = tpu.reciprocal %67 {approx = true} : vector<8x1xf32> -> vector<8x1xf32>
    %69 = vector.broadcast %68 : vector<8x1xf32> to vector<8x8xf32>
    %70 = arith.mulf %65, %69 : vector<8x8xf32>
    %c0_35 = arith.constant 0 : index
    %c16 = arith.constant 16 : index
    %c0_36 = arith.constant 0 : index
    %71 = vector.load %arg11[%c0_35, %c16, %c0_36] : memref<1x288x8xf32, #tpu.memory_space<vmem>>, vector<1x8x8xf32>
    %72 = vector.shape_cast %71 : vector<1x8x8xf32> to vector<8x8xf32>
    %73 = vector.shape_cast %70 : vector<8x8xf32> to vector<1x8x8xf32>
    tpu.vector_store %arg11[%c0_35, %c16, %c0_36], %73 {strides = array<i32>} : memref<1x288x8xf32, #tpu.memory_space<vmem>>, vector<1x8x8xf32>,
    %cst_37 = arith.constant dense<0.000000e+00> : vector<8x128xf32>
    %74 = tpu.matmul %70, %57, %cst_37 {dimension_numbers = #tpu.dot_dimension_numbers<[1], [0], [0], [1], [0, 0, 1, 1], [], []>} : vector<8x8xf32>, vector<8x128xf32>, vector<8x128xf32> -> vector<8x128xf32>
    %75 = vector.extract_strided_slice %14 {offsets = [0, 384], sizes = [8, 128], strides = [1, 1]} : vector<8x2304xf32> to vector<8x128xf32>
    %76 = vector.extract_strided_slice %14 {offsets = [0, 1152], sizes = [8, 128], strides = [1, 1]} : vector<8x2304xf32> to vector<8x128xf32>
    %77 = vector.extract_strided_slice %14 {offsets = [0, 1920], sizes = [8, 128], strides = [1, 1]} : vector<8x2304xf32> to vector<8x128xf32>
    %cst_38 = arith.constant dense<0.000000e+00> : vector<8x8xf32>
    %78 = tpu.matmul %75, %76, %cst_38 {dimension_numbers = #tpu.dot_dimension_numbers<[1], [1], [0], [0], [0, 0, 1, 0], [], []>} : vector<8x128xf32>, vector<8x128xf32>, vector<8x8xf32> -> vector<8x8xf32>
    %cst_39 = arith.constant 0.0883883461 : f32
    %79 = vector.broadcast %cst_39 : f32 to vector<8x8xf32>
    %80 = arith.mulf %78, %79 : vector<8x8xf32>
    %cst_40 = arith.constant dense<0xFF800000> : vector<8xf32>
    %81 = vector.multi_reduction <maximumf>, %80, %cst_40 [1] : vector<8x8xf32> to vector<8xf32>
    %82 = vector.shape_cast %81 : vector<8xf32> to vector<8x1xf32>
    %83 = vector.broadcast %82 : vector<8x1xf32> to vector<8x8xf32>
    %84 = arith.subf %80, %83 : vector<8x8xf32>
    %85 = math.exp %84 : vector<8x8xf32>
    %cst_41 = arith.constant dense<0.000000e+00> : vector<8xf32>
    %86 = vector.multi_reduction <add>, %85, %cst_41 [1] : vector<8x8xf32> to vector<8xf32>
    %87 = vector.shape_cast %86 : vector<8xf32> to vector<8x1xf32>
    %88 = tpu.reciprocal %87 {approx = true} : vector<8x1xf32> -> vector<8x1xf32>
    %89 = vector.broadcast %88 : vector<8x1xf32> to vector<8x8xf32>
    %90 = arith.mulf %85, %89 : vector<8x8xf32>
    %c0_42 = arith.constant 0 : index
    %c24 = arith.constant 24 : index
    %c0_43 = arith.constant 0 : index
    %91 = vector.load %arg11[%c0_42, %c24, %c0_43] : memref<1x288x8xf32, #tpu.memory_space<vmem>>, vector<1x8x8xf32>
    %92 = vector.shape_cast %91 : vector<1x8x8xf32> to vector<8x8xf32>
    %93 = vector.shape_cast %90 : vector<8x8xf32> to vector<1x8x8xf32>
    tpu.vector_store %arg11[%c0_42, %c24, %c0_43], %93 {strides = array<i32>} : memref<1x288x8xf32, #tpu.memory_space<vmem>>, vector<1x8x8xf32>,
    %cst_44 = arith.constant dense<0.000000e+00> : vector<8x128xf32>
    %94 = tpu.matmul %90, %77, %cst_44 {dimension_numbers = #tpu.dot_dimension_numbers<[1], [0], [0], [1], [0, 0, 1, 1], [], []>} : vector<8x8xf32>, vector<8x128xf32>, vector<8x128xf32> -> vector<8x128xf32>
    %95 = vector.extract_strided_slice %14 {offsets = [0, 512], sizes = [8, 128], strides = [1, 1]} : vector<8x2304xf32> to vector<8x128xf32>
    %96 = vector.extract_strided_slice %14 {offsets = [0, 1280], sizes = [8, 128], strides = [1, 1]} : vector<8x2304xf32> to vector<8x128xf32>
    %97 = vector.extract_strided_slice %14 {offsets = [0, 2048], sizes = [8, 128], strides = [1, 1]} : vector<8x2304xf32> to vector<8x128xf32>
    %cst_45 = arith.constant dense<0.000000e+00> : vector<8x8xf32>
    %98 = tpu.matmul %95, %96, %cst_45 {dimension_numbers = #tpu.dot_dimension_numbers<[1], [1], [0], [0], [0, 0, 1, 0], [], []>} : vector<8x128xf32>, vector<8x128xf32>, vector<8x8xf32> -> vector<8x8xf32>
    %cst_46 = arith.constant 0.0883883461 : f32
    %99 = vector.broadcast %cst_46 : f32 to vector<8x8xf32>
    %100 = arith.mulf %98, %99 : vector<8x8xf32>
    %cst_47 = arith.constant dense<0xFF800000> : vector<8xf32>
    %101 = vector.multi_reduction <maximumf>, %100, %cst_47 [1] : vector<8x8xf32> to vector<8xf32>
    %102 = vector.shape_cast %101 : vector<8xf32> to vector<8x1xf32>
    %103 = vector.broadcast %102 : vector<8x1xf32> to vector<8x8xf32>
    %104 = arith.subf %100, %103 : vector<8x8xf32>
    %105 = math.exp %104 : vector<8x8xf32>
    %cst_48 = arith.constant dense<0.000000e+00> : vector<8xf32>
    %106 = vector.multi_reduction <add>, %105, %cst_48 [1] : vector<8x8xf32> to vector<8xf32>
    %107 = vector.shape_cast %106 : vector<8xf32> to vector<8x1xf32>
    %108 = tpu.reciprocal %107 {approx = true} : vector<8x1xf32> -> vector<8x1xf32>
    %109 = vector.broadcast %108 : vector<8x1xf32> to vector<8x8xf32>
    %110 = arith.mulf %105, %109 : vector<8x8xf32>
    %c0_49 = arith.constant 0 : index
    %c32 = arith.constant 32 : index
    %c0_50 = arith.constant 0 : index
    %111 = vector.load %arg11[%c0_49, %c32, %c0_50] : memref<1x288x8xf32, #tpu.memory_space<vmem>>, vector<1x8x8xf32>
    %112 = vector.shape_cast %111 : vector<1x8x8xf32> to vector<8x8xf32>
    %113 = vector.shape_cast %110 : vector<8x8xf32> to vector<1x8x8xf32>
    tpu.vector_store %arg11[%c0_49, %c32, %c0_50], %113 {strides = array<i32>} : memref<1x288x8xf32, #tpu.memory_space<vmem>>, vector<1x8x8xf32>,
    %cst_51 = arith.constant dense<0.000000e+00> : vector<8x128xf32>
    %114 = tpu.matmul %110, %97, %cst_51 {dimension_numbers = #tpu.dot_dimension_numbers<[1], [0], [0], [1], [0, 0, 1, 1], [], []>} : vector<8x8xf32>, vector<8x128xf32>, vector<8x128xf32> -> vector<8x128xf32>
    %115 = vector.extract_strided_slice %14 {offsets = [0, 640], sizes = [8, 128], strides = [1, 1]} : vector<8x2304xf32> to vector<8x128xf32>
    %116 = vector.extract_strided_slice %14 {offsets = [0, 1408], sizes = [8, 128], strides = [1, 1]} : vector<8x2304xf32> to vector<8x128xf32>
    %117 = vector.extract_strided_slice %14 {offsets = [0, 2176], sizes = [8, 128], strides = [1, 1]} : vector<8x2304xf32> to vector<8x128xf32>
    %cst_52 = arith.constant dense<0.000000e+00> : vector<8x8xf32>
    %118 = tpu.matmul %115, %116, %cst_52 {dimension_numbers = #tpu.dot_dimension_numbers<[1], [1], [0], [0], [0, 0, 1, 0], [], []>} : vector<8x128xf32>, vector<8x128xf32>, vector<8x8xf32> -> vector<8x8xf32>
    %cst_53 = arith.constant 0.0883883461 : f32
    %119 = vector.broadcast %cst_53 : f32 to vector<8x8xf32>
    %120 = arith.mulf %118, %119 : vector<8x8xf32>
    %cst_54 = arith.constant dense<0xFF800000> : vector<8xf32>
    %121 = vector.multi_reduction <maximumf>, %120, %cst_54 [1] : vector<8x8xf32> to vector<8xf32>
    %122 = vector.shape_cast %121 : vector<8xf32> to vector<8x1xf32>
    %123 = vector.broadcast %122 : vector<8x1xf32> to vector<8x8xf32>
    %124 = arith.subf %120, %123 : vector<8x8xf32>
    %125 = math.exp %124 : vector<8x8xf32>
    %cst_55 = arith.constant dense<0.000000e+00> : vector<8xf32>
    %126 = vector.multi_reduction <add>, %125, %cst_55 [1] : vector<8x8xf32> to vector<8xf32>
    %127 = vector.shape_cast %126 : vector<8xf32> to vector<8x1xf32>
    %128 = tpu.reciprocal %127 {approx = true} : vector<8x1xf32> -> vector<8x1xf32>
    %129 = vector.broadcast %128 : vector<8x1xf32> to vector<8x8xf32>
    %130 = arith.mulf %125, %129 : vector<8x8xf32>
    %c0_56 = arith.constant 0 : index
    %c40 = arith.constant 40 : index
    %c0_57 = arith.constant 0 : index
    %131 = vector.load %arg11[%c0_56, %c40, %c0_57] : memref<1x288x8xf32, #tpu.memory_space<vmem>>, vector<1x8x8xf32>
    %132 = vector.shape_cast %131 : vector<1x8x8xf32> to vector<8x8xf32>
    %133 = vector.shape_cast %130 : vector<8x8xf32> to vector<1x8x8xf32>
    tpu.vector_store %arg11[%c0_56, %c40, %c0_57], %133 {strides = array<i32>} : memref<1x288x8xf32, #tpu.memory_space<vmem>>, vector<1x8x8xf32>,
    %cst_58 = arith.constant dense<0.000000e+00> : vector<8x128xf32>
    %134 = tpu.matmul %130, %117, %cst_58 {dimension_numbers = #tpu.dot_dimension_numbers<[1], [0], [0], [1], [0, 0, 1, 1], [], []>} : vector<8x8xf32>, vector<8x128xf32>, vector<8x128xf32> -> vector<8x128xf32>
    %135 = tpu.concatenate %34, %54, %74, %94, %114, %134 in 1 : vector<8x128xf32>, vector<8x128xf32>, vector<8x128xf32>, vector<8x128xf32>, vector<8x128xf32>, vector<8x128xf32> -> vector<8x768xf32>
    %c0_59 = arith.constant 0 : index
    %c0_60 = arith.constant 0 : index
    %c0_61 = arith.constant 0 : index
    %136 = vector.load %arg7[%c0_59, %c0_60, %c0_61] : memref<6x768x64xf32, #tpu.memory_space<vmem>>, vector<1x768x64xf32>
    %137 = vector.shape_cast %136 : vector<1x768x64xf32> to vector<768x64xf32>
    %cst_62 = arith.constant dense<0.000000e+00> : vector<8x64xf32>
    %138 = tpu.matmul %135, %137, %cst_62 {dimension_numbers = #tpu.dot_dimension_numbers<[1], [0], [0], [1], [0, 0, 1, 1], [], []>} : vector<8x768xf32>, vector<768x64xf32>, vector<8x64xf32> -> vector<8x64xf32>
    %139 = arith.addf %138, %11 : vector<8x64xf32>
    %cst_63 = arith.constant dense<0.000000e+00> : vector<8xf32>
    %140 = vector.multi_reduction <add>, %139, %cst_63 [1] : vector<8x64xf32> to vector<8xf32>
    %141 = vector.shape_cast %140 : vector<8xf32> to vector<8x1xf32>
    %cst_64 = arith.constant 6.400000e+01 : f32
    %142 = vector.broadcast %cst_64 : f32 to vector<8x1xf32>
    %143 = arith.divf %141, %142 : vector<8x1xf32>
    %144 = vector.broadcast %143 : vector<8x1xf32> to vector<8x64xf32>
    %145 = arith.subf %139, %144 : vector<8x64xf32>
    %146 = arith.mulf %145, %145 : vector<8x64xf32>
    %cst_65 = arith.constant dense<0.000000e+00> : vector<8xf32>
    %147 = vector.multi_reduction <add>, %146, %cst_65 [1] : vector<8x64xf32> to vector<8xf32>
    %148 = vector.shape_cast %147 : vector<8xf32> to vector<8x1xf32>
    %cst_66 = arith.constant 6.400000e+01 : f32
    %149 = vector.broadcast %cst_66 : f32 to vector<8x1xf32>
    %150 = arith.divf %148, %149 : vector<8x1xf32>
    %151 = vector.broadcast %143 : vector<8x1xf32> to vector<8x64xf32>
    %152 = arith.subf %139, %151 : vector<8x64xf32>
    %cst_67 = arith.constant 9.99999974E-6 : f32
    %153 = vector.broadcast %cst_67 : f32 to vector<8x1xf32>
    %154 = arith.addf %150, %153 : vector<8x1xf32>
    %155 = math.rsqrt %154 : vector<8x1xf32>
    %156 = vector.broadcast %155 : vector<8x1xf32> to vector<8x64xf32>
    %157 = arith.mulf %152, %156 : vector<8x64xf32>
    %c0_68 = arith.constant 0 : index
    %c0_69 = arith.constant 0 : index
    %c0_70 = arith.constant 0 : index
    %158 = vector.load %arg8[%c0_68, %c0_69, %c0_70] : memref<6x64x256xf32, #tpu.memory_space<vmem>>, vector<1x64x256xf32>
    %159 = vector.shape_cast %158 : vector<1x64x256xf32> to vector<64x256xf32>
    %cst_71 = arith.constant dense<0.000000e+00> : vector<8x256xf32>
    %160 = tpu.matmul %157, %159, %cst_71 {dimension_numbers = #tpu.dot_dimension_numbers<[1], [0], [0], [1], [0, 0, 1, 1], [], []>} : vector<8x64xf32>, vector<64x256xf32>, vector<8x256xf32> -> vector<8x256xf32>
    %cst_72 = arith.constant 0.000000e+00 : f32
    %161 = vector.broadcast %cst_72 : f32 to vector<8x256xf32>
    %162 = arith.maximumf %160, %161 : vector<8x256xf32>
    %c0_73 = arith.constant 0 : index
    %c0_74 = arith.constant 0 : index
    %c0_75 = arith.constant 0 : index
    %163 = vector.load %arg9[%c0_73, %c0_74, %c0_75] : memref<6x256x64xf32, #tpu.memory_space<vmem>>, vector<1x256x64xf32>
    %164 = vector.shape_cast %163 : vector<1x256x64xf32> to vector<256x64xf32>
    %cst_76 = arith.constant dense<0.000000e+00> : vector<8x64xf32>
    %165 = tpu.matmul %162, %164, %cst_76 {dimension_numbers = #tpu.dot_dimension_numbers<[1], [0], [0], [1], [0, 0, 1, 1], [], []>} : vector<8x256xf32>, vector<256x64xf32>, vector<8x64xf32> -> vector<8x64xf32>
    %166 = arith.addf %165, %157 : vector<8x64xf32>
    %cst_77 = arith.constant dense<0.000000e+00> : vector<8xf32>
    %167 = vector.multi_reduction <add>, %166, %cst_77 [1] : vector<8x64xf32> to vector<8xf32>
    %168 = vector.shape_cast %167 : vector<8xf32> to vector<8x1xf32>
    %cst_78 = arith.constant 6.400000e+01 : f32
    %169 = vector.broadcast %cst_78 : f32 to vector<8x1xf32>
    %170 = arith.divf %168, %169 : vector<8x1xf32>
    %171 = vector.broadcast %170 : vector<8x1xf32> to vector<8x64xf32>
    %172 = arith.subf %166, %171 : vector<8x64xf32>
    %173 = arith.mulf %172, %172 : vector<8x64xf32>
    %cst_79 = arith.constant dense<0.000000e+00> : vector<8xf32>
    %174 = vector.multi_reduction <add>, %173, %cst_79 [1] : vector<8x64xf32> to vector<8xf32>
    %175 = vector.shape_cast %174 : vector<8xf32> to vector<8x1xf32>
    %cst_80 = arith.constant 6.400000e+01 : f32
    %176 = vector.broadcast %cst_80 : f32 to vector<8x1xf32>
    %177 = arith.divf %175, %176 : vector<8x1xf32>
    %178 = vector.broadcast %170 : vector<8x1xf32> to vector<8x64xf32>
    %179 = arith.subf %166, %178 : vector<8x64xf32>
    %cst_81 = arith.constant 9.99999974E-6 : f32
    %180 = vector.broadcast %cst_81 : f32 to vector<8x1xf32>
    %181 = arith.addf %177, %180 : vector<8x1xf32>
    %182 = math.rsqrt %181 : vector<8x1xf32>
    %183 = vector.broadcast %182 : vector<8x1xf32> to vector<8x64xf32>
    %184 = arith.mulf %179, %183 : vector<8x64xf32>
    %c1 = arith.constant 1 : index
    %c0_82 = arith.constant 0 : index
    %c0_83 = arith.constant 0 : index
    %185 = vector.load %arg6[%c1, %c0_82, %c0_83] : memref<6x64x2304xf32, #tpu.memory_space<vmem>>, vector<1x64x2304xf32>
    %186 = vector.shape_cast %185 : vector<1x64x2304xf32> to vector<64x2304xf32>
    %cst_84 = arith.constant dense<0.000000e+00> : vector<8x2304xf32>
    %187 = tpu.matmul %184, %186, %cst_84 {dimension_numbers = #tpu.dot_dimension_numbers<[1], [0], [0], [1], [0, 0, 1, 1], [], []>} : vector<8x64xf32>, vector<64x2304xf32>, vector<8x2304xf32> -> vector<8x2304xf32>
    %188 = vector.extract_strided_slice %187 {offsets = [0, 0], sizes = [8, 128], strides = [1, 1]} : vector<8x2304xf32> to vector<8x128xf32>
    %189 = vector.extract_strided_slice %187 {offsets = [0, 768], sizes = [8, 128], strides = [1, 1]} : vector<8x2304xf32> to vector<8x128xf32>
    %190 = vector.extract_strided_slice %187 {offsets = [0, 1536], sizes = [8, 128], strides = [1, 1]} : vector<8x2304xf32> to vector<8x128xf32>
    %cst_85 = arith.constant dense<0.000000e+00> : vector<8x8xf32>
    %191 = tpu.matmul %188, %189, %cst_85 {dimension_numbers = #tpu.dot_dimension_numbers<[1], [1], [0], [0], [0, 0, 1, 0], [], []>} : vector<8x128xf32>, vector<8x128xf32>, vector<8x8xf32> -> vector<8x8xf32>
    %cst_86 = arith.constant 0.0883883461 : f32
    %192 = vector.broadcast %cst_86 : f32 to vector<8x8xf32>
    %193 = arith.mulf %191, %192 : vector<8x8xf32>
    %cst_87 = arith.constant dense<0xFF800000> : vector<8xf32>
    %194 = vector.multi_reduction <maximumf>, %193, %cst_87 [1] : vector<8x8xf32> to vector<8xf32>
    %195 = vector.shape_cast %194 : vector<8xf32> to vector<8x1xf32>
    %196 = vector.broadcast %195 : vector<8x1xf32> to vector<8x8xf32>
    %197 = arith.subf %193, %196 : vector<8x8xf32>
    %198 = math.exp %197 : vector<8x8xf32>
    %cst_88 = arith.constant dense<0.000000e+00> : vector<8xf32>
    %199 = vector.multi_reduction <add>, %198, %cst_88 [1] : vector<8x8xf32> to vector<8xf32>
    %200 = vector.shape_cast %199 : vector<8xf32> to vector<8x1xf32>
    %201 = tpu.reciprocal %200 {approx = true} : vector<8x1xf32> -> vector<8x1xf32>
    %202 = vector.broadcast %201 : vector<8x1xf32> to vector<8x8xf32>
    %203 = arith.mulf %198, %202 : vector<8x8xf32>
    %c0_89 = arith.constant 0 : index
    %c48 = arith.constant 48 : index
    %c0_90 = arith.constant 0 : index
    %204 = vector.load %arg11[%c0_89, %c48, %c0_90] : memref<1x288x8xf32, #tpu.memory_space<vmem>>, vector<1x8x8xf32>
    %205 = vector.shape_cast %204 : vector<1x8x8xf32> to vector<8x8xf32>
    %206 = vector.shape_cast %203 : vector<8x8xf32> to vector<1x8x8xf32>
    tpu.vector_store %arg11[%c0_89, %c48, %c0_90], %206 {strides = array<i32>} : memref<1x288x8xf32, #tpu.memory_space<vmem>>, vector<1x8x8xf32>,
    %cst_91 = arith.constant dense<0.000000e+00> : vector<8x128xf32>
    %207 = tpu.matmul %203, %190, %cst_91 {dimension_numbers = #tpu.dot_dimension_numbers<[1], [0], [0], [1], [0, 0, 1, 1], [], []>} : vector<8x8xf32>, vector<8x128xf32>, vector<8x128xf32> -> vector<8x128xf32>
    %208 = vector.extract_strided_slice %187 {offsets = [0, 128], sizes = [8, 128], strides = [1, 1]} : vector<8x2304xf32> to vector<8x128xf32>
    %209 = vector.extract_strided_slice %187 {offsets = [0, 896], sizes = [8, 128], strides = [1, 1]} : vector<8x2304xf32> to vector<8x128xf32>
    %210 = vector.extract_strided_slice %187 {offsets = [0, 1664], sizes = [8, 128], strides = [1, 1]} : vector<8x2304xf32> to vector<8x128xf32>
    %cst_92 = arith.constant dense<0.000000e+00> : vector<8x8xf32>
    %211 = tpu.matmul %208, %209, %cst_92 {dimension_numbers = #tpu.dot_dimension_numbers<[1], [1], [0], [0], [0, 0, 1, 0], [], []>} : vector<8x128xf32>, vector<8x128xf32>, vector<8x8xf32> -> vector<8x8xf32>
    %cst_93 = arith.constant 0.0883883461 : f32
    %212 = vector.broadcast %cst_93 : f32 to vector<8x8xf32>
    %213 = arith.mulf %211, %212 : vector<8x8xf32>
    %cst_94 = arith.constant dense<0xFF800000> : vector<8xf32>
    %214 = vector.multi_reduction <maximumf>, %213, %cst_94 [1] : vector<8x8xf32> to vector<8xf32>
    %215 = vector.shape_cast %214 : vector<8xf32> to vector<8x1xf32>
    %216 = vector.broadcast %215 : vector<8x1xf32> to vector<8x8xf32>
    %217 = arith.subf %213, %216 : vector<8x8xf32>
    %218 = math.exp %217 : vector<8x8xf32>
    %cst_95 = arith.constant dense<0.000000e+00> : vector<8xf32>
    %219 = vector.multi_reduction <add>, %218, %cst_95 [1] : vector<8x8xf32> to vector<8xf32>
    %220 = vector.shape_cast %219 : vector<8xf32> to vector<8x1xf32>
    %221 = tpu.reciprocal %220 {approx = true} : vector<8x1xf32> -> vector<8x1xf32>
    %222 = vector.broadcast %221 : vector<8x1xf32> to vector<8x8xf32>
    %223 = arith.mulf %218, %222 : vector<8x8xf32>
    %c0_96 = arith.constant 0 : index
    %c56 = arith.constant 56 : index
    %c0_97 = arith.constant 0 : index
    %224 = vector.load %arg11[%c0_96, %c56, %c0_97] : memref<1x288x8xf32, #tpu.memory_space<vmem>>, vector<1x8x8xf32>
    %225 = vector.shape_cast %224 : vector<1x8x8xf32> to vector<8x8xf32>
    %226 = vector.shape_cast %223 : vector<8x8xf32> to vector<1x8x8xf32>
    tpu.vector_store %arg11[%c0_96, %c56, %c0_97], %226 {strides = array<i32>} : memref<1x288x8xf32, #tpu.memory_space<vmem>>, vector<1x8x8xf32>,
    %cst_98 = arith.constant dense<0.000000e+00> : vector<8x128xf32>
    %227 = tpu.matmul %223, %210, %cst_98 {dimension_numbers = #tpu.dot_dimension_numbers<[1], [0], [0], [1], [0, 0, 1, 1], [], []>} : vector<8x8xf32>, vector<8x128xf32>, vector<8x128xf32> -> vector<8x128xf32>
    %228 = vector.extract_strided_slice %187 {offsets = [0, 256], sizes = [8, 128], strides = [1, 1]} : vector<8x2304xf32> to vector<8x128xf32>
    %229 = vector.extract_strided_slice %187 {offsets = [0, 1024], sizes = [8, 128], strides = [1, 1]} : vector<8x2304xf32> to vector<8x128xf32>
    %230 = vector.extract_strided_slice %187 {offsets = [0, 1792], sizes = [8, 128], strides = [1, 1]} : vector<8x2304xf32> to vector<8x128xf32>
    %cst_99 = arith.constant dense<0.000000e+00> : vector<8x8xf32>
    %231 = tpu.matmul %228, %229, %cst_99 {dimension_numbers = #tpu.dot_dimension_numbers<[1], [1], [0], [0], [0, 0, 1, 0], [], []>} : vector<8x128xf32>, vector<8x128xf32>, vector<8x8xf32> -> vector<8x8xf32>
    %cst_100 = arith.constant 0.0883883461 : f32
    %232 = vector.broadcast %cst_100 : f32 to vector<8x8xf32>
    %233 = arith.mulf %231, %232 : vector<8x8xf32>
    %cst_101 = arith.constant dense<0xFF800000> : vector<8xf32>
    %234 = vector.multi_reduction <maximumf>, %233, %cst_101 [1] : vector<8x8xf32> to vector<8xf32>
    %235 = vector.shape_cast %234 : vector<8xf32> to vector<8x1xf32>
    %236 = vector.broadcast %235 : vector<8x1xf32> to vector<8x8xf32>
    %237 = arith.subf %233, %236 : vector<8x8xf32>
    %238 = math.exp %237 : vector<8x8xf32>
    %cst_102 = arith.constant dense<0.000000e+00> : vector<8xf32>
    %239 = vector.multi_reduction <add>, %238, %cst_102 [1] : vector<8x8xf32> to vector<8xf32>
    %240 = vector.shape_cast %239 : vector<8xf32> to vector<8x1xf32>
    %241 = tpu.reciprocal %240 {approx = true} : vector<8x1xf32> -> vector<8x1xf32>
    %242 = vector.broadcast %241 : vector<8x1xf32> to vector<8x8xf32>
    %243 = arith.mulf %238, %242 : vector<8x8xf32>
    %c0_103 = arith.constant 0 : index
    %c64 = arith.constant 64 : index
    %c0_104 = arith.constant 0 : index
    %244 = vector.load %arg11[%c0_103, %c64, %c0_104] : memref<1x288x8xf32, #tpu.memory_space<vmem>>, vector<1x8x8xf32>
    %245 = vector.shape_cast %244 : vector<1x8x8xf32> to vector<8x8xf32>
    %246 = vector.shape_cast %243 : vector<8x8xf32> to vector<1x8x8xf32>
    tpu.vector_store %arg11[%c0_103, %c64, %c0_104], %246 {strides = array<i32>} : memref<1x288x8xf32, #tpu.memory_space<vmem>>, vector<1x8x8xf32>,
    %cst_105 = arith.constant dense<0.000000e+00> : vector<8x128xf32>
    %247 = tpu.matmul %243, %230, %cst_105 {dimension_numbers = #tpu.dot_dimension_numbers<[1], [0], [0], [1], [0, 0, 1, 1], [], []>} : vector<8x8xf32>, vector<8x128xf32>, vector<8x128xf32> -> vector<8x128xf32>
    %248 = vector.extract_strided_slice %187 {offsets = [0, 384], sizes = [8, 128], strides = [1, 1]} : vector<8x2304xf32> to vector<8x128xf32>
    %249 = vector.extract_strided_slice %187 {offsets = [0, 1152], sizes = [8, 128], strides = [1, 1]} : vector<8x2304xf32> to vector<8x128xf32>
    %250 = vector.extract_strided_slice %187 {offsets = [0, 1920], sizes = [8, 128], strides = [1, 1]} : vector<8x2304xf32> to vector<8x128xf32>
    %cst_106 = arith.constant dense<0.000000e+00> : vector<8x8xf32>
    %251 = tpu.matmul %248, %249, %cst_106 {dimension_numbers = #tpu.dot_dimension_numbers<[1], [1], [0], [0], [0, 0, 1, 0], [], []>} : vector<8x128xf32>, vector<8x128xf32>, vector<8x8xf32> -> vector<8x8xf32>
    %cst_107 = arith.constant 0.0883883461 : f32
    %252 = vector.broadcast %cst_107 : f32 to vector<8x8xf32>
    %253 = arith.mulf %251, %252 : vector<8x8xf32>
    %cst_108 = arith.constant dense<0xFF800000> : vector<8xf32>
    %254 = vector.multi_reduction <maximumf>, %253, %cst_108 [1] : vector<8x8xf32> to vector<8xf32>
    %255 = vector.shape_cast %254 : vector<8xf32> to vector<8x1xf32>
    %256 = vector.broadcast %255 : vector<8x1xf32> to vector<8x8xf32>
    %257 = arith.subf %253, %256 : vector<8x8xf32>
    %258 = math.exp %257 : vector<8x8xf32>
    %cst_109 = arith.constant dense<0.000000e+00> : vector<8xf32>
    %259 = vector.multi_reduction <add>, %258, %cst_109 [1] : vector<8x8xf32> to vector<8xf32>
    %260 = vector.shape_cast %259 : vector<8xf32> to vector<8x1xf32>
    %261 = tpu.reciprocal %260 {approx = true} : vector<8x1xf32> -> vector<8x1xf32>
    %262 = vector.broadcast %261 : vector<8x1xf32> to vector<8x8xf32>
    %263 = arith.mulf %258, %262 : vector<8x8xf32>
    %c0_110 = arith.constant 0 : index
    %c72 = arith.constant 72 : index
    %c0_111 = arith.constant 0 : index
    %264 = vector.load %arg11[%c0_110, %c72, %c0_111] : memref<1x288x8xf32, #tpu.memory_space<vmem>>, vector<1x8x8xf32>
    %265 = vector.shape_cast %264 : vector<1x8x8xf32> to vector<8x8xf32>
    %266 = vector.shape_cast %263 : vector<8x8xf32> to vector<1x8x8xf32>
    tpu.vector_store %arg11[%c0_110, %c72, %c0_111], %266 {strides = array<i32>} : memref<1x288x8xf32, #tpu.memory_space<vmem>>, vector<1x8x8xf32>,
    %cst_112 = arith.constant dense<0.000000e+00> : vector<8x128xf32>
    %267 = tpu.matmul %263, %250, %cst_112 {dimension_numbers = #tpu.dot_dimension_numbers<[1], [0], [0], [1], [0, 0, 1, 1], [], []>} : vector<8x8xf32>, vector<8x128xf32>, vector<8x128xf32> -> vector<8x128xf32>
    %268 = vector.extract_strided_slice %187 {offsets = [0, 512], sizes = [8, 128], strides = [1, 1]} : vector<8x2304xf32> to vector<8x128xf32>
    %269 = vector.extract_strided_slice %187 {offsets = [0, 1280], sizes = [8, 128], strides = [1, 1]} : vector<8x2304xf32> to vector<8x128xf32>
    %270 = vector.extract_strided_slice %187 {offsets = [0, 2048], sizes = [8, 128], strides = [1, 1]} : vector<8x2304xf32> to vector<8x128xf32>
    %cst_113 = arith.constant dense<0.000000e+00> : vector<8x8xf32>
    %271 = tpu.matmul %268, %269, %cst_113 {dimension_numbers = #tpu.dot_dimension_numbers<[1], [1], [0], [0], [0, 0, 1, 0], [], []>} : vector<8x128xf32>, vector<8x128xf32>, vector<8x8xf32> -> vector<8x8xf32>
    %cst_114 = arith.constant 0.0883883461 : f32
    %272 = vector.broadcast %cst_114 : f32 to vector<8x8xf32>
    %273 = arith.mulf %271, %272 : vector<8x8xf32>
    %cst_115 = arith.constant dense<0xFF800000> : vector<8xf32>
    %274 = vector.multi_reduction <maximumf>, %273, %cst_115 [1] : vector<8x8xf32> to vector<8xf32>
    %275 = vector.shape_cast %274 : vector<8xf32> to vector<8x1xf32>
    %276 = vector.broadcast %275 : vector<8x1xf32> to vector<8x8xf32>
    %277 = arith.subf %273, %276 : vector<8x8xf32>
    %278 = math.exp %277 : vector<8x8xf32>
    %cst_116 = arith.constant dense<0.000000e+00> : vector<8xf32>
    %279 = vector.multi_reduction <add>, %278, %cst_116 [1] : vector<8x8xf32> to vector<8xf32>
    %280 = vector.shape_cast %279 : vector<8xf32> to vector<8x1xf32>
    %281 = tpu.reciprocal %280 {approx = true} : vector<8x1xf32> -> vector<8x1xf32>
    %282 = vector.broadcast %281 : vector<8x1xf32> to vector<8x8xf32>
    %283 = arith.mulf %278, %282 : vector<8x8xf32>
    %c0_117 = arith.constant 0 : index
    %c80 = arith.constant 80 : index
    %c0_118 = arith.constant 0 : index
    %284 = vector.load %arg11[%c0_117, %c80, %c0_118] : memref<1x288x8xf32, #tpu.memory_space<vmem>>, vector<1x8x8xf32>
    %285 = vector.shape_cast %284 : vector<1x8x8xf32> to vector<8x8xf32>
    %286 = vector.shape_cast %283 : vector<8x8xf32> to vector<1x8x8xf32>
    tpu.vector_store %arg11[%c0_117, %c80, %c0_118], %286 {strides = array<i32>} : memref<1x288x8xf32, #tpu.memory_space<vmem>>, vector<1x8x8xf32>,
    %cst_119 = arith.constant dense<0.000000e+00> : vector<8x128xf32>
    %287 = tpu.matmul %283, %270, %cst_119 {dimension_numbers = #tpu.dot_dimension_numbers<[1], [0], [0], [1], [0, 0, 1, 1], [], []>} : vector<8x8xf32>, vector<8x128xf32>, vector<8x128xf32> -> vector<8x128xf32>
    %288 = vector.extract_strided_slice %187 {offsets = [0, 640], sizes = [8, 128], strides = [1, 1]} : vector<8x2304xf32> to vector<8x128xf32>
    %289 = vector.extract_strided_slice %187 {offsets = [0, 1408], sizes = [8, 128], strides = [1, 1]} : vector<8x2304xf32> to vector<8x128xf32>
    %290 = vector.extract_strided_slice %187 {offsets = [0, 2176], sizes = [8, 128], strides = [1, 1]} : vector<8x2304xf32> to vector<8x128xf32>
    %cst_120 = arith.constant dense<0.000000e+00> : vector<8x8xf32>
    %291 = tpu.matmul %288, %289, %cst_120 {dimension_numbers = #tpu.dot_dimension_numbers<[1], [1], [0], [0], [0, 0, 1, 0], [], []>} : vector<8x128xf32>, vector<8x128xf32>, vector<8x8xf32> -> vector<8x8xf32>
    %cst_121 = arith.constant 0.0883883461 : f32
    %292 = vector.broadcast %cst_121 : f32 to vector<8x8xf32>
    %293 = arith.mulf %291, %292 : vector<8x8xf32>
    %cst_122 = arith.constant dense<0xFF800000> : vector<8xf32>
    %294 = vector.multi_reduction <maximumf>, %293, %cst_122 [1] : vector<8x8xf32> to vector<8xf32>
    %295 = vector.shape_cast %294 : vector<8xf32> to vector<8x1xf32>
    %296 = vector.broadcast %295 : vector<8x1xf32> to vector<8x8xf32>
    %297 = arith.subf %293, %296 : vector<8x8xf32>
    %298 = math.exp %297 : vector<8x8xf32>
    %cst_123 = arith.constant dense<0.000000e+00> : vector<8xf32>
    %299 = vector.multi_reduction <add>, %298, %cst_123 [1] : vector<8x8xf32> to vector<8xf32>
    %300 = vector.shape_cast %299 : vector<8xf32> to vector<8x1xf32>
    %301 = tpu.reciprocal %300 {approx = true} : vector<8x1xf32> -> vector<8x1xf32>
    %302 = vector.broadcast %301 : vector<8x1xf32> to vector<8x8xf32>
    %303 = arith.mulf %298, %302 : vector<8x8xf32>
    %c0_124 = arith.constant 0 : index
    %c88 = arith.constant 88 : index
    %c0_125 = arith.constant 0 : index
    %304 = vector.load %arg11[%c0_124, %c88, %c0_125] : memref<1x288x8xf32, #tpu.memory_space<vmem>>, vector<1x8x8xf32>
    %305 = vector.shape_cast %304 : vector<1x8x8xf32> to vector<8x8xf32>
    %306 = vector.shape_cast %303 : vector<8x8xf32> to vector<1x8x8xf32>
    tpu.vector_store %arg11[%c0_124, %c88, %c0_125], %306 {strides = array<i32>} : memref<1x288x8xf32, #tpu.memory_space<vmem>>, vector<1x8x8xf32>,
    %cst_126 = arith.constant dense<0.000000e+00> : vector<8x128xf32>
    %307 = tpu.matmul %303, %290, %cst_126 {dimension_numbers = #tpu.dot_dimension_numbers<[1], [0], [0], [1], [0, 0, 1, 1], [], []>} : vector<8x8xf32>, vector<8x128xf32>, vector<8x128xf32> -> vector<8x128xf32>
    %308 = tpu.concatenate %207, %227, %247, %267, %287, %307 in 1 : vector<8x128xf32>, vector<8x128xf32>, vector<8x128xf32>, vector<8x128xf32>, vector<8x128xf32>, vector<8x128xf32> -> vector<8x768xf32>
    %c1_127 = arith.constant 1 : index
    %c0_128 = arith.constant 0 : index
    %c0_129 = arith.constant 0 : index
    %309 = vector.load %arg7[%c1_127, %c0_128, %c0_129] : memref<6x768x64xf32, #tpu.memory_space<vmem>>, vector<1x768x64xf32>
    %310 = vector.shape_cast %309 : vector<1x768x64xf32> to vector<768x64xf32>
    %cst_130 = arith.constant dense<0.000000e+00> : vector<8x64xf32>
    %311 = tpu.matmul %308, %310, %cst_130 {dimension_numbers = #tpu.dot_dimension_numbers<[1], [0], [0], [1], [0, 0, 1, 1], [], []>} : vector<8x768xf32>, vector<768x64xf32>, vector<8x64xf32> -> vector<8x64xf32>
    %312 = arith.addf %311, %184 : vector<8x64xf32>
    %cst_131 = arith.constant dense<0.000000e+00> : vector<8xf32>
    %313 = vector.multi_reduction <add>, %312, %cst_131 [1] : vector<8x64xf32> to vector<8xf32>
    %314 = vector.shape_cast %313 : vector<8xf32> to vector<8x1xf32>
    %cst_132 = arith.constant 6.400000e+01 : f32
    %315 = vector.broadcast %cst_132 : f32 to vector<8x1xf32>
    %316 = arith.divf %314, %315 : vector<8x1xf32>
    %317 = vector.broadcast %316 : vector<8x1xf32> to vector<8x64xf32>
    %318 = arith.subf %312, %317 : vector<8x64xf32>
    %319 = arith.mulf %318, %318 : vector<8x64xf32>
    %cst_133 = arith.constant dense<0.000000e+00> : vector<8xf32>
    %320 = vector.multi_reduction <add>, %319, %cst_133 [1] : vector<8x64xf32> to vector<8xf32>
    %321 = vector.shape_cast %320 : vector<8xf32> to vector<8x1xf32>
    %cst_134 = arith.constant 6.400000e+01 : f32
    %322 = vector.broadcast %cst_134 : f32 to vector<8x1xf32>
    %323 = arith.divf %321, %322 : vector<8x1xf32>
    %324 = vector.broadcast %316 : vector<8x1xf32> to vector<8x64xf32>
    %325 = arith.subf %312, %324 : vector<8x64xf32>
    %cst_135 = arith.constant 9.99999974E-6 : f32
    %326 = vector.broadcast %cst_135 : f32 to vector<8x1xf32>
    %327 = arith.addf %323, %326 : vector<8x1xf32>
    %328 = math.rsqrt %327 : vector<8x1xf32>
    %329 = vector.broadcast %328 : vector<8x1xf32> to vector<8x64xf32>
    %330 = arith.mulf %325, %329 : vector<8x64xf32>
    %c1_136 = arith.constant 1 : index
    %c0_137 = arith.constant 0 : index
    %c0_138 = arith.constant 0 : index
    %331 = vector.load %arg8[%c1_136, %c0_137, %c0_138] : memref<6x64x256xf32, #tpu.memory_space<vmem>>, vector<1x64x256xf32>
    %332 = vector.shape_cast %331 : vector<1x64x256xf32> to vector<64x256xf32>
    %cst_139 = arith.constant dense<0.000000e+00> : vector<8x256xf32>
    %333 = tpu.matmul %330, %332, %cst_139 {dimension_numbers = #tpu.dot_dimension_numbers<[1], [0], [0], [1], [0, 0, 1, 1], [], []>} : vector<8x64xf32>, vector<64x256xf32>, vector<8x256xf32> -> vector<8x256xf32>
    %cst_140 = arith.constant 0.000000e+00 : f32
    %334 = vector.broadcast %cst_140 : f32 to vector<8x256xf32>
    %335 = arith.maximumf %333, %334 : vector<8x256xf32>
    %c1_141 = arith.constant 1 : index
    %c0_142 = arith.constant 0 : index
    %c0_143 = arith.constant 0 : index
    %336 = vector.load %arg9[%c1_141, %c0_142, %c0_143] : memref<6x256x64xf32, #tpu.memory_space<vmem>>, vector<1x256x64xf32>
    %337 = vector.shape_cast %336 : vector<1x256x64xf32> to vector<256x64xf32>
    %cst_144 = arith.constant dense<0.000000e+00> : vector<8x64xf32>
    %338 = tpu.matmul %335, %337, %cst_144 {dimension_numbers = #tpu.dot_dimension_numbers<[1], [0], [0], [1], [0, 0, 1, 1], [], []>} : vector<8x256xf32>, vector<256x64xf32>, vector<8x64xf32> -> vector<8x64xf32>
    %339 = arith.addf %338, %330 : vector<8x64xf32>
    %cst_145 = arith.constant dense<0.000000e+00> : vector<8xf32>
    %340 = vector.multi_reduction <add>, %339, %cst_145 [1] : vector<8x64xf32> to vector<8xf32>
    %341 = vector.shape_cast %340 : vector<8xf32> to vector<8x1xf32>
    %cst_146 = arith.constant 6.400000e+01 : f32
    %342 = vector.broadcast %cst_146 : f32 to vector<8x1xf32>
    %343 = arith.divf %341, %342 : vector<8x1xf32>
    %344 = vector.broadcast %343 : vector<8x1xf32> to vector<8x64xf32>
    %345 = arith.subf %339, %344 : vector<8x64xf32>
    %346 = arith.mulf %345, %345 : vector<8x64xf32>
    %cst_147 = arith.constant dense<0.000000e+00> : vector<8xf32>
    %347 = vector.multi_reduction <add>, %346, %cst_147 [1] : vector<8x64xf32> to vector<8xf32>
    %348 = vector.shape_cast %347 : vector<8xf32> to vector<8x1xf32>
    %cst_148 = arith.constant 6.400000e+01 : f32
    %349 = vector.broadcast %cst_148 : f32 to vector<8x1xf32>
    %350 = arith.divf %348, %349 : vector<8x1xf32>
    %351 = vector.broadcast %343 : vector<8x1xf32> to vector<8x64xf32>
    %352 = arith.subf %339, %351 : vector<8x64xf32>
    %cst_149 = arith.constant 9.99999974E-6 : f32
    %353 = vector.broadcast %cst_149 : f32 to vector<8x1xf32>
    %354 = arith.addf %350, %353 : vector<8x1xf32>
    %355 = math.rsqrt %354 : vector<8x1xf32>
    %356 = vector.broadcast %355 : vector<8x1xf32> to vector<8x64xf32>
    %357 = arith.mulf %352, %356 : vector<8x64xf32>
    %c2 = arith.constant 2 : index
    %c0_150 = arith.constant 0 : index
    %c0_151 = arith.constant 0 : index
    %358 = vector.load %arg6[%c2, %c0_150, %c0_151] : memref<6x64x2304xf32, #tpu.memory_space<vmem>>, vector<1x64x2304xf32>
    %359 = vector.shape_cast %358 : vector<1x64x2304xf32> to vector<64x2304xf32>
    %cst_152 = arith.constant dense<0.000000e+00> : vector<8x2304xf32>
    %360 = tpu.matmul %357, %359, %cst_152 {dimension_numbers = #tpu.dot_dimension_numbers<[1], [0], [0], [1], [0, 0, 1, 1], [], []>} : vector<8x64xf32>, vector<64x2304xf32>, vector<8x2304xf32> -> vector<8x2304xf32>
    %361 = vector.extract_strided_slice %360 {offsets = [0, 0], sizes = [8, 128], strides = [1, 1]} : vector<8x2304xf32> to vector<8x128xf32>
    %362 = vector.extract_strided_slice %360 {offsets = [0, 768], sizes = [8, 128], strides = [1, 1]} : vector<8x2304xf32> to vector<8x128xf32>
    %363 = vector.extract_strided_slice %360 {offsets = [0, 1536], sizes = [8, 128], strides = [1, 1]} : vector<8x2304xf32> to vector<8x128xf32>
    %cst_153 = arith.constant dense<0.000000e+00> : vector<8x8xf32>
    %364 = tpu.matmul %361, %362, %cst_153 {dimension_numbers = #tpu.dot_dimension_numbers<[1], [1], [0], [0], [0, 0, 1, 0], [], []>} : vector<8x128xf32>, vector<8x128xf32>, vector<8x8xf32> -> vector<8x8xf32>
    %cst_154 = arith.constant 0.0883883461 : f32
    %365 = vector.broadcast %cst_154 : f32 to vector<8x8xf32>
    %366 = arith.mulf %364, %365 : vector<8x8xf32>
    %cst_155 = arith.constant dense<0xFF800000> : vector<8xf32>
    %367 = vector.multi_reduction <maximumf>, %366, %cst_155 [1] : vector<8x8xf32> to vector<8xf32>
    %368 = vector.shape_cast %367 : vector<8xf32> to vector<8x1xf32>
    %369 = vector.broadcast %368 : vector<8x1xf32> to vector<8x8xf32>
    %370 = arith.subf %366, %369 : vector<8x8xf32>
    %371 = math.exp %370 : vector<8x8xf32>
    %cst_156 = arith.constant dense<0.000000e+00> : vector<8xf32>
    %372 = vector.multi_reduction <add>, %371, %cst_156 [1] : vector<8x8xf32> to vector<8xf32>
    %373 = vector.shape_cast %372 : vector<8xf32> to vector<8x1xf32>
    %374 = tpu.reciprocal %373 {approx = true} : vector<8x1xf32> -> vector<8x1xf32>
    %375 = vector.broadcast %374 : vector<8x1xf32> to vector<8x8xf32>
    %376 = arith.mulf %371, %375 : vector<8x8xf32>
    %c0_157 = arith.constant 0 : index
    %c96 = arith.constant 96 : index
    %c0_158 = arith.constant 0 : index
    %377 = vector.load %arg11[%c0_157, %c96, %c0_158] : memref<1x288x8xf32, #tpu.memory_space<vmem>>, vector<1x8x8xf32>
    %378 = vector.shape_cast %377 : vector<1x8x8xf32> to vector<8x8xf32>
    %379 = vector.shape_cast %376 : vector<8x8xf32> to vector<1x8x8xf32>
    tpu.vector_store %arg11[%c0_157, %c96, %c0_158], %379 {strides = array<i32>} : memref<1x288x8xf32, #tpu.memory_space<vmem>>, vector<1x8x8xf32>,
    %cst_159 = arith.constant dense<0.000000e+00> : vector<8x128xf32>
    %380 = tpu.matmul %376, %363, %cst_159 {dimension_numbers = #tpu.dot_dimension_numbers<[1], [0], [0], [1], [0, 0, 1, 1], [], []>} : vector<8x8xf32>, vector<8x128xf32>, vector<8x128xf32> -> vector<8x128xf32>
    %381 = vector.extract_strided_slice %360 {offsets = [0, 128], sizes = [8, 128], strides = [1, 1]} : vector<8x2304xf32> to vector<8x128xf32>
    %382 = vector.extract_strided_slice %360 {offsets = [0, 896], sizes = [8, 128], strides = [1, 1]} : vector<8x2304xf32> to vector<8x128xf32>
    %383 = vector.extract_strided_slice %360 {offsets = [0, 1664], sizes = [8, 128], strides = [1, 1]} : vector<8x2304xf32> to vector<8x128xf32>
    %cst_160 = arith.constant dense<0.000000e+00> : vector<8x8xf32>
    %384 = tpu.matmul %381, %382, %cst_160 {dimension_numbers = #tpu.dot_dimension_numbers<[1], [1], [0], [0], [0, 0, 1, 0], [], []>} : vector<8x128xf32>, vector<8x128xf32>, vector<8x8xf32> -> vector<8x8xf32>
    %cst_161 = arith.constant 0.0883883461 : f32
    %385 = vector.broadcast %cst_161 : f32 to vector<8x8xf32>
    %386 = arith.mulf %384, %385 : vector<8x8xf32>
    %cst_162 = arith.constant dense<0xFF800000> : vector<8xf32>
    %387 = vector.multi_reduction <maximumf>, %386, %cst_162 [1] : vector<8x8xf32> to vector<8xf32>
    %388 = vector.shape_cast %387 : vector<8xf32> to vector<8x1xf32>
    %389 = vector.broadcast %388 : vector<8x1xf32> to vector<8x8xf32>
    %390 = arith.subf %386, %389 : vector<8x8xf32>
    %391 = math.exp %390 : vector<8x8xf32>
    %cst_163 = arith.constant dense<0.000000e+00> : vector<8xf32>
    %392 = vector.multi_reduction <add>, %391, %cst_163 [1] : vector<8x8xf32> to vector<8xf32>
    %393 = vector.shape_cast %392 : vector<8xf32> to vector<8x1xf32>
    %394 = tpu.reciprocal %393 {approx = true} : vector<8x1xf32> -> vector<8x1xf32>
    %395 = vector.broadcast %394 : vector<8x1xf32> to vector<8x8xf32>
    %396 = arith.mulf %391, %395 : vector<8x8xf32>
    %c0_164 = arith.constant 0 : index
    %c104 = arith.constant 104 : index
    %c0_165 = arith.constant 0 : index
    %397 = vector.load %arg11[%c0_164, %c104, %c0_165] : memref<1x288x8xf32, #tpu.memory_space<vmem>>, vector<1x8x8xf32>
    %398 = vector.shape_cast %397 : vector<1x8x8xf32> to vector<8x8xf32>
    %399 = vector.shape_cast %396 : vector<8x8xf32> to vector<1x8x8xf32>
    tpu.vector_store %arg11[%c0_164, %c104, %c0_165], %399 {strides = array<i32>} : memref<1x288x8xf32, #tpu.memory_space<vmem>>, vector<1x8x8xf32>,
    %cst_166 = arith.constant dense<0.000000e+00> : vector<8x128xf32>
    %400 = tpu.matmul %396, %383, %cst_166 {dimension_numbers = #tpu.dot_dimension_numbers<[1], [0], [0], [1], [0, 0, 1, 1], [], []>} : vector<8x8xf32>, vector<8x128xf32>, vector<8x128xf32> -> vector<8x128xf32>
    %401 = vector.extract_strided_slice %360 {offsets = [0, 256], sizes = [8, 128], strides = [1, 1]} : vector<8x2304xf32> to vector<8x128xf32>
    %402 = vector.extract_strided_slice %360 {offsets = [0, 1024], sizes = [8, 128], strides = [1, 1]} : vector<8x2304xf32> to vector<8x128xf32>
    %403 = vector.extract_strided_slice %360 {offsets = [0, 1792], sizes = [8, 128], strides = [1, 1]} : vector<8x2304xf32> to vector<8x128xf32>
    %cst_167 = arith.constant dense<0.000000e+00> : vector<8x8xf32>
    %404 = tpu.matmul %401, %402, %cst_167 {dimension_numbers = #tpu.dot_dimension_numbers<[1], [1], [0], [0], [0, 0, 1, 0], [], []>} : vector<8x128xf32>, vector<8x128xf32>, vector<8x8xf32> -> vector<8x8xf32>
    %cst_168 = arith.constant 0.0883883461 : f32
    %405 = vector.broadcast %cst_168 : f32 to vector<8x8xf32>
    %406 = arith.mulf %404, %405 : vector<8x8xf32>
    %cst_169 = arith.constant dense<0xFF800000> : vector<8xf32>
    %407 = vector.multi_reduction <maximumf>, %406, %cst_169 [1] : vector<8x8xf32> to vector<8xf32>
    %408 = vector.shape_cast %407 : vector<8xf32> to vector<8x1xf32>
    %409 = vector.broadcast %408 : vector<8x1xf32> to vector<8x8xf32>
    %410 = arith.subf %406, %409 : vector<8x8xf32>
    %411 = math.exp %410 : vector<8x8xf32>
    %cst_170 = arith.constant dense<0.000000e+00> : vector<8xf32>
    %412 = vector.multi_reduction <add>, %411, %cst_170 [1] : vector<8x8xf32> to vector<8xf32>
    %413 = vector.shape_cast %412 : vector<8xf32> to vector<8x1xf32>
    %414 = tpu.reciprocal %413 {approx = true} : vector<8x1xf32> -> vector<8x1xf32>
    %415 = vector.broadcast %414 : vector<8x1xf32> to vector<8x8xf32>
    %416 = arith.mulf %411, %415 : vector<8x8xf32>
    %c0_171 = arith.constant 0 : index
    %c112 = arith.constant 112 : index
    %c0_172 = arith.constant 0 : index
    %417 = vector.load %arg11[%c0_171, %c112, %c0_172] : memref<1x288x8xf32, #tpu.memory_space<vmem>>, vector<1x8x8xf32>
    %418 = vector.shape_cast %417 : vector<1x8x8xf32> to vector<8x8xf32>
    %419 = vector.shape_cast %416 : vector<8x8xf32> to vector<1x8x8xf32>
    tpu.vector_store %arg11[%c0_171, %c112, %c0_172], %419 {strides = array<i32>} : memref<1x288x8xf32, #tpu.memory_space<vmem>>, vector<1x8x8xf32>,
    %cst_173 = arith.constant dense<0.000000e+00> : vector<8x128xf32>
    %420 = tpu.matmul %416, %403, %cst_173 {dimension_numbers = #tpu.dot_dimension_numbers<[1], [0], [0], [1], [0, 0, 1, 1], [], []>} : vector<8x8xf32>, vector<8x128xf32>, vector<8x128xf32> -> vector<8x128xf32>
    %421 = vector.extract_strided_slice %360 {offsets = [0, 384], sizes = [8, 128], strides = [1, 1]} : vector<8x2304xf32> to vector<8x128xf32>
    %422 = vector.extract_strided_slice %360 {offsets = [0, 1152], sizes = [8, 128], strides = [1, 1]} : vector<8x2304xf32> to vector<8x128xf32>
    %423 = vector.extract_strided_slice %360 {offsets = [0, 1920], sizes = [8, 128], strides = [1, 1]} : vector<8x2304xf32> to vector<8x128xf32>
    %cst_174 = arith.constant dense<0.000000e+00> : vector<8x8xf32>
    %424 = tpu.matmul %421, %422, %cst_174 {dimension_numbers = #tpu.dot_dimension_numbers<[1], [1], [0], [0], [0, 0, 1, 0], [], []>} : vector<8x128xf32>, vector<8x128xf32>, vector<8x8xf32> -> vector<8x8xf32>
    %cst_175 = arith.constant 0.0883883461 : f32
    %425 = vector.broadcast %cst_175 : f32 to vector<8x8xf32>
    %426 = arith.mulf %424, %425 : vector<8x8xf32>
    %cst_176 = arith.constant dense<0xFF800000> : vector<8xf32>
    %427 = vector.multi_reduction <maximumf>, %426, %cst_176 [1] : vector<8x8xf32> to vector<8xf32>
    %428 = vector.shape_cast %427 : vector<8xf32> to vector<8x1xf32>
    %429 = vector.broadcast %428 : vector<8x1xf32> to vector<8x8xf32>
    %430 = arith.subf %426, %429 : vector<8x8xf32>
    %431 = math.exp %430 : vector<8x8xf32>
    %cst_177 = arith.constant dense<0.000000e+00> : vector<8xf32>
    %432 = vector.multi_reduction <add>, %431, %cst_177 [1] : vector<8x8xf32> to vector<8xf32>
    %433 = vector.shape_cast %432 : vector<8xf32> to vector<8x1xf32>
    %434 = tpu.reciprocal %433 {approx = true} : vector<8x1xf32> -> vector<8x1xf32>
    %435 = vector.broadcast %434 : vector<8x1xf32> to vector<8x8xf32>
    %436 = arith.mulf %431, %435 : vector<8x8xf32>
    %c0_178 = arith.constant 0 : index
    %c120 = arith.constant 120 : index
    %c0_179 = arith.constant 0 : index
    %437 = vector.load %arg11[%c0_178, %c120, %c0_179] : memref<1x288x8xf32, #tpu.memory_space<vmem>>, vector<1x8x8xf32>
    %438 = vector.shape_cast %437 : vector<1x8x8xf32> to vector<8x8xf32>
    %439 = vector.shape_cast %436 : vector<8x8xf32> to vector<1x8x8xf32>
    tpu.vector_store %arg11[%c0_178, %c120, %c0_179], %439 {strides = array<i32>} : memref<1x288x8xf32, #tpu.memory_space<vmem>>, vector<1x8x8xf32>,
    %cst_180 = arith.constant dense<0.000000e+00> : vector<8x128xf32>
    %440 = tpu.matmul %436, %423, %cst_180 {dimension_numbers = #tpu.dot_dimension_numbers<[1], [0], [0], [1], [0, 0, 1, 1], [], []>} : vector<8x8xf32>, vector<8x128xf32>, vector<8x128xf32> -> vector<8x128xf32>
    %441 = vector.extract_strided_slice %360 {offsets = [0, 512], sizes = [8, 128], strides = [1, 1]} : vector<8x2304xf32> to vector<8x128xf32>
    %442 = vector.extract_strided_slice %360 {offsets = [0, 1280], sizes = [8, 128], strides = [1, 1]} : vector<8x2304xf32> to vector<8x128xf32>
    %443 = vector.extract_strided_slice %360 {offsets = [0, 2048], sizes = [8, 128], strides = [1, 1]} : vector<8x2304xf32> to vector<8x128xf32>
    %cst_181 = arith.constant dense<0.000000e+00> : vector<8x8xf32>
    %444 = tpu.matmul %441, %442, %cst_181 {dimension_numbers = #tpu.dot_dimension_numbers<[1], [1], [0], [0], [0, 0, 1, 0], [], []>} : vector<8x128xf32>, vector<8x128xf32>, vector<8x8xf32> -> vector<8x8xf32>
    %cst_182 = arith.constant 0.0883883461 : f32
    %445 = vector.broadcast %cst_182 : f32 to vector<8x8xf32>
    %446 = arith.mulf %444, %445 : vector<8x8xf32>
    %cst_183 = arith.constant dense<0xFF800000> : vector<8xf32>
    %447 = vector.multi_reduction <maximumf>, %446, %cst_183 [1] : vector<8x8xf32> to vector<8xf32>
    %448 = vector.shape_cast %447 : vector<8xf32> to vector<8x1xf32>
    %449 = vector.broadcast %448 : vector<8x1xf32> to vector<8x8xf32>
    %450 = arith.subf %446, %449 : vector<8x8xf32>
    %451 = math.exp %450 : vector<8x8xf32>
    %cst_184 = arith.constant dense<0.000000e+00> : vector<8xf32>
    %452 = vector.multi_reduction <add>, %451, %cst_184 [1] : vector<8x8xf32> to vector<8xf32>
    %453 = vector.shape_cast %452 : vector<8xf32> to vector<8x1xf32>
    %454 = tpu.reciprocal %453 {approx = true} : vector<8x1xf32> -> vector<8x1xf32>
    %455 = vector.broadcast %454 : vector<8x1xf32> to vector<8x8xf32>
    %456 = arith.mulf %451, %455 : vector<8x8xf32>
    %c0_185 = arith.constant 0 : index
    %c128 = arith.constant 128 : index
    %c0_186 = arith.constant 0 : index
    %457 = vector.load %arg11[%c0_185, %c128, %c0_186] : memref<1x288x8xf32, #tpu.memory_space<vmem>>, vector<1x8x8xf32>
    %458 = vector.shape_cast %457 : vector<1x8x8xf32> to vector<8x8xf32>
    %459 = vector.shape_cast %456 : vector<8x8xf32> to vector<1x8x8xf32>
    tpu.vector_store %arg11[%c0_185, %c128, %c0_186], %459 {strides = array<i32>} : memref<1x288x8xf32, #tpu.memory_space<vmem>>, vector<1x8x8xf32>,
    %cst_187 = arith.constant dense<0.000000e+00> : vector<8x128xf32>
    %460 = tpu.matmul %456, %443, %cst_187 {dimension_numbers = #tpu.dot_dimension_numbers<[1], [0], [0], [1], [0, 0, 1, 1], [], []>} : vector<8x8xf32>, vector<8x128xf32>, vector<8x128xf32> -> vector<8x128xf32>
    %461 = vector.extract_strided_slice %360 {offsets = [0, 640], sizes = [8, 128], strides = [1, 1]} : vector<8x2304xf32> to vector<8x128xf32>
    %462 = vector.extract_strided_slice %360 {offsets = [0, 1408], sizes = [8, 128], strides = [1, 1]} : vector<8x2304xf32> to vector<8x128xf32>
    %463 = vector.extract_strided_slice %360 {offsets = [0, 2176], sizes = [8, 128], strides = [1, 1]} : vector<8x2304xf32> to vector<8x128xf32>
    %cst_188 = arith.constant dense<0.000000e+00> : vector<8x8xf32>
    %464 = tpu.matmul %461, %462, %cst_188 {dimension_numbers = #tpu.dot_dimension_numbers<[1], [1], [0], [0], [0, 0, 1, 0], [], []>} : vector<8x128xf32>, vector<8x128xf32>, vector<8x8xf32> -> vector<8x8xf32>
    %cst_189 = arith.constant 0.0883883461 : f32
    %465 = vector.broadcast %cst_189 : f32 to vector<8x8xf32>
    %466 = arith.mulf %464, %465 : vector<8x8xf32>
    %cst_190 = arith.constant dense<0xFF800000> : vector<8xf32>
    %467 = vector.multi_reduction <maximumf>, %466, %cst_190 [1] : vector<8x8xf32> to vector<8xf32>
    %468 = vector.shape_cast %467 : vector<8xf32> to vector<8x1xf32>
    %469 = vector.broadcast %468 : vector<8x1xf32> to vector<8x8xf32>
    %470 = arith.subf %466, %469 : vector<8x8xf32>
    %471 = math.exp %470 : vector<8x8xf32>
    %cst_191 = arith.constant dense<0.000000e+00> : vector<8xf32>
    %472 = vector.multi_reduction <add>, %471, %cst_191 [1] : vector<8x8xf32> to vector<8xf32>
    %473 = vector.shape_cast %472 : vector<8xf32> to vector<8x1xf32>
    %474 = tpu.reciprocal %473 {approx = true} : vector<8x1xf32> -> vector<8x1xf32>
    %475 = vector.broadcast %474 : vector<8x1xf32> to vector<8x8xf32>
    %476 = arith.mulf %471, %475 : vector<8x8xf32>
    %c0_192 = arith.constant 0 : index
    %c136 = arith.constant 136 : index
    %c0_193 = arith.constant 0 : index
    %477 = vector.load %arg11[%c0_192, %c136, %c0_193] : memref<1x288x8xf32, #tpu.memory_space<vmem>>, vector<1x8x8xf32>
    %478 = vector.shape_cast %477 : vector<1x8x8xf32> to vector<8x8xf32>
    %479 = vector.shape_cast %476 : vector<8x8xf32> to vector<1x8x8xf32>
    tpu.vector_store %arg11[%c0_192, %c136, %c0_193], %479 {strides = array<i32>} : memref<1x288x8xf32, #tpu.memory_space<vmem>>, vector<1x8x8xf32>,
    %cst_194 = arith.constant dense<0.000000e+00> : vector<8x128xf32>
    %480 = tpu.matmul %476, %463, %cst_194 {dimension_numbers = #tpu.dot_dimension_numbers<[1], [0], [0], [1], [0, 0, 1, 1], [], []>} : vector<8x8xf32>, vector<8x128xf32>, vector<8x128xf32> -> vector<8x128xf32>
    %481 = tpu.concatenate %380, %400, %420, %440, %460, %480 in 1 : vector<8x128xf32>, vector<8x128xf32>, vector<8x128xf32>, vector<8x128xf32>, vector<8x128xf32>, vector<8x128xf32> -> vector<8x768xf32>
    %c2_195 = arith.constant 2 : index
    %c0_196 = arith.constant 0 : index
    %c0_197 = arith.constant 0 : index
    %482 = vector.load %arg7[%c2_195, %c0_196, %c0_197] : memref<6x768x64xf32, #tpu.memory_space<vmem>>, vector<1x768x64xf32>
    %483 = vector.shape_cast %482 : vector<1x768x64xf32> to vector<768x64xf32>
    %cst_198 = arith.constant dense<0.000000e+00> : vector<8x64xf32>
    %484 = tpu.matmul %481, %483, %cst_198 {dimension_numbers = #tpu.dot_dimension_numbers<[1], [0], [0], [1], [0, 0, 1, 1], [], []>} : vector<8x768xf32>, vector<768x64xf32>, vector<8x64xf32> -> vector<8x64xf32>
    %485 = arith.addf %484, %357 : vector<8x64xf32>
    %cst_199 = arith.constant dense<0.000000e+00> : vector<8xf32>
    %486 = vector.multi_reduction <add>, %485, %cst_199 [1] : vector<8x64xf32> to vector<8xf32>
    %487 = vector.shape_cast %486 : vector<8xf32> to vector<8x1xf32>
    %cst_200 = arith.constant 6.400000e+01 : f32
    %488 = vector.broadcast %cst_200 : f32 to vector<8x1xf32>
    %489 = arith.divf %487, %488 : vector<8x1xf32>
    %490 = vector.broadcast %489 : vector<8x1xf32> to vector<8x64xf32>
    %491 = arith.subf %485, %490 : vector<8x64xf32>
    %492 = arith.mulf %491, %491 : vector<8x64xf32>
    %cst_201 = arith.constant dense<0.000000e+00> : vector<8xf32>
    %493 = vector.multi_reduction <add>, %492, %cst_201 [1] : vector<8x64xf32> to vector<8xf32>
    %494 = vector.shape_cast %493 : vector<8xf32> to vector<8x1xf32>
    %cst_202 = arith.constant 6.400000e+01 : f32
    %495 = vector.broadcast %cst_202 : f32 to vector<8x1xf32>
    %496 = arith.divf %494, %495 : vector<8x1xf32>
    %497 = vector.broadcast %489 : vector<8x1xf32> to vector<8x64xf32>
    %498 = arith.subf %485, %497 : vector<8x64xf32>
    %cst_203 = arith.constant 9.99999974E-6 : f32
    %499 = vector.broadcast %cst_203 : f32 to vector<8x1xf32>
    %500 = arith.addf %496, %499 : vector<8x1xf32>
    %501 = math.rsqrt %500 : vector<8x1xf32>
    %502 = vector.broadcast %501 : vector<8x1xf32> to vector<8x64xf32>
    %503 = arith.mulf %498, %502 : vector<8x64xf32>
    %c2_204 = arith.constant 2 : index
    %c0_205 = arith.constant 0 : index
    %c0_206 = arith.constant 0 : index
    %504 = vector.load %arg8[%c2_204, %c0_205, %c0_206] : memref<6x64x256xf32, #tpu.memory_space<vmem>>, vector<1x64x256xf32>
    %505 = vector.shape_cast %504 : vector<1x64x256xf32> to vector<64x256xf32>
    %cst_207 = arith.constant dense<0.000000e+00> : vector<8x256xf32>
    %506 = tpu.matmul %503, %505, %cst_207 {dimension_numbers = #tpu.dot_dimension_numbers<[1], [0], [0], [1], [0, 0, 1, 1], [], []>} : vector<8x64xf32>, vector<64x256xf32>, vector<8x256xf32> -> vector<8x256xf32>
    %cst_208 = arith.constant 0.000000e+00 : f32
    %507 = vector.broadcast %cst_208 : f32 to vector<8x256xf32>
    %508 = arith.maximumf %506, %507 : vector<8x256xf32>
    %c2_209 = arith.constant 2 : index
    %c0_210 = arith.constant 0 : index
    %c0_211 = arith.constant 0 : index
    %509 = vector.load %arg9[%c2_209, %c0_210, %c0_211] : memref<6x256x64xf32, #tpu.memory_space<vmem>>, vector<1x256x64xf32>
    %510 = vector.shape_cast %509 : vector<1x256x64xf32> to vector<256x64xf32>
    %cst_212 = arith.constant dense<0.000000e+00> : vector<8x64xf32>
    %511 = tpu.matmul %508, %510, %cst_212 {dimension_numbers = #tpu.dot_dimension_numbers<[1], [0], [0], [1], [0, 0, 1, 1], [], []>} : vector<8x256xf32>, vector<256x64xf32>, vector<8x64xf32> -> vector<8x64xf32>
    %512 = arith.addf %511, %503 : vector<8x64xf32>
    %cst_213 = arith.constant dense<0.000000e+00> : vector<8xf32>
    %513 = vector.multi_reduction <add>, %512, %cst_213 [1] : vector<8x64xf32> to vector<8xf32>
    %514 = vector.shape_cast %513 : vector<8xf32> to vector<8x1xf32>
    %cst_214 = arith.constant 6.400000e+01 : f32
    %515 = vector.broadcast %cst_214 : f32 to vector<8x1xf32>
    %516 = arith.divf %514, %515 : vector<8x1xf32>
    %517 = vector.broadcast %516 : vector<8x1xf32> to vector<8x64xf32>
    %518 = arith.subf %512, %517 : vector<8x64xf32>
    %519 = arith.mulf %518, %518 : vector<8x64xf32>
    %cst_215 = arith.constant dense<0.000000e+00> : vector<8xf32>
    %520 = vector.multi_reduction <add>, %519, %cst_215 [1] : vector<8x64xf32> to vector<8xf32>
    %521 = vector.shape_cast %520 : vector<8xf32> to vector<8x1xf32>
    %cst_216 = arith.constant 6.400000e+01 : f32
    %522 = vector.broadcast %cst_216 : f32 to vector<8x1xf32>
    %523 = arith.divf %521, %522 : vector<8x1xf32>
    %524 = vector.broadcast %516 : vector<8x1xf32> to vector<8x64xf32>
    %525 = arith.subf %512, %524 : vector<8x64xf32>
    %cst_217 = arith.constant 9.99999974E-6 : f32
    %526 = vector.broadcast %cst_217 : f32 to vector<8x1xf32>
    %527 = arith.addf %523, %526 : vector<8x1xf32>
    %528 = math.rsqrt %527 : vector<8x1xf32>
    %529 = vector.broadcast %528 : vector<8x1xf32> to vector<8x64xf32>
    %530 = arith.mulf %525, %529 : vector<8x64xf32>
    %c3 = arith.constant 3 : index
    %c0_218 = arith.constant 0 : index
    %c0_219 = arith.constant 0 : index
    %531 = vector.load %arg6[%c3, %c0_218, %c0_219] : memref<6x64x2304xf32, #tpu.memory_space<vmem>>, vector<1x64x2304xf32>
    %532 = vector.shape_cast %531 : vector<1x64x2304xf32> to vector<64x2304xf32>
    %cst_220 = arith.constant dense<0.000000e+00> : vector<8x2304xf32>
    %533 = tpu.matmul %530, %532, %cst_220 {dimension_numbers = #tpu.dot_dimension_numbers<[1], [0], [0], [1], [0, 0, 1, 1], [], []>} : vector<8x64xf32>, vector<64x2304xf32>, vector<8x2304xf32> -> vector<8x2304xf32>
    %534 = vector.extract_strided_slice %533 {offsets = [0, 0], sizes = [8, 128], strides = [1, 1]} : vector<8x2304xf32> to vector<8x128xf32>
    %535 = vector.extract_strided_slice %533 {offsets = [0, 768], sizes = [8, 128], strides = [1, 1]} : vector<8x2304xf32> to vector<8x128xf32>
    %536 = vector.extract_strided_slice %533 {offsets = [0, 1536], sizes = [8, 128], strides = [1, 1]} : vector<8x2304xf32> to vector<8x128xf32>
    %cst_221 = arith.constant dense<0.000000e+00> : vector<8x8xf32>
    %537 = tpu.matmul %534, %535, %cst_221 {dimension_numbers = #tpu.dot_dimension_numbers<[1], [1], [0], [0], [0, 0, 1, 0], [], []>} : vector<8x128xf32>, vector<8x128xf32>, vector<8x8xf32> -> vector<8x8xf32>
    %cst_222 = arith.constant 0.0883883461 : f32
    %538 = vector.broadcast %cst_222 : f32 to vector<8x8xf32>
    %539 = arith.mulf %537, %538 : vector<8x8xf32>
    %cst_223 = arith.constant dense<0xFF800000> : vector<8xf32>
    %540 = vector.multi_reduction <maximumf>, %539, %cst_223 [1] : vector<8x8xf32> to vector<8xf32>
    %541 = vector.shape_cast %540 : vector<8xf32> to vector<8x1xf32>
    %542 = vector.broadcast %541 : vector<8x1xf32> to vector<8x8xf32>
    %543 = arith.subf %539, %542 : vector<8x8xf32>
    %544 = math.exp %543 : vector<8x8xf32>
    %cst_224 = arith.constant dense<0.000000e+00> : vector<8xf32>
    %545 = vector.multi_reduction <add>, %544, %cst_224 [1] : vector<8x8xf32> to vector<8xf32>
    %546 = vector.shape_cast %545 : vector<8xf32> to vector<8x1xf32>
    %547 = tpu.reciprocal %546 {approx = true} : vector<8x1xf32> -> vector<8x1xf32>
    %548 = vector.broadcast %547 : vector<8x1xf32> to vector<8x8xf32>
    %549 = arith.mulf %544, %548 : vector<8x8xf32>
    %c0_225 = arith.constant 0 : index
    %c144 = arith.constant 144 : index
    %c0_226 = arith.constant 0 : index
    %550 = vector.load %arg11[%c0_225, %c144, %c0_226] : memref<1x288x8xf32, #tpu.memory_space<vmem>>, vector<1x8x8xf32>
    %551 = vector.shape_cast %550 : vector<1x8x8xf32> to vector<8x8xf32>
    %552 = vector.shape_cast %549 : vector<8x8xf32> to vector<1x8x8xf32>
    tpu.vector_store %arg11[%c0_225, %c144, %c0_226], %552 {strides = array<i32>} : memref<1x288x8xf32, #tpu.memory_space<vmem>>, vector<1x8x8xf32>,
    %cst_227 = arith.constant dense<0.000000e+00> : vector<8x128xf32>
    %553 = tpu.matmul %549, %536, %cst_227 {dimension_numbers = #tpu.dot_dimension_numbers<[1], [0], [0], [1], [0, 0, 1, 1], [], []>} : vector<8x8xf32>, vector<8x128xf32>, vector<8x128xf32> -> vector<8x128xf32>
    %554 = vector.extract_strided_slice %533 {offsets = [0, 128], sizes = [8, 128], strides = [1, 1]} : vector<8x2304xf32> to vector<8x128xf32>
    %555 = vector.extract_strided_slice %533 {offsets = [0, 896], sizes = [8, 128], strides = [1, 1]} : vector<8x2304xf32> to vector<8x128xf32>
    %556 = vector.extract_strided_slice %533 {offsets = [0, 1664], sizes = [8, 128], strides = [1, 1]} : vector<8x2304xf32> to vector<8x128xf32>
    %cst_228 = arith.constant dense<0.000000e+00> : vector<8x8xf32>
    %557 = tpu.matmul %554, %555, %cst_228 {dimension_numbers = #tpu.dot_dimension_numbers<[1], [1], [0], [0], [0, 0, 1, 0], [], []>} : vector<8x128xf32>, vector<8x128xf32>, vector<8x8xf32> -> vector<8x8xf32>
    %cst_229 = arith.constant 0.0883883461 : f32
    %558 = vector.broadcast %cst_229 : f32 to vector<8x8xf32>
    %559 = arith.mulf %557, %558 : vector<8x8xf32>
    %cst_230 = arith.constant dense<0xFF800000> : vector<8xf32>
    %560 = vector.multi_reduction <maximumf>, %559, %cst_230 [1] : vector<8x8xf32> to vector<8xf32>
    %561 = vector.shape_cast %560 : vector<8xf32> to vector<8x1xf32>
    %562 = vector.broadcast %561 : vector<8x1xf32> to vector<8x8xf32>
    %563 = arith.subf %559, %562 : vector<8x8xf32>
    %564 = math.exp %563 : vector<8x8xf32>
    %cst_231 = arith.constant dense<0.000000e+00> : vector<8xf32>
    %565 = vector.multi_reduction <add>, %564, %cst_231 [1] : vector<8x8xf32> to vector<8xf32>
    %566 = vector.shape_cast %565 : vector<8xf32> to vector<8x1xf32>
    %567 = tpu.reciprocal %566 {approx = true} : vector<8x1xf32> -> vector<8x1xf32>
    %568 = vector.broadcast %567 : vector<8x1xf32> to vector<8x8xf32>
    %569 = arith.mulf %564, %568 : vector<8x8xf32>
    %c0_232 = arith.constant 0 : index
    %c152 = arith.constant 152 : index
    %c0_233 = arith.constant 0 : index
    %570 = vector.load %arg11[%c0_232, %c152, %c0_233] : memref<1x288x8xf32, #tpu.memory_space<vmem>>, vector<1x8x8xf32>
    %571 = vector.shape_cast %570 : vector<1x8x8xf32> to vector<8x8xf32>
    %572 = vector.shape_cast %569 : vector<8x8xf32> to vector<1x8x8xf32>
    tpu.vector_store %arg11[%c0_232, %c152, %c0_233], %572 {strides = array<i32>} : memref<1x288x8xf32, #tpu.memory_space<vmem>>, vector<1x8x8xf32>,
    %cst_234 = arith.constant dense<0.000000e+00> : vector<8x128xf32>
    %573 = tpu.matmul %569, %556, %cst_234 {dimension_numbers = #tpu.dot_dimension_numbers<[1], [0], [0], [1], [0, 0, 1, 1], [], []>} : vector<8x8xf32>, vector<8x128xf32>, vector<8x128xf32> -> vector<8x128xf32>
    %574 = vector.extract_strided_slice %533 {offsets = [0, 256], sizes = [8, 128], strides = [1, 1]} : vector<8x2304xf32> to vector<8x128xf32>
    %575 = vector.extract_strided_slice %533 {offsets = [0, 1024], sizes = [8, 128], strides = [1, 1]} : vector<8x2304xf32> to vector<8x128xf32>
    %576 = vector.extract_strided_slice %533 {offsets = [0, 1792], sizes = [8, 128], strides = [1, 1]} : vector<8x2304xf32> to vector<8x128xf32>
    %cst_235 = arith.constant dense<0.000000e+00> : vector<8x8xf32>
    %577 = tpu.matmul %574, %575, %cst_235 {dimension_numbers = #tpu.dot_dimension_numbers<[1], [1], [0], [0], [0, 0, 1, 0], [], []>} : vector<8x128xf32>, vector<8x128xf32>, vector<8x8xf32> -> vector<8x8xf32>
    %cst_236 = arith.constant 0.0883883461 : f32
    %578 = vector.broadcast %cst_236 : f32 to vector<8x8xf32>
    %579 = arith.mulf %577, %578 : vector<8x8xf32>
    %cst_237 = arith.constant dense<0xFF800000> : vector<8xf32>
    %580 = vector.multi_reduction <maximumf>, %579, %cst_237 [1] : vector<8x8xf32> to vector<8xf32>
    %581 = vector.shape_cast %580 : vector<8xf32> to vector<8x1xf32>
    %582 = vector.broadcast %581 : vector<8x1xf32> to vector<8x8xf32>
    %583 = arith.subf %579, %582 : vector<8x8xf32>
    %584 = math.exp %583 : vector<8x8xf32>
    %cst_238 = arith.constant dense<0.000000e+00> : vector<8xf32>
    %585 = vector.multi_reduction <add>, %584, %cst_238 [1] : vector<8x8xf32> to vector<8xf32>
    %586 = vector.shape_cast %585 : vector<8xf32> to vector<8x1xf32>
    %587 = tpu.reciprocal %586 {approx = true} : vector<8x1xf32> -> vector<8x1xf32>
    %588 = vector.broadcast %587 : vector<8x1xf32> to vector<8x8xf32>
    %589 = arith.mulf %584, %588 : vector<8x8xf32>
    %c0_239 = arith.constant 0 : index
    %c160 = arith.constant 160 : index
    %c0_240 = arith.constant 0 : index
    %590 = vector.load %arg11[%c0_239, %c160, %c0_240] : memref<1x288x8xf32, #tpu.memory_space<vmem>>, vector<1x8x8xf32>
    %591 = vector.shape_cast %590 : vector<1x8x8xf32> to vector<8x8xf32>
    %592 = vector.shape_cast %589 : vector<8x8xf32> to vector<1x8x8xf32>
    tpu.vector_store %arg11[%c0_239, %c160, %c0_240], %592 {strides = array<i32>} : memref<1x288x8xf32, #tpu.memory_space<vmem>>, vector<1x8x8xf32>,
    %cst_241 = arith.constant dense<0.000000e+00> : vector<8x128xf32>
    %593 = tpu.matmul %589, %576, %cst_241 {dimension_numbers = #tpu.dot_dimension_numbers<[1], [0], [0], [1], [0, 0, 1, 1], [], []>} : vector<8x8xf32>, vector<8x128xf32>, vector<8x128xf32> -> vector<8x128xf32>
    %594 = vector.extract_strided_slice %533 {offsets = [0, 384], sizes = [8, 128], strides = [1, 1]} : vector<8x2304xf32> to vector<8x128xf32>
    %595 = vector.extract_strided_slice %533 {offsets = [0, 1152], sizes = [8, 128], strides = [1, 1]} : vector<8x2304xf32> to vector<8x128xf32>
    %596 = vector.extract_strided_slice %533 {offsets = [0, 1920], sizes = [8, 128], strides = [1, 1]} : vector<8x2304xf32> to vector<8x128xf32>
    %cst_242 = arith.constant dense<0.000000e+00> : vector<8x8xf32>
    %597 = tpu.matmul %594, %595, %cst_242 {dimension_numbers = #tpu.dot_dimension_numbers<[1], [1], [0], [0], [0, 0, 1, 0], [], []>} : vector<8x128xf32>, vector<8x128xf32>, vector<8x8xf32> -> vector<8x8xf32>
    %cst_243 = arith.constant 0.0883883461 : f32
    %598 = vector.broadcast %cst_243 : f32 to vector<8x8xf32>
    %599 = arith.mulf %597, %598 : vector<8x8xf32>
    %cst_244 = arith.constant dense<0xFF800000> : vector<8xf32>
    %600 = vector.multi_reduction <maximumf>, %599, %cst_244 [1] : vector<8x8xf32> to vector<8xf32>
    %601 = vector.shape_cast %600 : vector<8xf32> to vector<8x1xf32>
    %602 = vector.broadcast %601 : vector<8x1xf32> to vector<8x8xf32>
    %603 = arith.subf %599, %602 : vector<8x8xf32>
    %604 = math.exp %603 : vector<8x8xf32>
    %cst_245 = arith.constant dense<0.000000e+00> : vector<8xf32>
    %605 = vector.multi_reduction <add>, %604, %cst_245 [1] : vector<8x8xf32> to vector<8xf32>
    %606 = vector.shape_cast %605 : vector<8xf32> to vector<8x1xf32>
    %607 = tpu.reciprocal %606 {approx = true} : vector<8x1xf32> -> vector<8x1xf32>
    %608 = vector.broadcast %607 : vector<8x1xf32> to vector<8x8xf32>
    %609 = arith.mulf %604, %608 : vector<8x8xf32>
    %c0_246 = arith.constant 0 : index
    %c168 = arith.constant 168 : index
    %c0_247 = arith.constant 0 : index
    %610 = vector.load %arg11[%c0_246, %c168, %c0_247] : memref<1x288x8xf32, #tpu.memory_space<vmem>>, vector<1x8x8xf32>
    %611 = vector.shape_cast %610 : vector<1x8x8xf32> to vector<8x8xf32>
    %612 = vector.shape_cast %609 : vector<8x8xf32> to vector<1x8x8xf32>
    tpu.vector_store %arg11[%c0_246, %c168, %c0_247], %612 {strides = array<i32>} : memref<1x288x8xf32, #tpu.memory_space<vmem>>, vector<1x8x8xf32>,
    %cst_248 = arith.constant dense<0.000000e+00> : vector<8x128xf32>
    %613 = tpu.matmul %609, %596, %cst_248 {dimension_numbers = #tpu.dot_dimension_numbers<[1], [0], [0], [1], [0, 0, 1, 1], [], []>} : vector<8x8xf32>, vector<8x128xf32>, vector<8x128xf32> -> vector<8x128xf32>
    %614 = vector.extract_strided_slice %533 {offsets = [0, 512], sizes = [8, 128], strides = [1, 1]} : vector<8x2304xf32> to vector<8x128xf32>
    %615 = vector.extract_strided_slice %533 {offsets = [0, 1280], sizes = [8, 128], strides = [1, 1]} : vector<8x2304xf32> to vector<8x128xf32>
    %616 = vector.extract_strided_slice %533 {offsets = [0, 2048], sizes = [8, 128], strides = [1, 1]} : vector<8x2304xf32> to vector<8x128xf32>
    %cst_249 = arith.constant dense<0.000000e+00> : vector<8x8xf32>
    %617 = tpu.matmul %614, %615, %cst_249 {dimension_numbers = #tpu.dot_dimension_numbers<[1], [1], [0], [0], [0, 0, 1, 0], [], []>} : vector<8x128xf32>, vector<8x128xf32>, vector<8x8xf32> -> vector<8x8xf32>
    %cst_250 = arith.constant 0.0883883461 : f32
    %618 = vector.broadcast %cst_250 : f32 to vector<8x8xf32>
    %619 = arith.mulf %617, %618 : vector<8x8xf32>
    %cst_251 = arith.constant dense<0xFF800000> : vector<8xf32>
    %620 = vector.multi_reduction <maximumf>, %619, %cst_251 [1] : vector<8x8xf32> to vector<8xf32>
    %621 = vector.shape_cast %620 : vector<8xf32> to vector<8x1xf32>
    %622 = vector.broadcast %621 : vector<8x1xf32> to vector<8x8xf32>
    %623 = arith.subf %619, %622 : vector<8x8xf32>
    %624 = math.exp %623 : vector<8x8xf32>
    %cst_252 = arith.constant dense<0.000000e+00> : vector<8xf32>
    %625 = vector.multi_reduction <add>, %624, %cst_252 [1] : vector<8x8xf32> to vector<8xf32>
    %626 = vector.shape_cast %625 : vector<8xf32> to vector<8x1xf32>
    %627 = tpu.reciprocal %626 {approx = true} : vector<8x1xf32> -> vector<8x1xf32>
    %628 = vector.broadcast %627 : vector<8x1xf32> to vector<8x8xf32>
    %629 = arith.mulf %624, %628 : vector<8x8xf32>
    %c0_253 = arith.constant 0 : index
    %c176 = arith.constant 176 : index
    %c0_254 = arith.constant 0 : index
    %630 = vector.load %arg11[%c0_253, %c176, %c0_254] : memref<1x288x8xf32, #tpu.memory_space<vmem>>, vector<1x8x8xf32>
    %631 = vector.shape_cast %630 : vector<1x8x8xf32> to vector<8x8xf32>
    %632 = vector.shape_cast %629 : vector<8x8xf32> to vector<1x8x8xf32>
    tpu.vector_store %arg11[%c0_253, %c176, %c0_254], %632 {strides = array<i32>} : memref<1x288x8xf32, #tpu.memory_space<vmem>>, vector<1x8x8xf32>,
    %cst_255 = arith.constant dense<0.000000e+00> : vector<8x128xf32>
    %633 = tpu.matmul %629, %616, %cst_255 {dimension_numbers = #tpu.dot_dimension_numbers<[1], [0], [0], [1], [0, 0, 1, 1], [], []>} : vector<8x8xf32>, vector<8x128xf32>, vector<8x128xf32> -> vector<8x128xf32>
    %634 = vector.extract_strided_slice %533 {offsets = [0, 640], sizes = [8, 128], strides = [1, 1]} : vector<8x2304xf32> to vector<8x128xf32>
    %635 = vector.extract_strided_slice %533 {offsets = [0, 1408], sizes = [8, 128], strides = [1, 1]} : vector<8x2304xf32> to vector<8x128xf32>
    %636 = vector.extract_strided_slice %533 {offsets = [0, 2176], sizes = [8, 128], strides = [1, 1]} : vector<8x2304xf32> to vector<8x128xf32>
    %cst_256 = arith.constant dense<0.000000e+00> : vector<8x8xf32>
    %637 = tpu.matmul %634, %635, %cst_256 {dimension_numbers = #tpu.dot_dimension_numbers<[1], [1], [0], [0], [0, 0, 1, 0], [], []>} : vector<8x128xf32>, vector<8x128xf32>, vector<8x8xf32> -> vector<8x8xf32>
    %cst_257 = arith.constant 0.0883883461 : f32
    %638 = vector.broadcast %cst_257 : f32 to vector<8x8xf32>
    %639 = arith.mulf %637, %638 : vector<8x8xf32>
    %cst_258 = arith.constant dense<0xFF800000> : vector<8xf32>
    %640 = vector.multi_reduction <maximumf>, %639, %cst_258 [1] : vector<8x8xf32> to vector<8xf32>
    %641 = vector.shape_cast %640 : vector<8xf32> to vector<8x1xf32>
    %642 = vector.broadcast %641 : vector<8x1xf32> to vector<8x8xf32>
    %643 = arith.subf %639, %642 : vector<8x8xf32>
    %644 = math.exp %643 : vector<8x8xf32>
    %cst_259 = arith.constant dense<0.000000e+00> : vector<8xf32>
    %645 = vector.multi_reduction <add>, %644, %cst_259 [1] : vector<8x8xf32> to vector<8xf32>
    %646 = vector.shape_cast %645 : vector<8xf32> to vector<8x1xf32>
    %647 = tpu.reciprocal %646 {approx = true} : vector<8x1xf32> -> vector<8x1xf32>
    %648 = vector.broadcast %647 : vector<8x1xf32> to vector<8x8xf32>
    %649 = arith.mulf %644, %648 : vector<8x8xf32>
    %c0_260 = arith.constant 0 : index
    %c184 = arith.constant 184 : index
    %c0_261 = arith.constant 0 : index
    %650 = vector.load %arg11[%c0_260, %c184, %c0_261] : memref<1x288x8xf32, #tpu.memory_space<vmem>>, vector<1x8x8xf32>
    %651 = vector.shape_cast %650 : vector<1x8x8xf32> to vector<8x8xf32>
    %652 = vector.shape_cast %649 : vector<8x8xf32> to vector<1x8x8xf32>
    tpu.vector_store %arg11[%c0_260, %c184, %c0_261], %652 {strides = array<i32>} : memref<1x288x8xf32, #tpu.memory_space<vmem>>, vector<1x8x8xf32>,
    %cst_262 = arith.constant dense<0.000000e+00> : vector<8x128xf32>
    %653 = tpu.matmul %649, %636, %cst_262 {dimension_numbers = #tpu.dot_dimension_numbers<[1], [0], [0], [1], [0, 0, 1, 1], [], []>} : vector<8x8xf32>, vector<8x128xf32>, vector<8x128xf32> -> vector<8x128xf32>
    %654 = tpu.concatenate %553, %573, %593, %613, %633, %653 in 1 : vector<8x128xf32>, vector<8x128xf32>, vector<8x128xf32>, vector<8x128xf32>, vector<8x128xf32>, vector<8x128xf32> -> vector<8x768xf32>
    %c3_263 = arith.constant 3 : index
    %c0_264 = arith.constant 0 : index
    %c0_265 = arith.constant 0 : index
    %655 = vector.load %arg7[%c3_263, %c0_264, %c0_265] : memref<6x768x64xf32, #tpu.memory_space<vmem>>, vector<1x768x64xf32>
    %656 = vector.shape_cast %655 : vector<1x768x64xf32> to vector<768x64xf32>
    %cst_266 = arith.constant dense<0.000000e+00> : vector<8x64xf32>
    %657 = tpu.matmul %654, %656, %cst_266 {dimension_numbers = #tpu.dot_dimension_numbers<[1], [0], [0], [1], [0, 0, 1, 1], [], []>} : vector<8x768xf32>, vector<768x64xf32>, vector<8x64xf32> -> vector<8x64xf32>
    %658 = arith.addf %657, %530 : vector<8x64xf32>
    %cst_267 = arith.constant dense<0.000000e+00> : vector<8xf32>
    %659 = vector.multi_reduction <add>, %658, %cst_267 [1] : vector<8x64xf32> to vector<8xf32>
    %660 = vector.shape_cast %659 : vector<8xf32> to vector<8x1xf32>
    %cst_268 = arith.constant 6.400000e+01 : f32
    %661 = vector.broadcast %cst_268 : f32 to vector<8x1xf32>
    %662 = arith.divf %660, %661 : vector<8x1xf32>
    %663 = vector.broadcast %662 : vector<8x1xf32> to vector<8x64xf32>
    %664 = arith.subf %658, %663 : vector<8x64xf32>
    %665 = arith.mulf %664, %664 : vector<8x64xf32>
    %cst_269 = arith.constant dense<0.000000e+00> : vector<8xf32>
    %666 = vector.multi_reduction <add>, %665, %cst_269 [1] : vector<8x64xf32> to vector<8xf32>
    %667 = vector.shape_cast %666 : vector<8xf32> to vector<8x1xf32>
    %cst_270 = arith.constant 6.400000e+01 : f32
    %668 = vector.broadcast %cst_270 : f32 to vector<8x1xf32>
    %669 = arith.divf %667, %668 : vector<8x1xf32>
    %670 = vector.broadcast %662 : vector<8x1xf32> to vector<8x64xf32>
    %671 = arith.subf %658, %670 : vector<8x64xf32>
    %cst_271 = arith.constant 9.99999974E-6 : f32
    %672 = vector.broadcast %cst_271 : f32 to vector<8x1xf32>
    %673 = arith.addf %669, %672 : vector<8x1xf32>
    %674 = math.rsqrt %673 : vector<8x1xf32>
    %675 = vector.broadcast %674 : vector<8x1xf32> to vector<8x64xf32>
    %676 = arith.mulf %671, %675 : vector<8x64xf32>
    %c3_272 = arith.constant 3 : index
    %c0_273 = arith.constant 0 : index
    %c0_274 = arith.constant 0 : index
    %677 = vector.load %arg8[%c3_272, %c0_273, %c0_274] : memref<6x64x256xf32, #tpu.memory_space<vmem>>, vector<1x64x256xf32>
    %678 = vector.shape_cast %677 : vector<1x64x256xf32> to vector<64x256xf32>
    %cst_275 = arith.constant dense<0.000000e+00> : vector<8x256xf32>
    %679 = tpu.matmul %676, %678, %cst_275 {dimension_numbers = #tpu.dot_dimension_numbers<[1], [0], [0], [1], [0, 0, 1, 1], [], []>} : vector<8x64xf32>, vector<64x256xf32>, vector<8x256xf32> -> vector<8x256xf32>
    %cst_276 = arith.constant 0.000000e+00 : f32
    %680 = vector.broadcast %cst_276 : f32 to vector<8x256xf32>
    %681 = arith.maximumf %679, %680 : vector<8x256xf32>
    %c3_277 = arith.constant 3 : index
    %c0_278 = arith.constant 0 : index
    %c0_279 = arith.constant 0 : index
    %682 = vector.load %arg9[%c3_277, %c0_278, %c0_279] : memref<6x256x64xf32, #tpu.memory_space<vmem>>, vector<1x256x64xf32>
    %683 = vector.shape_cast %682 : vector<1x256x64xf32> to vector<256x64xf32>
    %cst_280 = arith.constant dense<0.000000e+00> : vector<8x64xf32>
    %684 = tpu.matmul %681, %683, %cst_280 {dimension_numbers = #tpu.dot_dimension_numbers<[1], [0], [0], [1], [0, 0, 1, 1], [], []>} : vector<8x256xf32>, vector<256x64xf32>, vector<8x64xf32> -> vector<8x64xf32>
    %685 = arith.addf %684, %676 : vector<8x64xf32>
    %cst_281 = arith.constant dense<0.000000e+00> : vector<8xf32>
    %686 = vector.multi_reduction <add>, %685, %cst_281 [1] : vector<8x64xf32> to vector<8xf32>
    %687 = vector.shape_cast %686 : vector<8xf32> to vector<8x1xf32>
    %cst_282 = arith.constant 6.400000e+01 : f32
    %688 = vector.broadcast %cst_282 : f32 to vector<8x1xf32>
    %689 = arith.divf %687, %688 : vector<8x1xf32>
    %690 = vector.broadcast %689 : vector<8x1xf32> to vector<8x64xf32>
    %691 = arith.subf %685, %690 : vector<8x64xf32>
    %692 = arith.mulf %691, %691 : vector<8x64xf32>
    %cst_283 = arith.constant dense<0.000000e+00> : vector<8xf32>
    %693 = vector.multi_reduction <add>, %692, %cst_283 [1] : vector<8x64xf32> to vector<8xf32>
    %694 = vector.shape_cast %693 : vector<8xf32> to vector<8x1xf32>
    %cst_284 = arith.constant 6.400000e+01 : f32
    %695 = vector.broadcast %cst_284 : f32 to vector<8x1xf32>
    %696 = arith.divf %694, %695 : vector<8x1xf32>
    %697 = vector.broadcast %689 : vector<8x1xf32> to vector<8x64xf32>
    %698 = arith.subf %685, %697 : vector<8x64xf32>
    %cst_285 = arith.constant 9.99999974E-6 : f32
    %699 = vector.broadcast %cst_285 : f32 to vector<8x1xf32>
    %700 = arith.addf %696, %699 : vector<8x1xf32>
    %701 = math.rsqrt %700 : vector<8x1xf32>
    %702 = vector.broadcast %701 : vector<8x1xf32> to vector<8x64xf32>
    %703 = arith.mulf %698, %702 : vector<8x64xf32>
    %c4 = arith.constant 4 : index
    %c0_286 = arith.constant 0 : index
    %c0_287 = arith.constant 0 : index
    %704 = vector.load %arg6[%c4, %c0_286, %c0_287] : memref<6x64x2304xf32, #tpu.memory_space<vmem>>, vector<1x64x2304xf32>
    %705 = vector.shape_cast %704 : vector<1x64x2304xf32> to vector<64x2304xf32>
    %cst_288 = arith.constant dense<0.000000e+00> : vector<8x2304xf32>
    %706 = tpu.matmul %703, %705, %cst_288 {dimension_numbers = #tpu.dot_dimension_numbers<[1], [0], [0], [1], [0, 0, 1, 1], [], []>} : vector<8x64xf32>, vector<64x2304xf32>, vector<8x2304xf32> -> vector<8x2304xf32>
    %707 = vector.extract_strided_slice %706 {offsets = [0, 0], sizes = [8, 128], strides = [1, 1]} : vector<8x2304xf32> to vector<8x128xf32>
    %708 = vector.extract_strided_slice %706 {offsets = [0, 768], sizes = [8, 128], strides = [1, 1]} : vector<8x2304xf32> to vector<8x128xf32>
    %709 = vector.extract_strided_slice %706 {offsets = [0, 1536], sizes = [8, 128], strides = [1, 1]} : vector<8x2304xf32> to vector<8x128xf32>
    %cst_289 = arith.constant dense<0.000000e+00> : vector<8x8xf32>
    %710 = tpu.matmul %707, %708, %cst_289 {dimension_numbers = #tpu.dot_dimension_numbers<[1], [1], [0], [0], [0, 0, 1, 0], [], []>} : vector<8x128xf32>, vector<8x128xf32>, vector<8x8xf32> -> vector<8x8xf32>
    %cst_290 = arith.constant 0.0883883461 : f32
    %711 = vector.broadcast %cst_290 : f32 to vector<8x8xf32>
    %712 = arith.mulf %710, %711 : vector<8x8xf32>
    %cst_291 = arith.constant dense<0xFF800000> : vector<8xf32>
    %713 = vector.multi_reduction <maximumf>, %712, %cst_291 [1] : vector<8x8xf32> to vector<8xf32>
    %714 = vector.shape_cast %713 : vector<8xf32> to vector<8x1xf32>
    %715 = vector.broadcast %714 : vector<8x1xf32> to vector<8x8xf32>
    %716 = arith.subf %712, %715 : vector<8x8xf32>
    %717 = math.exp %716 : vector<8x8xf32>
    %cst_292 = arith.constant dense<0.000000e+00> : vector<8xf32>
    %718 = vector.multi_reduction <add>, %717, %cst_292 [1] : vector<8x8xf32> to vector<8xf32>
    %719 = vector.shape_cast %718 : vector<8xf32> to vector<8x1xf32>
    %720 = tpu.reciprocal %719 {approx = true} : vector<8x1xf32> -> vector<8x1xf32>
    %721 = vector.broadcast %720 : vector<8x1xf32> to vector<8x8xf32>
    %722 = arith.mulf %717, %721 : vector<8x8xf32>
    %c0_293 = arith.constant 0 : index
    %c192 = arith.constant 192 : index
    %c0_294 = arith.constant 0 : index
    %723 = vector.load %arg11[%c0_293, %c192, %c0_294] : memref<1x288x8xf32, #tpu.memory_space<vmem>>, vector<1x8x8xf32>
    %724 = vector.shape_cast %723 : vector<1x8x8xf32> to vector<8x8xf32>
    %725 = vector.shape_cast %722 : vector<8x8xf32> to vector<1x8x8xf32>
    tpu.vector_store %arg11[%c0_293, %c192, %c0_294], %725 {strides = array<i32>} : memref<1x288x8xf32, #tpu.memory_space<vmem>>, vector<1x8x8xf32>,
    %cst_295 = arith.constant dense<0.000000e+00> : vector<8x128xf32>
    %726 = tpu.matmul %722, %709, %cst_295 {dimension_numbers = #tpu.dot_dimension_numbers<[1], [0], [0], [1], [0, 0, 1, 1], [], []>} : vector<8x8xf32>, vector<8x128xf32>, vector<8x128xf32> -> vector<8x128xf32>
    %727 = vector.extract_strided_slice %706 {offsets = [0, 128], sizes = [8, 128], strides = [1, 1]} : vector<8x2304xf32> to vector<8x128xf32>
    %728 = vector.extract_strided_slice %706 {offsets = [0, 896], sizes = [8, 128], strides = [1, 1]} : vector<8x2304xf32> to vector<8x128xf32>
    %729 = vector.extract_strided_slice %706 {offsets = [0, 1664], sizes = [8, 128], strides = [1, 1]} : vector<8x2304xf32> to vector<8x128xf32>
    %cst_296 = arith.constant dense<0.000000e+00> : vector<8x8xf32>
    %730 = tpu.matmul %727, %728, %cst_296 {dimension_numbers = #tpu.dot_dimension_numbers<[1], [1], [0], [0], [0, 0, 1, 0], [], []>} : vector<8x128xf32>, vector<8x128xf32>, vector<8x8xf32> -> vector<8x8xf32>
    %cst_297 = arith.constant 0.0883883461 : f32
    %731 = vector.broadcast %cst_297 : f32 to vector<8x8xf32>
    %732 = arith.mulf %730, %731 : vector<8x8xf32>
    %cst_298 = arith.constant dense<0xFF800000> : vector<8xf32>
    %733 = vector.multi_reduction <maximumf>, %732, %cst_298 [1] : vector<8x8xf32> to vector<8xf32>
    %734 = vector.shape_cast %733 : vector<8xf32> to vector<8x1xf32>
    %735 = vector.broadcast %734 : vector<8x1xf32> to vector<8x8xf32>
    %736 = arith.subf %732, %735 : vector<8x8xf32>
    %737 = math.exp %736 : vector<8x8xf32>
    %cst_299 = arith.constant dense<0.000000e+00> : vector<8xf32>
    %738 = vector.multi_reduction <add>, %737, %cst_299 [1] : vector<8x8xf32> to vector<8xf32>
    %739 = vector.shape_cast %738 : vector<8xf32> to vector<8x1xf32>
    %740 = tpu.reciprocal %739 {approx = true} : vector<8x1xf32> -> vector<8x1xf32>
    %741 = vector.broadcast %740 : vector<8x1xf32> to vector<8x8xf32>
    %742 = arith.mulf %737, %741 : vector<8x8xf32>
    %c0_300 = arith.constant 0 : index
    %c200 = arith.constant 200 : index
    %c0_301 = arith.constant 0 : index
    %743 = vector.load %arg11[%c0_300, %c200, %c0_301] : memref<1x288x8xf32, #tpu.memory_space<vmem>>, vector<1x8x8xf32>
    %744 = vector.shape_cast %743 : vector<1x8x8xf32> to vector<8x8xf32>
    %745 = vector.shape_cast %742 : vector<8x8xf32> to vector<1x8x8xf32>
    tpu.vector_store %arg11[%c0_300, %c200, %c0_301], %745 {strides = array<i32>} : memref<1x288x8xf32, #tpu.memory_space<vmem>>, vector<1x8x8xf32>,
    %cst_302 = arith.constant dense<0.000000e+00> : vector<8x128xf32>
    %746 = tpu.matmul %742, %729, %cst_302 {dimension_numbers = #tpu.dot_dimension_numbers<[1], [0], [0], [1], [0, 0, 1, 1], [], []>} : vector<8x8xf32>, vector<8x128xf32>, vector<8x128xf32> -> vector<8x128xf32>
    %747 = vector.extract_strided_slice %706 {offsets = [0, 256], sizes = [8, 128], strides = [1, 1]} : vector<8x2304xf32> to vector<8x128xf32>
    %748 = vector.extract_strided_slice %706 {offsets = [0, 1024], sizes = [8, 128], strides = [1, 1]} : vector<8x2304xf32> to vector<8x128xf32>
    %749 = vector.extract_strided_slice %706 {offsets = [0, 1792], sizes = [8, 128], strides = [1, 1]} : vector<8x2304xf32> to vector<8x128xf32>
    %cst_303 = arith.constant dense<0.000000e+00> : vector<8x8xf32>
    %750 = tpu.matmul %747, %748, %cst_303 {dimension_numbers = #tpu.dot_dimension_numbers<[1], [1], [0], [0], [0, 0, 1, 0], [], []>} : vector<8x128xf32>, vector<8x128xf32>, vector<8x8xf32> -> vector<8x8xf32>
    %cst_304 = arith.constant 0.0883883461 : f32
    %751 = vector.broadcast %cst_304 : f32 to vector<8x8xf32>
    %752 = arith.mulf %750, %751 : vector<8x8xf32>
    %cst_305 = arith.constant dense<0xFF800000> : vector<8xf32>
    %753 = vector.multi_reduction <maximumf>, %752, %cst_305 [1] : vector<8x8xf32> to vector<8xf32>
    %754 = vector.shape_cast %753 : vector<8xf32> to vector<8x1xf32>
    %755 = vector.broadcast %754 : vector<8x1xf32> to vector<8x8xf32>
    %756 = arith.subf %752, %755 : vector<8x8xf32>
    %757 = math.exp %756 : vector<8x8xf32>
    %cst_306 = arith.constant dense<0.000000e+00> : vector<8xf32>
    %758 = vector.multi_reduction <add>, %757, %cst_306 [1] : vector<8x8xf32> to vector<8xf32>
    %759 = vector.shape_cast %758 : vector<8xf32> to vector<8x1xf32>
    %760 = tpu.reciprocal %759 {approx = true} : vector<8x1xf32> -> vector<8x1xf32>
    %761 = vector.broadcast %760 : vector<8x1xf32> to vector<8x8xf32>
    %762 = arith.mulf %757, %761 : vector<8x8xf32>
    %c0_307 = arith.constant 0 : index
    %c208 = arith.constant 208 : index
    %c0_308 = arith.constant 0 : index
    %763 = vector.load %arg11[%c0_307, %c208, %c0_308] : memref<1x288x8xf32, #tpu.memory_space<vmem>>, vector<1x8x8xf32>
    %764 = vector.shape_cast %763 : vector<1x8x8xf32> to vector<8x8xf32>
    %765 = vector.shape_cast %762 : vector<8x8xf32> to vector<1x8x8xf32>
    tpu.vector_store %arg11[%c0_307, %c208, %c0_308], %765 {strides = array<i32>} : memref<1x288x8xf32, #tpu.memory_space<vmem>>, vector<1x8x8xf32>,
    %cst_309 = arith.constant dense<0.000000e+00> : vector<8x128xf32>
    %766 = tpu.matmul %762, %749, %cst_309 {dimension_numbers = #tpu.dot_dimension_numbers<[1], [0], [0], [1], [0, 0, 1, 1], [], []>} : vector<8x8xf32>, vector<8x128xf32>, vector<8x128xf32> -> vector<8x128xf32>
    %767 = vector.extract_strided_slice %706 {offsets = [0, 384], sizes = [8, 128], strides = [1, 1]} : vector<8x2304xf32> to vector<8x128xf32>
    %768 = vector.extract_strided_slice %706 {offsets = [0, 1152], sizes = [8, 128], strides = [1, 1]} : vector<8x2304xf32> to vector<8x128xf32>
    %769 = vector.extract_strided_slice %706 {offsets = [0, 1920], sizes = [8, 128], strides = [1, 1]} : vector<8x2304xf32> to vector<8x128xf32>
    %cst_310 = arith.constant dense<0.000000e+00> : vector<8x8xf32>
    %770 = tpu.matmul %767, %768, %cst_310 {dimension_numbers = #tpu.dot_dimension_numbers<[1], [1], [0], [0], [0, 0, 1, 0], [], []>} : vector<8x128xf32>, vector<8x128xf32>, vector<8x8xf32> -> vector<8x8xf32>
    %cst_311 = arith.constant 0.0883883461 : f32
    %771 = vector.broadcast %cst_311 : f32 to vector<8x8xf32>
    %772 = arith.mulf %770, %771 : vector<8x8xf32>
    %cst_312 = arith.constant dense<0xFF800000> : vector<8xf32>
    %773 = vector.multi_reduction <maximumf>, %772, %cst_312 [1] : vector<8x8xf32> to vector<8xf32>
    %774 = vector.shape_cast %773 : vector<8xf32> to vector<8x1xf32>
    %775 = vector.broadcast %774 : vector<8x1xf32> to vector<8x8xf32>
    %776 = arith.subf %772, %775 : vector<8x8xf32>
    %777 = math.exp %776 : vector<8x8xf32>
    %cst_313 = arith.constant dense<0.000000e+00> : vector<8xf32>
    %778 = vector.multi_reduction <add>, %777, %cst_313 [1] : vector<8x8xf32> to vector<8xf32>
    %779 = vector.shape_cast %778 : vector<8xf32> to vector<8x1xf32>
    %780 = tpu.reciprocal %779 {approx = true} : vector<8x1xf32> -> vector<8x1xf32>
    %781 = vector.broadcast %780 : vector<8x1xf32> to vector<8x8xf32>
    %782 = arith.mulf %777, %781 : vector<8x8xf32>
    %c0_314 = arith.constant 0 : index
    %c216 = arith.constant 216 : index
    %c0_315 = arith.constant 0 : index
    %783 = vector.load %arg11[%c0_314, %c216, %c0_315] : memref<1x288x8xf32, #tpu.memory_space<vmem>>, vector<1x8x8xf32>
    %784 = vector.shape_cast %783 : vector<1x8x8xf32> to vector<8x8xf32>
    %785 = vector.shape_cast %782 : vector<8x8xf32> to vector<1x8x8xf32>
    tpu.vector_store %arg11[%c0_314, %c216, %c0_315], %785 {strides = array<i32>} : memref<1x288x8xf32, #tpu.memory_space<vmem>>, vector<1x8x8xf32>,
    %cst_316 = arith.constant dense<0.000000e+00> : vector<8x128xf32>
    %786 = tpu.matmul %782, %769, %cst_316 {dimension_numbers = #tpu.dot_dimension_numbers<[1], [0], [0], [1], [0, 0, 1, 1], [], []>} : vector<8x8xf32>, vector<8x128xf32>, vector<8x128xf32> -> vector<8x128xf32>
    %787 = vector.extract_strided_slice %706 {offsets = [0, 512], sizes = [8, 128], strides = [1, 1]} : vector<8x2304xf32> to vector<8x128xf32>
    %788 = vector.extract_strided_slice %706 {offsets = [0, 1280], sizes = [8, 128], strides = [1, 1]} : vector<8x2304xf32> to vector<8x128xf32>
    %789 = vector.extract_strided_slice %706 {offsets = [0, 2048], sizes = [8, 128], strides = [1, 1]} : vector<8x2304xf32> to vector<8x128xf32>
    %cst_317 = arith.constant dense<0.000000e+00> : vector<8x8xf32>
    %790 = tpu.matmul %787, %788, %cst_317 {dimension_numbers = #tpu.dot_dimension_numbers<[1], [1], [0], [0], [0, 0, 1, 0], [], []>} : vector<8x128xf32>, vector<8x128xf32>, vector<8x8xf32> -> vector<8x8xf32>
    %cst_318 = arith.constant 0.0883883461 : f32
    %791 = vector.broadcast %cst_318 : f32 to vector<8x8xf32>
    %792 = arith.mulf %790, %791 : vector<8x8xf32>
    %cst_319 = arith.constant dense<0xFF800000> : vector<8xf32>
    %793 = vector.multi_reduction <maximumf>, %792, %cst_319 [1] : vector<8x8xf32> to vector<8xf32>
    %794 = vector.shape_cast %793 : vector<8xf32> to vector<8x1xf32>
    %795 = vector.broadcast %794 : vector<8x1xf32> to vector<8x8xf32>
    %796 = arith.subf %792, %795 : vector<8x8xf32>
    %797 = math.exp %796 : vector<8x8xf32>
    %cst_320 = arith.constant dense<0.000000e+00> : vector<8xf32>
    %798 = vector.multi_reduction <add>, %797, %cst_320 [1] : vector<8x8xf32> to vector<8xf32>
    %799 = vector.shape_cast %798 : vector<8xf32> to vector<8x1xf32>
    %800 = tpu.reciprocal %799 {approx = true} : vector<8x1xf32> -> vector<8x1xf32>
    %801 = vector.broadcast %800 : vector<8x1xf32> to vector<8x8xf32>
    %802 = arith.mulf %797, %801 : vector<8x8xf32>
    %c0_321 = arith.constant 0 : index
    %c224 = arith.constant 224 : index
    %c0_322 = arith.constant 0 : index
    %803 = vector.load %arg11[%c0_321, %c224, %c0_322] : memref<1x288x8xf32, #tpu.memory_space<vmem>>, vector<1x8x8xf32>
    %804 = vector.shape_cast %803 : vector<1x8x8xf32> to vector<8x8xf32>
    %805 = vector.shape_cast %802 : vector<8x8xf32> to vector<1x8x8xf32>
    tpu.vector_store %arg11[%c0_321, %c224, %c0_322], %805 {strides = array<i32>} : memref<1x288x8xf32, #tpu.memory_space<vmem>>, vector<1x8x8xf32>,
    %cst_323 = arith.constant dense<0.000000e+00> : vector<8x128xf32>
    %806 = tpu.matmul %802, %789, %cst_323 {dimension_numbers = #tpu.dot_dimension_numbers<[1], [0], [0], [1], [0, 0, 1, 1], [], []>} : vector<8x8xf32>, vector<8x128xf32>, vector<8x128xf32> -> vector<8x128xf32>
    %807 = vector.extract_strided_slice %706 {offsets = [0, 640], sizes = [8, 128], strides = [1, 1]} : vector<8x2304xf32> to vector<8x128xf32>
    %808 = vector.extract_strided_slice %706 {offsets = [0, 1408], sizes = [8, 128], strides = [1, 1]} : vector<8x2304xf32> to vector<8x128xf32>
    %809 = vector.extract_strided_slice %706 {offsets = [0, 2176], sizes = [8, 128], strides = [1, 1]} : vector<8x2304xf32> to vector<8x128xf32>
    %cst_324 = arith.constant dense<0.000000e+00> : vector<8x8xf32>
    %810 = tpu.matmul %807, %808, %cst_324 {dimension_numbers = #tpu.dot_dimension_numbers<[1], [1], [0], [0], [0, 0, 1, 0], [], []>} : vector<8x128xf32>, vector<8x128xf32>, vector<8x8xf32> -> vector<8x8xf32>
    %cst_325 = arith.constant 0.0883883461 : f32
    %811 = vector.broadcast %cst_325 : f32 to vector<8x8xf32>
    %812 = arith.mulf %810, %811 : vector<8x8xf32>
    %cst_326 = arith.constant dense<0xFF800000> : vector<8xf32>
    %813 = vector.multi_reduction <maximumf>, %812, %cst_326 [1] : vector<8x8xf32> to vector<8xf32>
    %814 = vector.shape_cast %813 : vector<8xf32> to vector<8x1xf32>
    %815 = vector.broadcast %814 : vector<8x1xf32> to vector<8x8xf32>
    %816 = arith.subf %812, %815 : vector<8x8xf32>
    %817 = math.exp %816 : vector<8x8xf32>
    %cst_327 = arith.constant dense<0.000000e+00> : vector<8xf32>
    %818 = vector.multi_reduction <add>, %817, %cst_327 [1] : vector<8x8xf32> to vector<8xf32>
    %819 = vector.shape_cast %818 : vector<8xf32> to vector<8x1xf32>
    %820 = tpu.reciprocal %819 {approx = true} : vector<8x1xf32> -> vector<8x1xf32>
    %821 = vector.broadcast %820 : vector<8x1xf32> to vector<8x8xf32>
    %822 = arith.mulf %817, %821 : vector<8x8xf32>
    %c0_328 = arith.constant 0 : index
    %c232 = arith.constant 232 : index
    %c0_329 = arith.constant 0 : index
    %823 = vector.load %arg11[%c0_328, %c232, %c0_329] : memref<1x288x8xf32, #tpu.memory_space<vmem>>, vector<1x8x8xf32>
    %824 = vector.shape_cast %823 : vector<1x8x8xf32> to vector<8x8xf32>
    %825 = vector.shape_cast %822 : vector<8x8xf32> to vector<1x8x8xf32>
    tpu.vector_store %arg11[%c0_328, %c232, %c0_329], %825 {strides = array<i32>} : memref<1x288x8xf32, #tpu.memory_space<vmem>>, vector<1x8x8xf32>,
    %cst_330 = arith.constant dense<0.000000e+00> : vector<8x128xf32>
    %826 = tpu.matmul %822, %809, %cst_330 {dimension_numbers = #tpu.dot_dimension_numbers<[1], [0], [0], [1], [0, 0, 1, 1], [], []>} : vector<8x8xf32>, vector<8x128xf32>, vector<8x128xf32> -> vector<8x128xf32>
    %827 = tpu.concatenate %726, %746, %766, %786, %806, %826 in 1 : vector<8x128xf32>, vector<8x128xf32>, vector<8x128xf32>, vector<8x128xf32>, vector<8x128xf32>, vector<8x128xf32> -> vector<8x768xf32>
    %c4_331 = arith.constant 4 : index
    %c0_332 = arith.constant 0 : index
    %c0_333 = arith.constant 0 : index
    %828 = vector.load %arg7[%c4_331, %c0_332, %c0_333] : memref<6x768x64xf32, #tpu.memory_space<vmem>>, vector<1x768x64xf32>
    %829 = vector.shape_cast %828 : vector<1x768x64xf32> to vector<768x64xf32>
    %cst_334 = arith.constant dense<0.000000e+00> : vector<8x64xf32>
    %830 = tpu.matmul %827, %829, %cst_334 {dimension_numbers = #tpu.dot_dimension_numbers<[1], [0], [0], [1], [0, 0, 1, 1], [], []>} : vector<8x768xf32>, vector<768x64xf32>, vector<8x64xf32> -> vector<8x64xf32>
    %831 = arith.addf %830, %703 : vector<8x64xf32>
    %cst_335 = arith.constant dense<0.000000e+00> : vector<8xf32>
    %832 = vector.multi_reduction <add>, %831, %cst_335 [1] : vector<8x64xf32> to vector<8xf32>
    %833 = vector.shape_cast %832 : vector<8xf32> to vector<8x1xf32>
    %cst_336 = arith.constant 6.400000e+01 : f32
    %834 = vector.broadcast %cst_336 : f32 to vector<8x1xf32>
    %835 = arith.divf %833, %834 : vector<8x1xf32>
    %836 = vector.broadcast %835 : vector<8x1xf32> to vector<8x64xf32>
    %837 = arith.subf %831, %836 : vector<8x64xf32>
    %838 = arith.mulf %837, %837 : vector<8x64xf32>
    %cst_337 = arith.constant dense<0.000000e+00> : vector<8xf32>
    %839 = vector.multi_reduction <add>, %838, %cst_337 [1] : vector<8x64xf32> to vector<8xf32>
    %840 = vector.shape_cast %839 : vector<8xf32> to vector<8x1xf32>
    %cst_338 = arith.constant 6.400000e+01 : f32
    %841 = vector.broadcast %cst_338 : f32 to vector<8x1xf32>
    %842 = arith.divf %840, %841 : vector<8x1xf32>
    %843 = vector.broadcast %835 : vector<8x1xf32> to vector<8x64xf32>
    %844 = arith.subf %831, %843 : vector<8x64xf32>
    %cst_339 = arith.constant 9.99999974E-6 : f32
    %845 = vector.broadcast %cst_339 : f32 to vector<8x1xf32>
    %846 = arith.addf %842, %845 : vector<8x1xf32>
    %847 = math.rsqrt %846 : vector<8x1xf32>
    %848 = vector.broadcast %847 : vector<8x1xf32> to vector<8x64xf32>
    %849 = arith.mulf %844, %848 : vector<8x64xf32>
    %c4_340 = arith.constant 4 : index
    %c0_341 = arith.constant 0 : index
    %c0_342 = arith.constant 0 : index
    %850 = vector.load %arg8[%c4_340, %c0_341, %c0_342] : memref<6x64x256xf32, #tpu.memory_space<vmem>>, vector<1x64x256xf32>
    %851 = vector.shape_cast %850 : vector<1x64x256xf32> to vector<64x256xf32>
    %cst_343 = arith.constant dense<0.000000e+00> : vector<8x256xf32>
    %852 = tpu.matmul %849, %851, %cst_343 {dimension_numbers = #tpu.dot_dimension_numbers<[1], [0], [0], [1], [0, 0, 1, 1], [], []>} : vector<8x64xf32>, vector<64x256xf32>, vector<8x256xf32> -> vector<8x256xf32>
    %cst_344 = arith.constant 0.000000e+00 : f32
    %853 = vector.broadcast %cst_344 : f32 to vector<8x256xf32>
    %854 = arith.maximumf %852, %853 : vector<8x256xf32>
    %c4_345 = arith.constant 4 : index
    %c0_346 = arith.constant 0 : index
    %c0_347 = arith.constant 0 : index
    %855 = vector.load %arg9[%c4_345, %c0_346, %c0_347] : memref<6x256x64xf32, #tpu.memory_space<vmem>>, vector<1x256x64xf32>
    %856 = vector.shape_cast %855 : vector<1x256x64xf32> to vector<256x64xf32>
    %cst_348 = arith.constant dense<0.000000e+00> : vector<8x64xf32>
    %857 = tpu.matmul %854, %856, %cst_348 {dimension_numbers = #tpu.dot_dimension_numbers<[1], [0], [0], [1], [0, 0, 1, 1], [], []>} : vector<8x256xf32>, vector<256x64xf32>, vector<8x64xf32> -> vector<8x64xf32>
    %858 = arith.addf %857, %849 : vector<8x64xf32>
    %cst_349 = arith.constant dense<0.000000e+00> : vector<8xf32>
    %859 = vector.multi_reduction <add>, %858, %cst_349 [1] : vector<8x64xf32> to vector<8xf32>
    %860 = vector.shape_cast %859 : vector<8xf32> to vector<8x1xf32>
    %cst_350 = arith.constant 6.400000e+01 : f32
    %861 = vector.broadcast %cst_350 : f32 to vector<8x1xf32>
    %862 = arith.divf %860, %861 : vector<8x1xf32>
    %863 = vector.broadcast %862 : vector<8x1xf32> to vector<8x64xf32>
    %864 = arith.subf %858, %863 : vector<8x64xf32>
    %865 = arith.mulf %864, %864 : vector<8x64xf32>
    %cst_351 = arith.constant dense<0.000000e+00> : vector<8xf32>
    %866 = vector.multi_reduction <add>, %865, %cst_351 [1] : vector<8x64xf32> to vector<8xf32>
    %867 = vector.shape_cast %866 : vector<8xf32> to vector<8x1xf32>
    %cst_352 = arith.constant 6.400000e+01 : f32
    %868 = vector.broadcast %cst_352 : f32 to vector<8x1xf32>
    %869 = arith.divf %867, %868 : vector<8x1xf32>
    %870 = vector.broadcast %862 : vector<8x1xf32> to vector<8x64xf32>
    %871 = arith.subf %858, %870 : vector<8x64xf32>
    %cst_353 = arith.constant 9.99999974E-6 : f32
    %872 = vector.broadcast %cst_353 : f32 to vector<8x1xf32>
    %873 = arith.addf %869, %872 : vector<8x1xf32>
    %874 = math.rsqrt %873 : vector<8x1xf32>
    %875 = vector.broadcast %874 : vector<8x1xf32> to vector<8x64xf32>
    %876 = arith.mulf %871, %875 : vector<8x64xf32>
    %c5 = arith.constant 5 : index
    %c0_354 = arith.constant 0 : index
    %c0_355 = arith.constant 0 : index
    %877 = vector.load %arg6[%c5, %c0_354, %c0_355] : memref<6x64x2304xf32, #tpu.memory_space<vmem>>, vector<1x64x2304xf32>
    %878 = vector.shape_cast %877 : vector<1x64x2304xf32> to vector<64x2304xf32>
    %cst_356 = arith.constant dense<0.000000e+00> : vector<8x2304xf32>
    %879 = tpu.matmul %876, %878, %cst_356 {dimension_numbers = #tpu.dot_dimension_numbers<[1], [0], [0], [1], [0, 0, 1, 1], [], []>} : vector<8x64xf32>, vector<64x2304xf32>, vector<8x2304xf32> -> vector<8x2304xf32>
    %880 = vector.extract_strided_slice %879 {offsets = [0, 0], sizes = [8, 128], strides = [1, 1]} : vector<8x2304xf32> to vector<8x128xf32>
    %881 = vector.extract_strided_slice %879 {offsets = [0, 768], sizes = [8, 128], strides = [1, 1]} : vector<8x2304xf32> to vector<8x128xf32>
    %882 = vector.extract_strided_slice %879 {offsets = [0, 1536], sizes = [8, 128], strides = [1, 1]} : vector<8x2304xf32> to vector<8x128xf32>
    %cst_357 = arith.constant dense<0.000000e+00> : vector<8x8xf32>
    %883 = tpu.matmul %880, %881, %cst_357 {dimension_numbers = #tpu.dot_dimension_numbers<[1], [1], [0], [0], [0, 0, 1, 0], [], []>} : vector<8x128xf32>, vector<8x128xf32>, vector<8x8xf32> -> vector<8x8xf32>
    %cst_358 = arith.constant 0.0883883461 : f32
    %884 = vector.broadcast %cst_358 : f32 to vector<8x8xf32>
    %885 = arith.mulf %883, %884 : vector<8x8xf32>
    %cst_359 = arith.constant dense<0xFF800000> : vector<8xf32>
    %886 = vector.multi_reduction <maximumf>, %885, %cst_359 [1] : vector<8x8xf32> to vector<8xf32>
    %887 = vector.shape_cast %886 : vector<8xf32> to vector<8x1xf32>
    %888 = vector.broadcast %887 : vector<8x1xf32> to vector<8x8xf32>
    %889 = arith.subf %885, %888 : vector<8x8xf32>
    %890 = math.exp %889 : vector<8x8xf32>
    %cst_360 = arith.constant dense<0.000000e+00> : vector<8xf32>
    %891 = vector.multi_reduction <add>, %890, %cst_360 [1] : vector<8x8xf32> to vector<8xf32>
    %892 = vector.shape_cast %891 : vector<8xf32> to vector<8x1xf32>
    %893 = tpu.reciprocal %892 {approx = true} : vector<8x1xf32> -> vector<8x1xf32>
    %894 = vector.broadcast %893 : vector<8x1xf32> to vector<8x8xf32>
    %895 = arith.mulf %890, %894 : vector<8x8xf32>
    %c0_361 = arith.constant 0 : index
    %c240 = arith.constant 240 : index
    %c0_362 = arith.constant 0 : index
    %896 = vector.load %arg11[%c0_361, %c240, %c0_362] : memref<1x288x8xf32, #tpu.memory_space<vmem>>, vector<1x8x8xf32>
    %897 = vector.shape_cast %896 : vector<1x8x8xf32> to vector<8x8xf32>
    %898 = vector.shape_cast %895 : vector<8x8xf32> to vector<1x8x8xf32>
    tpu.vector_store %arg11[%c0_361, %c240, %c0_362], %898 {strides = array<i32>} : memref<1x288x8xf32, #tpu.memory_space<vmem>>, vector<1x8x8xf32>,
    %cst_363 = arith.constant dense<0.000000e+00> : vector<8x128xf32>
    %899 = tpu.matmul %895, %882, %cst_363 {dimension_numbers = #tpu.dot_dimension_numbers<[1], [0], [0], [1], [0, 0, 1, 1], [], []>} : vector<8x8xf32>, vector<8x128xf32>, vector<8x128xf32> -> vector<8x128xf32>
    %900 = vector.extract_strided_slice %879 {offsets = [0, 128], sizes = [8, 128], strides = [1, 1]} : vector<8x2304xf32> to vector<8x128xf32>
    %901 = vector.extract_strided_slice %879 {offsets = [0, 896], sizes = [8, 128], strides = [1, 1]} : vector<8x2304xf32> to vector<8x128xf32>
    %902 = vector.extract_strided_slice %879 {offsets = [0, 1664], sizes = [8, 128], strides = [1, 1]} : vector<8x2304xf32> to vector<8x128xf32>
    %cst_364 = arith.constant dense<0.000000e+00> : vector<8x8xf32>
    %903 = tpu.matmul %900, %901, %cst_364 {dimension_numbers = #tpu.dot_dimension_numbers<[1], [1], [0], [0], [0, 0, 1, 0], [], []>} : vector<8x128xf32>, vector<8x128xf32>, vector<8x8xf32> -> vector<8x8xf32>
    %cst_365 = arith.constant 0.0883883461 : f32
    %904 = vector.broadcast %cst_365 : f32 to vector<8x8xf32>
    %905 = arith.mulf %903, %904 : vector<8x8xf32>
    %cst_366 = arith.constant dense<0xFF800000> : vector<8xf32>
    %906 = vector.multi_reduction <maximumf>, %905, %cst_366 [1] : vector<8x8xf32> to vector<8xf32>
    %907 = vector.shape_cast %906 : vector<8xf32> to vector<8x1xf32>
    %908 = vector.broadcast %907 : vector<8x1xf32> to vector<8x8xf32>
    %909 = arith.subf %905, %908 : vector<8x8xf32>
    %910 = math.exp %909 : vector<8x8xf32>
    %cst_367 = arith.constant dense<0.000000e+00> : vector<8xf32>
    %911 = vector.multi_reduction <add>, %910, %cst_367 [1] : vector<8x8xf32> to vector<8xf32>
    %912 = vector.shape_cast %911 : vector<8xf32> to vector<8x1xf32>
    %913 = tpu.reciprocal %912 {approx = true} : vector<8x1xf32> -> vector<8x1xf32>
    %914 = vector.broadcast %913 : vector<8x1xf32> to vector<8x8xf32>
    %915 = arith.mulf %910, %914 : vector<8x8xf32>
    %c0_368 = arith.constant 0 : index
    %c248 = arith.constant 248 : index
    %c0_369 = arith.constant 0 : index
    %916 = vector.load %arg11[%c0_368, %c248, %c0_369] : memref<1x288x8xf32, #tpu.memory_space<vmem>>, vector<1x8x8xf32>
    %917 = vector.shape_cast %916 : vector<1x8x8xf32> to vector<8x8xf32>
    %918 = vector.shape_cast %915 : vector<8x8xf32> to vector<1x8x8xf32>
    tpu.vector_store %arg11[%c0_368, %c248, %c0_369], %918 {strides = array<i32>} : memref<1x288x8xf32, #tpu.memory_space<vmem>>, vector<1x8x8xf32>,
    %cst_370 = arith.constant dense<0.000000e+00> : vector<8x128xf32>
    %919 = tpu.matmul %915, %902, %cst_370 {dimension_numbers = #tpu.dot_dimension_numbers<[1], [0], [0], [1], [0, 0, 1, 1], [], []>} : vector<8x8xf32>, vector<8x128xf32>, vector<8x128xf32> -> vector<8x128xf32>
    %920 = vector.extract_strided_slice %879 {offsets = [0, 256], sizes = [8, 128], strides = [1, 1]} : vector<8x2304xf32> to vector<8x128xf32>
    %921 = vector.extract_strided_slice %879 {offsets = [0, 1024], sizes = [8, 128], strides = [1, 1]} : vector<8x2304xf32> to vector<8x128xf32>
    %922 = vector.extract_strided_slice %879 {offsets = [0, 1792], sizes = [8, 128], strides = [1, 1]} : vector<8x2304xf32> to vector<8x128xf32>
    %cst_371 = arith.constant dense<0.000000e+00> : vector<8x8xf32>
    %923 = tpu.matmul %920, %921, %cst_371 {dimension_numbers = #tpu.dot_dimension_numbers<[1], [1], [0], [0], [0, 0, 1, 0], [], []>} : vector<8x128xf32>, vector<8x128xf32>, vector<8x8xf32> -> vector<8x8xf32>
    %cst_372 = arith.constant 0.0883883461 : f32
    %924 = vector.broadcast %cst_372 : f32 to vector<8x8xf32>
    %925 = arith.mulf %923, %924 : vector<8x8xf32>
    %cst_373 = arith.constant dense<0xFF800000> : vector<8xf32>
    %926 = vector.multi_reduction <maximumf>, %925, %cst_373 [1] : vector<8x8xf32> to vector<8xf32>
    %927 = vector.shape_cast %926 : vector<8xf32> to vector<8x1xf32>
    %928 = vector.broadcast %927 : vector<8x1xf32> to vector<8x8xf32>
    %929 = arith.subf %925, %928 : vector<8x8xf32>
    %930 = math.exp %929 : vector<8x8xf32>
    %cst_374 = arith.constant dense<0.000000e+00> : vector<8xf32>
    %931 = vector.multi_reduction <add>, %930, %cst_374 [1] : vector<8x8xf32> to vector<8xf32>
    %932 = vector.shape_cast %931 : vector<8xf32> to vector<8x1xf32>
    %933 = tpu.reciprocal %932 {approx = true} : vector<8x1xf32> -> vector<8x1xf32>
    %934 = vector.broadcast %933 : vector<8x1xf32> to vector<8x8xf32>
    %935 = arith.mulf %930, %934 : vector<8x8xf32>
    %c0_375 = arith.constant 0 : index
    %c256 = arith.constant 256 : index
    %c0_376 = arith.constant 0 : index
    %936 = vector.load %arg11[%c0_375, %c256, %c0_376] : memref<1x288x8xf32, #tpu.memory_space<vmem>>, vector<1x8x8xf32>
    %937 = vector.shape_cast %936 : vector<1x8x8xf32> to vector<8x8xf32>
    %938 = vector.shape_cast %935 : vector<8x8xf32> to vector<1x8x8xf32>
    tpu.vector_store %arg11[%c0_375, %c256, %c0_376], %938 {strides = array<i32>} : memref<1x288x8xf32, #tpu.memory_space<vmem>>, vector<1x8x8xf32>,
    %cst_377 = arith.constant dense<0.000000e+00> : vector<8x128xf32>
    %939 = tpu.matmul %935, %922, %cst_377 {dimension_numbers = #tpu.dot_dimension_numbers<[1], [0], [0], [1], [0, 0, 1, 1], [], []>} : vector<8x8xf32>, vector<8x128xf32>, vector<8x128xf32> -> vector<8x128xf32>
    %940 = vector.extract_strided_slice %879 {offsets = [0, 384], sizes = [8, 128], strides = [1, 1]} : vector<8x2304xf32> to vector<8x128xf32>
    %941 = vector.extract_strided_slice %879 {offsets = [0, 1152], sizes = [8, 128], strides = [1, 1]} : vector<8x2304xf32> to vector<8x128xf32>
    %942 = vector.extract_strided_slice %879 {offsets = [0, 1920], sizes = [8, 128], strides = [1, 1]} : vector<8x2304xf32> to vector<8x128xf32>
    %cst_378 = arith.constant dense<0.000000e+00> : vector<8x8xf32>
    %943 = tpu.matmul %940, %941, %cst_378 {dimension_numbers = #tpu.dot_dimension_numbers<[1], [1], [0], [0], [0, 0, 1, 0], [], []>} : vector<8x128xf32>, vector<8x128xf32>, vector<8x8xf32> -> vector<8x8xf32>
    %cst_379 = arith.constant 0.0883883461 : f32
    %944 = vector.broadcast %cst_379 : f32 to vector<8x8xf32>
    %945 = arith.mulf %943, %944 : vector<8x8xf32>
    %cst_380 = arith.constant dense<0xFF800000> : vector<8xf32>
    %946 = vector.multi_reduction <maximumf>, %945, %cst_380 [1] : vector<8x8xf32> to vector<8xf32>
    %947 = vector.shape_cast %946 : vector<8xf32> to vector<8x1xf32>
    %948 = vector.broadcast %947 : vector<8x1xf32> to vector<8x8xf32>
    %949 = arith.subf %945, %948 : vector<8x8xf32>
    %950 = math.exp %949 : vector<8x8xf32>
    %cst_381 = arith.constant dense<0.000000e+00> : vector<8xf32>
    %951 = vector.multi_reduction <add>, %950, %cst_381 [1] : vector<8x8xf32> to vector<8xf32>
    %952 = vector.shape_cast %951 : vector<8xf32> to vector<8x1xf32>
    %953 = tpu.reciprocal %952 {approx = true} : vector<8x1xf32> -> vector<8x1xf32>
    %954 = vector.broadcast %953 : vector<8x1xf32> to vector<8x8xf32>
    %955 = arith.mulf %950, %954 : vector<8x8xf32>
    %c0_382 = arith.constant 0 : index
    %c264 = arith.constant 264 : index
    %c0_383 = arith.constant 0 : index
    %956 = vector.load %arg11[%c0_382, %c264, %c0_383] : memref<1x288x8xf32, #tpu.memory_space<vmem>>, vector<1x8x8xf32>
    %957 = vector.shape_cast %956 : vector<1x8x8xf32> to vector<8x8xf32>
    %958 = vector.shape_cast %955 : vector<8x8xf32> to vector<1x8x8xf32>
    tpu.vector_store %arg11[%c0_382, %c264, %c0_383], %958 {strides = array<i32>} : memref<1x288x8xf32, #tpu.memory_space<vmem>>, vector<1x8x8xf32>,
    %cst_384 = arith.constant dense<0.000000e+00> : vector<8x128xf32>
    %959 = tpu.matmul %955, %942, %cst_384 {dimension_numbers = #tpu.dot_dimension_numbers<[1], [0], [0], [1], [0, 0, 1, 1], [], []>} : vector<8x8xf32>, vector<8x128xf32>, vector<8x128xf32> -> vector<8x128xf32>
    %960 = vector.extract_strided_slice %879 {offsets = [0, 512], sizes = [8, 128], strides = [1, 1]} : vector<8x2304xf32> to vector<8x128xf32>
    %961 = vector.extract_strided_slice %879 {offsets = [0, 1280], sizes = [8, 128], strides = [1, 1]} : vector<8x2304xf32> to vector<8x128xf32>
    %962 = vector.extract_strided_slice %879 {offsets = [0, 2048], sizes = [8, 128], strides = [1, 1]} : vector<8x2304xf32> to vector<8x128xf32>
    %cst_385 = arith.constant dense<0.000000e+00> : vector<8x8xf32>
    %963 = tpu.matmul %960, %961, %cst_385 {dimension_numbers = #tpu.dot_dimension_numbers<[1], [1], [0], [0], [0, 0, 1, 0], [], []>} : vector<8x128xf32>, vector<8x128xf32>, vector<8x8xf32> -> vector<8x8xf32>
    %cst_386 = arith.constant 0.0883883461 : f32
    %964 = vector.broadcast %cst_386 : f32 to vector<8x8xf32>
    %965 = arith.mulf %963, %964 : vector<8x8xf32>
    %cst_387 = arith.constant dense<0xFF800000> : vector<8xf32>
    %966 = vector.multi_reduction <maximumf>, %965, %cst_387 [1] : vector<8x8xf32> to vector<8xf32>
    %967 = vector.shape_cast %966 : vector<8xf32> to vector<8x1xf32>
    %968 = vector.broadcast %967 : vector<8x1xf32> to vector<8x8xf32>
    %969 = arith.subf %965, %968 : vector<8x8xf32>
    %970 = math.exp %969 : vector<8x8xf32>
    %cst_388 = arith.constant dense<0.000000e+00> : vector<8xf32>
    %971 = vector.multi_reduction <add>, %970, %cst_388 [1] : vector<8x8xf32> to vector<8xf32>
    %972 = vector.shape_cast %971 : vector<8xf32> to vector<8x1xf32>
    %973 = tpu.reciprocal %972 {approx = true} : vector<8x1xf32> -> vector<8x1xf32>
    %974 = vector.broadcast %973 : vector<8x1xf32> to vector<8x8xf32>
    %975 = arith.mulf %970, %974 : vector<8x8xf32>
    %c0_389 = arith.constant 0 : index
    %c272 = arith.constant 272 : index
    %c0_390 = arith.constant 0 : index
    %976 = vector.load %arg11[%c0_389, %c272, %c0_390] : memref<1x288x8xf32, #tpu.memory_space<vmem>>, vector<1x8x8xf32>
    %977 = vector.shape_cast %976 : vector<1x8x8xf32> to vector<8x8xf32>
    %978 = vector.shape_cast %975 : vector<8x8xf32> to vector<1x8x8xf32>
    tpu.vector_store %arg11[%c0_389, %c272, %c0_390], %978 {strides = array<i32>} : memref<1x288x8xf32, #tpu.memory_space<vmem>>, vector<1x8x8xf32>,
    %cst_391 = arith.constant dense<0.000000e+00> : vector<8x128xf32>
    %979 = tpu.matmul %975, %962, %cst_391 {dimension_numbers = #tpu.dot_dimension_numbers<[1], [0], [0], [1], [0, 0, 1, 1], [], []>} : vector<8x8xf32>, vector<8x128xf32>, vector<8x128xf32> -> vector<8x128xf32>
    %980 = vector.extract_strided_slice %879 {offsets = [0, 640], sizes = [8, 128], strides = [1, 1]} : vector<8x2304xf32> to vector<8x128xf32>
    %981 = vector.extract_strided_slice %879 {offsets = [0, 1408], sizes = [8, 128], strides = [1, 1]} : vector<8x2304xf32> to vector<8x128xf32>
    %982 = vector.extract_strided_slice %879 {offsets = [0, 2176], sizes = [8, 128], strides = [1, 1]} : vector<8x2304xf32> to vector<8x128xf32>
    %cst_392 = arith.constant dense<0.000000e+00> : vector<8x8xf32>
    %983 = tpu.matmul %980, %981, %cst_392 {dimension_numbers = #tpu.dot_dimension_numbers<[1], [1], [0], [0], [0, 0, 1, 0], [], []>} : vector<8x128xf32>, vector<8x128xf32>, vector<8x8xf32> -> vector<8x8xf32>
    %cst_393 = arith.constant 0.0883883461 : f32
    %984 = vector.broadcast %cst_393 : f32 to vector<8x8xf32>
    %985 = arith.mulf %983, %984 : vector<8x8xf32>
    %cst_394 = arith.constant dense<0xFF800000> : vector<8xf32>
    %986 = vector.multi_reduction <maximumf>, %985, %cst_394 [1] : vector<8x8xf32> to vector<8xf32>
    %987 = vector.shape_cast %986 : vector<8xf32> to vector<8x1xf32>
    %988 = vector.broadcast %987 : vector<8x1xf32> to vector<8x8xf32>
    %989 = arith.subf %985, %988 : vector<8x8xf32>
    %990 = math.exp %989 : vector<8x8xf32>
    %cst_395 = arith.constant dense<0.000000e+00> : vector<8xf32>
    %991 = vector.multi_reduction <add>, %990, %cst_395 [1] : vector<8x8xf32> to vector<8xf32>
    %992 = vector.shape_cast %991 : vector<8xf32> to vector<8x1xf32>
    %993 = tpu.reciprocal %992 {approx = true} : vector<8x1xf32> -> vector<8x1xf32>
    %994 = vector.broadcast %993 : vector<8x1xf32> to vector<8x8xf32>
    %995 = arith.mulf %990, %994 : vector<8x8xf32>
    %c0_396 = arith.constant 0 : index
    %c280 = arith.constant 280 : index
    %c0_397 = arith.constant 0 : index
    %996 = vector.load %arg11[%c0_396, %c280, %c0_397] : memref<1x288x8xf32, #tpu.memory_space<vmem>>, vector<1x8x8xf32>
    %997 = vector.shape_cast %996 : vector<1x8x8xf32> to vector<8x8xf32>
    %998 = vector.shape_cast %995 : vector<8x8xf32> to vector<1x8x8xf32>
    tpu.vector_store %arg11[%c0_396, %c280, %c0_397], %998 {strides = array<i32>} : memref<1x288x8xf32, #tpu.memory_space<vmem>>, vector<1x8x8xf32>,
    %cst_398 = arith.constant dense<0.000000e+00> : vector<8x128xf32>
    %999 = tpu.matmul %995, %982, %cst_398 {dimension_numbers = #tpu.dot_dimension_numbers<[1], [0], [0], [1], [0, 0, 1, 1], [], []>} : vector<8x8xf32>, vector<8x128xf32>, vector<8x128xf32> -> vector<8x128xf32>
    %1000 = tpu.concatenate %899, %919, %939, %959, %979, %999 in 1 : vector<8x128xf32>, vector<8x128xf32>, vector<8x128xf32>, vector<8x128xf32>, vector<8x128xf32>, vector<8x128xf32> -> vector<8x768xf32>
    %c5_399 = arith.constant 5 : index
    %c0_400 = arith.constant 0 : index
    %c0_401 = arith.constant 0 : index
    %1001 = vector.load %arg7[%c5_399, %c0_400, %c0_401] : memref<6x768x64xf32, #tpu.memory_space<vmem>>, vector<1x768x64xf32>
    %1002 = vector.shape_cast %1001 : vector<1x768x64xf32> to vector<768x64xf32>
    %cst_402 = arith.constant dense<0.000000e+00> : vector<8x64xf32>
    %1003 = tpu.matmul %1000, %1002, %cst_402 {dimension_numbers = #tpu.dot_dimension_numbers<[1], [0], [0], [1], [0, 0, 1, 1], [], []>} : vector<8x768xf32>, vector<768x64xf32>, vector<8x64xf32> -> vector<8x64xf32>
    %1004 = arith.addf %1003, %876 : vector<8x64xf32>
    %cst_403 = arith.constant dense<0.000000e+00> : vector<8xf32>
    %1005 = vector.multi_reduction <add>, %1004, %cst_403 [1] : vector<8x64xf32> to vector<8xf32>
    %1006 = vector.shape_cast %1005 : vector<8xf32> to vector<8x1xf32>
    %cst_404 = arith.constant 6.400000e+01 : f32
    %1007 = vector.broadcast %cst_404 : f32 to vector<8x1xf32>
    %1008 = arith.divf %1006, %1007 : vector<8x1xf32>
    %1009 = vector.broadcast %1008 : vector<8x1xf32> to vector<8x64xf32>
    %1010 = arith.subf %1004, %1009 : vector<8x64xf32>
    %1011 = arith.mulf %1010, %1010 : vector<8x64xf32>
    %cst_405 = arith.constant dense<0.000000e+00> : vector<8xf32>
    %1012 = vector.multi_reduction <add>, %1011, %cst_405 [1] : vector<8x64xf32> to vector<8xf32>
    %1013 = vector.shape_cast %1012 : vector<8xf32> to vector<8x1xf32>
    %cst_406 = arith.constant 6.400000e+01 : f32
    %1014 = vector.broadcast %cst_406 : f32 to vector<8x1xf32>
    %1015 = arith.divf %1013, %1014 : vector<8x1xf32>
    %1016 = vector.broadcast %1008 : vector<8x1xf32> to vector<8x64xf32>
    %1017 = arith.subf %1004, %1016 : vector<8x64xf32>
    %cst_407 = arith.constant 9.99999974E-6 : f32
    %1018 = vector.broadcast %cst_407 : f32 to vector<8x1xf32>
    %1019 = arith.addf %1015, %1018 : vector<8x1xf32>
    %1020 = math.rsqrt %1019 : vector<8x1xf32>
    %1021 = vector.broadcast %1020 : vector<8x1xf32> to vector<8x64xf32>
    %1022 = arith.mulf %1017, %1021 : vector<8x64xf32>
    %c5_408 = arith.constant 5 : index
    %c0_409 = arith.constant 0 : index
    %c0_410 = arith.constant 0 : index
    %1023 = vector.load %arg8[%c5_408, %c0_409, %c0_410] : memref<6x64x256xf32, #tpu.memory_space<vmem>>, vector<1x64x256xf32>
    %1024 = vector.shape_cast %1023 : vector<1x64x256xf32> to vector<64x256xf32>
    %cst_411 = arith.constant dense<0.000000e+00> : vector<8x256xf32>
    %1025 = tpu.matmul %1022, %1024, %cst_411 {dimension_numbers = #tpu.dot_dimension_numbers<[1], [0], [0], [1], [0, 0, 1, 1], [], []>} : vector<8x64xf32>, vector<64x256xf32>, vector<8x256xf32> -> vector<8x256xf32>
    %cst_412 = arith.constant 0.000000e+00 : f32
    %1026 = vector.broadcast %cst_412 : f32 to vector<8x256xf32>
    %1027 = arith.maximumf %1025, %1026 : vector<8x256xf32>
    %c5_413 = arith.constant 5 : index
    %c0_414 = arith.constant 0 : index
    %c0_415 = arith.constant 0 : index
    %1028 = vector.load %arg9[%c5_413, %c0_414, %c0_415] : memref<6x256x64xf32, #tpu.memory_space<vmem>>, vector<1x256x64xf32>
    %1029 = vector.shape_cast %1028 : vector<1x256x64xf32> to vector<256x64xf32>
    %cst_416 = arith.constant dense<0.000000e+00> : vector<8x64xf32>
    %1030 = tpu.matmul %1027, %1029, %cst_416 {dimension_numbers = #tpu.dot_dimension_numbers<[1], [0], [0], [1], [0, 0, 1, 1], [], []>} : vector<8x256xf32>, vector<256x64xf32>, vector<8x64xf32> -> vector<8x64xf32>
    %1031 = arith.addf %1030, %1022 : vector<8x64xf32>
    %cst_417 = arith.constant dense<0.000000e+00> : vector<8xf32>
    %1032 = vector.multi_reduction <add>, %1031, %cst_417 [1] : vector<8x64xf32> to vector<8xf32>
    %1033 = vector.shape_cast %1032 : vector<8xf32> to vector<8x1xf32>
    %cst_418 = arith.constant 6.400000e+01 : f32
    %1034 = vector.broadcast %cst_418 : f32 to vector<8x1xf32>
    %1035 = arith.divf %1033, %1034 : vector<8x1xf32>
    %1036 = vector.broadcast %1035 : vector<8x1xf32> to vector<8x64xf32>
    %1037 = arith.subf %1031, %1036 : vector<8x64xf32>
    %1038 = arith.mulf %1037, %1037 : vector<8x64xf32>
    %cst_419 = arith.constant dense<0.000000e+00> : vector<8xf32>
    %1039 = vector.multi_reduction <add>, %1038, %cst_419 [1] : vector<8x64xf32> to vector<8xf32>
    %1040 = vector.shape_cast %1039 : vector<8xf32> to vector<8x1xf32>
    %cst_420 = arith.constant 6.400000e+01 : f32
    %1041 = vector.broadcast %cst_420 : f32 to vector<8x1xf32>
    %1042 = arith.divf %1040, %1041 : vector<8x1xf32>
    %1043 = vector.broadcast %1035 : vector<8x1xf32> to vector<8x64xf32>
    %1044 = arith.subf %1031, %1043 : vector<8x64xf32>
    %cst_421 = arith.constant 9.99999974E-6 : f32
    %1045 = vector.broadcast %cst_421 : f32 to vector<8x1xf32>
    %1046 = arith.addf %1042, %1045 : vector<8x1xf32>
    %1047 = math.rsqrt %1046 : vector<8x1xf32>
    %1048 = vector.broadcast %1047 : vector<8x1xf32> to vector<8x64xf32>
    %1049 = arith.mulf %1044, %1048 : vector<8x64xf32>
    %c0_422 = arith.constant 0 : index
    %c0_423 = arith.constant 0 : index
    %c0_424 = arith.constant 0 : index
    %1050 = vector.load %arg10[%c0_422, %c0_423, %c0_424] : memref<1x8x64xf32, #tpu.memory_space<vmem>>, vector<1x8x64xf32>
    %1051 = vector.shape_cast %1050 : vector<1x8x64xf32> to vector<8x64xf32>
    %1052 = vector.shape_cast %1049 : vector<8x64xf32> to vector<1x8x64xf32>
    tpu.vector_store %arg10[%c0_422, %c0_423, %c0_424], %1052 {strides = array<i32>} : memref<1x8x64xf32, #tpu.memory_space<vmem>>, vector<1x8x64xf32>,
    return
  }
  func.func @transform_0(%arg0: i32) -> (i32, i32, i32) {
    %c0_i32 = arith.constant 0 : i32
    %c0_i32_0 = arith.constant 0 : i32
    %c0_i32_1 = arith.constant 0 : i32
    return %arg0, %c0_i32, %c0_i32_0 : i32, i32, i32
  }
  func.func @transform_1(%arg0: i32) -> (i32, i32) {
    %c0_i32 = arith.constant 0 : i32
    %c0_i32_0 = arith.constant 0 : i32
    %c0_i32_1 = arith.constant 0 : i32
    return %c0_i32, %c0_i32_0 : i32, i32
  }
  func.func @transform_2(%arg0: i32) -> (i32, i32) {
    %c0_i32 = arith.constant 0 : i32
    %c0_i32_0 = arith.constant 0 : i32
    %c0_i32_1 = arith.constant 0 : i32
    return %c0_i32, %c0_i32_0 : i32, i32
  }
  func.func @transform_3(%arg0: i32) -> (i32, i32) {
    %c0_i32 = arith.constant 0 : i32
    %c0_i32_0 = arith.constant 0 : i32
    %c0_i32_1 = arith.constant 0 : i32
    return %c0_i32, %c0_i32_0 : i32, i32
  }
  func.func @transform_4(%arg0: i32) -> (i32, i32) {
    %c0_i32 = arith.constant 0 : i32
    %c0_i32_0 = arith.constant 0 : i32
    %c0_i32_1 = arith.constant 0 : i32
    return %c0_i32, %c0_i32_0 : i32, i32
  }
  func.func @transform_5(%arg0: i32) -> (i32, i32, i32) {
    %c0_i32 = arith.constant 0 : i32
    %c0_i32_0 = arith.constant 0 : i32
    %c0_i32_1 = arith.constant 0 : i32
    %c0_i32_2 = arith.constant 0 : i32
    return %c0_i32, %c0_i32_0, %c0_i32_1 : i32, i32, i32
  }
  func.func @transform_6(%arg0: i32) -> (i32, i32, i32) {
    %c0_i32 = arith.constant 0 : i32
    %c0_i32_0 = arith.constant 0 : i32
    %c0_i32_1 = arith.constant 0 : i32
    %c0_i32_2 = arith.constant 0 : i32
    return %c0_i32, %c0_i32_0, %c0_i32_1 : i32, i32, i32
  }
  func.func @transform_7(%arg0: i32) -> (i32, i32, i32) {
    %c0_i32 = arith.constant 0 : i32
    %c0_i32_0 = arith.constant 0 : i32
    %c0_i32_1 = arith.constant 0 : i32
    %c0_i32_2 = arith.constant 0 : i32
    return %c0_i32, %c0_i32_0, %c0_i32_1 : i32, i32, i32
  }
  func.func @transform_8(%arg0: i32) -> (i32, i32, i32) {
    %c0_i32 = arith.constant 0 : i32
    %c0_i32_0 = arith.constant 0 : i32
    %c0_i32_1 = arith.constant 0 : i32
    %c0_i32_2 = arith.constant 0 : i32
    return %c0_i32, %c0_i32_0, %c0_i32_1 : i32, i32, i32
  }
  func.func @transform_9(%arg0: i32) -> (i32, i32, i32) {
    %c0_i32 = arith.constant 0 : i32
    %c0_i32_0 = arith.constant 0 : i32
    %c0_i32_1 = arith.constant 0 : i32
    return %arg0, %c0_i32, %c0_i32_0 : i32, i32, i32
  }
  func.func @transform_10(%arg0: i32) -> (i32, i32, i32) {
    %c0_i32 = arith.constant 0 : i32
    %c0_i32_0 = arith.constant 0 : i32
    %c0_i32_1 = arith.constant 0 : i32
    return %arg0, %c0_i32, %c0_i32_0 : i32, i32, i32
  }
}

</mosaic_0001>

<bundles_post_ra>
// kernel: encoder_forward.1
= control target key start
LH: loop header
LB: loop body
LE: loop exit
PB: predicated region body
PF: predicated region fallthrough
CT: control target
= control target key end

     0   :  { %s15630_s0 = inlined_call_operand.vmem [shape: f32[2,8,10], index: 0, kind: input, shape index: {}]   ;;  %s15631_s1 = inlined_call_operand.vmem [shape: f32[8,64], index: 1, kind: input, shape index: {}]   ;;  %s15632_s2 = inlined_call_operand.vmem [shape: f32[10,16], index: 2, kind: input, shape index: {}]   ;;  %s15633_s3 = inlined_call_operand.vmem [shape: f32[16,32], index: 3, kind: input, shape index: {}]   ;;  %s15634_s4 = inlined_call_operand.vmem [shape: f32[32,64], index: 4, kind: input, shape index: {}]   ;;  %s15635_s5 = inlined_call_operand.vmem [shape: f32[6,64,2304], index: 5, kind: input, shape index: {}]   ;;  %s15636_s6 = inlined_call_operand.vmem [shape: f32[6,768,64], index: 6, kind: input, shape index: {}]   ;;  %s15637_s7 = inlined_call_operand.hbm [shape: f32[6,64,256], index: 7, kind: input, shape index: {}]   ;;  %s15638_s8 = inlined_call_operand.vmem [shape: f32[6,256,64], index: 8, kind: input, shape index: {}]   ;;  %s15639_s9 = inlined_call_operand.hbm [shape: f32[2,8,64], index: 9, kind: output, shape index: {0}]   ;;  %s15640_s10 = inlined_call_operand.vmem [shape: f32[2,288,8], index: 10, kind: output, shape index: {1}]  }
   0x1   :  { %15641 = sst [smem:[#allocation8_spill]] %s15637_s7 }
   0x2   :  { %16 = vsyncpa [#allocation3], 0 }
   0x3   :  { %17 = vsyncpa [#allocation4], 0 }
   0x4   :  { %19 = vsyncpa [#allocation4 + $0x1], 0  ;;  %s9957_s13 = smov 0   ;;  %s9959_s14 = smov 0  }
   0x5   :  { %s9961_s15 = smov 0   ;;  %s9963_s16 = smov 0  }
   0x6 LB: > { %s9978_s17 = sadd.s32 4294967295, %s9896_s16   ;;  %s8039_s18 = sadd.s32 4294967294, %s9896_s16   ;;  %s9896_s16 = sphi %s9963_s16, %s15648_s16   ;;  %s9892_s15 = sphi %s9961_s15, %s15647_s15   ;;  %s9888_s14 = sphi %s9959_s14, %s15646_s14   ;;  %s9884_s13 = sphi %s9957_s13, %s15645_s13  }
   0x7   : > { %s9982_s19 = sadd.s32 1, %s9896_s16   ;;  %s226_s20 = sadd.s32 1, %s9892_s15 }
   0x8   : > { %s223_s21 = ssub.s32 %s9896_s16, %s9982_s19  ;;  %p236_p0 = scmp.ne.s32.totalorder %s9892_s15, %s9888_s14 }
   0x9   : > { %p224_p1 = scmp.eq.s32.totalorder %s223_s21, 0  ;;  %p237_p2 = scmp.eq.s32.totalorder %s9978_s17, 1 }
   0xa   : > { %p242_p3 = scmp.ne.s32.totalorder %s9888_s14, %s9884_s13  ;;  %p243_p4 = scmp.eq.s32.totalorder %s8039_s18, 1 }
   0xb   : > { %s9993_s22 = scalar_select %p224_p1, %s9892_s15, %s226_s20  }
   0xc   : > { %p9995_p5 = por %p237_p2, %p236_p0  ;;  %p9999_p6 = por %p243_p4, %p242_p3 }
   0xd   : > { %p8040_p7 = scmp.ge.s32.totalorder %s9896_s16, 1  ;;  %p276_p8 = scmp.lt.s32.totalorder %s9896_s16, 3 }
   0xe   : > { %p9587_p9 = scmp.eq.s32.totalorder %s9978_s17, 0  ;;  %s15644_s7 = sld [smem:[#allocation8_spill]] }
   0xf   : > { %p277_p10 = pnand %p8040_p7, %p276_p8  ;;  %s9898_s28 = smov [#allocation2]  }
  0x10   : > { %s307_s29 = sshll.u32 %s9898_s28, 4  ;;  %s9899_s30 = smov 256   ;;  %s308_s29 = int_to_ptr.vmem [resolvable:$true] %s307_s29 }
  0x11   : > { %p9579_p11 = pneg %p277_p10  ;;  %s9900_s11 = smov 16  }
  0x12   : > { %333 = sbr.rel (%p277_p10) target bundleno = 10154 (0x27aa), region = 56 }
  0x13   : > { %p9580_p12 = pnand %p9587_p9, %p9579_p11 }
  0x14   : > { %s305_s27 = sshll.u32 %s15644_s7, 4  ;;  %s306_s27 = int_to_ptr.hbm [resolvable:$true] %s305_s27 }
  0x15   : > { %9582 = dma.hbm_to_vmem [thread:$0]  (!%p9580_p12), %s306_s27, 12288, %s308_s29, [#allocation3], %s9899_s30, %s9899_s30, %s9900_s11  }
  0x17   : > { %9875 = dma.done.wait (%p9587_p9), [#allocation3], 12288  }
  0x18   : > { %9877 = vsyncadd (%p9587_p9), [#allocation3], 4294955008  ;;  %p376_p13 = scmp.lt.s32.totalorder %s9978_s17, 1  ;;  %vm392_vm0 = vcmask 1041408   ;;  %v387_v0 = vld [vmem:[%s15632_s2 + $0x8] sm:$0x3] }
  0x19   : > { %v386_v1 = vld [vmem:[%s15632_s2] sm:$0xff]  ;;  %8048 = vmatpush.msk.msra.mxu0 %vm392_vm0, %v387_v0  ;;  %vm388_vm1 = vcmask 80896   ;;  %v418_v3 = vld [vmem:[%s15633_s3 + $0x8] sm:$0xff]  ;;  %vm419_vm2 = vcmask 130048   ;;  %v447_v7 = vld [vmem:[%s15634_s4 + $0x18] sm:$0xff]  ;;  %vm449_vm3 = vcmask 261120  }
  0x1a   : > { %s10017_s12 = scalar_select %p376_p13, %s9978_s17, 1  ;;  %v417_v4 = vld [vmem:[%s15633_s3] sm:$0xff]  ;;  %437 = vmatpush.msra.mxu1 %v418_v3  ;;  %465 = vmatpush.msra.mxu3 %v447_v7  ;;  %v446_v8 = vld [vmem:[%s15634_s4 + $0x10] sm:$0xff]  ;;  %v445_v9 = vld [vmem:[%s15634_s4 + $0x8] sm:$0xff]  ;;  %vm617_vm4 = vcmask 523264   ;;  %vm1002_vm5 = vcmask 64512  }
  0x1b   : > { %411 = vmatpush.msra.mxu0 %v386_v1  ;;  %v444_v10 = vld [vmem:[%s15634_s4] sm:$0xff]  ;;  %v599_v11 = vld [vmem:[%s15635_s5 + $0x3f0] sm:$0xff]  ;;  %v600_v12 = vld [vmem:[%s15635_s5 + $0x3f8] sm:$0xff]  ;;  %s366_s7 = sand.u32 1, %s9888_s14   ;;  %s9569_s29 = sshll.u32 %s9978_s17, 3 }
  0x1c   : > { %s8046_s18 = sshll.u32 %s10017_s12, 3  ;;  %438 = vmatpush.msra.mxu1 %v417_v4  ;;  %466 = vmatpush.msra.mxu3 %v446_v8  ;;  %v601_v13 = vld [vmem:[%s15635_s5 + $0x400] sm:$0xff]  ;;  %v602_v14 = vld [vmem:[%s15635_s5 + $0x408] sm:$0xff]  ;;  %v583_v17 = vld [vmem:[%s15635_s5 + $0x370] sm:$0xff]  ;;  %s9572_s21 = smul.u32 288, %s10017_s12 }
  0x1d   : > { %s379_s25 = scalar_lea.vmem %s15630_s0, %s8046_s18  ;;  %649 = vmatpush.msrb.mxu0 %v600_v12  ;;  %v581_v15 = vld [vmem:[%s15635_s5 + $0x360] sm:$0xff]  ;;  %v582_v16 = vld [vmem:[%s15635_s5 + $0x368] sm:$0xff]  ;;  %689 = vmatpush.msra.mxu2 %v602_v14  ;;  %v584_v18 = vld [vmem:[%s15635_s5 + $0x378] sm:$0xff]  ;;  %s7935_s20 = scalar_lea.hbm %s15639_s9, %s9569_s29 }
  0x1e   : > { %v385_v2 = vld [vmem:[%s379_s25] sm:$0xff]  ;;  %467 = vmatpush.msra.mxu3 %v445_v9  ;;  %669 = vmatpush.msrb.mxu1 %v601_v13  ;;  %v563_v19 = vld [vmem:[%s15635_s5 + $0x2d0] sm:$0xff]  ;;  %v564_v20 = vld [vmem:[%s15635_s5 + $0x2d8] sm:$0xff]  ;;  %s10550_s27 = scalar_lea.vmem %s15640_s10, %s9572_s21  ;;  %s7939_s25 = sshll.u32 %s7935_s20, 4  ;;  %s7940_s25 = int_to_ptr.hbm [resolvable:$true] %s7939_s25 }
  0x1f   : > { %8049 = vmatmul.msk.f32.vlgmr.msra.gmra.mxu0 %vm388_vm1, %v385_v2  ;;  %v565_v21 = vld [vmem:[%s15635_s5 + $0x2e0] sm:$0xff]  ;;  %v566_v22 = vld [vmem:[%s15635_s5 + $0x2e8] sm:$0xff]  ;;  %690 = vmatpush.msra.mxu2 %v584_v18  ;;  %v547_v25 = vld [vmem:[%s15635_s5 + $0x250] sm:$0xff]  ;;  %s7920_s17 = scalar_lea.sflag [#allocation4], %s366_s7  ;;  %s9844_s26 = sshra.s32 %s7940_s25, 4  ;;  %s9845_s26 = int_to_ptr.hbm [resolvable:$true] %s9844_s26 }
  0x20   : > { %468 = vmatpush.msra.mxu3 %v444_v10  ;;  %650 = vmatpush.msrb.mxu0 %v582_v16  ;;  %v545_v23 = vld [vmem:[%s15635_s5 + $0x240] sm:$0xff]  ;;  %v546_v24 = vld [vmem:[%s15635_s5 + $0x248] sm:$0xff]  ;;  %v548_v26 = vld [vmem:[%s15635_s5 + $0x258] sm:$0xff]  ;;  %s9846_s12 = scalar_lea.hbm %s9845_s26, 8  ;;  %p9851_p3 = scmp.lt.s32.totalorder %s9845_s26, %s15639_s9 }
  0x21   : > { %670 = vmatpush.msrb.mxu1 %v583_v17  ;;  %691 = vmatpush.msra.mxu2 %v566_v22  ;;  %v527_v27 = vld [vmem:[%s15635_s5 + $0x1b0] sm:$0xff]  ;;  %v528_v28 = vld [vmem:[%s15635_s5 + $0x1b8] sm:$0xff]  ;;  %v529_v29 = vld [vmem:[%s15635_s5 + $0x1c0] sm:$0xff]  ;;  %p9847_p0 = scmp.ne.s32.totalorder %s9845_s26, %s9846_s12 }
  0x22   : > { %629 = vmatpush.msrb.mxu3 %v599_v11  ;;  %651 = vmatpush.msrb.mxu0 %v564_v20  ;;  %v530_v30 = vld [vmem:[%s15635_s5 + $0x1c8] sm:$0xff]  ;;  %v509_v31 = vld [vmem:[%s15635_s5 + $0x120] sm:$0xff]  ;;  %v511_v33 = vld [vmem:[%s15635_s5 + $0x130] sm:$0xff] }
  0x23   : > { %671 = vmatpush.msrb.mxu1 %v565_v21  ;;  %692 = vmatpush.msra.mxu2 %v548_v26  ;;  %v510_v32 = vld [vmem:[%s15635_s5 + $0x128] sm:$0xff]  ;;  %v512_v34 = vld [vmem:[%s15635_s5 + $0x138] sm:$0xff]  ;;  %v491_v35 = vld [vmem:[%s15635_s5 + $0x90] sm:$0xff]  ;;  %p9848_p1 = pnand %p9847_p0, %p9995_p5 }
  0x24   : > { %630 = vmatpush.msrb.mxu3 %v581_v15  ;;  %652 = vmatpush.msrb.mxu0 %v546_v24  ;;  %v492_v36 = vld [vmem:[%s15635_s5 + $0x98] sm:$0xff]  ;;  %v493_v37 = vld [vmem:[%s15635_s5 + $0xa0] sm:$0xff]  ;;  %v494_v38 = vld [vmem:[%s15635_s5 + $0xa8] sm:$0xff] }
  0x25   : > { %672 = vmatpush.msrb.mxu1 %v547_v25  ;;  %693 = vmatpush.msra.mxu2 %v530_v30  ;;  %v473_v39 = vld [vmem:[%s15635_s5] sm:$0xff]  ;;  %v474_v40 = vld [vmem:[%s15635_s5 + $0x8] sm:$0xff]  ;;  %v475_v41 = vld [vmem:[%s15635_s5 + $0x10] sm:$0xff]  ;;  %p9849_p2 = pneg %p9848_p1 }
  0x26   : > { %631 = vmatpush.msrb.mxu3 %v563_v19  ;;  %653 = vmatpush.msrb.mxu0 %v528_v28  ;;  %v476_v42 = vld [vmem:[%s15635_s5 + $0x18] sm:$0xff]  ;;  %v605_v44 = vld [vmem:[%s15635_s5 + $0x420] sm:$0xff]  ;;  %v606_v45 = vld [vmem:[%s15635_s5 + $0x428] sm:$0xff] }
  0x27   : > { %673 = vmatpush.msrb.mxu1 %v529_v29  ;;  %694 = vmatpush.msra.mxu2 %v512_v34  ;;  %v604_v43 = vld [vmem:[%s15635_s5 + $0x418] sm:$0xff]  ;;  %v586_v46 = vld [vmem:[%s15635_s5 + $0x388] sm:$0xff]  ;;  %v587_v47 = vld [vmem:[%s15635_s5 + $0x390] sm:$0xff] }
  0x28   : > { %632 = vmatpush.msrb.mxu3 %v545_v23  ;;  %654 = vmatpush.msrb.mxu0 %v510_v32  ;;  %v588_v48 = vld [vmem:[%s15635_s5 + $0x398] sm:$0xff]  ;;  %v569_v50 = vld [vmem:[%s15635_s5 + $0x300] sm:$0xff]  ;;  %v570_v51 = vld [vmem:[%s15635_s5 + $0x308] sm:$0xff] }
  0x29   : > { %674 = vmatpush.msrb.mxu1 %v511_v33  ;;  %695 = vmatpush.msra.mxu2 %v494_v38  ;;  %v568_v49 = vld [vmem:[%s15635_s5 + $0x2f8] sm:$0xff]  ;;  %v550_v52 = vld [vmem:[%s15635_s5 + $0x268] sm:$0xff]  ;;  %v551_v53 = vld [vmem:[%s15635_s5 + $0x270] sm:$0xff] }
  0x2a   : > { %633 = vmatpush.msrb.mxu3 %v527_v27  ;;  %655 = vmatpush.msrb.mxu0 %v492_v36  ;;  %v552_v54 = vld [vmem:[%s15635_s5 + $0x278] sm:$0xff]  ;;  %v533_v56 = vld [vmem:[%s15635_s5 + $0x1e0] sm:$0xff]  ;;  %v534_v57 = vld [vmem:[%s15635_s5 + $0x1e8] sm:$0xff] }
  0x2b   : > { %675 = vmatpush.msrb.mxu1 %v493_v37  ;;  %696 = vmatpush.msra.mxu2 %v476_v42  ;;  %v532_v55 = vld [vmem:[%s15635_s5 + $0x1d8] sm:$0xff]  ;;  %v514_v59 = vld [vmem:[%s15635_s5 + $0x148] sm:$0xff]  ;;  %v515_v60 = vld [vmem:[%s15635_s5 + $0x150] sm:$0xff] }
  0x2c   : > { %634 = vmatpush.msrb.mxu3 %v509_v31  ;;  %656 = vmatpush.msrb.mxu0 %v474_v40  ;;  %v516_v61 = vld [vmem:[%s15635_s5 + $0x158] sm:$0xff]  ;;  %v603_v62 = vld [vmem:[%s15635_s5 + $0x410] sm:$0xff]  ;;  %v585_v0 = vld [vmem:[%s15635_s5 + $0x380] sm:$0xff] }
  0x2d   : > { %676 = vmatpush.msrb.mxu1 %v475_v41  ;;  %769 = vmatpush.msrb.mxu2 %v606_v45  ;;  %v567_v1 = vld [vmem:[%s15635_s5 + $0x2f0] sm:$0xff]  ;;  %v549_v2 = vld [vmem:[%s15635_s5 + $0x260] sm:$0xff]  ;;  %v498_v8 = vld [vmem:[%s15635_s5 + $0xc8] sm:$0xff] }
  0x2e   : > { %635 = vmatpush.msrb.mxu3 %v491_v35  ;;  %729 = vmatpush.msra.mxu0 %v604_v43  ;;  %v531_v3 = vld [vmem:[%s15635_s5 + $0x1d0] sm:$0xff]  ;;  %v513_v4 = vld [vmem:[%s15635_s5 + $0x140] sm:$0xff]  ;;  %v478_v10 = vld [vmem:[%s15635_s5 + $0x28] sm:$0xff] }
  0x2f   : > { %770 = vmatpush.msrb.mxu2 %v588_v48  ;;  %v497_v7 = vld [vmem:[%s15635_s5 + $0xc0] sm:$0xff]  ;;  %v479_v11 = vld [vmem:[%s15635_s5 + $0x30] sm:$0xff]  ;;  %v480_v12 = vld [vmem:[%s15635_s5 + $0x38] sm:$0xff] }
  0x30   : > { %636 = vmatpush.msrb.mxu3 %v473_v39  ;;  %730 = vmatpush.msra.mxu0 %v586_v46  ;;  %v477_v9 = vld [vmem:[%s15635_s5 + $0x20] sm:$0xff]  ;;  %v607_v16 = vld [vmem:[%s15635_s5 + $0x430] sm:$0xff]  ;;  %v608_v17 = vld [vmem:[%s15635_s5 + $0x438] sm:$0xff] }
  0x31   : > { %771 = vmatpush.msrb.mxu2 %v570_v51  ;;  %v448_v13 = vld [vmem:[%s15631_s1] sm:$0xff]  ;;  %v610_v19 = vld [vmem:[%s15635_s5 + $0x448] sm:$0xff]  ;;  %v591_v22 = vld [vmem:[%s15635_s5 + $0x3b0] sm:$0xff] }
  0x32   : > { %731 = vmatpush.msra.mxu0 %v568_v49  ;;  %v609_v18 = vld [vmem:[%s15635_s5 + $0x440] sm:$0xff]  ;;  %v590_v21 = vld [vmem:[%s15635_s5 + $0x3a8] sm:$0xff]  ;;  %v592_v23 = vld [vmem:[%s15635_s5 + $0x3b8] sm:$0xff] }
  0x33   : > { %772 = vmatpush.msrb.mxu2 %v552_v54  ;;  %v589_v20 = vld [vmem:[%s15635_s5 + $0x3a0] sm:$0xff]  ;;  %v571_v24 = vld [vmem:[%s15635_s5 + $0x310] sm:$0xff]  ;;  %v572_v25 = vld [vmem:[%s15635_s5 + $0x318] sm:$0xff] }
  0x34   : > { %732 = vmatpush.msra.mxu0 %v550_v52  ;;  %v573_v26 = vld [vmem:[%s15635_s5 + $0x320] sm:$0xff]  ;;  %v574_v27 = vld [vmem:[%s15635_s5 + $0x328] sm:$0xff]  ;;  %v555_v30 = vld [vmem:[%s15635_s5 + $0x290] sm:$0xff] }
  0x35   : > { %773 = vmatpush.msrb.mxu2 %v534_v57  ;;  %v553_v28 = vld [vmem:[%s15635_s5 + $0x280] sm:$0xff]  ;;  %v554_v29 = vld [vmem:[%s15635_s5 + $0x288] sm:$0xff]  ;;  %v556_v31 = vld [vmem:[%s15635_s5 + $0x298] sm:$0xff] }
  0x36   : > { %733 = vmatpush.msra.mxu0 %v532_v55  ;;  %v535_v32 = vld [vmem:[%s15635_s5 + $0x1f0] sm:$0xff]  ;;  %v536_v33 = vld [vmem:[%s15635_s5 + $0x1f8] sm:$0xff]  ;;  %v537_v34 = vld [vmem:[%s15635_s5 + $0x200] sm:$0xff] }
  0x37   : > { %774 = vmatpush.msrb.mxu2 %v516_v61  ;;  %v538_v35 = vld [vmem:[%s15635_s5 + $0x208] sm:$0xff]  ;;  %v517_v36 = vld [vmem:[%s15635_s5 + $0x160] sm:$0xff]  ;;  %v519_v38 = vld [vmem:[%s15635_s5 + $0x170] sm:$0xff] }
  0x38   : > { %734 = vmatpush.msra.mxu0 %v514_v59  ;;  %v518_v37 = vld [vmem:[%s15635_s5 + $0x168] sm:$0xff]  ;;  %v520_v39 = vld [vmem:[%s15635_s5 + $0x178] sm:$0xff]  ;;  %v499_v40 = vld [vmem:[%s15635_s5 + $0xd0] sm:$0xff] }
  0x39   : > { %775 = vmatpush.msrb.mxu2 %v498_v8  ;;  %v500_v41 = vld [vmem:[%s15635_s5 + $0xd8] sm:$0xff]  ;;  %v501_v42 = vld [vmem:[%s15635_s5 + $0xe0] sm:$0xff]  ;;  %v502_v43 = vld [vmem:[%s15635_s5 + $0xe8] sm:$0xff] }
  0x3a   : > { %v482_v45 = vld [vmem:[%s15635_s5 + $0x48] sm:$0xff]  ;;  %v483_v46 = vld [vmem:[%s15635_s5 + $0x50] sm:$0xff]  ;;  %v612_v49 = vld [vmem:[%s15635_s5 + $0x458] sm:$0xff] }
  0x3b   : > { %776 = vmatpush.msrb.mxu2 %v480_v12  ;;  %v611_v48 = vld [vmem:[%s15635_s5 + $0x450] sm:$0xff]  ;;  %v614_v51 = vld [vmem:[%s15635_s5 + $0x468] sm:$0xff]  ;;  %v593_v52 = vld [vmem:[%s15635_s5 + $0x3c0] sm:$0xff] }
  0x3c   : > { %v595_v54 = vld [vmem:[%s15635_s5 + $0x3d0] sm:$0xff]  ;;  %v596_v55 = vld [vmem:[%s15635_s5 + $0x3d8] sm:$0xff]  ;;  %v578_v59 = vld [vmem:[%s15635_s5 + $0x348] sm:$0xff] }
  0x3d   : > { %v576_v57 = vld [vmem:[%s15635_s5 + $0x338] sm:$0xff]  ;;  %v558_v61 = vld [vmem:[%s15635_s5 + $0x2a8] sm:$0xff]  ;;  %v503_v8 = vld [vmem:[%s15635_s5 + $0xf0] sm:$0xff] }
  0x3e   : > { %v485_v12 = vld [vmem:[%s15635_s5 + $0x60] sm:$0xff] }
  0x9c   : > { %v413_v5 = vpop.f32.mrf.mxu0 }
  0x9d   : > { %9626 = vtanh.f32 %v413_v5  ;;  %v495_v5 = vld [vmem:[%s15635_s5 + $0xb0] sm:$0xff] }
  0xa3   : > { %v9627_v6 = vpop.eup %9626 }
  0xa4   : > { %8050 = vmatmul.msk.f32.vlgmr.msra.gmra.mxu1 %vm419_vm2, %v9627_v6  ;;  %v496_v6 = vld [vmem:[%s15635_s5 + $0xb8] sm:$0xff] }
  0xa5   : > { %749 = vmatpush.msra.mxu1 %v605_v44  ;;  %735 = vmatpush.msra.mxu0 %v496_v6  ;;  %v481_v44 = vld [vmem:[%s15635_s5 + $0x40] sm:$0xff]  ;;  %v523_v6 = vld [vmem:[%s15635_s5 + $0x190] sm:$0xff] }
  0xa7   : > { %750 = vmatpush.msra.mxu1 %v587_v47  ;;  %736 = vmatpush.msra.mxu0 %v478_v10  ;;  %v484_v47 = vld [vmem:[%s15635_s5 + $0x58] sm:$0xff]  ;;  %v505_v10 = vld [vmem:[%s15635_s5 + $0x100] sm:$0xff] }
  0xa9   : > { %751 = vmatpush.msra.mxu1 %v569_v50  ;;  %v613_v50 = vld [vmem:[%s15635_s5 + $0x460] sm:$0xff] }
  0xab   : > { %752 = vmatpush.msra.mxu1 %v551_v53  ;;  %v594_v53 = vld [vmem:[%s15635_s5 + $0x3c8] sm:$0xff] }
  0xad   : > { %753 = vmatpush.msra.mxu1 %v533_v56  ;;  %v575_v56 = vld [vmem:[%s15635_s5 + $0x330] sm:$0xff] }
  0xaf   : > { %754 = vmatpush.msra.mxu1 %v515_v60  ;;  %v557_v60 = vld [vmem:[%s15635_s5 + $0x2a0] sm:$0xff] }
  0xb1   : > { %755 = vmatpush.msra.mxu1 %v497_v7  ;;  %v524_v7 = vld [vmem:[%s15635_s5 + $0x198] sm:$0xff] }
  0xb3   : > { %756 = vmatpush.msra.mxu1 %v479_v11  ;;  %v506_v11 = vld [vmem:[%s15635_s5 + $0x108] sm:$0xff] }
 0x121   : > { %v440_v58 = vpop.f32.mrf.mxu1 }
 0x122   : > { %9628 = vtanh.f32 %v440_v58  ;;  %v577_v58 = vld [vmem:[%s15635_s5 + $0x340] sm:$0xff] }
 0x128   : > { %v9629_v63 = vpop.eup %9628 }
 0x129   : > { %8051 = vmatmul.msk.f32.vlgmr.msra.gmra.mxu3 %vm449_vm3, %v9629_v63  ;;  %v560_v63 = vld [vmem:[%s15635_s5 + $0x2b8] sm:$0xff] }
 0x12a   : > { %709 = vmatpush.msra.mxu3 %v603_v62  ;;  %v559_v62 = vld [vmem:[%s15635_s5 + $0x2b0] sm:$0xff] }
 0x12c   : > { %710 = vmatpush.msra.mxu3 %v585_v0  ;;  %v539_v0 = vld [vmem:[%s15635_s5 + $0x210] sm:$0xff] }
 0x12e   : > { %711 = vmatpush.msra.mxu3 %v567_v1  ;;  %v540_v1 = vld [vmem:[%s15635_s5 + $0x218] sm:$0xff] }
 0x130   : > { %712 = vmatpush.msra.mxu3 %v549_v2  ;;  %v541_v2 = vld [vmem:[%s15635_s5 + $0x220] sm:$0xff] }
 0x132   : > { %713 = vmatpush.msra.mxu3 %v531_v3  ;;  %v542_v3 = vld [vmem:[%s15635_s5 + $0x228] sm:$0xff] }
 0x134   : > { %714 = vmatpush.msra.mxu3 %v513_v4  ;;  %v521_v4 = vld [vmem:[%s15635_s5 + $0x180] sm:$0xff] }
 0x136   : > { %715 = vmatpush.msra.mxu3 %v495_v5  ;;  %v522_v5 = vld [vmem:[%s15635_s5 + $0x188] sm:$0xff] }
 0x138   : > { %716 = vmatpush.msra.mxu3 %v477_v9  ;;  %v504_v9 = vld [vmem:[%s15635_s5 + $0xf8] sm:$0xff] }
 0x1ac   : > { %v470_v14 = vpop.f32.mrf.mxu3 }
 0x1ad   : > { %v10242_v15 = vadd.f32 %v470_v14, %v448_v13  ;;  %v486_v13 = vld [vmem:[%s15635_s5 + $0x68] sm:$0xff]  ;;  %v487_v14 = vld [vmem:[%s15635_s5 + $0x70] sm:$0xff] }
 0x1af   : > { %8052 = vmatmul.msk.f32.vlgmr.msrb.gmra.mxu3 %vm617_vm4, %v10242_v15  ;;  %8053 = vmatmul.msk.f32.vlgmr.msrb.gmra.mxu0 %vm617_vm4, %v10242_v15 }
 0x1b0   : > { %8054 = vmatmul.msk.f32.vlgmr.msrb.gmra.mxu1 %vm617_vm4, %v10242_v15  ;;  %8055 = vmatmul.msk.f32.vlgmr.msra.gmra.mxu2 %vm617_vm4, %v10242_v15 }
 0x1b1   : > { %789 = vmatpush.msrb.mxu3 %v607_v16  ;;  %809 = vmatpush.msrb.mxu0 %v608_v17  ;;  %v488_v16 = vld [vmem:[%s15635_s5 + $0x78] sm:$0xff]  ;;  %v615_v17 = vld [vmem:[%s15635_s5 + $0x470] sm:$0xff] }
 0x1b2   : > { %829 = vmatpush.msrb.mxu1 %v609_v18  ;;  %849 = vmatpush.msra.mxu2 %v610_v19  ;;  %v616_v18 = vld [vmem:[%s15635_s5 + $0x478] sm:$0xff]  ;;  %v597_v19 = vld [vmem:[%s15635_s5 + $0x3e0] sm:$0xff] }
 0x1b3   : > { %790 = vmatpush.msrb.mxu3 %v589_v20  ;;  %810 = vmatpush.msrb.mxu0 %v590_v21  ;;  %v598_v20 = vld [vmem:[%s15635_s5 + $0x3e8] sm:$0xff]  ;;  %v579_v21 = vld [vmem:[%s15635_s5 + $0x350] sm:$0xff] }
 0x1b4   : > { %830 = vmatpush.msrb.mxu1 %v591_v22  ;;  %850 = vmatpush.msra.mxu2 %v592_v23  ;;  %v580_v22 = vld [vmem:[%s15635_s5 + $0x358] sm:$0xff]  ;;  %v561_v23 = vld [vmem:[%s15635_s5 + $0x2c0] sm:$0xff] }
 0x1b5   : > { %791 = vmatpush.msrb.mxu3 %v571_v24  ;;  %811 = vmatpush.msrb.mxu0 %v572_v25  ;;  %v562_v24 = vld [vmem:[%s15635_s5 + $0x2c8] sm:$0xff]  ;;  %v543_v25 = vld [vmem:[%s15635_s5 + $0x230] sm:$0xff] }
 0x1b6   : > { %831 = vmatpush.msrb.mxu1 %v573_v26  ;;  %851 = vmatpush.msra.mxu2 %v574_v27  ;;  %v544_v26 = vld [vmem:[%s15635_s5 + $0x238] sm:$0xff]  ;;  %v525_v27 = vld [vmem:[%s15635_s5 + $0x1a0] sm:$0xff] }
 0x1b7   : > { %792 = vmatpush.msrb.mxu3 %v553_v28  ;;  %812 = vmatpush.msrb.mxu0 %v554_v29  ;;  %v526_v28 = vld [vmem:[%s15635_s5 + $0x1a8] sm:$0xff]  ;;  %v507_v29 = vld [vmem:[%s15635_s5 + $0x110] sm:$0xff] }
 0x1b8   : > { %832 = vmatpush.msrb.mxu1 %v555_v30  ;;  %852 = vmatpush.msra.mxu2 %v556_v31  ;;  %v508_v30 = vld [vmem:[%s15635_s5 + $0x118] sm:$0xff]  ;;  %v489_v31 = vld [vmem:[%s15635_s5 + $0x80] sm:$0xff] }
 0x1b9   : > { %8056 = vmatmul.msk.f32.vlgmr.msra.gmra.mxu3 %vm617_vm4, %v10242_v15  ;;  %8057 = vmatmul.msk.f32.vlgmr.msra.gmra.mxu0 %vm617_vm4, %v10242_v15 }
 0x1ba   : > { %8058 = vmatmul.msk.f32.vlgmr.msra.gmra.mxu1 %vm617_vm4, %v10242_v15  ;;  %8059 = vmatmul.msk.f32.vlgmr.msrb.gmra.mxu2 %vm617_vm4, %v10242_v15 }
 0x1bb   : > { %793 = vmatpush.msrb.mxu3 %v535_v32  ;;  %813 = vmatpush.msrb.mxu0 %v536_v33  ;;  %v490_v32 = vld [vmem:[%s15635_s5 + $0x88] sm:$0xff] }
 0x1bc   : > { %833 = vmatpush.msrb.mxu1 %v537_v34  ;;  %853 = vmatpush.msra.mxu2 %v538_v35 }
 0x1bd   : > { %794 = vmatpush.msrb.mxu3 %v517_v36  ;;  %814 = vmatpush.msrb.mxu0 %v518_v37 }
 0x1be   : > { %834 = vmatpush.msrb.mxu1 %v519_v38  ;;  %854 = vmatpush.msra.mxu2 %v520_v39 }
 0x1bf   : > { %795 = vmatpush.msrb.mxu3 %v499_v40  ;;  %815 = vmatpush.msrb.mxu0 %v500_v41 }
 0x1c0   : > { %835 = vmatpush.msrb.mxu1 %v501_v42  ;;  %855 = vmatpush.msra.mxu2 %v502_v43 }
 0x1c1   : > { %796 = vmatpush.msrb.mxu3 %v481_v44  ;;  %816 = vmatpush.msrb.mxu0 %v482_v45 }
 0x1c2   : > { %836 = vmatpush.msrb.mxu1 %v483_v46  ;;  %856 = vmatpush.msra.mxu2 %v484_v47 }
 0x1c3   : > { %869 = vmatpush.msra.mxu3 %v611_v48  ;;  %889 = vmatpush.msra.mxu0 %v612_v49 }
 0x1c4   : > { %909 = vmatpush.msra.mxu1 %v613_v50  ;;  %929 = vmatpush.msrb.mxu2 %v614_v51 }
 0x1c5   : > { %8060 = vmatmul.msk.f32.vlgmr.msrb.gmra.mxu3 %vm617_vm4, %v10242_v15  ;;  %8061 = vmatmul.msk.f32.vlgmr.msrb.gmra.mxu0 %vm617_vm4, %v10242_v15 }
 0x1c6   : > { %8062 = vmatmul.msk.f32.vlgmr.msrb.gmra.mxu1 %vm617_vm4, %v10242_v15  ;;  %8063 = vmatmul.msk.f32.vlgmr.msra.gmra.mxu2 %vm617_vm4, %v10242_v15 }
 0x1c7   : > { %870 = vmatpush.msra.mxu3 %v593_v52  ;;  %890 = vmatpush.msra.mxu0 %v594_v53 }
 0x1c8   : > { %910 = vmatpush.msra.mxu1 %v595_v54  ;;  %930 = vmatpush.msrb.mxu2 %v596_v55 }
 0x1c9   : > { %871 = vmatpush.msra.mxu3 %v575_v56  ;;  %891 = vmatpush.msra.mxu0 %v576_v57 }
 0x1ca   : > { %911 = vmatpush.msra.mxu1 %v577_v58  ;;  %931 = vmatpush.msrb.mxu2 %v578_v59 }
 0x1cb   : > { %872 = vmatpush.msra.mxu3 %v557_v60  ;;  %892 = vmatpush.msra.mxu0 %v558_v61 }
 0x1cc   : > { %912 = vmatpush.msra.mxu1 %v559_v62  ;;  %932 = vmatpush.msrb.mxu2 %v560_v63 }
 0x1cd   : > { %873 = vmatpush.msra.mxu3 %v539_v0  ;;  %893 = vmatpush.msra.mxu0 %v540_v1 }
 0x1ce   : > { %913 = vmatpush.msra.mxu1 %v541_v2  ;;  %933 = vmatpush.msrb.mxu2 %v542_v3 }
 0x1cf   : > { %874 = vmatpush.msra.mxu3 %v521_v4  ;;  %894 = vmatpush.msra.mxu0 %v522_v5 }
 0x1d0   : > { %914 = vmatpush.msra.mxu1 %v523_v6  ;;  %934 = vmatpush.msrb.mxu2 %v524_v7 }
 0x1d1   : > { %875 = vmatpush.msra.mxu3 %v503_v8  ;;  %895 = vmatpush.msra.mxu0 %v504_v9 }
 0x1d2   : > { %915 = vmatpush.msra.mxu1 %v505_v10  ;;  %935 = vmatpush.msrb.mxu2 %v506_v11 }
 0x1d3   : > { %876 = vmatpush.msra.mxu3 %v485_v12  ;;  %896 = vmatpush.msra.mxu0 %v486_v13 }
 0x1d4   : > { %916 = vmatpush.msra.mxu1 %v487_v14  ;;  %936 = vmatpush.msrb.mxu2 %v488_v16 }
 0x1d5   : > { %8064 = vmatmul.msk.f32.vlgmr.msra.gmra.mxu3 %vm617_vm4, %v10242_v15  ;;  %8065 = vmatmul.msk.f32.vlgmr.msra.gmra.mxu0 %vm617_vm4, %v10242_v15 }
 0x1d6   : > { %8066 = vmatmul.msk.f32.vlgmr.msra.gmra.mxu1 %vm617_vm4, %v10242_v15  ;;  %8067 = vmatmul.msk.f32.vlgmr.msrb.gmra.mxu2 %vm617_vm4, %v10242_v15 }
 0x1d7   : > { %949 = vmatpush.msrb.mxu3 %v615_v17  ;;  %969 = vmatpush.msrb.mxu0 %v616_v18 }
 0x1d9   : > { %950 = vmatpush.msrb.mxu3 %v597_v19  ;;  %970 = vmatpush.msrb.mxu0 %v598_v20 }
 0x1db   : > { %951 = vmatpush.msrb.mxu3 %v579_v21  ;;  %971 = vmatpush.msrb.mxu0 %v580_v22 }
 0x1dd   : > { %952 = vmatpush.msrb.mxu3 %v561_v23  ;;  %972 = vmatpush.msrb.mxu0 %v562_v24 }
 0x1df   : > { %953 = vmatpush.msrb.mxu3 %v543_v25  ;;  %973 = vmatpush.msrb.mxu0 %v544_v26 }
 0x1e1   : > { %954 = vmatpush.msrb.mxu3 %v525_v27  ;;  %974 = vmatpush.msrb.mxu0 %v526_v28 }
 0x1e3   : > { %955 = vmatpush.msrb.mxu3 %v507_v29  ;;  %975 = vmatpush.msrb.mxu0 %v508_v30 }
 0x1e5   : > { %956 = vmatpush.msrb.mxu3 %v489_v31  ;;  %976 = vmatpush.msrb.mxu0 %v490_v32 }
 0x1e6   : > { %8068 = vmatmul.msk.f32.vlgmr.msrb.gmra.mxu3 %vm617_vm4, %v10242_v15  ;;  %8069 = vmatmul.msk.f32.vlgmr.msrb.gmra.mxu0 %vm617_vm4, %v10242_v15 }
 0x22c   : > { %v658_v34 = vpop.f32.mrf.mxu0 }
 0x22d   : > { %v678_v33 = vpop.f32.mrf.mxu1 }
 0x232   : > { %v638_v36 = vpop.f32.mrf.mxu3 }
 0x233   : > { %v698_v35 = vpop.f32.mrf.mxu2 }
 0x236   : > { %v738_v38 = vpop.f32.mrf.mxu0 }
 0x237   : > { %v758_v37 = vpop.f32.mrf.mxu1 }
 0x238   : > { %996 = vmatpush.xpose.msra.mxu0 %v758_v37 }
 0x23b   : > { %997 = vmatmul.f32.vlgmr.msra.gmra.mxu0 %v638_v36 }
 0x23c   : > { %v718_v40 = vpop.f32.mrf.mxu3 }
 0x23d   : > { %v778_v39 = vpop.f32.mrf.mxu2 }
 0x23e   : > { %1053 = vmatpush.xpose.msrb.mxu1 %v778_v39 }
 0x241   : > { %1054 = vmatmul.f32.vlgmr.msrb.gmra.mxu1 %v658_v34 }
 0x242   : > { %v818_v41 = vpop.f32.mrf.mxu0 }
 0x243   : > { %1165 = vmatpush.xpose.msra.mxu1 %v818_v41  ;;  %v838_v43 = vpop.f32.mrf.mxu1 }
 0x248   : > { %v798_v42 = vpop.f32.mrf.mxu3 }
 0x249   : > { %v858_v44 = vpop.f32.mrf.mxu2  ;;  %1109 = vmatpush.xpose.msra.mxu3 %v798_v42  ;;  %1166 = vmatmul.f32.vlgmr.msra.gmra.mxu1 %v698_v35  ;;  %v1333_v42 = vld [vmem:[%s15636_s6 + $0x78] sm:$0xff] }
 0x24a   : > { %1277 = vmatpush.xpose.msrb.mxu1 %v858_v44  ;;  %v1331_v44 = vld [vmem:[%s15636_s6 + $0x68] sm:$0xff] }
 0x24c   : > { %1110 = vmatmul.f32.vlgmr.msra.gmra.mxu3 %v678_v33 }
 0x24d   : > { %1221 = vmatpush.xpose.msrb.mxu3 %v838_v43  ;;  %v1332_v43 = vld [vmem:[%s15636_s6 + $0x70] sm:$0xff] }
 0x251   : > { %1278 = vmatmul.f32.vlgmr.msrb.gmra.mxu1 %v738_v38  ;;  %1414 = vmatpush.msra.mxu3 %v1333_v42  ;;  %v1378_v42 = vld [vmem:[%s15636_s6 + $0x1e0] sm:$0xff] }
 0x252   : > { %v898_v47 = vpop.f32.mrf.mxu0 }
 0x253   : > { %v918_v45 = vpop.f32.mrf.mxu1  ;;  %1415 = vmatpush.msra.mxu3 %v1332_v43  ;;  %v1391_v43 = vld [vmem:[%s15636_s6 + $0x248] sm:$0xff] }
 0x254   : > { %1145 = vmatpush.msrb.mxu0 %v918_v45  ;;  %1222 = vmatmul.f32.vlgmr.msrb.gmra.mxu3 %v718_v40  ;;  %v1330_v45 = vld [vmem:[%s15636_s6 + $0x60] sm:$0xff] }
 0x255   : > { %1416 = vmatpush.msra.mxu3 %v1331_v44  ;;  %v1334_v44 = vld [vmem:[%s15636_s6 + $0x80] sm:$0xff] }
 0x257   : > { %1417 = vmatpush.msra.mxu3 %v1330_v45  ;;  %v1354_v45 = vld [vmem:[%s15636_s6 + $0x120] sm:$0xff] }
 0x258   : > { %v878_v46 = vpop.f32.mrf.mxu3 }
 0x259   : > { %1033 = vmatpush.msra.mxu2 %v878_v46  ;;  %v938_v39 = vpop.f32.mrf.mxu2 }
 0x25b   : > { %1089 = vmatpush.msrb.mxu2 %v898_v47  ;;  %v1365_v47 = vld [vmem:[%s15636_s6 + $0x178] sm:$0xff] }
 0x25c   : > { %1454 = vmatpush.msra.mxu1 %v1365_v47  ;;  %v1390_v47 = vld [vmem:[%s15636_s6 + $0x240] sm:$0xff] }
 0x263   : > { %v10520_v49 = vpop.f32.mrf.mxu0 }
 0x269   : > { %v958_v48 = vpop.f32.mrf.mxu3 }
 0x26a   : > { %1257 = vmatpush.msra.mxu0 %v958_v48  ;;  %v1329_v48 = vld [vmem:[%s15636_s6 + $0x58] sm:$0xff] }
 0x26b   : > { %1418 = vmatpush.msra.mxu3 %v1329_v48  ;;  %v1413_v48 = vld [vmem:[%s15636_s6 + $0x2f8] sm:$0xff] }
 0x2b8   : > { %v998_v50 = vpop.f32.mrf.mxu0 }
 0x2b9   : > { %v1001_v51 = vmul.f32 0.088388346, %v998_v50  ;;  %v1363_v50 = vld [vmem:[%s15636_s6 + $0x168] sm:$0xff] }
 0x2bb   : > { %v1003_v52 = vsel %vm1002_vm5, %v1001_v51, -inf }
 0x2bc   : > { %1004 = vmax.xlane.f32.xlu0 %v1003_v52  ;;  %v1362_v52 = vld [vmem:[%s15636_s6 + $0x160] sm:$0xff] }
 0x2be   : > { %v1055_v53 = vpop.f32.mrf.mxu1 }
 0x2bf   : > { %v1058_v54 = vmul.f32 0.088388346, %v1055_v53  ;;  %v1327_v53 = vld [vmem:[%s15636_s6 + $0x48] sm:$0xff] }
 0x2c1   : > { %v1059_v55 = vsel %vm1002_vm5, %v1058_v54, -inf }
 0x2c4   : > { %1060 = vmax.xlane.f32.xlu0 %v1059_v55 }
 0x2c6   : > { %v1167_v58 = vpop.f32.mrf.mxu1 }
 0x2c7   : > { %v1170_v60 = vmul.f32 0.088388346, %v1167_v58 }
 0x2c9   : > { %v1171_v0 = vsel %vm1002_vm5, %v1170_v60, -inf }
 0x2ce   : > { %v1279_v1 = vpop.f32.mrf.mxu1 }
 0x2cf   : > { %v1111_v56 = vpop.f32.mrf.mxu3  ;;  %v1282_v2 = vmul.f32 0.088388346, %v1279_v1  ;;  %v1324_v1 = vld [vmem:[%s15636_s6 + $0x30] sm:$0xff] }
 0x2d0   : > { %v1114_v57 = vmul.f32 0.088388346, %v1111_v56  ;;  %v1326_v56 = vld [vmem:[%s15636_s6 + $0x40] sm:$0xff] }
 0x2d1   : > { %v1283_v3 = vsel %vm1002_vm5, %v1282_v2, -inf }
 0x2d2   : > { %v1115_v59 = vsel %vm1002_vm5, %v1114_v57, -inf }
 0x2d3   : > { %1116 = vmax.xlane.f32.xlu1 %v1115_v59  ;;  %v1349_v59 = vld [vmem:[%s15636_s6 + $0xf8] sm:$0xff] }
 0x2d7   : > { %v1223_v61 = vpop.f32.mrf.mxu3 }
 0x2d8   : > { %v1226_v62 = vmul.f32 0.088388346, %v1223_v61 }
 0x2da   : > { %v1227_v63 = vsel %vm1002_vm5, %v1226_v62, -inf }
 0x2db   : > { %1228 = vmax.xlane.f32.xlu2 %v1227_v63  ;;  %1172 = vmax.xlane.f32.xlu1 %v1171_v0  ;;  %v1348_v63 = vld [vmem:[%s15636_s6 + $0xf0] sm:$0xff]  ;;  %v1359_v0 = vld [vmem:[%s15636_s6 + $0x148] sm:$0xff] }
 0x2e3   : > { %1284 = vmax.xlane.f32.xlu2 %v1283_v3  ;;  %v1358_v3 = vld [vmem:[%s15636_s6 + $0x140] sm:$0xff] }
 0x32f   : > { %v1005_v4 = vpop.xlane.xlu0 %1004 }
 0x330   : > { %v1006_v5 = vsub.f32 %v1001_v51, %v1005_v4  ;;  %v1328_v51 = vld [vmem:[%s15636_s6 + $0x50] sm:$0xff]  ;;  %v1323_v4 = vld [vmem:[%s15636_s6 + $0x28] sm:$0xff] }
 0x331   : > { %1419 = vmatpush.msra.mxu3 %v1328_v51  ;;  %v1389_v51 = vld [vmem:[%s15636_s6 + $0x238] sm:$0xff] }
 0x332   : > { %v1007_v6 = vmul.f32 1.442695, %v1006_v5  ;;  %v1346_v5 = vld [vmem:[%s15636_s6 + $0xe0] sm:$0xff] }
 0x333   : > { %1420 = vmatpush.msra.mxu3 %v1327_v53  ;;  %v1352_v53 = vld [vmem:[%s15636_s6 + $0x110] sm:$0xff] }
 0x334   : > { %9630 = vpow2.f32 %v1007_v6 }
 0x335   : > { %1421 = vmatpush.msra.mxu3 %v1326_v56  ;;  %v1411_v56 = vld [vmem:[%s15636_s6 + $0x2e8] sm:$0xff] }
 0x337   : > { %v1061_v7 = vpop.xlane.xlu0 %1060 }
 0x338   : > { %v1062_v8 = vsub.f32 %v1058_v54, %v1061_v7  ;;  %v1361_v54 = vld [vmem:[%s15636_s6 + $0x158] sm:$0xff]  ;;  %v1322_v7 = vld [vmem:[%s15636_s6 + $0x20] sm:$0xff] }
 0x33a   : > { %v9631_v9 = vpop.eup %9630  ;;  %v1063_v10 = vmul.f32 1.442695, %v1062_v8 }
 0x33b   : > { %v1009_v11 = vsel %vm1002_vm5, %v9631_v9, 0.0 }
 0x33c   : > { %9632 = vpow2.f32 %v1063_v10  ;;  %1010 = vadd.xlane.f32.xlu0 %v1009_v11  ;;  %v1345_v11 = vld [vmem:[%s15636_s6 + $0xd8] sm:$0xff] }
 0x342   : > { %v9633_v12 = vpop.eup %9632 }
 0x343   : > { %v1065_v13 = vsel %vm1002_vm5, %v9633_v12, 0.0 }
 0x344   : > { %1066 = vadd.xlane.f32.xlu1 %v1065_v13  ;;  %v1321_v13 = vld [vmem:[%s15636_s6 + $0x18] sm:$0xff] }
 0x346   : > { %v1117_v14 = vpop.xlane.xlu1 %1116 }
 0x347   : > { %v1118_v16 = vsub.f32 %v1114_v57, %v1117_v14  ;;  %v1381_v14 = vld [vmem:[%s15636_s6 + $0x1f8] sm:$0xff] }
 0x349   : > { %v1119_v17 = vmul.f32 1.442695, %v1118_v16  ;;  %v1344_v16 = vld [vmem:[%s15636_s6 + $0xd0] sm:$0xff] }
 0x34b   : > { %9634 = vpow2.f32 %v1119_v17  ;;  %v1320_v17 = vld [vmem:[%s15636_s6 + $0x10] sm:$0xff] }
 0x34e   : > { %v1229_v18 = vpop.xlane.xlu2 %1228  ;;  %v1173_v19 = vpop.xlane.xlu1 %1172 }
 0x34f   : > { %v1230_v20 = vsub.f32 %v1226_v62, %v1229_v18  ;;  %v1174_v21 = vsub.f32 %v1170_v60, %v1173_v19  ;;  %v1360_v60 = vld [vmem:[%s15636_s6 + $0x150] sm:$0xff]  ;;  %v1325_v62 = vld [vmem:[%s15636_s6 + $0x38] sm:$0xff]  ;;  %v1343_v18 = vld [vmem:[%s15636_s6 + $0xc8] sm:$0xff] }
 0x350   : > { %1422 = vmatpush.msra.mxu3 %v1325_v62  ;;  %v1319_v19 = vld [vmem:[%s15636_s6 + $0x8] sm:$0xff]  ;;  %v1373_v62 = vld [vmem:[%s15636_s6 + $0x1b8] sm:$0xff] }
 0x351   : > { %v10530_v22 = vpop.eup %9634  ;;  %v1231_v23 = vmul.f32 1.442695, %v1230_v20  ;;  %v1175_v24 = vmul.f32 1.442695, %v1174_v21  ;;  %v1342_v20 = vld [vmem:[%s15636_s6 + $0xc0] sm:$0xff] }
 0x352   : > { %v1121_v25 = vsel %vm1002_vm5, %v10530_v22, 0.0  ;;  %1423 = vmatpush.msra.mxu3 %v1324_v1  ;;  %v1372_v1 = vld [vmem:[%s15636_s6 + $0x1b0] sm:$0xff] }
 0x353   : > { %9636 = vpow2.f32 %v1231_v23  ;;  %1122 = vadd.xlane.f32.xlu2 %v1121_v25  ;;  %v1397_v25 = vld [vmem:[%s15636_s6 + $0x278] sm:$0xff] }
 0x354   : > { %9638 = vpow2.f32 %v1175_v24  ;;  %1424 = vmatpush.msra.mxu3 %v1323_v4  ;;  %v1341_v24 = vld [vmem:[%s15636_s6 + $0xb8] sm:$0xff]  ;;  %v1371_v4 = vld [vmem:[%s15636_s6 + $0x1a8] sm:$0xff] }
 0x356   : > { %v1285_v26 = vpop.xlane.xlu2 %1284  ;;  %1425 = vmatpush.msra.mxu3 %v1322_v7  ;;  %v1370_v7 = vld [vmem:[%s15636_s6 + $0x1a0] sm:$0xff] }
 0x357   : > { %v1286_v27 = vsub.f32 %v1282_v2, %v1285_v26  ;;  %v1347_v2 = vld [vmem:[%s15636_s6 + $0xe8] sm:$0xff]  ;;  %v1340_v26 = vld [vmem:[%s15636_s6 + $0xb0] sm:$0xff] }
 0x358   : > { %1426 = vmatpush.msra.mxu3 %v1321_v13  ;;  %v1368_v13 = vld [vmem:[%s15636_s6 + $0x190] sm:$0xff] }
 0x359   : > { %v10534_v28 = vpop.eup %9636  ;;  %v1287_v29 = vmul.f32 1.442695, %v1286_v27  ;;  %v1396_v27 = vld [vmem:[%s15636_s6 + $0x270] sm:$0xff] }
 0x35a   : > { %v10536_v30 = vpop.eup %9638  ;;  %v1233_v31 = vsel %vm1002_vm5, %v10534_v28, 0.0  ;;  %1427 = vmatpush.msra.mxu3 %v1320_v17  ;;  %v1403_v17 = vld [vmem:[%s15636_s6 + $0x2a8] sm:$0xff] }
 0x35b   : > { %9640 = vpow2.f32 %v1287_v29  ;;  %1234 = vadd.xlane.f32.xlu1 %v1233_v31  ;;  %v1177_v32 = vsel %vm1002_vm5, %v10536_v30, 0.0  ;;  %v1395_v29 = vld [vmem:[%s15636_s6 + $0x268] sm:$0xff]  ;;  %v1394_v31 = vld [vmem:[%s15636_s6 + $0x260] sm:$0xff] }
 0x35c   : > { %1178 = vadd.xlane.f32.xlu0 %v1177_v32  ;;  %1428 = vmatpush.msra.mxu3 %v1319_v19  ;;  %v1337_v32 = vld [vmem:[%s15636_s6 + $0x98] sm:$0xff]  ;;  %v1366_v19 = vld [vmem:[%s15636_s6 + $0x180] sm:$0xff] }
 0x361   : > { %v10542_v33 = vpop.eup %9640 }
 0x362   : > { %v1289_v34 = vsel %vm1002_vm5, %v10542_v33, 0.0 }
 0x363   : > { %1290 = vadd.xlane.f32.xlu2 %v1289_v34  ;;  %v1380_v34 = vld [vmem:[%s15636_s6 + $0x1f0] sm:$0xff] }
 0x3af   : > { %v1011_v35 = vpop.xlane.xlu0 %1010 }
 0x3b0   : > { %9642 = vrcp.f32 %v1011_v35  ;;  %v1393_v35 = vld [vmem:[%s15636_s6 + $0x258] sm:$0xff] }
 0x3b6   : > { %v9643_v36 = vpop.eup %9642 }
 0x3b7   : > { %v1013_v37 = vmul.f32 %v9643_v36, %v9631_v9  ;;  %v1067_v38 = vpop.xlane.xlu1 %1066  ;;  %v1336_v36 = vld [vmem:[%s15636_s6 + $0x90] sm:$0xff] }
 0x3b8   : > { %9644 = vrcp.f32 %v1067_v38  ;;  %v1379_v38 = vld [vmem:[%s15636_s6 + $0x1e8] sm:$0xff] }
 0x3b9   : > { %1014 = vst.msk [vmem:[%s10550_s27] sm:$0xff] %vm1002_vm5, %v1013_v37  ;;  %8070 = vmatmul.msk.f32.vlgmr.msra.gmra.mxu2 %vm1002_vm5, %v1013_v37  ;;  %v1356_v37 = vld [vmem:[%s15636_s6 + $0x130] sm:$0xff] }
 0x3ba   : > { %1201 = vmatpush.msra.mxu2 %v938_v39  ;;  %v1392_v39 = vld [vmem:[%s15636_s6 + $0x250] sm:$0xff] }
 0x3be   : > { %v9645_v40 = vpop.eup %9644 }
 0x3bf   : > { %v1069_v41 = vmul.f32 %v9645_v40, %v9633_v12  ;;  %v1335_v40 = vld [vmem:[%s15636_s6 + $0x88] sm:$0xff] }
 0x3c1   : > { %1070 = vst.msk [vmem:[%s10550_s27 + $0x8] sm:$0xff] %vm1002_vm5, %v1069_v41  ;;  %8071 = vmatmul.msk.f32.vlgmr.msrb.gmra.mxu2 %vm1002_vm5, %v1069_v41  ;;  %v1355_v41 = vld [vmem:[%s15636_s6 + $0x128] sm:$0xff] }
 0x3c2   : > { %1313 = vmatpush.msrb.mxu2 %v10520_v49  ;;  %v1364_v49 = vld [vmem:[%s15636_s6 + $0x170] sm:$0xff] }
 0x3c3   : > { %1455 = vmatpush.msra.mxu1 %v1364_v49  ;;  %v1353_v49 = vld [vmem:[%s15636_s6 + $0x118] sm:$0xff] }
 0x3c5   : > { %1456 = vmatpush.msra.mxu1 %v1363_v50  ;;  %v1376_v50 = vld [vmem:[%s15636_s6 + $0x1d0] sm:$0xff] }
 0x3c6   : > { %v1123_v46 = vpop.xlane.xlu2 %1122 }
 0x3c7   : > { %9646 = vrcp.f32 %v1123_v46  ;;  %1457 = vmatpush.msra.mxu1 %v1362_v52  ;;  %v1377_v46 = vld [vmem:[%s15636_s6 + $0x1d8] sm:$0xff]  ;;  %v1412_v52 = vld [vmem:[%s15636_s6 + $0x2f0] sm:$0xff] }
 0x3c9   : > { %1458 = vmatpush.msra.mxu1 %v1361_v54  ;;  %v1375_v54 = vld [vmem:[%s15636_s6 + $0x1c8] sm:$0xff] }
 0x3cb   : > { %1459 = vmatpush.msra.mxu1 %v1360_v60  ;;  %v1410_v60 = vld [vmem:[%s15636_s6 + $0x2e0] sm:$0xff] }
 0x3cd   : > { %v9647_v55 = vpop.eup %9646  ;;  %1460 = vmatpush.msra.mxu1 %v1359_v0  ;;  %v1409_v0 = vld [vmem:[%s15636_s6 + $0x2d8] sm:$0xff] }
 0x3ce   : > { %v1125_v57 = vmul.f32 %v9647_v55, %v10530_v22  ;;  %v1235_v58 = vpop.xlane.xlu1 %1234  ;;  %v1318_v22 = vld [vmem:[%s15636_s6] sm:$0xff]  ;;  %v1388_v55 = vld [vmem:[%s15636_s6 + $0x230] sm:$0xff] }
 0x3cf   : > { %v1179_v61 = vpop.xlane.xlu0 %1178  ;;  %9648 = vrcp.f32 %v1235_v58  ;;  %1461 = vmatpush.msra.mxu1 %v1358_v3  ;;  %1429 = vmatpush.msra.mxu3 %v1318_v22  ;;  %v1374_v58 = vld [vmem:[%s15636_s6 + $0x1c0] sm:$0xff]  ;;  %v1408_v3 = vld [vmem:[%s15636_s6 + $0x2d0] sm:$0xff] }
 0x3d0   : > { %1126 = vst.msk [vmem:[%s10550_s27 + $0x10] sm:$0xff] %vm1002_vm5, %v1125_v57  ;;  %9650 = vrcp.f32 %v1179_v61  ;;  %8072 = vmatmul.msk.f32.vlgmr.msrb.gmra.mxu0 %vm1002_vm5, %v1125_v57  ;;  %v1351_v57 = vld [vmem:[%s15636_s6 + $0x108] sm:$0xff]  ;;  %v1350_v61 = vld [vmem:[%s15636_s6 + $0x100] sm:$0xff]  ;;  %v1400_v22 = vld [vmem:[%s15636_s6 + $0x290] sm:$0xff] }
 0x3d1   : > { %1434 = vmatpush.msrb.mxu0 %v1349_v59  ;;  %1494 = vmatpush.msrb.mxu3 %v1397_v25  ;;  %v1387_v59 = vld [vmem:[%s15636_s6 + $0x228] sm:$0xff]  ;;  %v1398_v25 = vld [vmem:[%s15636_s6 + $0x280] sm:$0xff] }
 0x3d3   : > { %1435 = vmatpush.msrb.mxu0 %v1348_v63  ;;  %1495 = vmatpush.msrb.mxu3 %v1396_v27  ;;  %v1386_v63 = vld [vmem:[%s15636_s6 + $0x220] sm:$0xff] }
 0x3d5   : > { %v9649_v6 = vpop.eup %9648  ;;  %1436 = vmatpush.msrb.mxu0 %v1347_v2  ;;  %1496 = vmatpush.msrb.mxu3 %v1395_v29  ;;  %v1385_v2 = vld [vmem:[%s15636_s6 + $0x218] sm:$0xff] }
 0x3d6   : > { %v9651_v8 = vpop.eup %9650  ;;  %v1237_v9 = vmul.f32 %v9649_v6, %v10534_v28  ;;  %v1291_v10 = vpop.xlane.xlu2 %1290  ;;  %v1339_v28 = vld [vmem:[%s15636_s6 + $0xa8] sm:$0xff] }
 0x3d7   : > { %v1181_v12 = vmul.f32 %v9651_v8, %v10536_v30  ;;  %9652 = vrcp.f32 %v1291_v10  ;;  %1437 = vmatpush.msrb.mxu0 %v1346_v5  ;;  %v1338_v30 = vld [vmem:[%s15636_s6 + $0xa0] sm:$0xff]  ;;  %1497 = vmatpush.msrb.mxu3 %v1394_v31  ;;  %v1384_v5 = vld [vmem:[%s15636_s6 + $0x210] sm:$0xff]  ;;  %v1407_v6 = vld [vmem:[%s15636_s6 + $0x2c8] sm:$0xff] }
 0x3d8   : > { %1238 = vst.msk [vmem:[%s10550_s27 + $0x20] sm:$0xff] %vm1002_vm5, %v1237_v9  ;;  %8074 = vmatmul.msk.f32.vlgmr.msra.gmra.mxu0 %vm1002_vm5, %v1237_v9  ;;  %v1383_v8 = vld [vmem:[%s15636_s6 + $0x208] sm:$0xff]  ;;  %v1406_v9 = vld [vmem:[%s15636_s6 + $0x2c0] sm:$0xff]  ;;  %v1369_v10 = vld [vmem:[%s15636_s6 + $0x198] sm:$0xff] }
 0x3d9   : > { %1182 = vst.msk [vmem:[%s10550_s27 + $0x18] sm:$0xff] %vm1002_vm5, %v1181_v12  ;;  %8073 = vmatmul.msk.f32.vlgmr.msra.gmra.mxu2 %vm1002_vm5, %v1181_v12  ;;  %1438 = vmatpush.msrb.mxu0 %v1345_v11  ;;  %v1382_v11 = vld [vmem:[%s15636_s6 + $0x200] sm:$0xff]  ;;  %v1405_v12 = vld [vmem:[%s15636_s6 + $0x2b8] sm:$0xff] }
 0x3da   : > { %1474 = vmatpush.msra.mxu2 %v1381_v14  ;;  %1498 = vmatpush.msrb.mxu3 %v1393_v35  ;;  %v1404_v14 = vld [vmem:[%s15636_s6 + $0x2b0] sm:$0xff] }
 0x3db   : > { %1439 = vmatpush.msrb.mxu0 %v1344_v16  ;;  %v1367_v16 = vld [vmem:[%s15636_s6 + $0x188] sm:$0xff] }
 0x3dc   : > { %1475 = vmatpush.msra.mxu2 %v1380_v34  ;;  %1499 = vmatpush.msrb.mxu3 %v1392_v39 }
 0x3dd   : > { %v9653_v21 = vpop.eup %9652  ;;  %1440 = vmatpush.msrb.mxu0 %v1343_v18 }
 0x3de   : > { %v1293_v23 = vmul.f32 %v9653_v21, %v10542_v33  ;;  %v1357_v33 = vld [vmem:[%s15636_s6 + $0x138] sm:$0xff]  ;;  %1476 = vmatpush.msra.mxu2 %v1379_v38  ;;  %1500 = vmatpush.msrb.mxu3 %v1391_v43  ;;  %v9901_v43 = vmov 64.0  }
 0x3df   : > { %1441 = vmatpush.msrb.mxu0 %v1342_v20  ;;  %1462 = vmatpush.msra.mxu1 %v1357_v33  ;;  %v1402_v20 = vld [vmem:[%s15636_s6 + $0x2a0] sm:$0xff]  ;;  %v1401_v21 = vld [vmem:[%s15636_s6 + $0x298] sm:$0xff]  ;;  %9654 = vrcp.f32 %v9901_v43  ;;  %v1625_v43 = vld [vmem:[%s15638_s8 + $0x8] sm:$0xff] }
 0x3e0   : > { %1294 = vst.msk [vmem:[%s10550_s27 + $0x28] sm:$0xff] %vm1002_vm5, %v1293_v23  ;;  %1477 = vmatpush.msra.mxu2 %v1378_v42  ;;  %1501 = vmatpush.msrb.mxu3 %v1390_v47 }
 0x3e1   : > { %8075 = vmatmul.msk.f32.vlgmr.msrb.gmra.mxu2 %vm1002_vm5, %v1293_v23  ;;  %1442 = vmatpush.msrb.mxu0 %v1341_v24  ;;  %v1399_v23 = vld [vmem:[%s15636_s6 + $0x288] sm:$0xff] }
 0x3e2   : > { %1463 = vmatpush.msra.mxu1 %v1356_v37  ;;  %1478 = vmatpush.msra.mxu2 %v1377_v46 }
 0x3e3   : > { %1443 = vmatpush.msrb.mxu0 %v1340_v26  ;;  %1502 = vmatpush.msrb.mxu3 %v1389_v51 }
 0x3e4   : > { %1464 = vmatpush.msra.mxu1 %v1355_v41  ;;  %1479 = vmatpush.msra.mxu2 %v1376_v50 }
 0x3e5   : > { %1444 = vmatpush.msrb.mxu0 %v1339_v28  ;;  %1503 = vmatpush.msrb.mxu3 %v1388_v55  ;;  %v1578_v55 = vld [vmem:[#allocation2 + $0x78] sm:$0xff] }
 0x3e6   : > { %1465 = vmatpush.msra.mxu1 %v1354_v45  ;;  %1480 = vmatpush.msra.mxu2 %v1375_v54  ;;  %v1577_v54 = vld [vmem:[#allocation2 + $0x70] sm:$0xff] }
 0x3e7   : > { %1445 = vmatpush.msrb.mxu0 %v1338_v30  ;;  %1504 = vmatpush.msrb.mxu3 %v1387_v59  ;;  %v1574_v59 = vld [vmem:[#allocation2 + $0x58] sm:$0xff] }
 0x3e8   : > { %1466 = vmatpush.msra.mxu1 %v1353_v49  ;;  %1481 = vmatpush.msra.mxu2 %v1374_v58  ;;  %v1573_v58 = vld [vmem:[#allocation2 + $0x50] sm:$0xff] }
 0x3e9   : > { %1446 = vmatpush.msrb.mxu0 %v1337_v32  ;;  %1505 = vmatpush.msrb.mxu3 %v1386_v63  ;;  %v1570_v63 = vld [vmem:[#allocation2 + $0x38] sm:$0xff] }
 0x3ea   : > { %1467 = vmatpush.msra.mxu1 %v1352_v53  ;;  %1482 = vmatpush.msra.mxu2 %v1373_v62  ;;  %v1569_v62 = vld [vmem:[#allocation2 + $0x30] sm:$0xff] }
 0x3eb   : > { %1447 = vmatpush.msrb.mxu0 %v1336_v36  ;;  %1506 = vmatpush.msrb.mxu3 %v1385_v2  ;;  %v1565_v2 = vld [vmem:[#allocation2 + $0x10] sm:$0xff] }
 0x3ec   : > { %1468 = vmatpush.msra.mxu1 %v1351_v57  ;;  %1483 = vmatpush.msra.mxu2 %v1372_v1  ;;  %v1576_v57 = vld [vmem:[#allocation2 + $0x68] sm:$0xff] }
 0x3ed   : > { %1448 = vmatpush.msrb.mxu0 %v1335_v40  ;;  %1507 = vmatpush.msrb.mxu3 %v1384_v5  ;;  %v1568_v1 = vld [vmem:[#allocation2 + $0x28] sm:$0xff] }
 0x3ee   : > { %1469 = vmatpush.msra.mxu1 %v1350_v61  ;;  %1484 = vmatpush.msra.mxu2 %v1371_v4  ;;  %v1572_v61 = vld [vmem:[#allocation2 + $0x48] sm:$0xff]  ;;  %v1563_v4 = vld [vmem:[#allocation2] sm:$0xff] }
 0x3ef   : > { %1449 = vmatpush.msrb.mxu0 %v1334_v44  ;;  %1508 = vmatpush.msrb.mxu3 %v1383_v8  ;;  %v9655_v44 = vpop.eup %9654  ;;  %v1564_v5 = vld [vmem:[#allocation2 + $0x8] sm:$0xff]  ;;  %v1638_v8 = vld [vmem:[%s15638_s8 + $0x70] sm:$0xff] }
 0x3f0   : > { %1485 = vmatpush.msra.mxu2 %v1370_v7  ;;  %v1538_v45 = vmul.f32 64.0, %v9655_v44  ;;  %vm1542_vm6 = vweird.f32 %v9655_v44  ;;  %1590 = vmatpush.msrb.mxu1 %v1577_v54  ;;  %v1655_v7 = vld [vmem:[%s15638_s8 + $0xf8] sm:$0xff] }
 0x3f1   : > { %1514 = vmatpush.msra.mxu0 %v1413_v48  ;;  %1509 = vmatpush.msrb.mxu3 %v1382_v11  ;;  %v1653_v11 = vld [vmem:[%s15638_s8 + $0xe8] sm:$0xff] }
 0x3f2   : > { %1486 = vmatpush.msra.mxu2 %v1369_v10  ;;  %v1539_v46 = vsub.f32 1.0, %v1538_v45  ;;  %v1637_v10 = vld [vmem:[%s15638_s8 + $0x68] sm:$0xff]  ;;  %v1624_v45 = vld [vmem:[%s15638_s8] sm:$0xff] }
 0x3f3   : > { %1515 = vmatpush.msra.mxu0 %v1412_v52 }
 0x3f4   : > { %1487 = vmatpush.msra.mxu2 %v1368_v13  ;;  %v1540_v47 = vmul.f32 %v9655_v44, %v1539_v46  ;;  %v1652_v13 = vld [vmem:[%s15638_s8 + $0xe0] sm:$0xff]  ;;  %v1643_v46 = vld [vmem:[%s15638_s8 + $0x98] sm:$0xff] }
 0x3f5   : > { %1516 = vmatpush.msra.mxu0 %v1411_v56  ;;  %v1575_v56 = vld [vmem:[#allocation2 + $0x60] sm:$0xff] }
 0x3f6   : > { %1488 = vmatpush.msra.mxu2 %v1367_v16  ;;  %1591 = vmatpush.msrb.mxu1 %v1575_v56 }
 0x3f7   : > { %1517 = vmatpush.msra.mxu0 %v1410_v60  ;;  %v1571_v60 = vld [vmem:[#allocation2 + $0x40] sm:$0xff] }
 0x3f8   : > { %1489 = vmatpush.msra.mxu2 %v1366_v19  ;;  %1592 = vmatpush.msrb.mxu1 %v1573_v58 }
 0x3f9   : > { %1518 = vmatpush.msra.mxu0 %v1409_v0  ;;  %v1567_v0 = vld [vmem:[#allocation2 + $0x20] sm:$0xff] }
 0x3fa   : > { %1610 = vmatpush.msrb.mxu2 %v1578_v55  ;;  %1593 = vmatpush.msrb.mxu1 %v1571_v60  ;;  %v8205_v60 = vld [vmem:[%s15635_s5 + $0x878] sm:$0xff] }
 0x3fb   : > { %1519 = vmatpush.msra.mxu0 %v1408_v3  ;;  %v1566_v3 = vld [vmem:[#allocation2 + $0x18] sm:$0xff] }
 0x3fc   : > { %1611 = vmatpush.msrb.mxu2 %v1576_v57  ;;  %1594 = vmatpush.msrb.mxu1 %v1569_v62  ;;  %v8209_v62 = vld [vmem:[%s15635_s5 + $0x898] sm:$0xff] }
 0x3fd   : > { %1520 = vmatpush.msra.mxu0 %v1407_v6  ;;  %v1639_v6 = vld [vmem:[%s15638_s8 + $0x78] sm:$0xff] }
 0x3fe   : > { %1612 = vmatpush.msrb.mxu2 %v1574_v59  ;;  %1595 = vmatpush.msrb.mxu1 %v1567_v0  ;;  %v8204_v59 = vld [vmem:[%s15635_s5 + $0x870] sm:$0xff]  ;;  %v8187_v0 = vld [vmem:[%s15635_s5 + $0x7e8] sm:$0xff] }
 0x3ff   : > { %1521 = vmatpush.msra.mxu0 %v1406_v9  ;;  %v1654_v9 = vld [vmem:[%s15638_s8 + $0xf0] sm:$0xff] }
 0x400   : > { %1613 = vmatpush.msrb.mxu2 %v1572_v61  ;;  %1596 = vmatpush.msrb.mxu1 %v1565_v2  ;;  %v8208_v61 = vld [vmem:[%s15635_s5 + $0x890] sm:$0xff]  ;;  %v8191_v2 = vld [vmem:[%s15635_s5 + $0x808] sm:$0xff] }
 0x401   : > { %1522 = vmatpush.msra.mxu0 %v1405_v12  ;;  %v1636_v12 = vld [vmem:[%s15638_s8 + $0x60] sm:$0xff] }
 0x402   : > { %1614 = vmatpush.msrb.mxu2 %v1570_v63  ;;  %1597 = vmatpush.msrb.mxu1 %v1563_v4  ;;  %v8186_v63 = vld [vmem:[%s15635_s5 + $0x7e0] sm:$0xff]  ;;  %v8169_v4 = vld [vmem:[%s15635_s5 + $0x758] sm:$0xff] }
 0x403   : > { %1523 = vmatpush.msra.mxu0 %v1404_v14 }
 0x404   : > { %1615 = vmatpush.msrb.mxu2 %v1568_v1  ;;  %v8190_v1 = vld [vmem:[%s15635_s5 + $0x800] sm:$0xff] }
 0x405   : > { %1524 = vmatpush.msra.mxu0 %v1403_v17  ;;  %v1635_v17 = vld [vmem:[%s15638_s8 + $0x58] sm:$0xff] }
 0x406   : > { %1616 = vmatpush.msrb.mxu2 %v1566_v3  ;;  %v8168_v3 = vld [vmem:[%s15635_s5 + $0x750] sm:$0xff] }
 0x407   : > { %1525 = vmatpush.msra.mxu0 %v1402_v20  ;;  %v1634_v20 = vld [vmem:[%s15638_s8 + $0x50] sm:$0xff] }
 0x408   : > { %1617 = vmatpush.msrb.mxu2 %v1564_v5  ;;  %v8172_v5 = vld [vmem:[%s15635_s5 + $0x770] sm:$0xff] }
 0x409   : > { %1526 = vmatpush.msra.mxu0 %v1401_v21  ;;  %v1650_v21 = vld [vmem:[%s15638_s8 + $0xd0] sm:$0xff] }
 0x40b   : > { %1527 = vmatpush.msra.mxu0 %v1400_v22  ;;  %v1633_v22 = vld [vmem:[%s15638_s8 + $0x48] sm:$0xff] }
 0x40d   : > { %1528 = vmatpush.msra.mxu0 %v1399_v23  ;;  %v1649_v23 = vld [vmem:[%s15638_s8 + $0xc8] sm:$0xff] }
 0x40f   : > { %1529 = vmatpush.msra.mxu0 %v1398_v25  ;;  %v1648_v25 = vld [vmem:[%s15638_s8 + $0xc0] sm:$0xff] }
 0x43c   : > { %v1035_v18 = vpop.f32.mrf.mxu2 }
 0x43d   : > { %1430 = vmatmul.f32.vlgmr.msra.gmra.mxu3 %v1035_v18  ;;  %v1651_v18 = vld [vmem:[%s15638_s8 + $0xd8] sm:$0xff] }
 0x43e   : > { %1874 = vmatpush.msra.mxu3 %v8204_v59  ;;  %v8104_v59 = vld [vmem:[%s15635_s5 + $0x550] sm:$0xff] }
 0x440   : > { %1875 = vmatpush.msra.mxu3 %v8186_v63  ;;  %v8086_v63 = vld [vmem:[%s15635_s5 + $0x4c0] sm:$0xff] }
 0x442   : > { %1876 = vmatpush.msra.mxu3 %v8168_v3 }
 0x444   : > { %v1091_v24 = vpop.f32.mrf.mxu2 }
 0x445   : > { %1450 = vmatmul.f32.vlgmr.msrb.gmra.mxu0 %v1091_v24  ;;  %v1632_v24 = vld [vmem:[%s15638_s8 + $0x40] sm:$0xff] }
 0x446   : > { %1894 = vmatpush.msrb.mxu0 %v8205_v60  ;;  %v8105_v60 = vld [vmem:[%s15635_s5 + $0x558] sm:$0xff] }
 0x448   : > { %1895 = vmatpush.msrb.mxu0 %v8187_v0  ;;  %v8087_v0 = vld [vmem:[%s15635_s5 + $0x4c8] sm:$0xff] }
 0x44a   : > { %1896 = vmatpush.msrb.mxu0 %v8169_v4 }
 0x44d   : > { %v1147_v26 = vpop.f32.mrf.mxu0 }
 0x44e   : > { %1470 = vmatmul.f32.vlgmr.msra.gmra.mxu1 %v1147_v26  ;;  %v1631_v26 = vld [vmem:[%s15638_s8 + $0x38] sm:$0xff] }
 0x44f   : > { %1656 = vmatpush.msra.mxu1 %v1639_v6  ;;  %v8173_v6 = vld [vmem:[%s15635_s5 + $0x778] sm:$0xff] }
 0x451   : > { %1657 = vmatpush.msra.mxu1 %v1638_v8 }
 0x453   : > { %1658 = vmatpush.msra.mxu1 %v1637_v10 }
 0x455   : > { %v1259_v27 = vpop.f32.mrf.mxu0  ;;  %1659 = vmatpush.msra.mxu1 %v1636_v12  ;;  %v8150_v12 = vld [vmem:[%s15635_s5 + $0x6c0] sm:$0xff] }
 0x456   : > { %1510 = vmatmul.f32.vlgmr.msrb.gmra.mxu3 %v1259_v27  ;;  %v1647_v27 = vld [vmem:[%s15638_s8 + $0xb8] sm:$0xff] }
 0x457   : > { %1660 = vmatpush.msra.mxu1 %v1635_v17  ;;  %1877 = vmatpush.msra.mxu3 %v8150_v12  ;;  %v8132_v17 = vld [vmem:[%s15635_s5 + $0x630] sm:$0xff] }
 0x459   : > { %1661 = vmatpush.msra.mxu1 %v1634_v20  ;;  %1878 = vmatpush.msra.mxu3 %v8132_v17  ;;  %v8137_v20 = vld [vmem:[%s15635_s5 + $0x658] sm:$0xff]  ;;  %v8192_v17 = vld [vmem:[%s15635_s5 + $0x810] sm:$0xff] }
 0x45b   : > { %1662 = vmatpush.msra.mxu1 %v1633_v22  ;;  %v8115_v22 = vld [vmem:[%s15635_s5 + $0x5a8] sm:$0xff] }
 0x45c   : > { %v1203_v28 = vpop.f32.mrf.mxu2 }
 0x45d   : > { %1490 = vmatmul.f32.vlgmr.msra.gmra.mxu2 %v1203_v28  ;;  %1663 = vmatpush.msra.mxu1 %v1632_v24  ;;  %v8119_v24 = vld [vmem:[%s15635_s5 + $0x5c8] sm:$0xff] }
 0x45e   : > { %1676 = vmatpush.msra.mxu2 %v1655_v7 }
 0x45f   : > { %1664 = vmatpush.msra.mxu1 %v1631_v26  ;;  %v8097_v26 = vld [vmem:[%s15635_s5 + $0x518] sm:$0xff] }
 0x460   : > { %1677 = vmatpush.msra.mxu2 %v1654_v9 }
 0x462   : > { %1678 = vmatpush.msra.mxu2 %v1653_v11 }
 0x464   : > { %v1315_v29 = vpop.f32.mrf.mxu2  ;;  %1679 = vmatpush.msra.mxu2 %v1652_v13  ;;  %v8151_v13 = vld [vmem:[%s15635_s5 + $0x6c8] sm:$0xff] }
 0x465   : > { %1530 = vmatmul.f32.vlgmr.msra.gmra.mxu0 %v1315_v29  ;;  %v1630_v29 = vld [vmem:[%s15638_s8 + $0x30] sm:$0xff] }
 0x466   : > { %1680 = vmatpush.msra.mxu2 %v1651_v18  ;;  %1665 = vmatpush.msra.mxu1 %v1630_v29  ;;  %v8133_v18 = vld [vmem:[%s15635_s5 + $0x638] sm:$0xff]  ;;  %v8078_v29 = vld [vmem:[%s15635_s5 + $0x480] sm:$0xff] }
 0x467   : > { %1897 = vmatpush.msrb.mxu0 %v8151_v13  ;;  %v8210_v13 = vld [vmem:[%s15635_s5 + $0x8a0] sm:$0xff] }
 0x468   : > { %1681 = vmatpush.msra.mxu2 %v1650_v21  ;;  %v8114_v21 = vld [vmem:[%s15635_s5 + $0x5a0] sm:$0xff] }
 0x469   : > { %1898 = vmatpush.msrb.mxu0 %v8133_v18  ;;  %1879 = vmatpush.msra.mxu3 %v8114_v21  ;;  %v8193_v18 = vld [vmem:[%s15635_s5 + $0x818] sm:$0xff]  ;;  %v8174_v21 = vld [vmem:[%s15635_s5 + $0x780] sm:$0xff] }
 0x46a   : > { %1682 = vmatpush.msra.mxu2 %v1649_v23  ;;  %v8118_v23 = vld [vmem:[%s15635_s5 + $0x5c0] sm:$0xff] }
 0x46b   : > { %1899 = vmatpush.msrb.mxu0 %v8115_v22  ;;  %v8175_v22 = vld [vmem:[%s15635_s5 + $0x788] sm:$0xff] }
 0x46c   : > { %1683 = vmatpush.msra.mxu2 %v1648_v25  ;;  %v8096_v25 = vld [vmem:[%s15635_s5 + $0x510] sm:$0xff] }
 0x46d   : > { %1880 = vmatpush.msra.mxu3 %v8096_v25  ;;  %1900 = vmatpush.msrb.mxu0 %v8097_v26  ;;  %v8156_v25 = vld [vmem:[%s15635_s5 + $0x6f0] sm:$0xff]  ;;  %v8157_v26 = vld [vmem:[%s15635_s5 + $0x6f8] sm:$0xff] }
 0x46e   : > { %1684 = vmatpush.msra.mxu2 %v1647_v27  ;;  %v8100_v27 = vld [vmem:[%s15635_s5 + $0x530] sm:$0xff] }
 0x46f   : > { %1881 = vmatpush.msra.mxu3 %v8078_v29  ;;  %v8138_v29 = vld [vmem:[%s15635_s5 + $0x660] sm:$0xff] }
 0x4c0   : > { %v1431_v30 = vpop.f32.mrf.mxu3 }
 0x4c1   : > { %v1432_v31 = vadd.f32 %v1431_v30, %v10242_v15  ;;  %v1541_v15 = vadd.f32 %v9655_v44, %v1540_v47  ;;  %v1646_v30 = vld [vmem:[%s15638_s8 + $0xb0] sm:$0xff] }
 0x4c2   : > { %v1451_v32 = vpop.f32.mrf.mxu0  ;;  %1685 = vmatpush.msra.mxu2 %v1646_v30  ;;  %v1642_v47 = vld [vmem:[%s15638_s8 + $0x90] sm:$0xff]  ;;  %v8079_v30 = vld [vmem:[%s15635_s5 + $0x488] sm:$0xff] }
 0x4c3   : > { %v1452_v34 = vadd.f32 %v1451_v32, %v1432_v31  ;;  %v10865_v48 = vsel %vm1542_vm6, %v9655_v44, %v1541_v15  ;;  %v1629_v32 = vld [vmem:[%s15638_s8 + $0x28] sm:$0xff]  ;;  %v1644_v44 = vld [vmem:[%s15638_s8 + $0xa0] sm:$0xff]  ;;  %1901 = vmatpush.msrb.mxu0 %v8079_v30 }
 0x4c4   : > { %1666 = vmatpush.msra.mxu1 %v1629_v32  ;;  %v1641_v15 = vld [vmem:[%s15638_s8 + $0x88] sm:$0xff] }
 0x4c5   : > { %v8083_v32 = vld [vmem:[%s15635_s5 + $0x4a8] sm:$0xff] }
 0x4c6   : > { %v8139_v30 = vld [vmem:[%s15635_s5 + $0x668] sm:$0xff] }
 0x4cb   : > { %v1471_v33 = vpop.f32.mrf.mxu1 }
 0x4cc   : > { %v1472_v35 = vadd.f32 %v1471_v33, %v1452_v34  ;;  %v1645_v33 = vld [vmem:[%s15638_s8 + $0xa8] sm:$0xff] }
 0x4cd   : > { %1686 = vmatpush.msra.mxu2 %v1645_v33  ;;  %v8206_v33 = vld [vmem:[%s15635_s5 + $0x880] sm:$0xff] }
 0x4ce   : > { %1914 = vmatpush.msrb.mxu3 %v8206_v33  ;;  %v8120_v33 = vld [vmem:[%s15635_s5 + $0x5d0] sm:$0xff] }
 0x4cf   : > { %1687 = vmatpush.msra.mxu2 %v1644_v44  ;;  %v8177_v44 = vld [vmem:[%s15635_s5 + $0x798] sm:$0xff] }
 0x4d1   : > { %1688 = vmatpush.msra.mxu2 %v1643_v46  ;;  %v8153_v46 = vld [vmem:[%s15635_s5 + $0x6d8] sm:$0xff] }
 0x4d3   : > { %1689 = vmatpush.msra.mxu2 %v1642_v47  ;;  %v8158_v47 = vld [vmem:[%s15635_s5 + $0x700] sm:$0xff] }
 0x4d5   : > { %1690 = vmatpush.msra.mxu2 %v1641_v15  ;;  %v8159_v15 = vld [vmem:[%s15635_s5 + $0x708] sm:$0xff] }
 0x4d9   : > { %v1511_v38 = vpop.f32.mrf.mxu3 }
 0x4e0   : > { %v1491_v36 = vpop.f32.mrf.mxu2 }
 0x4e1   : > { %v1492_v37 = vadd.f32 %v1491_v36, %v1472_v35  ;;  %v1628_v35 = vld [vmem:[%s15638_s8 + $0x20] sm:$0xff] }
 0x4e2   : > { %v1531_v40 = vpop.f32.mrf.mxu0  ;;  %1667 = vmatpush.msra.mxu1 %v1628_v35  ;;  %v8212_v35 = vld [vmem:[%s15635_s5 + $0x8b0] sm:$0xff] }
 0x4e3   : > { %v1512_v39 = vadd.f32 %v1511_v38, %v1492_v37  ;;  %v1627_v37 = vld [vmem:[%s15638_s8 + $0x18] sm:$0xff] }
 0x4e4   : > { %1668 = vmatpush.msra.mxu1 %v1627_v37  ;;  %v8188_v37 = vld [vmem:[%s15635_s5 + $0x7f0] sm:$0xff] }
 0x4e5   : > { %v1532_v41 = vadd.f32 %v1531_v40, %v1512_v39  ;;  %v1626_v39 = vld [vmem:[%s15638_s8 + $0x10] sm:$0xff]  ;;  %1915 = vmatpush.msrb.mxu3 %v8188_v37  ;;  %v8102_v37 = vld [vmem:[%s15635_s5 + $0x540] sm:$0xff] }
 0x4e6   : > { %1669 = vmatpush.msra.mxu1 %v1626_v39  ;;  %v8194_v39 = vld [vmem:[%s15635_s5 + $0x820] sm:$0xff] }
 0x4e7   : > { %v1534_v42 = vsel %vm617_vm4, %v1532_v41, 0.0 }
 0x4e8   : > { %1535 = vadd.xlane.f32.xlu0 %v1534_v42  ;;  %1670 = vmatpush.msra.mxu1 %v1625_v43  ;;  %v8176_v43 = vld [vmem:[%s15635_s5 + $0x790] sm:$0xff] }
 0x4ea   : > { %1671 = vmatpush.msra.mxu1 %v1624_v45  ;;  %v8152_v45 = vld [vmem:[%s15635_s5 + $0x6d0] sm:$0xff] }
 0x55b   : > { %v1536_v49 = vpop.xlane.xlu0 %1535 }
 0x55c   : > { %v1544_v50 = vmul.f32 %v10865_v48, %v1536_v49  ;;  %v1640_v49 = vld [vmem:[%s15638_s8 + $0x80] sm:$0xff] }
 0x55d   : > { %1691 = vmatpush.msra.mxu2 %v1640_v49  ;;  %v8134_v49 = vld [vmem:[%s15635_s5 + $0x640] sm:$0xff] }
 0x55e   : > { %v10868_v51 = vsub.f32 %v1532_v41, %v1544_v50 }
 0x560   : > { %v1546_v52 = vmul.f32 %v10868_v51, %v10868_v51 }
 0x562   : > { %v1547_v53 = vsel %vm617_vm4, %v1546_v52, 0.0 }
 0x563   : > { %1548 = vadd.xlane.f32.xlu1 %v1547_v53 }
 0x5d6   : > { %v1549_v14 = vpop.xlane.xlu1 %1548 }
 0x5d7   : > { %v1550_v16 = vmul.f32 %v1549_v14, %v10865_v48  ;;  %v8154_v14 = vld [vmem:[%s15635_s5 + $0x6e0] sm:$0xff] }
 0x5d9   : > { %v1551_v19 = vadd.f32 1e-05, %v1550_v16  ;;  %v8155_v16 = vld [vmem:[%s15635_s5 + $0x6e8] sm:$0xff] }
 0x5db   : > { %9656 = vrsqrt.f32 %v1551_v19  ;;  %vm1558_vm8 = vweird.f32 %v1551_v19 }
 0x5e1   : > { %v9657_v28 = vpop.eup %9656 }
 0x5e2   : > { %v1553_v31 = vmul.f32 %v9657_v28, %v1551_v19  ;;  %vm1559_vm7 = vweird.f32 %v9657_v28  ;;  %v8136_v19 = vld [vmem:[%s15635_s5 + $0x650] sm:$0xff] }
 0x5e3   : > { %vm1560_vm9 = vmor %vm1558_vm8, %vm1559_vm7 }
 0x5e4   : > { %v1554_v34 = vmul.f32 %v9657_v28, %v1553_v31  ;;  %v8082_v31 = vld [vmem:[%s15635_s5 + $0x4a0] sm:$0xff] }
 0x5e6   : > { %v1555_v36 = vmul.f32 0.5, %v1554_v34  ;;  %v8207_v34 = vld [vmem:[%s15635_s5 + $0x888] sm:$0xff] }
 0x5e7   : > { %1934 = vmatpush.msra.mxu0 %v8207_v34  ;;  %v8121_v34 = vld [vmem:[%s15635_s5 + $0x5d8] sm:$0xff] }
 0x5e8   : > { %v1556_v38 = vsub.f32 1.5, %v1555_v36  ;;  %v8213_v36 = vld [vmem:[%s15635_s5 + $0x8b8] sm:$0xff] }
 0x5ea   : > { %v1557_v40 = vmul.f32 %v9657_v28, %v1556_v38  ;;  %v8189_v38 = vld [vmem:[%s15635_s5 + $0x7f8] sm:$0xff] }
 0x5eb   : > { %1935 = vmatpush.msra.mxu0 %v8189_v38  ;;  %v8103_v38 = vld [vmem:[%s15635_s5 + $0x548] sm:$0xff] }
 0x5ec   : > { %v1561_v41 = vsel %vm1560_vm9, %v9657_v28, %v1557_v40  ;;  %v8101_v28 = vld [vmem:[%s15635_s5 + $0x538] sm:$0xff]  ;;  %v8195_v40 = vld [vmem:[%s15635_s5 + $0x828] sm:$0xff] }
 0x5ed   : > { %v1562_v42 = vmul.f32 %v1561_v41, %v10868_v51  ;;  %v8170_v41 = vld [vmem:[%s15635_s5 + $0x760] sm:$0xff] }
 0x5ee   : > { %1916 = vmatpush.msrb.mxu3 %v8170_v41  ;;  %v8084_v41 = vld [vmem:[%s15635_s5 + $0x4b0] sm:$0xff] }
 0x5ef   : > { %8076 = vmatmul.msk.f32.vlgmr.msrb.gmra.mxu1 %vm617_vm4, %v1562_v42  ;;  %8077 = vmatmul.msk.f32.vlgmr.msrb.gmra.mxu2 %vm617_vm4, %v1562_v42 }
 0x5f0   : > { %1954 = vmatpush.msrb.mxu1 %v8208_v61  ;;  %1974 = vmatpush.msrb.mxu2 %v8209_v62  ;;  %v8080_v61 = vld [vmem:[%s15635_s5 + $0x490] sm:$0xff]  ;;  %v8081_v62 = vld [vmem:[%s15635_s5 + $0x498] sm:$0xff] }
 0x5f1   : > { %1917 = vmatpush.msrb.mxu3 %v8152_v45  ;;  %v8214_v45 = vld [vmem:[%s15635_s5 + $0x8c0] sm:$0xff] }
 0x5f2   : > { %1955 = vmatpush.msrb.mxu1 %v8190_v1  ;;  %1975 = vmatpush.msrb.mxu2 %v8191_v2 }
 0x5f3   : > { %1918 = vmatpush.msrb.mxu3 %v8134_v49  ;;  %v8196_v49 = vld [vmem:[%s15635_s5 + $0x830] sm:$0xff] }
 0x5f4   : > { %1956 = vmatpush.msrb.mxu1 %v8172_v5  ;;  %1976 = vmatpush.msrb.mxu2 %v8173_v6 }
 0x5f6   : > { %1957 = vmatpush.msrb.mxu1 %v8154_v14  ;;  %1977 = vmatpush.msrb.mxu2 %v8155_v16  ;;  %v8211_v14 = vld [vmem:[%s15635_s5 + $0x8a8] sm:$0xff]  ;;  %v8216_v16 = vld [vmem:[%s15635_s5 + $0x8d0] sm:$0xff] }
 0x5f8   : > { %1958 = vmatpush.msrb.mxu1 %v8136_v19  ;;  %1978 = vmatpush.msrb.mxu2 %v8137_v20  ;;  %v8198_v19 = vld [vmem:[%s15635_s5 + $0x840] sm:$0xff]  ;;  %v8199_v20 = vld [vmem:[%s15635_s5 + $0x848] sm:$0xff] }
 0x5fa   : > { %1959 = vmatpush.msrb.mxu1 %v8118_v23  ;;  %1979 = vmatpush.msrb.mxu2 %v8119_v24  ;;  %v8180_v23 = vld [vmem:[%s15635_s5 + $0x7b0] sm:$0xff]  ;;  %v8181_v24 = vld [vmem:[%s15635_s5 + $0x7b8] sm:$0xff] }
 0x5fc   : > { %1960 = vmatpush.msrb.mxu1 %v8100_v27  ;;  %1980 = vmatpush.msrb.mxu2 %v8101_v28  ;;  %v8162_v27 = vld [vmem:[%s15635_s5 + $0x720] sm:$0xff]  ;;  %v8163_v28 = vld [vmem:[%s15635_s5 + $0x728] sm:$0xff] }
 0x5fe   : > { %1961 = vmatpush.msrb.mxu1 %v8082_v31  ;;  %1981 = vmatpush.msrb.mxu2 %v8083_v32  ;;  %v8144_v31 = vld [vmem:[%s15635_s5 + $0x690] sm:$0xff]  ;;  %v8145_v32 = vld [vmem:[%s15635_s5 + $0x698] sm:$0xff] }
 0x66c   : > { %v1599_v50 = vpop.f32.mrf.mxu1 }
 0x66d   : > { %v1622_v51 = vmax.f32 %v1599_v50, 0.0  ;;  %v8135_v50 = vld [vmem:[%s15635_s5 + $0x648] sm:$0xff] }
 0x66f   : > { %1672 = vmatmul.f32.vlgmr.msra.gmra.mxu1 %v1622_v51  ;;  %v8140_v51 = vld [vmem:[%s15635_s5 + $0x670] sm:$0xff] }
 0x670   : > { %2034 = vmatpush.msra.mxu1 %v8212_v35  ;;  %v8126_v35 = vld [vmem:[%s15635_s5 + $0x600] sm:$0xff] }
 0x672   : > { %v1619_v52 = vpop.f32.mrf.mxu2  ;;  %2035 = vmatpush.msra.mxu1 %v8194_v39  ;;  %v8108_v39 = vld [vmem:[%s15635_s5 + $0x570] sm:$0xff] }
 0x673   : > { %v1623_v53 = vmax.f32 %v1619_v52, 0.0  ;;  %v8141_v52 = vld [vmem:[%s15635_s5 + $0x678] sm:$0xff] }
 0x674   : > { %2036 = vmatpush.msra.mxu1 %v8176_v43  ;;  %v8090_v43 = vld [vmem:[%s15635_s5 + $0x4e0] sm:$0xff] }
 0x675   : > { %1692 = vmatmul.f32.vlgmr.msra.gmra.mxu2 %v1623_v53  ;;  %v8116_v53 = vld [vmem:[%s15635_s5 + $0x5b0] sm:$0xff] }
 0x676   : > { %2054 = vmatpush.msra.mxu2 %v8213_v36  ;;  %2037 = vmatpush.msra.mxu1 %v8158_v47  ;;  %v8127_v36 = vld [vmem:[%s15635_s5 + $0x608] sm:$0xff]  ;;  %v8220_v47 = vld [vmem:[%s15635_s5 + $0x8f0] sm:$0xff] }
 0x677   : > { %1919 = vmatpush.msrb.mxu3 %v8116_v53  ;;  %v8178_v53 = vld [vmem:[%s15635_s5 + $0x7a0] sm:$0xff] }
 0x678   : > { %2055 = vmatpush.msra.mxu2 %v8195_v40  ;;  %2038 = vmatpush.msra.mxu1 %v8140_v51  ;;  %v8109_v40 = vld [vmem:[%s15635_s5 + $0x578] sm:$0xff]  ;;  %v8202_v51 = vld [vmem:[%s15635_s5 + $0x860] sm:$0xff] }
 0x67a   : > { %2056 = vmatpush.msra.mxu2 %v8177_v44  ;;  %v8091_v44 = vld [vmem:[%s15635_s5 + $0x4e8] sm:$0xff] }
 0x67c   : > { %2057 = vmatpush.msra.mxu2 %v8159_v15  ;;  %v8221_v15 = vld [vmem:[%s15635_s5 + $0x8f8] sm:$0xff] }
 0x67e   : > { %2058 = vmatpush.msra.mxu2 %v8141_v52  ;;  %v8203_v52 = vld [vmem:[%s15635_s5 + $0x868] sm:$0xff] }
 0x6ec   : > { %v1673_v54 = vpop.f32.mrf.mxu1 }
 0x6ed   : > { %v1674_v55 = vadd.f32 %v1673_v54, %v1562_v42  ;;  %v8171_v42 = vld [vmem:[%s15635_s5 + $0x768] sm:$0xff]  ;;  %v8117_v54 = vld [vmem:[%s15635_s5 + $0x5b8] sm:$0xff] }
 0x6ee   : > { %1936 = vmatpush.msra.mxu0 %v8171_v42  ;;  %v8085_v42 = vld [vmem:[%s15635_s5 + $0x4b8] sm:$0xff] }
 0x6f0   : > { %1937 = vmatpush.msra.mxu0 %v8153_v46  ;;  %v8215_v46 = vld [vmem:[%s15635_s5 + $0x8c8] sm:$0xff] }
 0x6f2   : > { %1938 = vmatpush.msra.mxu0 %v8135_v50  ;;  %v8197_v50 = vld [vmem:[%s15635_s5 + $0x838] sm:$0xff] }
 0x6f4   : > { %1939 = vmatpush.msra.mxu0 %v8117_v54  ;;  %v8179_v54 = vld [vmem:[%s15635_s5 + $0x7a8] sm:$0xff] }
 0x6f8   : > { %v1693_v56 = vpop.f32.mrf.mxu2 }
 0x6f9   : > { %v1694_v57 = vadd.f32 %v1693_v56, %v1674_v55  ;;  %v8122_v55 = vld [vmem:[%s15635_s5 + $0x5e0] sm:$0xff]  ;;  %v8123_v56 = vld [vmem:[%s15635_s5 + $0x5e8] sm:$0xff] }
 0x6fa   : > { %2039 = vmatpush.msra.mxu1 %v8122_v55  ;;  %2059 = vmatpush.msra.mxu2 %v8123_v56  ;;  %v8184_v55 = vld [vmem:[%s15635_s5 + $0x7d0] sm:$0xff]  ;;  %v8185_v56 = vld [vmem:[%s15635_s5 + $0x7d8] sm:$0xff] }
 0x6fb   : > { %v1696_v58 = vsel %vm617_vm4, %v1694_v57, 0.0 }
 0x6fc   : > { %1697 = vadd.xlane.f32.xlu2 %v1696_v58  ;;  %v8099_v58 = vld [vmem:[%s15635_s5 + $0x528] sm:$0xff]  ;;  %2040 = vmatpush.msra.mxu1 %v8104_v59  ;;  %v8166_v59 = vld [vmem:[%s15635_s5 + $0x740] sm:$0xff] }
 0x6fd   : > { %1940 = vmatpush.msra.mxu0 %v8099_v58  ;;  %2060 = vmatpush.msra.mxu2 %v8105_v60  ;;  %v8161_v58 = vld [vmem:[%s15635_s5 + $0x718] sm:$0xff]  ;;  %v8167_v60 = vld [vmem:[%s15635_s5 + $0x748] sm:$0xff] }
 0x6fe   : > { %2041 = vmatpush.msra.mxu1 %v8086_v63  ;;  %v8148_v63 = vld [vmem:[%s15635_s5 + $0x6b0] sm:$0xff] }
 0x6ff   : > { %1941 = vmatpush.msra.mxu0 %v8081_v62  ;;  %2061 = vmatpush.msra.mxu2 %v8087_v0  ;;  %v8143_v62 = vld [vmem:[%s15635_s5 + $0x688] sm:$0xff]  ;;  %v8149_v0 = vld [vmem:[%s15635_s5 + $0x6b8] sm:$0xff] }
 0x76f   : > { %v1698_v7 = vpop.xlane.xlu2 %1697 }
 0x770   : > { %v1699_v8 = vmul.f32 %v1698_v7, %v10865_v48 }
 0x772   : > { %v11011_v9 = vsub.f32 %v1694_v57, %v1699_v8  ;;  %v8098_v57 = vld [vmem:[%s15635_s5 + $0x520] sm:$0xff] }
 0x773   : > { %1920 = vmatpush.msrb.mxu3 %v8098_v57  ;;  %v8160_v57 = vld [vmem:[%s15635_s5 + $0x710] sm:$0xff] }
 0x774   : > { %v1701_v10 = vmul.f32 %v11011_v9, %v11011_v9 }
 0x775   : > { %1921 = vmatpush.msrb.mxu3 %v8080_v61  ;;  %v8142_v61 = vld [vmem:[%s15635_s5 + $0x680] sm:$0xff] }
 0x776   : > { %v1702_v11 = vsel %vm617_vm4, %v1701_v10, 0.0 }
 0x777   : > { %1703 = vadd.xlane.f32.xlu0 %v1702_v11 }
 0x7ea   : > { %v1704_v1 = vpop.xlane.xlu0 %1703 }
 0x7eb   : > { %v1705_v2 = vmul.f32 %v1704_v1, %v10865_v48  ;;  %v8124_v1 = vld [vmem:[%s15635_s5 + $0x5f0] sm:$0xff] }
 0x7ed   : > { %v1706_v3 = vadd.f32 1e-05, %v1705_v2  ;;  %v8125_v2 = vld [vmem:[%s15635_s5 + $0x5f8] sm:$0xff] }
 0x7ef   : > { %9658 = vrsqrt.f32 %v1706_v3  ;;  %vm1713_vm11 = vweird.f32 %v1706_v3 }
 0x7f5   : > { %v9659_v4 = vpop.eup %9658 }
 0x7f6   : > { %v1708_v5 = vmul.f32 %v9659_v4, %v1706_v3  ;;  %vm1714_vm10 = vweird.f32 %v9659_v4  ;;  %v8130_v3 = vld [vmem:[%s15635_s5 + $0x620] sm:$0xff] }
 0x7f7   : > { %vm1715_vm12 = vmor %vm1713_vm11, %vm1714_vm10 }
 0x7f8   : > { %v1709_v6 = vmul.f32 %v9659_v4, %v1708_v5  ;;  %v8106_v5 = vld [vmem:[%s15635_s5 + $0x560] sm:$0xff] }
 0x7fa   : > { %v1710_v7 = vmul.f32 0.5, %v1709_v6  ;;  %v8107_v6 = vld [vmem:[%s15635_s5 + $0x568] sm:$0xff] }
 0x7fc   : > { %v1711_v8 = vsub.f32 1.5, %v1710_v7  ;;  %v8112_v7 = vld [vmem:[%s15635_s5 + $0x590] sm:$0xff] }
 0x7fe   : > { %v1712_v10 = vmul.f32 %v9659_v4, %v1711_v8  ;;  %v8113_v8 = vld [vmem:[%s15635_s5 + $0x598] sm:$0xff] }
 0x800   : > { %v1716_v11 = vsel %vm1715_vm12, %v9659_v4, %v1712_v10  ;;  %v8131_v4 = vld [vmem:[%s15635_s5 + $0x628] sm:$0xff]  ;;  %v8088_v10 = vld [vmem:[%s15635_s5 + $0x4d0] sm:$0xff] }
 0x801   : > { %v11174_v12 = vmul.f32 %v1716_v11, %v11011_v9  ;;  %v8217_v9 = vld [vmem:[%s15635_s5 + $0x8d8] sm:$0xff] }
 0x802   : > { %v8089_v11 = vld [vmem:[%s15635_s5 + $0x4d8] sm:$0xff] }
 0x803   : > { %8222 = vmatmul.msk.f32.vlgmr.msra.gmra.mxu3 %vm617_vm4, %v11174_v12  ;;  %8223 = vmatmul.msk.f32.vlgmr.msrb.gmra.mxu0 %vm617_vm4, %v11174_v12 }
 0x804   : > { %8226 = vmatmul.msk.f32.vlgmr.msrb.gmra.mxu1 %vm617_vm4, %v11174_v12  ;;  %8227 = vmatmul.msk.f32.vlgmr.msrb.gmra.mxu2 %vm617_vm4, %v11174_v12 }
 0x805   : > { %1994 = vmatpush.msra.mxu3 %v8210_v13  ;;  %2014 = vmatpush.msrb.mxu0 %v8211_v14  ;;  %v8094_v13 = vld [vmem:[%s15635_s5 + $0x500] sm:$0xff]  ;;  %v8095_v14 = vld [vmem:[%s15635_s5 + $0x508] sm:$0xff] }
 0x806   : > { %2114 = vmatpush.msrb.mxu1 %v8216_v16  ;;  %2134 = vmatpush.msrb.mxu2 %v8217_v9  ;;  %v8218_v16 = vld [vmem:[%s15635_s5 + $0x8e0] sm:$0xff]  ;;  %v8219_v9 = vld [vmem:[%s15635_s5 + $0x8e8] sm:$0xff] }
 0x807   : > { %1995 = vmatpush.msra.mxu3 %v8192_v17  ;;  %2015 = vmatpush.msrb.mxu0 %v8193_v18  ;;  %v8200_v17 = vld [vmem:[%s15635_s5 + $0x850] sm:$0xff]  ;;  %v8201_v18 = vld [vmem:[%s15635_s5 + $0x858] sm:$0xff] }
 0x808   : > { %2115 = vmatpush.msrb.mxu1 %v8198_v19  ;;  %2135 = vmatpush.msrb.mxu2 %v8199_v20  ;;  %v8182_v19 = vld [vmem:[%s15635_s5 + $0x7c0] sm:$0xff]  ;;  %v8183_v20 = vld [vmem:[%s15635_s5 + $0x7c8] sm:$0xff] }
 0x809   : > { %1996 = vmatpush.msra.mxu3 %v8174_v21  ;;  %2016 = vmatpush.msrb.mxu0 %v8175_v22  ;;  %v8164_v21 = vld [vmem:[%s15635_s5 + $0x730] sm:$0xff]  ;;  %v8165_v22 = vld [vmem:[%s15635_s5 + $0x738] sm:$0xff] }
 0x80a   : > { %2116 = vmatpush.msrb.mxu1 %v8180_v23  ;;  %2136 = vmatpush.msrb.mxu2 %v8181_v24  ;;  %v8146_v23 = vld [vmem:[%s15635_s5 + $0x6a0] sm:$0xff]  ;;  %v8147_v24 = vld [vmem:[%s15635_s5 + $0x6a8] sm:$0xff] }
 0x80b   : > { %1997 = vmatpush.msra.mxu3 %v8156_v25  ;;  %2017 = vmatpush.msrb.mxu0 %v8157_v26  ;;  %v8128_v25 = vld [vmem:[%s15635_s5 + $0x610] sm:$0xff]  ;;  %v8129_v26 = vld [vmem:[%s15635_s5 + $0x618] sm:$0xff] }
 0x80c   : > { %2117 = vmatpush.msrb.mxu1 %v8162_v27  ;;  %2137 = vmatpush.msrb.mxu2 %v8163_v28  ;;  %v8110_v27 = vld [vmem:[%s15635_s5 + $0x580] sm:$0xff]  ;;  %v8111_v28 = vld [vmem:[%s15635_s5 + $0x588] sm:$0xff] }
 0x80d   : > { %8224 = vmatmul.msk.f32.vlgmr.msrb.gmra.mxu3 %vm617_vm4, %v11174_v12  ;;  %8225 = vmatmul.msk.f32.vlgmr.msra.gmra.mxu0 %vm617_vm4, %v11174_v12 }
 0x80e   : > { %1998 = vmatpush.msra.mxu3 %v8138_v29  ;;  %2018 = vmatpush.msrb.mxu0 %v8139_v30  ;;  %v8092_v29 = vld [vmem:[%s15635_s5 + $0x4f0] sm:$0xff]  ;;  %v8093_v30 = vld [vmem:[%s15635_s5 + $0x4f8] sm:$0xff] }
 0x80f   : > { %8230 = vmatmul.msk.f32.vlgmr.msra.gmra.mxu1 %vm617_vm4, %v11174_v12  ;;  %8231 = vmatmul.msk.f32.vlgmr.msra.gmra.mxu2 %vm617_vm4, %v11174_v12 }
 0x810   : > { %2118 = vmatpush.msrb.mxu1 %v8144_v31  ;;  %2138 = vmatpush.msrb.mxu2 %v8145_v32 }
 0x811   : > { %1999 = vmatpush.msra.mxu3 %v8120_v33  ;;  %2019 = vmatpush.msrb.mxu0 %v8121_v34 }
 0x812   : > { %2119 = vmatpush.msrb.mxu1 %v8126_v35  ;;  %2139 = vmatpush.msrb.mxu2 %v8127_v36 }
 0x813   : > { %2000 = vmatpush.msra.mxu3 %v8102_v37  ;;  %2020 = vmatpush.msrb.mxu0 %v8103_v38 }
 0x814   : > { %2120 = vmatpush.msrb.mxu1 %v8108_v39  ;;  %2140 = vmatpush.msrb.mxu2 %v8109_v40 }
 0x815   : > { %2001 = vmatpush.msra.mxu3 %v8084_v41  ;;  %2021 = vmatpush.msrb.mxu0 %v8085_v42 }
 0x816   : > { %2121 = vmatpush.msrb.mxu1 %v8090_v43  ;;  %2141 = vmatpush.msrb.mxu2 %v8091_v44 }
 0x817   : > { %2074 = vmatpush.msrb.mxu3 %v8214_v45  ;;  %2094 = vmatpush.msra.mxu0 %v8215_v46 }
 0x818   : > { %2194 = vmatpush.msra.mxu1 %v8220_v47  ;;  %2214 = vmatpush.msra.mxu2 %v8221_v15 }
 0x819   : > { %8228 = vmatmul.msk.f32.vlgmr.msra.gmra.mxu3 %vm617_vm4, %v11174_v12  ;;  %8229 = vmatmul.msk.f32.vlgmr.msrb.gmra.mxu0 %vm617_vm4, %v11174_v12 }
 0x81a   : > { %8234 = vmatmul.msk.f32.vlgmr.msrb.gmra.mxu1 %vm617_vm4, %v11174_v12  ;;  %8235 = vmatmul.msk.f32.vlgmr.msrb.gmra.mxu2 %vm617_vm4, %v11174_v12 }
 0x81b   : > { %2075 = vmatpush.msrb.mxu3 %v8196_v49  ;;  %2095 = vmatpush.msra.mxu0 %v8197_v50 }
 0x81c   : > { %2195 = vmatpush.msra.mxu1 %v8202_v51  ;;  %2215 = vmatpush.msra.mxu2 %v8203_v52 }
 0x81d   : > { %2076 = vmatpush.msrb.mxu3 %v8178_v53  ;;  %2096 = vmatpush.msra.mxu0 %v8179_v54 }
 0x81e   : > { %2196 = vmatpush.msra.mxu1 %v8184_v55  ;;  %2216 = vmatpush.msra.mxu2 %v8185_v56 }
 0x81f   : > { %2077 = vmatpush.msrb.mxu3 %v8160_v57  ;;  %2097 = vmatpush.msra.mxu0 %v8161_v58 }
 0x820   : > { %2197 = vmatpush.msra.mxu1 %v8166_v59  ;;  %2217 = vmatpush.msra.mxu2 %v8167_v60 }
 0x821   : > { %2078 = vmatpush.msrb.mxu3 %v8142_v61  ;;  %2098 = vmatpush.msra.mxu0 %v8143_v62 }
 0x822   : > { %2198 = vmatpush.msra.mxu1 %v8148_v63  ;;  %2218 = vmatpush.msra.mxu2 %v8149_v0 }
 0x823   : > { %2079 = vmatpush.msrb.mxu3 %v8124_v1  ;;  %2099 = vmatpush.msra.mxu0 %v8125_v2 }
 0x824   : > { %2199 = vmatpush.msra.mxu1 %v8130_v3  ;;  %2219 = vmatpush.msra.mxu2 %v8131_v4 }
 0x825   : > { %2080 = vmatpush.msrb.mxu3 %v8106_v5  ;;  %2100 = vmatpush.msra.mxu0 %v8107_v6 }
 0x826   : > { %2200 = vmatpush.msra.mxu1 %v8112_v7  ;;  %2220 = vmatpush.msra.mxu2 %v8113_v8 }
 0x827   : > { %2081 = vmatpush.msrb.mxu3 %v8088_v10  ;;  %2101 = vmatpush.msra.mxu0 %v8089_v11 }
 0x828   : > { %2201 = vmatpush.msra.mxu1 %v8094_v13  ;;  %2221 = vmatpush.msra.mxu2 %v8095_v14 }
 0x829   : > { %8232 = vmatmul.msk.f32.vlgmr.msrb.gmra.mxu3 %vm617_vm4, %v11174_v12  ;;  %8233 = vmatmul.msk.f32.vlgmr.msra.gmra.mxu0 %vm617_vm4, %v11174_v12 }
 0x82a   : > { %2154 = vmatpush.msra.mxu3 %v8218_v16  ;;  %2174 = vmatpush.msrb.mxu0 %v8219_v9 }
 0x82b   : > { %8238 = vmatmul.msk.f32.vlgmr.msra.gmra.mxu1 %vm617_vm4, %v11174_v12  ;;  %8239 = vmatmul.msk.f32.vlgmr.msra.gmra.mxu2 %vm617_vm4, %v11174_v12 }
 0x82c   : > { %2155 = vmatpush.msra.mxu3 %v8200_v17  ;;  %2175 = vmatpush.msrb.mxu0 %v8201_v18 }
 0x82e   : > { %2156 = vmatpush.msra.mxu3 %v8182_v19  ;;  %2176 = vmatpush.msrb.mxu0 %v8183_v20 }
 0x830   : > { %2157 = vmatpush.msra.mxu3 %v8164_v21  ;;  %2177 = vmatpush.msrb.mxu0 %v8165_v22 }
 0x832   : > { %2158 = vmatpush.msra.mxu3 %v8146_v23  ;;  %2178 = vmatpush.msrb.mxu0 %v8147_v24 }
 0x834   : > { %2159 = vmatpush.msra.mxu3 %v8128_v25  ;;  %2179 = vmatpush.msrb.mxu0 %v8129_v26 }
 0x836   : > { %2160 = vmatpush.msra.mxu3 %v8110_v27  ;;  %2180 = vmatpush.msrb.mxu0 %v8111_v28 }
 0x838   : > { %2161 = vmatpush.msra.mxu3 %v8092_v29  ;;  %2181 = vmatpush.msrb.mxu0 %v8093_v30 }
 0x839   : > { %8236 = vmatmul.msk.f32.vlgmr.msra.gmra.mxu3 %vm617_vm4, %v11174_v12  ;;  %8237 = vmatmul.msk.f32.vlgmr.msrb.gmra.mxu0 %vm617_vm4, %v11174_v12 }
 0x880   : > { %v1903_v31 = vpop.f32.mrf.mxu0 }
 0x881   : > { %v1963_v32 = vpop.f32.mrf.mxu1 }
 0x886   : > { %v1883_v33 = vpop.f32.mrf.mxu3 }
 0x887   : > { %v1983_v34 = vpop.f32.mrf.mxu2 }
 0x88a   : > { %v1943_v35 = vpop.f32.mrf.mxu0 }
 0x88c   : > { %v2043_v36 = vpop.f32.mrf.mxu1 }
 0x890   : > { %v1923_v37 = vpop.f32.mrf.mxu3 }
 0x892   : > { %v2063_v38 = vpop.f32.mrf.mxu2 }
 0x896   : > { %v2023_v39 = vpop.f32.mrf.mxu0 }
 0x897   : > { %v2123_v40 = vpop.f32.mrf.mxu1  ;;  %2297 = vmatpush.xpose.msrb.mxu1 %v2023_v39  ;;  %v8259_v39 = vld [vmem:[%s15636_s6 + $0x368] sm:$0xff] }
 0x898   : > { %2277 = vmatpush.msra.mxu0 %v2123_v40 }
 0x89a   : > { %2298 = vmatmul.f32.vlgmr.msrb.gmra.mxu1 %v1903_v31 }
 0x89b   : > { %2409 = vmatpush.xpose.msra.mxu1 %v2063_v38 }
 0x89c   : > { %v2003_v41 = vpop.f32.mrf.mxu3 }
 0x89d   : > { %v2143_v42 = vpop.f32.mrf.mxu2  ;;  %2241 = vmatpush.xpose.msrb.mxu3 %v2003_v41  ;;  %v8258_v41 = vld [vmem:[%s15636_s6 + $0x360] sm:$0xff] }
 0x89e   : > { %2333 = vmatpush.msrb.mxu2 %v2143_v42 }
 0x8a0   : > { %2242 = vmatmul.f32.vlgmr.msrb.gmra.mxu3 %v1883_v33 }
 0x8a1   : > { %2353 = vmatpush.xpose.msra.mxu3 %v2043_v36  ;;  %v8261_v36 = vld [vmem:[%s15636_s6 + $0x378] sm:$0xff] }
 0x8a2   : > { %2410 = vmatmul.f32.vlgmr.msra.gmra.mxu1 %v1943_v35 }
 0x8a6   : > { %v2103_v43 = vpop.f32.mrf.mxu0 }
 0x8a7   : > { %2521 = vmatpush.xpose.msrb.mxu1 %v2103_v43  ;;  %v8257_v43 = vld [vmem:[%s15636_s6 + $0x358] sm:$0xff] }
 0x8a8   : > { %2354 = vmatmul.f32.vlgmr.msra.gmra.mxu3 %v1923_v37  ;;  %v11452_v47 = vpop.f32.mrf.mxu1  ;;  %v8260_v37 = vld [vmem:[%s15636_s6 + $0x370] sm:$0xff] }
 0x8aa   : > { %2522 = vmatmul.f32.vlgmr.msrb.gmra.mxu1 %v1983_v34 }
 0x8ac   : > { %v2083_v44 = vpop.f32.mrf.mxu3 }
 0x8ad   : > { %2465 = vmatpush.xpose.msrb.mxu3 %v2083_v44  ;;  %v8256_v44 = vld [vmem:[%s15636_s6 + $0x350] sm:$0xff] }
 0x8ae   : > { %v2223_v40 = vpop.f32.mrf.mxu2 }
 0x8b0   : > { %2466 = vmatmul.f32.vlgmr.msrb.gmra.mxu3 %v1963_v32 }
 0x8b1   : > { %2659 = vmatpush.msra.mxu3 %v8261_v36  ;;  %v8265_v36 = vld [vmem:[%s15636_s6 + $0x398] sm:$0xff] }
 0x8b3   : > { %2660 = vmatpush.msra.mxu3 %v8260_v37  ;;  %v8264_v37 = vld [vmem:[%s15636_s6 + $0x390] sm:$0xff] }
 0x8b5   : > { %2661 = vmatpush.msra.mxu3 %v8259_v39  ;;  %v8262_v39 = vld [vmem:[%s15636_s6 + $0x380] sm:$0xff] }
 0x8b6   : > { %v2183_v45 = vpop.f32.mrf.mxu0 }
 0x8b7   : > { %2445 = vmatpush.msra.mxu2 %v2183_v45  ;;  %2662 = vmatpush.msra.mxu3 %v8258_v41  ;;  %v8293_v45 = vld [vmem:[%s15636_s6 + $0x478] sm:$0xff] }
 0x8b8   : > { %2699 = vmatpush.msra.mxu1 %v8293_v45  ;;  %v8285_v41 = vld [vmem:[%s15636_s6 + $0x438] sm:$0xff]  ;;  %v8284_v45 = vld [vmem:[%s15636_s6 + $0x430] sm:$0xff] }
 0x8b9   : > { %2663 = vmatpush.msra.mxu3 %v8257_v43  ;;  %v8321_v43 = vld [vmem:[%s15636_s6 + $0x558] sm:$0xff] }
 0x8bb   : > { %2664 = vmatpush.msra.mxu3 %v8256_v44  ;;  %v8340_v44 = vld [vmem:[%s15636_s6 + $0x5f0] sm:$0xff] }
 0x8bc   : > { %v2163_v46 = vpop.f32.mrf.mxu3 }
 0x8bd   : > { %2389 = vmatpush.msrb.mxu0 %v2163_v46  ;;  %v8255_v46 = vld [vmem:[%s15636_s6 + $0x348] sm:$0xff] }
 0x8be   : > { %2665 = vmatpush.msra.mxu3 %v8255_v46  ;;  %v8303_v46 = vld [vmem:[%s15636_s6 + $0x4c8] sm:$0xff] }
 0x917   : > { %v2299_v15 = vpop.f32.mrf.mxu1 }
 0x918   : > { %v2302_v49 = vmul.f32 0.088388346, %v2299_v15  ;;  %v8292_v15 = vld [vmem:[%s15636_s6 + $0x470] sm:$0xff] }
 0x919   : > { %2700 = vmatpush.msra.mxu1 %v8292_v15  ;;  %v8320_v15 = vld [vmem:[%s15636_s6 + $0x550] sm:$0xff] }
 0x91a   : > { %v2303_v50 = vsel %vm1002_vm5, %v2302_v49, -inf }
 0x91b   : > { %2304 = vmax.xlane.f32.xlu2 %v2303_v50  ;;  %v8254_v50 = vld [vmem:[%s15636_s6 + $0x340] sm:$0xff] }
 0x91c   : > { %2666 = vmatpush.msra.mxu3 %v8254_v50  ;;  %v8283_v50 = vld [vmem:[%s15636_s6 + $0x428] sm:$0xff] }
 0x91f   : > { %v2411_v53 = vpop.f32.mrf.mxu1 }
 0x920   : > { %v2414_v55 = vmul.f32 0.088388346, %v2411_v53 }
 0x922   : > { %v2415_v59 = vsel %vm1002_vm5, %v2414_v55, -inf }
 0x923   : > { %v2243_v51 = vpop.f32.mrf.mxu3 }
 0x924   : > { %v2246_v52 = vmul.f32 0.088388346, %v2243_v51  ;;  %v8291_v51 = vld [vmem:[%s15636_s6 + $0x468] sm:$0xff] }
 0x925   : > { %2701 = vmatpush.msra.mxu1 %v8291_v51  ;;  %v8302_v51 = vld [vmem:[%s15636_s6 + $0x4c0] sm:$0xff] }
 0x926   : > { %v2247_v54 = vsel %vm1002_vm5, %v2246_v52, -inf }
 0x927   : > { %2248 = vmax.xlane.f32.xlu1 %v2247_v54  ;;  %v2523_v60 = vpop.f32.mrf.mxu1 }
 0x928   : > { %v2526_v61 = vmul.f32 0.088388346, %v2523_v60  ;;  %v8288_v60 = vld [vmem:[%s15636_s6 + $0x450] sm:$0xff] }
 0x92a   : > { %v2527_v1 = vsel %vm1002_vm5, %v2526_v61, -inf }
 0x92b   : > { %v2355_v56 = vpop.f32.mrf.mxu3 }
 0x92c   : > { %v2358_v57 = vmul.f32 0.088388346, %v2355_v56  ;;  %v8290_v56 = vld [vmem:[%s15636_s6 + $0x460] sm:$0xff] }
 0x92d   : > { %2702 = vmatpush.msra.mxu1 %v8290_v56  ;;  %v8318_v56 = vld [vmem:[%s15636_s6 + $0x540] sm:$0xff] }
 0x92e   : > { %v2359_v58 = vsel %vm1002_vm5, %v2358_v57, -inf }
 0x92f   : > { %2360 = vmax.xlane.f32.xlu0 %v2359_v58  ;;  %2416 = vmax.xlane.f32.xlu1 %v2415_v59  ;;  %v8289_v58 = vld [vmem:[%s15636_s6 + $0x458] sm:$0xff]  ;;  %v8251_v59 = vld [vmem:[%s15636_s6 + $0x328] sm:$0xff] }
 0x930   : > { %2703 = vmatpush.msra.mxu1 %v8289_v58  ;;  %v8281_v58 = vld [vmem:[%s15636_s6 + $0x418] sm:$0xff] }
 0x932   : > { %2704 = vmatpush.msra.mxu1 %v8288_v60  ;;  %v8317_v60 = vld [vmem:[%s15636_s6 + $0x538] sm:$0xff] }
 0x933   : > { %v2467_v62 = vpop.f32.mrf.mxu3 }
 0x934   : > { %v2470_v63 = vmul.f32 0.088388346, %v2467_v62  ;;  %v8287_v62 = vld [vmem:[%s15636_s6 + $0x448] sm:$0xff] }
 0x935   : > { %2705 = vmatpush.msra.mxu1 %v8287_v62  ;;  %v8299_v62 = vld [vmem:[%s15636_s6 + $0x4a8] sm:$0xff] }
 0x936   : > { %v2471_v0 = vsel %vm1002_vm5, %v2470_v63, -inf }
 0x937   : > { %2472 = vmax.xlane.f32.xlu2 %v2471_v0  ;;  %2528 = vmax.xlane.f32.xlu0 %v2527_v1 }
 0x98e   : > { %v2305_v2 = vpop.xlane.xlu2 %2304 }
 0x98f   : > { %v2306_v3 = vsub.f32 %v2302_v49, %v2305_v2  ;;  %v8277_v2 = vld [vmem:[%s15636_s6 + $0x3f8] sm:$0xff] }
 0x991   : > { %v2307_v4 = vmul.f32 1.442695, %v2306_v3 }
 0x993   : > { %9660 = vpow2.f32 %v2307_v4 }
 0x999   : > { %v9661_v5 = vpop.eup %9660 }
 0x99a   : > { %v2249_v6 = vpop.xlane.xlu1 %2248  ;;  %v2309_v7 = vsel %vm1002_vm5, %v9661_v5, 0.0 }
 0x99b   : > { %v2250_v8 = vsub.f32 %v2246_v52, %v2249_v6  ;;  %2310 = vadd.xlane.f32.xlu2 %v2309_v7  ;;  %v8309_v6 = vld [vmem:[%s15636_s6 + $0x4f8] sm:$0xff]  ;;  %v8276_v7 = vld [vmem:[%s15636_s6 + $0x3f0] sm:$0xff] }
 0x99d   : > { %v2251_v10 = vmul.f32 1.442695, %v2250_v8  ;;  %v8286_v8 = vld [vmem:[%s15636_s6 + $0x440] sm:$0xff] }
 0x99e   : > { %2706 = vmatpush.msra.mxu1 %v8286_v8  ;;  %v8333_v8 = vld [vmem:[%s15636_s6 + $0x5b8] sm:$0xff] }
 0x99f   : > { %9662 = vpow2.f32 %v2251_v10  ;;  %v8248_v10 = vld [vmem:[%s15636_s6 + $0x310] sm:$0xff] }
 0x9a0   : > { %2707 = vmatpush.msra.mxu1 %v8285_v41 }
 0x9a2   : > { %v2361_v11 = vpop.xlane.xlu0 %2360  ;;  %v2417_v13 = vpop.xlane.xlu1 %2416  ;;  %2708 = vmatpush.msra.mxu1 %v8284_v45 }
 0x9a3   : > { %v2362_v14 = vsub.f32 %v2358_v57, %v2361_v11  ;;  %v2418_v16 = vsub.f32 %v2414_v55, %v2417_v13  ;;  %v8253_v55 = vld [vmem:[%s15636_s6 + $0x338] sm:$0xff]  ;;  %v8252_v57 = vld [vmem:[%s15636_s6 + $0x330] sm:$0xff]  ;;  %v8275_v13 = vld [vmem:[%s15636_s6 + $0x3e8] sm:$0xff] }
 0x9a4   : > { %2667 = vmatpush.msra.mxu3 %v8253_v55  ;;  %v8308_v11 = vld [vmem:[%s15636_s6 + $0x4f0] sm:$0xff]  ;;  %2709 = vmatpush.msra.mxu1 %v8283_v50  ;;  %v8301_v55 = vld [vmem:[%s15636_s6 + $0x4b8] sm:$0xff] }
 0x9a5   : > { %v9663_v9 = vpop.eup %9662  ;;  %v2363_v17 = vmul.f32 1.442695, %v2362_v14  ;;  %v2419_v18 = vmul.f32 1.442695, %v2418_v16  ;;  %v8247_v14 = vld [vmem:[%s15636_s6 + $0x308] sm:$0xff]  ;;  %v2817_v50 = vld [vmem:[#allocation2 + $0xf8] sm:$0xff] }
 0x9a6   : > { %v2253_v19 = vsel %vm1002_vm5, %v9663_v9, 0.0  ;;  %2668 = vmatpush.msra.mxu3 %v8252_v57  ;;  %v8307_v16 = vld [vmem:[%s15636_s6 + $0x4e8] sm:$0xff]  ;;  %v8337_v57 = vld [vmem:[%s15636_s6 + $0x5d8] sm:$0xff] }
 0x9a7   : > { %9664 = vpow2.f32 %v2363_v17  ;;  %2254 = vadd.xlane.f32.xlu1 %v2253_v19 }
 0x9a8   : > { %9666 = vpow2.f32 %v2419_v18  ;;  %2669 = vmatpush.msra.mxu3 %v8251_v59  ;;  %v8246_v18 = vld [vmem:[%s15636_s6 + $0x300] sm:$0xff]  ;;  %v8300_v59 = vld [vmem:[%s15636_s6 + $0x4b0] sm:$0xff] }
 0x9aa   : > { %v2473_v20 = vpop.xlane.xlu2 %2472  ;;  %v2529_v21 = vpop.xlane.xlu0 %2528 }
 0x9ab   : > { %v2474_v22 = vsub.f32 %v2470_v63, %v2473_v20  ;;  %v2530_v23 = vsub.f32 %v2526_v61, %v2529_v21  ;;  %v8250_v61 = vld [vmem:[%s15636_s6 + $0x320] sm:$0xff]  ;;  %v8273_v21 = vld [vmem:[%s15636_s6 + $0x3d8] sm:$0xff] }
 0x9ac   : > { %2670 = vmatpush.msra.mxu3 %v8250_v61  ;;  %v8280_v61 = vld [vmem:[%s15636_s6 + $0x410] sm:$0xff] }
 0x9ad   : > { %v11462_v24 = vpop.eup %9664  ;;  %v2475_v25 = vmul.f32 1.442695, %v2474_v22  ;;  %v2531_v26 = vmul.f32 1.442695, %v2530_v23  ;;  %v8325_v23 = vld [vmem:[%s15636_s6 + $0x578] sm:$0xff] }
 0x9ae   : > { %v11464_v27 = vpop.eup %9666  ;;  %v2365_v28 = vsel %vm1002_vm5, %v11462_v24, 0.0 }
 0x9af   : > { %9668 = vpow2.f32 %v2475_v25  ;;  %2366 = vadd.xlane.f32.xlu0 %v2365_v28  ;;  %v2421_v29 = vsel %vm1002_vm5, %v11464_v27, 0.0  ;;  %v8272_v25 = vld [vmem:[%s15636_s6 + $0x3d0] sm:$0xff]  ;;  %v8271_v28 = vld [vmem:[%s15636_s6 + $0x3c8] sm:$0xff] }
 0x9b0   : > { %9670 = vpow2.f32 %v2531_v26  ;;  %2422 = vadd.xlane.f32.xlu1 %v2421_v29  ;;  %v8324_v26 = vld [vmem:[%s15636_s6 + $0x570] sm:$0xff]  ;;  %v8323_v29 = vld [vmem:[%s15636_s6 + $0x568] sm:$0xff] }
 0x9b5   : > { %v11470_v30 = vpop.eup %9668 }
 0x9b6   : > { %v11472_v31 = vpop.eup %9670  ;;  %v2477_v32 = vsel %vm1002_vm5, %v11470_v30, 0.0 }
 0x9b7   : > { %2478 = vadd.xlane.f32.xlu2 %v2477_v32  ;;  %v2533_v33 = vsel %vm1002_vm5, %v11472_v31, 0.0  ;;  %v8269_v32 = vld [vmem:[%s15636_s6 + $0x3b8] sm:$0xff] }
 0x9b8   : > { %2534 = vadd.xlane.f32.xlu0 %v2533_v33  ;;  %v8268_v33 = vld [vmem:[%s15636_s6 + $0x3b0] sm:$0xff] }
 0xa0e   : > { %v2311_v34 = vpop.xlane.xlu2 %2310 }
 0xa0f   : > { %9672 = vrcp.f32 %v2311_v34  ;;  %v8267_v34 = vld [vmem:[%s15636_s6 + $0x3a8] sm:$0xff] }
 0xa15   : > { %v9673_v35 = vpop.eup %9672 }
 0xa16   : > { %v2313_v38 = vmul.f32 %v9673_v35, %v9661_v5  ;;  %v8249_v5 = vld [vmem:[%s15636_s6 + $0x318] sm:$0xff]  ;;  %v8266_v35 = vld [vmem:[%s15636_s6 + $0x3a0] sm:$0xff] }
 0xa17   : > { %2671 = vmatpush.msra.mxu3 %v8249_v5  ;;  %v8278_v5 = vld [vmem:[%s15636_s6 + $0x400] sm:$0xff] }
 0xa18   : > { %2314 = vst.msk [vmem:[%s10550_s27 + $0x38] sm:$0xff] %vm1002_vm5, %v2313_v38  ;;  %8241 = vmatmul.msk.f32.vlgmr.msrb.gmra.mxu2 %vm1002_vm5, %v2313_v38  ;;  %v8263_v38 = vld [vmem:[%s15636_s6 + $0x388] sm:$0xff] }
 0xa19   : > { %2557 = vmatpush.msrb.mxu2 %v2223_v40  ;;  %2672 = vmatpush.msra.mxu3 %v8248_v10  ;;  %v8341_v40 = vld [vmem:[%s15636_s6 + $0x5f8] sm:$0xff]  ;;  %v8296_v10 = vld [vmem:[%s15636_s6 + $0x490] sm:$0xff] }
 0xa1a   : > { %v2255_v42 = vpop.xlane.xlu1 %2254 }
 0xa1b   : > { %9674 = vrcp.f32 %v2255_v42  ;;  %2673 = vmatpush.msra.mxu3 %v8247_v14  ;;  %v8304_v42 = vld [vmem:[%s15636_s6 + $0x4d0] sm:$0xff]  ;;  %v8295_v14 = vld [vmem:[%s15636_s6 + $0x488] sm:$0xff] }
 0xa1d   : > { %2674 = vmatpush.msra.mxu3 %v8246_v18  ;;  %v8311_v18 = vld [vmem:[%s15636_s6 + $0x508] sm:$0xff] }
 0xa1f   : > { %2739 = vmatpush.msrb.mxu3 %v8325_v23  ;;  %v8327_v23 = vld [vmem:[%s15636_s6 + $0x588] sm:$0xff] }
 0xa21   : > { %v9675_v49 = vpop.eup %9674  ;;  %2740 = vmatpush.msrb.mxu3 %v8324_v26 }
 0xa22   : > { %v2257_v52 = vmul.f32 %v9675_v49, %v9663_v9  ;;  %v2367_v53 = vpop.xlane.xlu0 %2366  ;;  %v8274_v9 = vld [vmem:[%s15636_s6 + $0x3e0] sm:$0xff]  ;;  %v8339_v49 = vld [vmem:[%s15636_s6 + $0x5e8] sm:$0xff] }
 0xa23   : > { %9676 = vrcp.f32 %v2367_v53  ;;  %v2423_v54 = vpop.xlane.xlu1 %2422  ;;  %2741 = vmatpush.msrb.mxu3 %v8323_v29  ;;  %v8338_v53 = vld [vmem:[%s15636_s6 + $0x5e0] sm:$0xff] }
 0xa24   : > { %2258 = vst.msk [vmem:[%s10550_s27 + $0x30] sm:$0xff] %vm1002_vm5, %v2257_v52  ;;  %9678 = vrcp.f32 %v2423_v54  ;;  %8240 = vmatmul.msk.f32.vlgmr.msra.gmra.mxu0 %vm1002_vm5, %v2257_v52  ;;  %v8319_v52 = vld [vmem:[%s15636_s6 + $0x548] sm:$0xff]  ;;  %v8282_v54 = vld [vmem:[%s15636_s6 + $0x420] sm:$0xff] }
 0xa25   : > { %2501 = vmatpush.msra.mxu0 %v11452_v47  ;;  %2710 = vmatpush.msra.mxu1 %v8282_v54  ;;  %v2813_v54 = vld [vmem:[#allocation2 + $0xd8] sm:$0xff] }
 0xa27   : > { %2711 = vmatpush.msra.mxu1 %v8281_v58  ;;  %v2809_v58 = vld [vmem:[#allocation2 + $0xb8] sm:$0xff] }
 0xa29   : > { %v9677_v47 = vpop.eup %9676  ;;  %2712 = vmatpush.msra.mxu1 %v8280_v61  ;;  %v2805_v61 = vld [vmem:[#allocation2 + $0x98] sm:$0xff] }
 0xa2a   : > { %v9679_v63 = vpop.eup %9678  ;;  %v2369_v0 = vmul.f32 %v9677_v47, %v11462_v24  ;;  %v2479_v1 = vpop.xlane.xlu2 %2478  ;;  %v8306_v24 = vld [vmem:[%s15636_s6 + $0x4e0] sm:$0xff]  ;;  %v8336_v47 = vld [vmem:[%s15636_s6 + $0x5d0] sm:$0xff] }
 0xa2b   : > { %v2425_v3 = vmul.f32 %v9679_v63, %v11464_v27  ;;  %9680 = vrcp.f32 %v2479_v1  ;;  %v2535_v4 = vpop.xlane.xlu0 %2534  ;;  %v8305_v27 = vld [vmem:[%s15636_s6 + $0x4d8] sm:$0xff]  ;;  %v8316_v63 = vld [vmem:[%s15636_s6 + $0x530] sm:$0xff]  ;;  %v8279_v1 = vld [vmem:[%s15636_s6 + $0x408] sm:$0xff] }
 0xa2c   : > { %2370 = vst.msk [vmem:[%s10550_s27 + $0x40] sm:$0xff] %vm1002_vm5, %v2369_v0  ;;  %9682 = vrcp.f32 %v2535_v4  ;;  %8242 = vmatmul.msk.f32.vlgmr.msrb.gmra.mxu0 %vm1002_vm5, %v2369_v0  ;;  %v8335_v0 = vld [vmem:[%s15636_s6 + $0x5c8] sm:$0xff]  ;;  %v8334_v4 = vld [vmem:[%s15636_s6 + $0x5c0] sm:$0xff]  ;;  %2713 = vmatpush.msra.mxu1 %v8279_v1  ;;  %v8375_v1 = vld [vmem:[%s15638_s8 + $0x1f8] sm:$0xff] }
 0xa2d   : > { %2426 = vst.msk [vmem:[%s10550_s27 + $0x48] sm:$0xff] %vm1002_vm5, %v2425_v3  ;;  %8243 = vmatmul.msk.f32.vlgmr.msra.gmra.mxu2 %vm1002_vm5, %v2425_v3  ;;  %2679 = vmatpush.msrb.mxu0 %v8277_v2  ;;  %v8298_v2 = vld [vmem:[%s15636_s6 + $0x4a0] sm:$0xff]  ;;  %v8315_v3 = vld [vmem:[%s15636_s6 + $0x528] sm:$0xff] }
 0xa2e   : > { %2719 = vmatpush.msra.mxu2 %v8309_v6  ;;  %v8297_v6 = vld [vmem:[%s15636_s6 + $0x498] sm:$0xff]  ;;  %2714 = vmatpush.msra.mxu1 %v8278_v5  ;;  %v8373_v5 = vld [vmem:[%s15638_s8 + $0x1e8] sm:$0xff] }
 0xa2f   : > { %2680 = vmatpush.msrb.mxu0 %v8276_v7  ;;  %v8314_v7 = vld [vmem:[%s15636_s6 + $0x520] sm:$0xff] }
 0xa30   : > { %2720 = vmatpush.msra.mxu2 %v8308_v11  ;;  %v8313_v11 = vld [vmem:[%s15636_s6 + $0x518] sm:$0xff] }
 0xa31   : > { %v9681_v17 = vpop.eup %9680  ;;  %2681 = vmatpush.msrb.mxu0 %v8275_v13  ;;  %v8332_v13 = vld [vmem:[%s15636_s6 + $0x5b0] sm:$0xff] }
 0xa32   : > { %v9683_v19 = vpop.eup %9682  ;;  %v2481_v20 = vmul.f32 %v9681_v17, %v11470_v30  ;;  %2721 = vmatpush.msra.mxu2 %v8307_v16  ;;  %v8270_v30 = vld [vmem:[%s15636_s6 + $0x3c0] sm:$0xff]  ;;  %v8312_v16 = vld [vmem:[%s15636_s6 + $0x510] sm:$0xff] }
 0xa33   : > { %v2537_v22 = vmul.f32 %v9683_v19, %v11472_v31  ;;  %2682 = vmatpush.msrb.mxu0 %v8274_v9  ;;  %v8322_v31 = vld [vmem:[%s15636_s6 + $0x560] sm:$0xff]  ;;  %v8331_v9 = vld [vmem:[%s15636_s6 + $0x5a8] sm:$0xff] }
 0xa34   : > { %2482 = vst.msk [vmem:[%s10550_s27 + $0x50] sm:$0xff] %vm1002_vm5, %v2481_v20  ;;  %8244 = vmatmul.msk.f32.vlgmr.msra.gmra.mxu0 %vm1002_vm5, %v2481_v20  ;;  %2722 = vmatpush.msra.mxu2 %v8306_v24  ;;  %v8294_v17 = vld [vmem:[%s15636_s6 + $0x480] sm:$0xff] }
 0xa35   : > { %2538 = vst.msk [vmem:[%s10550_s27 + $0x58] sm:$0xff] %vm1002_vm5, %v2537_v22  ;;  %8245 = vmatmul.msk.f32.vlgmr.msrb.gmra.mxu2 %vm1002_vm5, %v2537_v22  ;;  %2683 = vmatpush.msrb.mxu0 %v8273_v21  ;;  %v8330_v19 = vld [vmem:[%s15636_s6 + $0x5a0] sm:$0xff]  ;;  %v8329_v21 = vld [vmem:[%s15636_s6 + $0x598] sm:$0xff]  ;;  %v8328_v22 = vld [vmem:[%s15636_s6 + $0x590] sm:$0xff] }
 0xa36   : > { %2723 = vmatpush.msra.mxu2 %v8305_v27  ;;  %2742 = vmatpush.msrb.mxu3 %v8322_v31  ;;  %v8310_v20 = vld [vmem:[%s15636_s6 + $0x500] sm:$0xff] }
 0xa37   : > { %2684 = vmatpush.msrb.mxu0 %v8272_v25  ;;  %v8326_v24 = vld [vmem:[%s15636_s6 + $0x580] sm:$0xff] }
 0xa38   : > { %2724 = vmatpush.msra.mxu2 %v8304_v42  ;;  %2743 = vmatpush.msrb.mxu3 %v8321_v43 }
 0xa39   : > { %2685 = vmatpush.msrb.mxu0 %v8271_v28 }
 0xa3a   : > { %2725 = vmatpush.msra.mxu2 %v8303_v46  ;;  %2744 = vmatpush.msrb.mxu3 %v8320_v15 }
 0xa3b   : > { %2686 = vmatpush.msrb.mxu0 %v8270_v30 }
 0xa3c   : > { %2726 = vmatpush.msra.mxu2 %v8302_v51  ;;  %2745 = vmatpush.msrb.mxu3 %v8319_v52  ;;  %v2814_v51 = vld [vmem:[#allocation2 + $0xe0] sm:$0xff]  ;;  %v2815_v52 = vld [vmem:[#allocation2 + $0xe8] sm:$0xff] }
 0xa3d   : > { %2687 = vmatpush.msrb.mxu0 %v8269_v32 }
 0xa3e   : > { %2727 = vmatpush.msra.mxu2 %v8301_v55  ;;  %2746 = vmatpush.msrb.mxu3 %v8318_v56  ;;  %v2810_v55 = vld [vmem:[#allocation2 + $0xc0] sm:$0xff]  ;;  %v2811_v56 = vld [vmem:[#allocation2 + $0xc8] sm:$0xff] }
 0xa3f   : > { %2688 = vmatpush.msrb.mxu0 %v8268_v33 }
 0xa40   : > { %2728 = vmatpush.msra.mxu2 %v8300_v59  ;;  %2747 = vmatpush.msrb.mxu3 %v8317_v60  ;;  %v2806_v59 = vld [vmem:[#allocation2 + $0xa0] sm:$0xff]  ;;  %v2807_v60 = vld [vmem:[#allocation2 + $0xa8] sm:$0xff] }
 0xa41   : > { %2689 = vmatpush.msrb.mxu0 %v8267_v34 }
 0xa42   : > { %2729 = vmatpush.msra.mxu2 %v8299_v62  ;;  %2748 = vmatpush.msrb.mxu3 %v8316_v63  ;;  %v2802_v62 = vld [vmem:[#allocation2 + $0x80] sm:$0xff]  ;;  %v2803_v63 = vld [vmem:[#allocation2 + $0x88] sm:$0xff] }
 0xa43   : > { %2690 = vmatpush.msrb.mxu0 %v8266_v35 }
 0xa44   : > { %2730 = vmatpush.msra.mxu2 %v8298_v2  ;;  %2749 = vmatpush.msrb.mxu3 %v8315_v3  ;;  %v8358_v2 = vld [vmem:[%s15638_s8 + $0x170] sm:$0xff] }
 0xa45   : > { %2691 = vmatpush.msrb.mxu0 %v8265_v36  ;;  %v8374_v3 = vld [vmem:[%s15638_s8 + $0x1f0] sm:$0xff] }
 0xa46   : > { %2731 = vmatpush.msra.mxu2 %v8297_v6  ;;  %2750 = vmatpush.msrb.mxu3 %v8314_v7  ;;  %v8356_v6 = vld [vmem:[%s15638_s8 + $0x160] sm:$0xff] }
 0xa47   : > { %2692 = vmatpush.msrb.mxu0 %v8264_v37  ;;  %v8372_v7 = vld [vmem:[%s15638_s8 + $0x1e0] sm:$0xff] }
 0xa48   : > { %2732 = vmatpush.msra.mxu2 %v8296_v10  ;;  %2751 = vmatpush.msrb.mxu3 %v8313_v11  ;;  %v8355_v11 = vld [vmem:[%s15638_s8 + $0x158] sm:$0xff] }
 0xa49   : > { %2693 = vmatpush.msrb.mxu0 %v8263_v38 }
 0xa4a   : > { %2733 = vmatpush.msra.mxu2 %v8295_v14  ;;  %2752 = vmatpush.msrb.mxu3 %v8312_v16  ;;  %v8354_v16 = vld [vmem:[%s15638_s8 + $0x150] sm:$0xff] }
 0xa4b   : > { %2694 = vmatpush.msrb.mxu0 %v8262_v39 }
 0xa4c   : > { %2734 = vmatpush.msra.mxu2 %v8294_v17  ;;  %2753 = vmatpush.msrb.mxu3 %v8311_v18  ;;  %v8353_v17 = vld [vmem:[%s15638_s8 + $0x148] sm:$0xff] }
 0xa4d   : > { %2759 = vmatpush.msra.mxu0 %v8341_v40  ;;  %v8369_v18 = vld [vmem:[%s15638_s8 + $0x1c8] sm:$0xff] }
 0xa4e   : > { %2754 = vmatpush.msrb.mxu3 %v8310_v20  ;;  %2849 = vmatpush.msrb.mxu2 %v2817_v50  ;;  %v8368_v20 = vld [vmem:[%s15638_s8 + $0x1c0] sm:$0xff] }
 0xa4f   : > { %2760 = vmatpush.msra.mxu0 %v8340_v44 }
 0xa50   : > { %2850 = vmatpush.msrb.mxu2 %v2815_v52 }
 0xa51   : > { %2761 = vmatpush.msra.mxu0 %v8339_v49  ;;  %v2816_v49 = vld [vmem:[#allocation2 + $0xf0] sm:$0xff] }
 0xa52   : > { %2829 = vmatpush.msrb.mxu1 %v2816_v49  ;;  %2851 = vmatpush.msrb.mxu2 %v2813_v54  ;;  %v8502_v54 = vld [vmem:[%s15635_s5 + $0xcf0] sm:$0xff] }
 0xa53   : > { %2762 = vmatpush.msra.mxu0 %v8338_v53  ;;  %v2812_v53 = vld [vmem:[#allocation2 + $0xd0] sm:$0xff] }
 0xa54   : > { %2830 = vmatpush.msrb.mxu1 %v2814_v51  ;;  %2852 = vmatpush.msrb.mxu2 %v2811_v56  ;;  %v8506_v56 = vld [vmem:[%s15635_s5 + $0xd10] sm:$0xff] }
 0xa55   : > { %2763 = vmatpush.msra.mxu0 %v8337_v57  ;;  %v2808_v57 = vld [vmem:[#allocation2 + $0xb0] sm:$0xff] }
 0xa56   : > { %2831 = vmatpush.msrb.mxu1 %v2812_v53  ;;  %2853 = vmatpush.msrb.mxu2 %v2809_v58  ;;  %v8484_v58 = vld [vmem:[%s15635_s5 + $0xc60] sm:$0xff] }
 0xa57   : > { %2764 = vmatpush.msra.mxu0 %v8336_v47  ;;  %v2804_v47 = vld [vmem:[#allocation2 + $0x90] sm:$0xff] }
 0xa58   : > { %2832 = vmatpush.msrb.mxu1 %v2810_v55  ;;  %2854 = vmatpush.msrb.mxu2 %v2807_v60  ;;  %v8503_v55 = vld [vmem:[%s15635_s5 + $0xcf8] sm:$0xff]  ;;  %v8488_v60 = vld [vmem:[%s15635_s5 + $0xc80] sm:$0xff] }
 0xa59   : > { %2765 = vmatpush.msra.mxu0 %v8335_v0  ;;  %v8359_v0 = vld [vmem:[%s15638_s8 + $0x178] sm:$0xff] }
 0xa5a   : > { %2833 = vmatpush.msrb.mxu1 %v2808_v57  ;;  %2855 = vmatpush.msrb.mxu2 %v2805_v61  ;;  %v8507_v57 = vld [vmem:[%s15635_s5 + $0xd18] sm:$0xff]  ;;  %v8466_v61 = vld [vmem:[%s15635_s5 + $0xbd0] sm:$0xff] }
 0xa5b   : > { %2766 = vmatpush.msra.mxu0 %v8334_v4  ;;  %v8357_v4 = vld [vmem:[%s15638_s8 + $0x168] sm:$0xff] }
 0xa5c   : > { %2834 = vmatpush.msrb.mxu1 %v2806_v59  ;;  %2856 = vmatpush.msrb.mxu2 %v2803_v63  ;;  %v8485_v59 = vld [vmem:[%s15635_s5 + $0xc68] sm:$0xff]  ;;  %v8470_v63 = vld [vmem:[%s15635_s5 + $0xbf0] sm:$0xff] }
 0xa5d   : > { %2767 = vmatpush.msra.mxu0 %v8333_v8 }
 0xa5e   : > { %2835 = vmatpush.msrb.mxu1 %v2804_v47  ;;  %v8489_v47 = vld [vmem:[%s15635_s5 + $0xc88] sm:$0xff] }
 0xa5f   : > { %2768 = vmatpush.msra.mxu0 %v8332_v13  ;;  %v8371_v13 = vld [vmem:[%s15638_s8 + $0x1d8] sm:$0xff] }
 0xa60   : > { %2836 = vmatpush.msrb.mxu1 %v2802_v62  ;;  %v8467_v62 = vld [vmem:[%s15635_s5 + $0xbd8] sm:$0xff] }
 0xa61   : > { %2769 = vmatpush.msra.mxu0 %v8331_v9  ;;  %v8370_v9 = vld [vmem:[%s15638_s8 + $0x1d0] sm:$0xff] }
 0xa63   : > { %2770 = vmatpush.msra.mxu0 %v8330_v19  ;;  %v8352_v19 = vld [vmem:[%s15638_s8 + $0x140] sm:$0xff] }
 0xa65   : > { %2771 = vmatpush.msra.mxu0 %v8329_v21  ;;  %v8351_v21 = vld [vmem:[%s15638_s8 + $0x138] sm:$0xff] }
 0xa67   : > { %2772 = vmatpush.msra.mxu0 %v8328_v22  ;;  %v8367_v22 = vld [vmem:[%s15638_s8 + $0x1b8] sm:$0xff] }
 0xa69   : > { %2773 = vmatpush.msra.mxu0 %v8327_v23 }
 0xa6b   : > { %2774 = vmatpush.msra.mxu0 %v8326_v24  ;;  %v8350_v24 = vld [vmem:[%s15638_s8 + $0x130] sm:$0xff] }
 0xa9b   : > { %v2335_v25 = vpop.f32.mrf.mxu2 }
 0xa9c   : > { %2695 = vmatmul.f32.vlgmr.msrb.gmra.mxu0 %v2335_v25  ;;  %v8366_v25 = vld [vmem:[%s15638_s8 + $0x1b0] sm:$0xff] }
 0xa9d   : > { %3134 = vmatpush.msrb.mxu0 %v8503_v55  ;;  %v8403_v55 = vld [vmem:[%s15635_s5 + $0x9d8] sm:$0xff] }
 0xa9f   : > { %3135 = vmatpush.msrb.mxu0 %v8485_v59  ;;  %v8385_v59 = vld [vmem:[%s15635_s5 + $0x948] sm:$0xff] }
 0xaa1   : > { %v2279_v26 = vpop.f32.mrf.mxu0  ;;  %3136 = vmatpush.msrb.mxu0 %v8467_v62 }
 0xaa2   : > { %2675 = vmatmul.f32.vlgmr.msra.gmra.mxu3 %v2279_v26 }
 0xaa3   : > { %3114 = vmatpush.msra.mxu3 %v8502_v54  ;;  %v8402_v54 = vld [vmem:[%s15635_s5 + $0x9d0] sm:$0xff] }
 0xaa5   : > { %3115 = vmatpush.msra.mxu3 %v8484_v58  ;;  %v8384_v58 = vld [vmem:[%s15635_s5 + $0x940] sm:$0xff] }
 0xaa7   : > { %3116 = vmatpush.msra.mxu3 %v8466_v61 }
 0xaa9   : > { %v2391_v27 = vpop.f32.mrf.mxu0 }
 0xaaa   : > { %2715 = vmatmul.f32.vlgmr.msra.gmra.mxu1 %v2391_v27  ;;  %v8349_v27 = vld [vmem:[%s15638_s8 + $0x128] sm:$0xff] }
 0xaab   : > { %2896 = vmatpush.msra.mxu1 %v8359_v0  ;;  %v8471_v0 = vld [vmem:[%s15635_s5 + $0xbf8] sm:$0xff] }
 0xaad   : > { %2897 = vmatpush.msra.mxu1 %v8358_v2 }
 0xaaf   : > { %2898 = vmatpush.msra.mxu1 %v8357_v4 }
 0xab0   : > { %v2447_v28 = vpop.f32.mrf.mxu2 }
 0xab1   : > { %2735 = vmatmul.f32.vlgmr.msra.gmra.mxu2 %v2447_v28  ;;  %v2503_v29 = vpop.f32.mrf.mxu0  ;;  %2899 = vmatpush.msra.mxu1 %v8356_v6  ;;  %v8365_v28 = vld [vmem:[%s15638_s8 + $0x1a8] sm:$0xff]  ;;  %v8448_v6 = vld [vmem:[%s15635_s5 + $0xb40] sm:$0xff] }
 0xab2   : > { %2755 = vmatmul.f32.vlgmr.msrb.gmra.mxu3 %v2503_v29  ;;  %2916 = vmatpush.msra.mxu2 %v8375_v1 }
 0xab3   : > { %2900 = vmatpush.msra.mxu1 %v8355_v11  ;;  %3117 = vmatpush.msra.mxu3 %v8448_v6  ;;  %v8430_v11 = vld [vmem:[%s15635_s5 + $0xab0] sm:$0xff] }
 0xab4   : > { %2917 = vmatpush.msra.mxu2 %v8374_v3 }
 0xab5   : > { %2901 = vmatpush.msra.mxu1 %v8354_v16  ;;  %3118 = vmatpush.msra.mxu3 %v8430_v11  ;;  %v8435_v16 = vld [vmem:[%s15635_s5 + $0xad8] sm:$0xff]  ;;  %v8490_v11 = vld [vmem:[%s15635_s5 + $0xc90] sm:$0xff] }
 0xab6   : > { %2918 = vmatpush.msra.mxu2 %v8373_v5 }
 0xab7   : > { %2902 = vmatpush.msra.mxu1 %v8353_v17  ;;  %v8413_v17 = vld [vmem:[%s15635_s5 + $0xa28] sm:$0xff] }
 0xab8   : > { %v2559_v30 = vpop.f32.mrf.mxu2  ;;  %2919 = vmatpush.msra.mxu2 %v8372_v7  ;;  %v8449_v7 = vld [vmem:[%s15635_s5 + $0xb48] sm:$0xff] }
 0xab9   : > { %2775 = vmatmul.f32.vlgmr.msra.gmra.mxu0 %v2559_v30  ;;  %2903 = vmatpush.msra.mxu1 %v8352_v19  ;;  %v8348_v30 = vld [vmem:[%s15638_s8 + $0x120] sm:$0xff]  ;;  %v8417_v19 = vld [vmem:[%s15635_s5 + $0xa48] sm:$0xff] }
 0xaba   : > { %2920 = vmatpush.msra.mxu2 %v8371_v13  ;;  %3137 = vmatpush.msrb.mxu0 %v8449_v7  ;;  %v8431_v13 = vld [vmem:[%s15635_s5 + $0xab8] sm:$0xff]  ;;  %v8508_v7 = vld [vmem:[%s15635_s5 + $0xd20] sm:$0xff] }
 0xabb   : > { %2904 = vmatpush.msra.mxu1 %v8351_v21  ;;  %v8395_v21 = vld [vmem:[%s15635_s5 + $0x998] sm:$0xff] }
 0xabc   : > { %2921 = vmatpush.msra.mxu2 %v8370_v9  ;;  %3138 = vmatpush.msrb.mxu0 %v8431_v13  ;;  %v8412_v9 = vld [vmem:[%s15635_s5 + $0xa20] sm:$0xff]  ;;  %v8491_v13 = vld [vmem:[%s15635_s5 + $0xc98] sm:$0xff] }
 0xabd   : > { %2905 = vmatpush.msra.mxu1 %v8350_v24  ;;  %3119 = vmatpush.msra.mxu3 %v8412_v9  ;;  %v8376_v24 = vld [vmem:[%s15635_s5 + $0x900] sm:$0xff] }
 0xabe   : > { %2922 = vmatpush.msra.mxu2 %v8369_v18  ;;  %v8416_v18 = vld [vmem:[%s15635_s5 + $0xa40] sm:$0xff]  ;;  %3139 = vmatpush.msrb.mxu0 %v8413_v17  ;;  %v8473_v17 = vld [vmem:[%s15635_s5 + $0xc08] sm:$0xff] }
 0xabf   : > { %2906 = vmatpush.msra.mxu1 %v8349_v27  ;;  %v8381_v27 = vld [vmem:[%s15635_s5 + $0x928] sm:$0xff]  ;;  %v8472_v9 = vld [vmem:[%s15635_s5 + $0xc00] sm:$0xff] }
 0xac0   : > { %2923 = vmatpush.msra.mxu2 %v8368_v20  ;;  %v8394_v20 = vld [vmem:[%s15635_s5 + $0x990] sm:$0xff]  ;;  %3140 = vmatpush.msrb.mxu0 %v8395_v21  ;;  %v8455_v21 = vld [vmem:[%s15635_s5 + $0xb78] sm:$0xff] }
 0xac1   : > { %2907 = vmatpush.msra.mxu1 %v8348_v30  ;;  %3120 = vmatpush.msra.mxu3 %v8394_v20  ;;  %v8510_v30 = vld [vmem:[%s15635_s5 + $0xd30] sm:$0xff] }
 0xac2   : > { %2924 = vmatpush.msra.mxu2 %v8367_v22  ;;  %v8398_v22 = vld [vmem:[%s15635_s5 + $0x9b0] sm:$0xff] }
 0xac3   : > { %3121 = vmatpush.msra.mxu3 %v8376_v24  ;;  %v8454_v20 = vld [vmem:[%s15635_s5 + $0xb70] sm:$0xff]  ;;  %v8436_v24 = vld [vmem:[%s15635_s5 + $0xae0] sm:$0xff] }
 0xac4   : > { %2925 = vmatpush.msra.mxu2 %v8366_v25  ;;  %v8377_v25 = vld [vmem:[%s15635_s5 + $0x908] sm:$0xff] }
 0xac5   : > { %3141 = vmatpush.msrb.mxu0 %v8377_v25  ;;  %v8437_v25 = vld [vmem:[%s15635_s5 + $0xae8] sm:$0xff] }
 0xac6   : > { %2926 = vmatpush.msra.mxu2 %v8365_v28  ;;  %v8504_v28 = vld [vmem:[%s15635_s5 + $0xd00] sm:$0xff] }
 0xac7   : > { %3154 = vmatpush.msrb.mxu3 %v8504_v28  ;;  %v8418_v28 = vld [vmem:[%s15635_s5 + $0xa50] sm:$0xff] }
 0xb19   : > { %v2696_v33 = vpop.f32.mrf.mxu0 }
 0xb25   : > { %v2676_v31 = vpop.f32.mrf.mxu3 }
 0xb26   : > { %v2677_v32 = vadd.f32 %v2676_v31, %v11174_v12 }
 0xb27   : > { %v2716_v35 = vpop.f32.mrf.mxu1 }
 0xb28   : > { %v2697_v34 = vadd.f32 %v2696_v33, %v2677_v32  ;;  %v8347_v32 = vld [vmem:[%s15638_s8 + $0x118] sm:$0xff] }
 0xb29   : > { %2908 = vmatpush.msra.mxu1 %v8347_v32  ;;  %v8486_v32 = vld [vmem:[%s15635_s5 + $0xc70] sm:$0xff] }
 0xb2a   : > { %v2717_v36 = vadd.f32 %v2716_v35, %v2697_v34  ;;  %v8346_v34 = vld [vmem:[%s15638_s8 + $0x110] sm:$0xff]  ;;  %3155 = vmatpush.msrb.mxu3 %v8486_v32  ;;  %v8400_v32 = vld [vmem:[%s15635_s5 + $0x9c0] sm:$0xff] }
 0xb2b   : > { %2909 = vmatpush.msra.mxu1 %v8346_v34  ;;  %v8492_v34 = vld [vmem:[%s15635_s5 + $0xca0] sm:$0xff] }
 0xb34   : > { %v2736_v37 = vpop.f32.mrf.mxu2 }
 0xb35   : > { %v2737_v38 = vadd.f32 %v2736_v37, %v2717_v36  ;;  %v2756_v39 = vpop.f32.mrf.mxu3 }
 0xb36   : > { %v2776_v41 = vpop.f32.mrf.mxu0 }
 0xb37   : > { %v2757_v40 = vadd.f32 %v2756_v39, %v2737_v38  ;;  %v8345_v38 = vld [vmem:[%s15638_s8 + $0x108] sm:$0xff]  ;;  %v8364_v39 = vld [vmem:[%s15638_s8 + $0x1a0] sm:$0xff] }
 0xb38   : > { %2910 = vmatpush.msra.mxu1 %v8345_v38  ;;  %2927 = vmatpush.msra.mxu2 %v8364_v39  ;;  %v8474_v38 = vld [vmem:[%s15635_s5 + $0xc10] sm:$0xff]  ;;  %v8475_v39 = vld [vmem:[%s15635_s5 + $0xc18] sm:$0xff] }
 0xb39   : > { %v2777_v42 = vadd.f32 %v2776_v41, %v2757_v40  ;;  %v8344_v40 = vld [vmem:[%s15638_s8 + $0x100] sm:$0xff]  ;;  %v8363_v41 = vld [vmem:[%s15638_s8 + $0x198] sm:$0xff] }
 0xb3a   : > { %2911 = vmatpush.msra.mxu1 %v8344_v40  ;;  %2928 = vmatpush.msra.mxu2 %v8363_v41  ;;  %v8450_v40 = vld [vmem:[%s15635_s5 + $0xb50] sm:$0xff]  ;;  %v8451_v41 = vld [vmem:[%s15635_s5 + $0xb58] sm:$0xff] }
 0xb3b   : > { %v2779_v43 = vsel %vm617_vm4, %v2777_v42, 0.0 }
 0xb3c   : > { %2780 = vadd.xlane.f32.xlu1 %v2779_v43  ;;  %v8361_v43 = vld [vmem:[%s15638_s8 + $0x188] sm:$0xff] }
 0xbaf   : > { %v2781_v44 = vpop.xlane.xlu1 %2780 }
 0xbb0   : > { %v2782_v45 = vmul.f32 %v2781_v44, %v10865_v48  ;;  %v8360_v44 = vld [vmem:[%s15638_s8 + $0x180] sm:$0xff] }
 0xbb2   : > { %v11792_v46 = vsub.f32 %v2777_v42, %v2782_v45  ;;  %v8362_v42 = vld [vmem:[%s15638_s8 + $0x190] sm:$0xff] }
 0xbb3   : > { %2929 = vmatpush.msra.mxu2 %v8362_v42  ;;  %v8456_v42 = vld [vmem:[%s15635_s5 + $0xb80] sm:$0xff] }
 0xbb4   : > { %v2784_v12 = vmul.f32 %v11792_v46, %v11792_v46 }
 0xbb5   : > { %2930 = vmatpush.msra.mxu2 %v8361_v43  ;;  %v8457_v43 = vld [vmem:[%s15635_s5 + $0xb88] sm:$0xff] }
 0xbb6   : > { %v2785_v15 = vsel %vm617_vm4, %v2784_v12, 0.0 }
 0xbb7   : > { %2786 = vadd.xlane.f32.xlu2 %v2785_v15  ;;  %2931 = vmatpush.msra.mxu2 %v8360_v44  ;;  %v8432_v44 = vld [vmem:[%s15635_s5 + $0xac0] sm:$0xff] }
 0xc2a   : > { %v2787_v8 = vpop.xlane.xlu2 %2786 }
 0xc2b   : > { %v2788_v10 = vmul.f32 %v2787_v8, %v10865_v48  ;;  %v8452_v8 = vld [vmem:[%s15635_s5 + $0xb60] sm:$0xff] }
 0xc2d   : > { %v2789_v14 = vadd.f32 1e-05, %v2788_v10  ;;  %v8453_v10 = vld [vmem:[%s15635_s5 + $0xb68] sm:$0xff] }
 0xc2f   : > { %9684 = vrsqrt.f32 %v2789_v14  ;;  %vm2796_vm14 = vweird.f32 %v2789_v14 }
 0xc35   : > { %v9685_v23 = vpop.eup %9684 }
 0xc36   : > { %v2791_v26 = vmul.f32 %v9685_v23, %v2789_v14  ;;  %vm2797_vm13 = vweird.f32 %v9685_v23  ;;  %v8434_v14 = vld [vmem:[%s15635_s5 + $0xad0] sm:$0xff] }
 0xc37   : > { %vm2798_vm15 = vmor %vm2796_vm14, %vm2797_vm13 }
 0xc38   : > { %v2792_v29 = vmul.f32 %v9685_v23, %v2791_v26  ;;  %v8380_v26 = vld [vmem:[%s15635_s5 + $0x920] sm:$0xff] }
 0xc3a   : > { %v2793_v31 = vmul.f32 0.5, %v2792_v29  ;;  %v8505_v29 = vld [vmem:[%s15635_s5 + $0xd08] sm:$0xff] }
 0xc3b   : > { %3174 = vmatpush.msra.mxu0 %v8505_v29  ;;  %v8419_v29 = vld [vmem:[%s15635_s5 + $0xa58] sm:$0xff] }
 0xc3c   : > { %v2794_v33 = vsub.f32 1.5, %v2793_v31  ;;  %v8511_v31 = vld [vmem:[%s15635_s5 + $0xd38] sm:$0xff] }
 0xc3e   : > { %v2795_v35 = vmul.f32 %v9685_v23, %v2794_v33  ;;  %v8487_v33 = vld [vmem:[%s15635_s5 + $0xc78] sm:$0xff] }
 0xc3f   : > { %3175 = vmatpush.msra.mxu0 %v8487_v33  ;;  %v8401_v33 = vld [vmem:[%s15635_s5 + $0x9c8] sm:$0xff] }
 0xc40   : > { %v2799_v36 = vsel %vm2798_vm15, %v9685_v23, %v2795_v35  ;;  %v8399_v23 = vld [vmem:[%s15635_s5 + $0x9b8] sm:$0xff]  ;;  %v8493_v35 = vld [vmem:[%s15635_s5 + $0xca8] sm:$0xff] }
 0xc41   : > { %v2800_v37 = vmul.f32 %v2799_v36, %v11792_v46  ;;  %v8468_v36 = vld [vmem:[%s15635_s5 + $0xbe0] sm:$0xff] }
 0xc42   : > { %3156 = vmatpush.msrb.mxu3 %v8468_v36  ;;  %v8382_v36 = vld [vmem:[%s15635_s5 + $0x930] sm:$0xff] }
 0xc43   : > { %8342 = vmatmul.msk.f32.vlgmr.msrb.gmra.mxu1 %vm617_vm4, %v2800_v37  ;;  %8343 = vmatmul.msk.f32.vlgmr.msrb.gmra.mxu2 %vm617_vm4, %v2800_v37 }
 0xc44   : > { %3194 = vmatpush.msrb.mxu1 %v8506_v56  ;;  %3214 = vmatpush.msrb.mxu2 %v8507_v57  ;;  %v8378_v56 = vld [vmem:[%s15635_s5 + $0x910] sm:$0xff]  ;;  %v8379_v57 = vld [vmem:[%s15635_s5 + $0x918] sm:$0xff] }
 0xc45   : > { %3157 = vmatpush.msrb.mxu3 %v8450_v40  ;;  %v8512_v40 = vld [vmem:[%s15635_s5 + $0xd40] sm:$0xff] }
 0xc46   : > { %3195 = vmatpush.msrb.mxu1 %v8488_v60  ;;  %3215 = vmatpush.msrb.mxu2 %v8489_v47 }
 0xc47   : > { %3158 = vmatpush.msrb.mxu3 %v8432_v44  ;;  %v8494_v44 = vld [vmem:[%s15635_s5 + $0xcb0] sm:$0xff] }
 0xc48   : > { %3196 = vmatpush.msrb.mxu1 %v8470_v63  ;;  %3216 = vmatpush.msrb.mxu2 %v8471_v0 }
 0xc4a   : > { %3197 = vmatpush.msrb.mxu1 %v8452_v8  ;;  %3217 = vmatpush.msrb.mxu2 %v8453_v10  ;;  %v8509_v8 = vld [vmem:[%s15635_s5 + $0xd28] sm:$0xff]  ;;  %v8514_v10 = vld [vmem:[%s15635_s5 + $0xd50] sm:$0xff] }
 0xc4c   : > { %3198 = vmatpush.msrb.mxu1 %v8434_v14  ;;  %3218 = vmatpush.msrb.mxu2 %v8435_v16  ;;  %v8496_v14 = vld [vmem:[%s15635_s5 + $0xcc0] sm:$0xff]  ;;  %v8497_v16 = vld [vmem:[%s15635_s5 + $0xcc8] sm:$0xff] }
 0xc4e   : > { %3199 = vmatpush.msrb.mxu1 %v8416_v18  ;;  %3219 = vmatpush.msrb.mxu2 %v8417_v19  ;;  %v8478_v18 = vld [vmem:[%s15635_s5 + $0xc30] sm:$0xff]  ;;  %v8479_v19 = vld [vmem:[%s15635_s5 + $0xc38] sm:$0xff] }
 0xc50   : > { %3200 = vmatpush.msrb.mxu1 %v8398_v22  ;;  %3220 = vmatpush.msrb.mxu2 %v8399_v23  ;;  %v8460_v22 = vld [vmem:[%s15635_s5 + $0xba0] sm:$0xff]  ;;  %v8461_v23 = vld [vmem:[%s15635_s5 + $0xba8] sm:$0xff] }
 0xc52   : > { %3201 = vmatpush.msrb.mxu1 %v8380_v26  ;;  %3221 = vmatpush.msrb.mxu2 %v8381_v27  ;;  %v8442_v26 = vld [vmem:[%s15635_s5 + $0xb10] sm:$0xff]  ;;  %v8443_v27 = vld [vmem:[%s15635_s5 + $0xb18] sm:$0xff] }
 0xcc0   : > { %v2838_v45 = vpop.f32.mrf.mxu1 }
 0xcc1   : > { %v2861_v46 = vmax.f32 %v2838_v45, 0.0  ;;  %v8433_v45 = vld [vmem:[%s15635_s5 + $0xac8] sm:$0xff] }
 0xcc3   : > { %2912 = vmatmul.f32.vlgmr.msra.gmra.mxu1 %v2861_v46  ;;  %v8438_v46 = vld [vmem:[%s15635_s5 + $0xaf0] sm:$0xff] }
 0xcc4   : > { %3274 = vmatpush.msra.mxu1 %v8510_v30  ;;  %v8424_v30 = vld [vmem:[%s15635_s5 + $0xa80] sm:$0xff] }
 0xcc6   : > { %v2858_v12 = vpop.f32.mrf.mxu2  ;;  %3275 = vmatpush.msra.mxu1 %v8492_v34  ;;  %v8406_v34 = vld [vmem:[%s15635_s5 + $0x9f0] sm:$0xff] }
 0xcc7   : > { %v2862_v15 = vmax.f32 %v2858_v12, 0.0  ;;  %v8439_v12 = vld [vmem:[%s15635_s5 + $0xaf8] sm:$0xff] }
 0xcc8   : > { %3276 = vmatpush.msra.mxu1 %v8474_v38  ;;  %v8388_v38 = vld [vmem:[%s15635_s5 + $0x960] sm:$0xff] }
 0xcc9   : > { %2932 = vmatmul.f32.vlgmr.msra.gmra.mxu2 %v2862_v15  ;;  %v8414_v15 = vld [vmem:[%s15635_s5 + $0xa30] sm:$0xff] }
 0xcca   : > { %3294 = vmatpush.msra.mxu2 %v8511_v31  ;;  %3277 = vmatpush.msra.mxu1 %v8456_v42  ;;  %v8425_v31 = vld [vmem:[%s15635_s5 + $0xa88] sm:$0xff]  ;;  %v8518_v42 = vld [vmem:[%s15635_s5 + $0xd70] sm:$0xff] }
 0xccb   : > { %3159 = vmatpush.msrb.mxu3 %v8414_v15  ;;  %v8476_v15 = vld [vmem:[%s15635_s5 + $0xc20] sm:$0xff] }
 0xccc   : > { %3295 = vmatpush.msra.mxu2 %v8493_v35  ;;  %3278 = vmatpush.msra.mxu1 %v8438_v46  ;;  %v8407_v35 = vld [vmem:[%s15635_s5 + $0x9f8] sm:$0xff]  ;;  %v8500_v46 = vld [vmem:[%s15635_s5 + $0xce0] sm:$0xff] }
 0xcce   : > { %3296 = vmatpush.msra.mxu2 %v8475_v39  ;;  %v8389_v39 = vld [vmem:[%s15635_s5 + $0x968] sm:$0xff] }
 0xcd0   : > { %3297 = vmatpush.msra.mxu2 %v8457_v43  ;;  %v8519_v43 = vld [vmem:[%s15635_s5 + $0xd78] sm:$0xff] }
 0xcd2   : > { %3298 = vmatpush.msra.mxu2 %v8439_v12  ;;  %v8501_v12 = vld [vmem:[%s15635_s5 + $0xce8] sm:$0xff] }
 0xd40   : > { %v2913_v49 = vpop.f32.mrf.mxu1 }
 0xd41   : > { %v2914_v50 = vadd.f32 %v2913_v49, %v2800_v37  ;;  %v8469_v37 = vld [vmem:[%s15635_s5 + $0xbe8] sm:$0xff]  ;;  %v8415_v49 = vld [vmem:[%s15635_s5 + $0xa38] sm:$0xff] }
 0xd42   : > { %3176 = vmatpush.msra.mxu0 %v8469_v37  ;;  %v8383_v37 = vld [vmem:[%s15635_s5 + $0x938] sm:$0xff] }
 0xd44   : > { %3177 = vmatpush.msra.mxu0 %v8451_v41  ;;  %v8513_v41 = vld [vmem:[%s15635_s5 + $0xd48] sm:$0xff] }
 0xd46   : > { %3178 = vmatpush.msra.mxu0 %v8433_v45  ;;  %v8495_v45 = vld [vmem:[%s15635_s5 + $0xcb8] sm:$0xff] }
 0xd48   : > { %3179 = vmatpush.msra.mxu0 %v8415_v49  ;;  %v8477_v49 = vld [vmem:[%s15635_s5 + $0xc28] sm:$0xff] }
 0xd4c   : > { %v2933_v51 = vpop.f32.mrf.mxu2 }
 0xd4d   : > { %v2934_v52 = vadd.f32 %v2933_v51, %v2914_v50  ;;  %v8420_v50 = vld [vmem:[%s15635_s5 + $0xa60] sm:$0xff]  ;;  %v8421_v51 = vld [vmem:[%s15635_s5 + $0xa68] sm:$0xff] }
 0xd4e   : > { %3279 = vmatpush.msra.mxu1 %v8420_v50  ;;  %3299 = vmatpush.msra.mxu2 %v8421_v51  ;;  %v8482_v50 = vld [vmem:[%s15635_s5 + $0xc50] sm:$0xff]  ;;  %v8483_v51 = vld [vmem:[%s15635_s5 + $0xc58] sm:$0xff] }
 0xd4f   : > { %v2936_v53 = vsel %vm617_vm4, %v2934_v52, 0.0 }
 0xd50   : > { %2937 = vadd.xlane.f32.xlu0 %v2936_v53  ;;  %v8397_v53 = vld [vmem:[%s15635_s5 + $0x9a8] sm:$0xff]  ;;  %3280 = vmatpush.msra.mxu1 %v8402_v54  ;;  %v8464_v54 = vld [vmem:[%s15635_s5 + $0xbc0] sm:$0xff] }
 0xd51   : > { %3180 = vmatpush.msra.mxu0 %v8397_v53  ;;  %3300 = vmatpush.msra.mxu2 %v8403_v55  ;;  %v8459_v53 = vld [vmem:[%s15635_s5 + $0xb98] sm:$0xff]  ;;  %v8465_v55 = vld [vmem:[%s15635_s5 + $0xbc8] sm:$0xff] }
 0xd52   : > { %3281 = vmatpush.msra.mxu1 %v8384_v58  ;;  %v8446_v58 = vld [vmem:[%s15635_s5 + $0xb30] sm:$0xff] }
 0xd53   : > { %3181 = vmatpush.msra.mxu0 %v8379_v57  ;;  %3301 = vmatpush.msra.mxu2 %v8385_v59  ;;  %v8441_v57 = vld [vmem:[%s15635_s5 + $0xb08] sm:$0xff]  ;;  %v8447_v59 = vld [vmem:[%s15635_s5 + $0xb38] sm:$0xff] }
 0xdc3   : > { %v2938_v1 = vpop.xlane.xlu0 %2937 }
 0xdc4   : > { %v2939_v2 = vmul.f32 %v2938_v1, %v10865_v48 }
 0xdc6   : > { %v11935_v3 = vsub.f32 %v2934_v52, %v2939_v2  ;;  %v8396_v52 = vld [vmem:[%s15635_s5 + $0x9a0] sm:$0xff] }
 0xdc7   : > { %3160 = vmatpush.msrb.mxu3 %v8396_v52  ;;  %v8458_v52 = vld [vmem:[%s15635_s5 + $0xb90] sm:$0xff] }
 0xdc8   : > { %v2941_v4 = vmul.f32 %v11935_v3, %v11935_v3 }
 0xdc9   : > { %3161 = vmatpush.msrb.mxu3 %v8378_v56  ;;  %v8440_v56 = vld [vmem:[%s15635_s5 + $0xb00] sm:$0xff] }
 0xdca   : > { %v2942_v5 = vsel %vm617_vm4, %v2941_v4, 0.0 }
 0xdcb   : > { %2943 = vadd.xlane.f32.xlu1 %v2942_v5 }
 0xe3e   : > { %v2944_v60 = vpop.xlane.xlu1 %2943 }
 0xe3f   : > { %v2945_v47 = vmul.f32 %v2944_v60, %v10865_v48  ;;  %v8422_v60 = vld [vmem:[%s15635_s5 + $0xa70] sm:$0xff] }
 0xe41   : > { %v2946_v61 = vadd.f32 1e-05, %v2945_v47  ;;  %v8423_v47 = vld [vmem:[%s15635_s5 + $0xa78] sm:$0xff] }
 0xe43   : > { %9686 = vrsqrt.f32 %v2946_v61  ;;  %vm2953_vm1 = vweird.f32 %v2946_v61 }
 0xe49   : > { %v9687_v62 = vpop.eup %9686 }
 0xe4a   : > { %v2948_v63 = vmul.f32 %v9687_v62, %v2946_v61  ;;  %vm2954_vm0 = vweird.f32 %v9687_v62  ;;  %v8428_v61 = vld [vmem:[%s15635_s5 + $0xaa0] sm:$0xff] }
 0xe4b   : > { %vm2955_vm2 = vmor %vm2953_vm1, %vm2954_vm0 }
 0xe4c   : > { %v2949_v0 = vmul.f32 %v9687_v62, %v2948_v63  ;;  %v8404_v63 = vld [vmem:[%s15635_s5 + $0x9e0] sm:$0xff] }
 0xe4e   : > { %v2950_v1 = vmul.f32 0.5, %v2949_v0  ;;  %v8405_v0 = vld [vmem:[%s15635_s5 + $0x9e8] sm:$0xff] }
 0xe50   : > { %v2951_v2 = vsub.f32 1.5, %v2950_v1  ;;  %v8410_v1 = vld [vmem:[%s15635_s5 + $0xa10] sm:$0xff] }
 0xe52   : > { %v2952_v4 = vmul.f32 %v9687_v62, %v2951_v2  ;;  %v8411_v2 = vld [vmem:[%s15635_s5 + $0xa18] sm:$0xff] }
 0xe54   : > { %v2956_v5 = vsel %vm2955_vm2, %v9687_v62, %v2952_v4  ;;  %v8429_v62 = vld [vmem:[%s15635_s5 + $0xaa8] sm:$0xff]  ;;  %v8386_v4 = vld [vmem:[%s15635_s5 + $0x950] sm:$0xff] }
 0xe55   : > { %v12098_v6 = vmul.f32 %v2956_v5, %v11935_v3  ;;  %v8515_v3 = vld [vmem:[%s15635_s5 + $0xd58] sm:$0xff] }
 0xe56   : > { %v8387_v5 = vld [vmem:[%s15635_s5 + $0x958] sm:$0xff] }
 0xe57   : > { %8520 = vmatmul.msk.f32.vlgmr.msra.gmra.mxu3 %vm617_vm4, %v12098_v6  ;;  %8521 = vmatmul.msk.f32.vlgmr.msrb.gmra.mxu0 %vm617_vm4, %v12098_v6 }
 0xe58   : > { %8524 = vmatmul.msk.f32.vlgmr.msrb.gmra.mxu1 %vm617_vm4, %v12098_v6  ;;  %8525 = vmatmul.msk.f32.vlgmr.msrb.gmra.mxu2 %vm617_vm4, %v12098_v6 }
 0xe59   : > { %3234 = vmatpush.msra.mxu3 %v8508_v7  ;;  %3254 = vmatpush.msrb.mxu0 %v8509_v8  ;;  %v8392_v7 = vld [vmem:[%s15635_s5 + $0x980] sm:$0xff]  ;;  %v8393_v8 = vld [vmem:[%s15635_s5 + $0x988] sm:$0xff] }
 0xe5a   : > { %3354 = vmatpush.msrb.mxu1 %v8514_v10  ;;  %3374 = vmatpush.msrb.mxu2 %v8515_v3  ;;  %v8516_v10 = vld [vmem:[%s15635_s5 + $0xd60] sm:$0xff]  ;;  %v8517_v3 = vld [vmem:[%s15635_s5 + $0xd68] sm:$0xff] }
 0xe5b   : > { %3235 = vmatpush.msra.mxu3 %v8490_v11  ;;  %3255 = vmatpush.msrb.mxu0 %v8491_v13  ;;  %v8498_v11 = vld [vmem:[%s15635_s5 + $0xcd0] sm:$0xff]  ;;  %v8499_v13 = vld [vmem:[%s15635_s5 + $0xcd8] sm:$0xff] }
 0xe5c   : > { %3355 = vmatpush.msrb.mxu1 %v8496_v14  ;;  %3375 = vmatpush.msrb.mxu2 %v8497_v16  ;;  %v8480_v14 = vld [vmem:[%s15635_s5 + $0xc40] sm:$0xff]  ;;  %v8481_v16 = vld [vmem:[%s15635_s5 + $0xc48] sm:$0xff] }
 0xe5d   : > { %3236 = vmatpush.msra.mxu3 %v8472_v9  ;;  %3256 = vmatpush.msrb.mxu0 %v8473_v17  ;;  %v8462_v9 = vld [vmem:[%s15635_s5 + $0xbb0] sm:$0xff]  ;;  %v8463_v17 = vld [vmem:[%s15635_s5 + $0xbb8] sm:$0xff] }
 0xe5e   : > { %3356 = vmatpush.msrb.mxu1 %v8478_v18  ;;  %3376 = vmatpush.msrb.mxu2 %v8479_v19  ;;  %v8444_v18 = vld [vmem:[%s15635_s5 + $0xb20] sm:$0xff]  ;;  %v8445_v19 = vld [vmem:[%s15635_s5 + $0xb28] sm:$0xff] }
 0xe5f   : > { %3237 = vmatpush.msra.mxu3 %v8454_v20  ;;  %3257 = vmatpush.msrb.mxu0 %v8455_v21  ;;  %v8426_v20 = vld [vmem:[%s15635_s5 + $0xa90] sm:$0xff]  ;;  %v8427_v21 = vld [vmem:[%s15635_s5 + $0xa98] sm:$0xff] }
 0xe60   : > { %3357 = vmatpush.msrb.mxu1 %v8460_v22  ;;  %3377 = vmatpush.msrb.mxu2 %v8461_v23  ;;  %v8408_v22 = vld [vmem:[%s15635_s5 + $0xa00] sm:$0xff]  ;;  %v8409_v23 = vld [vmem:[%s15635_s5 + $0xa08] sm:$0xff] }
 0xe61   : > { %8522 = vmatmul.msk.f32.vlgmr.msrb.gmra.mxu3 %vm617_vm4, %v12098_v6  ;;  %8523 = vmatmul.msk.f32.vlgmr.msra.gmra.mxu0 %vm617_vm4, %v12098_v6 }
 0xe62   : > { %3238 = vmatpush.msra.mxu3 %v8436_v24  ;;  %3258 = vmatpush.msrb.mxu0 %v8437_v25  ;;  %v8390_v24 = vld [vmem:[%s15635_s5 + $0x970] sm:$0xff]  ;;  %v8391_v25 = vld [vmem:[%s15635_s5 + $0x978] sm:$0xff] }
 0xe63   : > { %8528 = vmatmul.msk.f32.vlgmr.msra.gmra.mxu1 %vm617_vm4, %v12098_v6  ;;  %8529 = vmatmul.msk.f32.vlgmr.msra.gmra.mxu2 %vm617_vm4, %v12098_v6 }
 0xe64   : > { %3358 = vmatpush.msrb.mxu1 %v8442_v26  ;;  %3378 = vmatpush.msrb.mxu2 %v8443_v27 }
 0xe65   : > { %3239 = vmatpush.msra.mxu3 %v8418_v28  ;;  %3259 = vmatpush.msrb.mxu0 %v8419_v29 }
 0xe66   : > { %3359 = vmatpush.msrb.mxu1 %v8424_v30  ;;  %3379 = vmatpush.msrb.mxu2 %v8425_v31 }
 0xe67   : > { %3240 = vmatpush.msra.mxu3 %v8400_v32  ;;  %3260 = vmatpush.msrb.mxu0 %v8401_v33 }
 0xe68   : > { %3360 = vmatpush.msrb.mxu1 %v8406_v34  ;;  %3380 = vmatpush.msrb.mxu2 %v8407_v35 }
 0xe69   : > { %3241 = vmatpush.msra.mxu3 %v8382_v36  ;;  %3261 = vmatpush.msrb.mxu0 %v8383_v37 }
 0xe6a   : > { %3361 = vmatpush.msrb.mxu1 %v8388_v38  ;;  %3381 = vmatpush.msrb.mxu2 %v8389_v39 }
 0xe6b   : > { %3314 = vmatpush.msrb.mxu3 %v8512_v40  ;;  %3334 = vmatpush.msra.mxu0 %v8513_v41 }
 0xe6c   : > { %3434 = vmatpush.msra.mxu1 %v8518_v42  ;;  %3454 = vmatpush.msra.mxu2 %v8519_v43 }
 0xe6d   : > { %8526 = vmatmul.msk.f32.vlgmr.msra.gmra.mxu3 %vm617_vm4, %v12098_v6  ;;  %8527 = vmatmul.msk.f32.vlgmr.msrb.gmra.mxu0 %vm617_vm4, %v12098_v6 }
 0xe6e   : > { %8532 = vmatmul.msk.f32.vlgmr.msrb.gmra.mxu1 %vm617_vm4, %v12098_v6  ;;  %8533 = vmatmul.msk.f32.vlgmr.msrb.gmra.mxu2 %vm617_vm4, %v12098_v6 }
 0xe6f   : > { %3315 = vmatpush.msrb.mxu3 %v8494_v44  ;;  %3335 = vmatpush.msra.mxu0 %v8495_v45 }
 0xe70   : > { %3435 = vmatpush.msra.mxu1 %v8500_v46  ;;  %3455 = vmatpush.msra.mxu2 %v8501_v12 }
 0xe71   : > { %3316 = vmatpush.msrb.mxu3 %v8476_v15  ;;  %3336 = vmatpush.msra.mxu0 %v8477_v49 }
 0xe72   : > { %3436 = vmatpush.msra.mxu1 %v8482_v50  ;;  %3456 = vmatpush.msra.mxu2 %v8483_v51 }
 0xe73   : > { %3317 = vmatpush.msrb.mxu3 %v8458_v52  ;;  %3337 = vmatpush.msra.mxu0 %v8459_v53 }
 0xe74   : > { %3437 = vmatpush.msra.mxu1 %v8464_v54  ;;  %3457 = vmatpush.msra.mxu2 %v8465_v55 }
 0xe75   : > { %3318 = vmatpush.msrb.mxu3 %v8440_v56  ;;  %3338 = vmatpush.msra.mxu0 %v8441_v57 }
 0xe76   : > { %3438 = vmatpush.msra.mxu1 %v8446_v58  ;;  %3458 = vmatpush.msra.mxu2 %v8447_v59 }
 0xe77   : > { %3319 = vmatpush.msrb.mxu3 %v8422_v60  ;;  %3339 = vmatpush.msra.mxu0 %v8423_v47 }
 0xe78   : > { %3439 = vmatpush.msra.mxu1 %v8428_v61  ;;  %3459 = vmatpush.msra.mxu2 %v8429_v62 }
 0xe79   : > { %3320 = vmatpush.msrb.mxu3 %v8404_v63  ;;  %3340 = vmatpush.msra.mxu0 %v8405_v0 }
 0xe7a   : > { %3440 = vmatpush.msra.mxu1 %v8410_v1  ;;  %3460 = vmatpush.msra.mxu2 %v8411_v2 }
 0xe7b   : > { %3321 = vmatpush.msrb.mxu3 %v8386_v4  ;;  %3341 = vmatpush.msra.mxu0 %v8387_v5 }
 0xe7c   : > { %3441 = vmatpush.msra.mxu1 %v8392_v7  ;;  %3461 = vmatpush.msra.mxu2 %v8393_v8 }
 0xe7d   : > { %8530 = vmatmul.msk.f32.vlgmr.msrb.gmra.mxu3 %vm617_vm4, %v12098_v6  ;;  %8531 = vmatmul.msk.f32.vlgmr.msra.gmra.mxu0 %vm617_vm4, %v12098_v6 }
 0xe7e   : > { %3394 = vmatpush.msra.mxu3 %v8516_v10  ;;  %3414 = vmatpush.msrb.mxu0 %v8517_v3 }
 0xe7f   : > { %8536 = vmatmul.msk.f32.vlgmr.msra.gmra.mxu1 %vm617_vm4, %v12098_v6  ;;  %8537 = vmatmul.msk.f32.vlgmr.msra.gmra.mxu2 %vm617_vm4, %v12098_v6 }
 0xe80   : > { %3395 = vmatpush.msra.mxu3 %v8498_v11  ;;  %3415 = vmatpush.msrb.mxu0 %v8499_v13 }
 0xe82   : > { %3396 = vmatpush.msra.mxu3 %v8480_v14  ;;  %3416 = vmatpush.msrb.mxu0 %v8481_v16 }
 0xe84   : > { %3397 = vmatpush.msra.mxu3 %v8462_v9  ;;  %3417 = vmatpush.msrb.mxu0 %v8463_v17 }
 0xe86   : > { %3398 = vmatpush.msra.mxu3 %v8444_v18  ;;  %3418 = vmatpush.msrb.mxu0 %v8445_v19 }
 0xe88   : > { %3399 = vmatpush.msra.mxu3 %v8426_v20  ;;  %3419 = vmatpush.msrb.mxu0 %v8427_v21 }
 0xe8a   : > { %3400 = vmatpush.msra.mxu3 %v8408_v22  ;;  %3420 = vmatpush.msrb.mxu0 %v8409_v23 }
 0xe8c   : > { %3401 = vmatpush.msra.mxu3 %v8390_v24  ;;  %3421 = vmatpush.msrb.mxu0 %v8391_v25 }
 0xe8d   : > { %8534 = vmatmul.msk.f32.vlgmr.msra.gmra.mxu3 %vm617_vm4, %v12098_v6  ;;  %8535 = vmatmul.msk.f32.vlgmr.msrb.gmra.mxu0 %vm617_vm4, %v12098_v6 }
 0xed4   : > { %v3143_v26 = vpop.f32.mrf.mxu0 }
 0xed5   : > { %v3203_v27 = vpop.f32.mrf.mxu1 }
 0xeda   : > { %v3123_v28 = vpop.f32.mrf.mxu3 }
 0xedb   : > { %v3223_v29 = vpop.f32.mrf.mxu2 }
 0xede   : > { %v3183_v30 = vpop.f32.mrf.mxu0 }
 0xee0   : > { %v3283_v31 = vpop.f32.mrf.mxu1 }
 0xee4   : > { %v3163_v32 = vpop.f32.mrf.mxu3 }
 0xee6   : > { %v3303_v33 = vpop.f32.mrf.mxu2 }
 0xeea   : > { %v3263_v34 = vpop.f32.mrf.mxu0 }
 0xeeb   : > { %v3363_v35 = vpop.f32.mrf.mxu1  ;;  %3537 = vmatpush.xpose.msrb.mxu1 %v3263_v34  ;;  %v8557_v34 = vld [vmem:[%s15636_s6 + $0x668] sm:$0xff] }
 0xeec   : > { %3517 = vmatpush.msra.mxu0 %v3363_v35 }
 0xeee   : > { %3538 = vmatmul.f32.vlgmr.msrb.gmra.mxu1 %v3143_v26 }
 0xeef   : > { %3649 = vmatpush.xpose.msra.mxu1 %v3303_v33 }
 0xef0   : > { %v3243_v36 = vpop.f32.mrf.mxu3 }
 0xef1   : > { %v3383_v37 = vpop.f32.mrf.mxu2  ;;  %3481 = vmatpush.xpose.msrb.mxu3 %v3243_v36  ;;  %v8556_v36 = vld [vmem:[%s15636_s6 + $0x660] sm:$0xff] }
 0xef2   : > { %3573 = vmatpush.msrb.mxu2 %v3383_v37 }
 0xef4   : > { %3482 = vmatmul.f32.vlgmr.msrb.gmra.mxu3 %v3123_v28 }
 0xef5   : > { %3593 = vmatpush.xpose.msra.mxu3 %v3283_v31  ;;  %v8559_v31 = vld [vmem:[%s15636_s6 + $0x678] sm:$0xff] }
 0xef6   : > { %3650 = vmatmul.f32.vlgmr.msra.gmra.mxu1 %v3183_v30 }
 0xefa   : > { %v3343_v38 = vpop.f32.mrf.mxu0 }
 0xefb   : > { %3761 = vmatpush.xpose.msrb.mxu1 %v3343_v38  ;;  %v8555_v38 = vld [vmem:[%s15636_s6 + $0x658] sm:$0xff] }
 0xefc   : > { %3594 = vmatmul.f32.vlgmr.msra.gmra.mxu3 %v3163_v32  ;;  %v12376_v42 = vpop.f32.mrf.mxu1  ;;  %v8558_v32 = vld [vmem:[%s15636_s6 + $0x670] sm:$0xff] }
 0xefe   : > { %3762 = vmatmul.f32.vlgmr.msrb.gmra.mxu1 %v3223_v29 }
 0xf00   : > { %v3323_v39 = vpop.f32.mrf.mxu3 }
 0xf01   : > { %3705 = vmatpush.xpose.msrb.mxu3 %v3323_v39  ;;  %v8554_v39 = vld [vmem:[%s15636_s6 + $0x650] sm:$0xff] }
 0xf02   : > { %v3463_v35 = vpop.f32.mrf.mxu2 }
 0xf04   : > { %3706 = vmatmul.f32.vlgmr.msrb.gmra.mxu3 %v3203_v27 }
 0xf05   : > { %3899 = vmatpush.msra.mxu3 %v8559_v31  ;;  %v8563_v31 = vld [vmem:[%s15636_s6 + $0x698] sm:$0xff] }
 0xf07   : > { %3900 = vmatpush.msra.mxu3 %v8558_v32  ;;  %v8562_v32 = vld [vmem:[%s15636_s6 + $0x690] sm:$0xff] }
 0xf09   : > { %3901 = vmatpush.msra.mxu3 %v8557_v34  ;;  %v8560_v34 = vld [vmem:[%s15636_s6 + $0x680] sm:$0xff] }
 0xf0a   : > { %v3423_v40 = vpop.f32.mrf.mxu0 }
 0xf0b   : > { %3685 = vmatpush.msra.mxu2 %v3423_v40  ;;  %3902 = vmatpush.msra.mxu3 %v8556_v36  ;;  %v8591_v40 = vld [vmem:[%s15636_s6 + $0x778] sm:$0xff] }
 0xf0c   : > { %3939 = vmatpush.msra.mxu1 %v8591_v40  ;;  %v8583_v36 = vld [vmem:[%s15636_s6 + $0x738] sm:$0xff]  ;;  %v8582_v40 = vld [vmem:[%s15636_s6 + $0x730] sm:$0xff] }
 0xf0d   : > { %3903 = vmatpush.msra.mxu3 %v8555_v38  ;;  %v8619_v38 = vld [vmem:[%s15636_s6 + $0x858] sm:$0xff] }
 0xf0f   : > { %3904 = vmatpush.msra.mxu3 %v8554_v39  ;;  %v8638_v39 = vld [vmem:[%s15636_s6 + $0x8f0] sm:$0xff] }
 0xf10   : > { %v3403_v41 = vpop.f32.mrf.mxu3 }
 0xf11   : > { %3629 = vmatpush.msrb.mxu0 %v3403_v41  ;;  %v8553_v41 = vld [vmem:[%s15636_s6 + $0x648] sm:$0xff] }
 0xf12   : > { %3905 = vmatpush.msra.mxu3 %v8553_v41  ;;  %v8601_v41 = vld [vmem:[%s15636_s6 + $0x7c8] sm:$0xff] }
 0xf6b   : > { %v3539_v43 = vpop.f32.mrf.mxu1 }
 0xf6c   : > { %v3542_v44 = vmul.f32 0.088388346, %v3539_v43  ;;  %v8590_v43 = vld [vmem:[%s15636_s6 + $0x770] sm:$0xff] }
 0xf6d   : > { %3940 = vmatpush.msra.mxu1 %v8590_v43  ;;  %v8618_v43 = vld [vmem:[%s15636_s6 + $0x850] sm:$0xff] }
 0xf6e   : > { %v3543_v45 = vsel %vm1002_vm5, %v3542_v44, -inf }
 0xf6f   : > { %3544 = vmax.xlane.f32.xlu0 %v3543_v45  ;;  %v8552_v45 = vld [vmem:[%s15636_s6 + $0x640] sm:$0xff] }
 0xf70   : > { %3906 = vmatpush.msra.mxu3 %v8552_v45  ;;  %v8581_v45 = vld [vmem:[%s15636_s6 + $0x728] sm:$0xff] }
 0xf73   : > { %v3651_v15 = vpop.f32.mrf.mxu1 }
 0xf74   : > { %v3654_v50 = vmul.f32 0.088388346, %v3651_v15 }
 0xf76   : > { %v3655_v54 = vsel %vm1002_vm5, %v3654_v50, -inf }
 0xf77   : > { %v3483_v46 = vpop.f32.mrf.mxu3 }
 0xf78   : > { %v3486_v12 = vmul.f32 0.088388346, %v3483_v46  ;;  %v8589_v46 = vld [vmem:[%s15636_s6 + $0x768] sm:$0xff] }
 0xf79   : > { %3941 = vmatpush.msra.mxu1 %v8589_v46  ;;  %v8600_v46 = vld [vmem:[%s15636_s6 + $0x7c0] sm:$0xff] }
 0xf7a   : > { %v3487_v49 = vsel %vm1002_vm5, %v3486_v12, -inf }
 0xf7b   : > { %3488 = vmax.xlane.f32.xlu2 %v3487_v49  ;;  %v3763_v55 = vpop.f32.mrf.mxu1 }
 0xf7c   : > { %v3766_v56 = vmul.f32 0.088388346, %v3763_v55  ;;  %v8586_v55 = vld [vmem:[%s15636_s6 + $0x750] sm:$0xff] }
 0xf7e   : > { %v3767_v60 = vsel %vm1002_vm5, %v3766_v56, -inf }
 0xf7f   : > { %v3595_v51 = vpop.f32.mrf.mxu3 }
 0xf80   : > { %v3598_v52 = vmul.f32 0.088388346, %v3595_v51  ;;  %v8588_v51 = vld [vmem:[%s15636_s6 + $0x760] sm:$0xff] }
 0xf81   : > { %3942 = vmatpush.msra.mxu1 %v8588_v51  ;;  %v8616_v51 = vld [vmem:[%s15636_s6 + $0x840] sm:$0xff] }
 0xf82   : > { %v3599_v53 = vsel %vm1002_vm5, %v3598_v52, -inf }
 0xf83   : > { %3600 = vmax.xlane.f32.xlu1 %v3599_v53  ;;  %3656 = vmax.xlane.f32.xlu2 %v3655_v54  ;;  %v8587_v53 = vld [vmem:[%s15636_s6 + $0x758] sm:$0xff]  ;;  %v8549_v54 = vld [vmem:[%s15636_s6 + $0x628] sm:$0xff] }
 0xf84   : > { %3943 = vmatpush.msra.mxu1 %v8587_v53  ;;  %v8579_v53 = vld [vmem:[%s15636_s6 + $0x718] sm:$0xff] }
 0xf86   : > { %3944 = vmatpush.msra.mxu1 %v8586_v55  ;;  %v8615_v55 = vld [vmem:[%s15636_s6 + $0x838] sm:$0xff] }
 0xf87   : > { %v3707_v57 = vpop.f32.mrf.mxu3 }
 0xf88   : > { %v3710_v58 = vmul.f32 0.088388346, %v3707_v57  ;;  %v8585_v57 = vld [vmem:[%s15636_s6 + $0x748] sm:$0xff] }
 0xf89   : > { %3945 = vmatpush.msra.mxu1 %v8585_v57  ;;  %v8597_v57 = vld [vmem:[%s15636_s6 + $0x7a8] sm:$0xff] }
 0xf8a   : > { %v3711_v59 = vsel %vm1002_vm5, %v3710_v58, -inf }
 0xf8b   : > { %3712 = vmax.xlane.f32.xlu0 %v3711_v59  ;;  %3768 = vmax.xlane.f32.xlu1 %v3767_v60 }
 0xfe2   : > { %v3545_v47 = vpop.xlane.xlu0 %3544 }
 0xfe3   : > { %v3546_v61 = vsub.f32 %v3542_v44, %v3545_v47  ;;  %v8575_v47 = vld [vmem:[%s15636_s6 + $0x6f8] sm:$0xff] }
 0xfe5   : > { %v3547_v62 = vmul.f32 1.442695, %v3546_v61 }
 0xfe7   : > { %9688 = vpow2.f32 %v3547_v62 }
 0xfed   : > { %v9689_v63 = vpop.eup %9688 }
 0xfee   : > { %v3489_v0 = vpop.xlane.xlu2 %3488  ;;  %v3549_v1 = vsel %vm1002_vm5, %v9689_v63, 0.0 }
 0xfef   : > { %v3490_v2 = vsub.f32 %v3486_v12, %v3489_v0  ;;  %3550 = vadd.xlane.f32.xlu0 %v3549_v1  ;;  %v8607_v0 = vld [vmem:[%s15636_s6 + $0x7f8] sm:$0xff]  ;;  %v8574_v1 = vld [vmem:[%s15636_s6 + $0x6f0] sm:$0xff] }
 0xff1   : > { %v3491_v4 = vmul.f32 1.442695, %v3490_v2  ;;  %v8584_v2 = vld [vmem:[%s15636_s6 + $0x740] sm:$0xff] }
 0xff2   : > { %3946 = vmatpush.msra.mxu1 %v8584_v2  ;;  %v8631_v2 = vld [vmem:[%s15636_s6 + $0x8b8] sm:$0xff] }
 0xff3   : > { %9690 = vpow2.f32 %v3491_v4  ;;  %v8546_v4 = vld [vmem:[%s15636_s6 + $0x610] sm:$0xff] }
 0xff4   : > { %3947 = vmatpush.msra.mxu1 %v8583_v36 }
 0xff6   : > { %v3601_v5 = vpop.xlane.xlu1 %3600  ;;  %v3657_v7 = vpop.xlane.xlu2 %3656  ;;  %3948 = vmatpush.msra.mxu1 %v8582_v40 }
 0xff7   : > { %v3602_v8 = vsub.f32 %v3598_v52, %v3601_v5  ;;  %v3658_v10 = vsub.f32 %v3654_v50, %v3657_v7  ;;  %v8551_v50 = vld [vmem:[%s15636_s6 + $0x638] sm:$0xff]  ;;  %v8550_v52 = vld [vmem:[%s15636_s6 + $0x630] sm:$0xff]  ;;  %v8573_v7 = vld [vmem:[%s15636_s6 + $0x6e8] sm:$0xff] }
 0xff8   : > { %3907 = vmatpush.msra.mxu3 %v8551_v50  ;;  %v8606_v5 = vld [vmem:[%s15636_s6 + $0x7f0] sm:$0xff]  ;;  %3949 = vmatpush.msra.mxu1 %v8581_v45  ;;  %v8599_v50 = vld [vmem:[%s15636_s6 + $0x7b8] sm:$0xff] }
 0xff9   : > { %v9691_v3 = vpop.eup %9690  ;;  %v3603_v11 = vmul.f32 1.442695, %v3602_v8  ;;  %v3659_v13 = vmul.f32 1.442695, %v3658_v10  ;;  %v8545_v8 = vld [vmem:[%s15636_s6 + $0x608] sm:$0xff]  ;;  %v4057_v45 = vld [vmem:[#allocation2 + $0x178] sm:$0xff] }
 0xffa   : > { %v3493_v14 = vsel %vm1002_vm5, %v9691_v3, 0.0  ;;  %3908 = vmatpush.msra.mxu3 %v8550_v52  ;;  %v8605_v10 = vld [vmem:[%s15636_s6 + $0x7e8] sm:$0xff]  ;;  %v8635_v52 = vld [vmem:[%s15636_s6 + $0x8d8] sm:$0xff] }
 0xffb   : > { %9692 = vpow2.f32 %v3603_v11  ;;  %3494 = vadd.xlane.f32.xlu2 %v3493_v14 }
 0xffc   : > { %9694 = vpow2.f32 %v3659_v13  ;;  %3909 = vmatpush.msra.mxu3 %v8549_v54  ;;  %v8544_v13 = vld [vmem:[%s15636_s6 + $0x600] sm:$0xff]  ;;  %v8598_v54 = vld [vmem:[%s15636_s6 + $0x7b0] sm:$0xff] }
 0xffe   : > { %v3713_v16 = vpop.xlane.xlu0 %3712  ;;  %v3769_v9 = vpop.xlane.xlu1 %3768 }
 0xfff   : > { %v3714_v17 = vsub.f32 %v3710_v58, %v3713_v16  ;;  %v3770_v18 = vsub.f32 %v3766_v56, %v3769_v9  ;;  %v8548_v56 = vld [vmem:[%s15636_s6 + $0x620] sm:$0xff]  ;;  %v8571_v9 = vld [vmem:[%s15636_s6 + $0x6d8] sm:$0xff] }
0x1000   : > { %3910 = vmatpush.msra.mxu3 %v8548_v56  ;;  %v8578_v56 = vld [vmem:[%s15636_s6 + $0x710] sm:$0xff] }
0x1001   : > { %v12386_v19 = vpop.eup %9692  ;;  %v3715_v20 = vmul.f32 1.442695, %v3714_v17  ;;  %v3771_v21 = vmul.f32 1.442695, %v3770_v18  ;;  %v8623_v18 = vld [vmem:[%s15636_s6 + $0x878] sm:$0xff] }
0x1002   : > { %v12388_v22 = vpop.eup %9694  ;;  %v3605_v23 = vsel %vm1002_vm5, %v12386_v19, 0.0 }
0x1003   : > { %9696 = vpow2.f32 %v3715_v20  ;;  %3606 = vadd.xlane.f32.xlu1 %v3605_v23  ;;  %v3661_v24 = vsel %vm1002_vm5, %v12388_v22, 0.0  ;;  %v8570_v20 = vld [vmem:[%s15636_s6 + $0x6d0] sm:$0xff]  ;;  %v8569_v23 = vld [vmem:[%s15636_s6 + $0x6c8] sm:$0xff] }
0x1004   : > { %9698 = vpow2.f32 %v3771_v21  ;;  %3662 = vadd.xlane.f32.xlu2 %v3661_v24  ;;  %v8622_v21 = vld [vmem:[%s15636_s6 + $0x870] sm:$0xff]  ;;  %v8621_v24 = vld [vmem:[%s15636_s6 + $0x868] sm:$0xff] }
0x1009   : > { %v12394_v25 = vpop.eup %9696 }
0x100a   : > { %v12396_v26 = vpop.eup %9698  ;;  %v3717_v27 = vsel %vm1002_vm5, %v12394_v25, 0.0 }
0x100b   : > { %3718 = vadd.xlane.f32.xlu0 %v3717_v27  ;;  %v3773_v28 = vsel %vm1002_vm5, %v12396_v26, 0.0  ;;  %v8567_v27 = vld [vmem:[%s15636_s6 + $0x6b8] sm:$0xff] }
0x100c   : > { %3774 = vadd.xlane.f32.xlu1 %v3773_v28  ;;  %v8566_v28 = vld [vmem:[%s15636_s6 + $0x6b0] sm:$0xff] }
0x1062   : > { %v3551_v29 = vpop.xlane.xlu0 %3550 }
0x1063   : > { %9700 = vrcp.f32 %v3551_v29  ;;  %v8565_v29 = vld [vmem:[%s15636_s6 + $0x6a8] sm:$0xff] }
0x1069   : > { %v9701_v30 = vpop.eup %9700 }
0x106a   : > { %v3553_v33 = vmul.f32 %v9701_v30, %v9689_v63  ;;  %v8547_v63 = vld [vmem:[%s15636_s6 + $0x618] sm:$0xff]  ;;  %v8564_v30 = vld [vmem:[%s15636_s6 + $0x6a0] sm:$0xff] }
0x106b   : > { %3911 = vmatpush.msra.mxu3 %v8547_v63  ;;  %v8576_v63 = vld [vmem:[%s15636_s6 + $0x700] sm:$0xff] }
0x106c   : > { %3554 = vst.msk [vmem:[%s10550_s27 + $0x68] sm:$0xff] %vm1002_vm5, %v3553_v33  ;;  %8539 = vmatmul.msk.f32.vlgmr.msrb.gmra.mxu2 %vm1002_vm5, %v3553_v33  ;;  %v8561_v33 = vld [vmem:[%s15636_s6 + $0x688] sm:$0xff] }
0x106d   : > { %3797 = vmatpush.msrb.mxu2 %v3463_v35  ;;  %3912 = vmatpush.msra.mxu3 %v8546_v4  ;;  %v8639_v35 = vld [vmem:[%s15636_s6 + $0x8f8] sm:$0xff]  ;;  %v8594_v4 = vld [vmem:[%s15636_s6 + $0x790] sm:$0xff] }
0x106e   : > { %v3495_v37 = vpop.xlane.xlu2 %3494 }
0x106f   : > { %9702 = vrcp.f32 %v3495_v37  ;;  %3913 = vmatpush.msra.mxu3 %v8545_v8  ;;  %v8602_v37 = vld [vmem:[%s15636_s6 + $0x7d0] sm:$0xff]  ;;  %v8593_v8 = vld [vmem:[%s15636_s6 + $0x788] sm:$0xff] }
0x1071   : > { %3914 = vmatpush.msra.mxu3 %v8544_v13  ;;  %v8609_v13 = vld [vmem:[%s15636_s6 + $0x808] sm:$0xff] }
0x1073   : > { %3979 = vmatpush.msrb.mxu3 %v8623_v18  ;;  %v8625_v18 = vld [vmem:[%s15636_s6 + $0x888] sm:$0xff] }
0x1075   : > { %v9703_v44 = vpop.eup %9702  ;;  %3980 = vmatpush.msrb.mxu3 %v8622_v21 }
0x1076   : > { %v3497_v12 = vmul.f32 %v9703_v44, %v9691_v3  ;;  %v3607_v15 = vpop.xlane.xlu1 %3606  ;;  %v8572_v3 = vld [vmem:[%s15636_s6 + $0x6e0] sm:$0xff]  ;;  %v8637_v44 = vld [vmem:[%s15636_s6 + $0x8e8] sm:$0xff] }
0x1077   : > { %9704 = vrcp.f32 %v3607_v15  ;;  %v3663_v49 = vpop.xlane.xlu2 %3662  ;;  %3981 = vmatpush.msrb.mxu3 %v8621_v24  ;;  %v8636_v15 = vld [vmem:[%s15636_s6 + $0x8e0] sm:$0xff] }
0x1078   : > { %3498 = vst.msk [vmem:[%s10550_s27 + $0x60] sm:$0xff] %vm1002_vm5, %v3497_v12  ;;  %9706 = vrcp.f32 %v3663_v49  ;;  %8538 = vmatmul.msk.f32.vlgmr.msra.gmra.mxu0 %vm1002_vm5, %v3497_v12  ;;  %v8617_v12 = vld [vmem:[%s15636_s6 + $0x848] sm:$0xff]  ;;  %v8580_v49 = vld [vmem:[%s15636_s6 + $0x720] sm:$0xff] }
0x1079   : > { %3741 = vmatpush.msra.mxu0 %v12376_v42  ;;  %3950 = vmatpush.msra.mxu1 %v8580_v49  ;;  %v4053_v49 = vld [vmem:[#allocation2 + $0x158] sm:$0xff] }
0x107b   : > { %3951 = vmatpush.msra.mxu1 %v8579_v53  ;;  %v4049_v53 = vld [vmem:[#allocation2 + $0x138] sm:$0xff] }
0x107d   : > { %v9705_v42 = vpop.eup %9704  ;;  %3952 = vmatpush.msra.mxu1 %v8578_v56  ;;  %v4045_v56 = vld [vmem:[#allocation2 + $0x118] sm:$0xff] }
0x107e   : > { %v9707_v58 = vpop.eup %9706  ;;  %v3609_v59 = vmul.f32 %v9705_v42, %v12386_v19  ;;  %v3719_v60 = vpop.xlane.xlu0 %3718  ;;  %v8604_v19 = vld [vmem:[%s15636_s6 + $0x7e0] sm:$0xff]  ;;  %v8634_v42 = vld [vmem:[%s15636_s6 + $0x8d0] sm:$0xff] }
0x107f   : > { %v3665_v61 = vmul.f32 %v9707_v58, %v12388_v22  ;;  %9708 = vrcp.f32 %v3719_v60  ;;  %v3775_v62 = vpop.xlane.xlu1 %3774  ;;  %v8603_v22 = vld [vmem:[%s15636_s6 + $0x7d8] sm:$0xff]  ;;  %v8614_v58 = vld [vmem:[%s15636_s6 + $0x830] sm:$0xff]  ;;  %v8577_v60 = vld [vmem:[%s15636_s6 + $0x708] sm:$0xff] }
0x1080   : > { %3610 = vst.msk [vmem:[%s10550_s27 + $0x70] sm:$0xff] %vm1002_vm5, %v3609_v59  ;;  %9710 = vrcp.f32 %v3775_v62  ;;  %8540 = vmatmul.msk.f32.vlgmr.msrb.gmra.mxu0 %vm1002_vm5, %v3609_v59  ;;  %v8633_v59 = vld [vmem:[%s15636_s6 + $0x8c8] sm:$0xff]  ;;  %v8632_v62 = vld [vmem:[%s15636_s6 + $0x8c0] sm:$0xff]  ;;  %3953 = vmatpush.msra.mxu1 %v8577_v60  ;;  %v8673_v60 = vld [vmem:[%s15638_s8 + $0x2f8] sm:$0xff] }
0x1081   : > { %3666 = vst.msk [vmem:[%s10550_s27 + $0x78] sm:$0xff] %vm1002_vm5, %v3665_v61  ;;  %8541 = vmatmul.msk.f32.vlgmr.msra.gmra.mxu2 %vm1002_vm5, %v3665_v61  ;;  %3919 = vmatpush.msrb.mxu0 %v8575_v47  ;;  %v8596_v47 = vld [vmem:[%s15636_s6 + $0x7a0] sm:$0xff]  ;;  %v8613_v61 = vld [vmem:[%s15636_s6 + $0x828] sm:$0xff] }
0x1082   : > { %3959 = vmatpush.msra.mxu2 %v8607_v0  ;;  %v8595_v0 = vld [vmem:[%s15636_s6 + $0x798] sm:$0xff]  ;;  %3954 = vmatpush.msra.mxu1 %v8576_v63  ;;  %v8671_v63 = vld [vmem:[%s15638_s8 + $0x2e8] sm:$0xff] }
0x1083   : > { %3920 = vmatpush.msrb.mxu0 %v8574_v1  ;;  %v8612_v1 = vld [vmem:[%s15636_s6 + $0x820] sm:$0xff] }
0x1084   : > { %3960 = vmatpush.msra.mxu2 %v8606_v5  ;;  %v8611_v5 = vld [vmem:[%s15636_s6 + $0x818] sm:$0xff] }
0x1085   : > { %v9709_v11 = vpop.eup %9708  ;;  %3921 = vmatpush.msrb.mxu0 %v8573_v7  ;;  %v8630_v7 = vld [vmem:[%s15636_s6 + $0x8b0] sm:$0xff] }
0x1086   : > { %v9711_v14 = vpop.eup %9710  ;;  %v3721_v16 = vmul.f32 %v9709_v11, %v12394_v25  ;;  %3961 = vmatpush.msra.mxu2 %v8605_v10  ;;  %v8568_v25 = vld [vmem:[%s15636_s6 + $0x6c0] sm:$0xff]  ;;  %v8610_v10 = vld [vmem:[%s15636_s6 + $0x810] sm:$0xff] }
0x1087   : > { %v3777_v17 = vmul.f32 %v9711_v14, %v12396_v26  ;;  %3922 = vmatpush.msrb.mxu0 %v8572_v3  ;;  %v8620_v26 = vld [vmem:[%s15636_s6 + $0x860] sm:$0xff]  ;;  %v8629_v3 = vld [vmem:[%s15636_s6 + $0x8a8] sm:$0xff] }
0x1088   : > { %3722 = vst.msk [vmem:[%s10550_s27 + $0x80] sm:$0xff] %vm1002_vm5, %v3721_v16  ;;  %8542 = vmatmul.msk.f32.vlgmr.msra.gmra.mxu0 %vm1002_vm5, %v3721_v16  ;;  %3962 = vmatpush.msra.mxu2 %v8604_v19  ;;  %v8592_v11 = vld [vmem:[%s15636_s6 + $0x780] sm:$0xff] }
0x1089   : > { %3778 = vst.msk [vmem:[%s10550_s27 + $0x88] sm:$0xff] %vm1002_vm5, %v3777_v17  ;;  %8543 = vmatmul.msk.f32.vlgmr.msrb.gmra.mxu2 %vm1002_vm5, %v3777_v17  ;;  %3923 = vmatpush.msrb.mxu0 %v8571_v9  ;;  %v8628_v14 = vld [vmem:[%s15636_s6 + $0x8a0] sm:$0xff]  ;;  %v8627_v9 = vld [vmem:[%s15636_s6 + $0x898] sm:$0xff]  ;;  %v8626_v17 = vld [vmem:[%s15636_s6 + $0x890] sm:$0xff] }
0x108a   : > { %3963 = vmatpush.msra.mxu2 %v8603_v22  ;;  %3982 = vmatpush.msrb.mxu3 %v8620_v26  ;;  %v8608_v16 = vld [vmem:[%s15636_s6 + $0x800] sm:$0xff] }
0x108b   : > { %3924 = vmatpush.msrb.mxu0 %v8570_v20  ;;  %v8624_v19 = vld [vmem:[%s15636_s6 + $0x880] sm:$0xff] }
0x108c   : > { %3964 = vmatpush.msra.mxu2 %v8602_v37  ;;  %3983 = vmatpush.msrb.mxu3 %v8619_v38 }
0x108d   : > { %3925 = vmatpush.msrb.mxu0 %v8569_v23 }
0x108e   : > { %3965 = vmatpush.msra.mxu2 %v8601_v41  ;;  %3984 = vmatpush.msrb.mxu3 %v8618_v43 }
0x108f   : > { %3926 = vmatpush.msrb.mxu0 %v8568_v25 }
0x1090   : > { %3966 = vmatpush.msra.mxu2 %v8600_v46  ;;  %3985 = vmatpush.msrb.mxu3 %v8617_v12  ;;  %v4054_v46 = vld [vmem:[#allocation2 + $0x160] sm:$0xff]  ;;  %v4055_v12 = vld [vmem:[#allocation2 + $0x168] sm:$0xff] }
0x1091   : > { %3927 = vmatpush.msrb.mxu0 %v8567_v27 }
0x1092   : > { %3967 = vmatpush.msra.mxu2 %v8599_v50  ;;  %3986 = vmatpush.msrb.mxu3 %v8616_v51  ;;  %v4050_v50 = vld [vmem:[#allocation2 + $0x140] sm:$0xff]  ;;  %v4051_v51 = vld [vmem:[#allocation2 + $0x148] sm:$0xff] }
0x1093   : > { %3928 = vmatpush.msrb.mxu0 %v8566_v28 }
0x1094   : > { %3968 = vmatpush.msra.mxu2 %v8598_v54  ;;  %3987 = vmatpush.msrb.mxu3 %v8615_v55  ;;  %v4046_v54 = vld [vmem:[#allocation2 + $0x120] sm:$0xff]  ;;  %v4047_v55 = vld [vmem:[#allocation2 + $0x128] sm:$0xff] }
0x1095   : > { %3929 = vmatpush.msrb.mxu0 %v8565_v29 }
0x1096   : > { %3969 = vmatpush.msra.mxu2 %v8597_v57  ;;  %3988 = vmatpush.msrb.mxu3 %v8614_v58  ;;  %v4042_v57 = vld [vmem:[#allocation2 + $0x100] sm:$0xff]  ;;  %v4043_v58 = vld [vmem:[#allocation2 + $0x108] sm:$0xff] }
0x1097   : > { %3930 = vmatpush.msrb.mxu0 %v8564_v30 }
0x1098   : > { %3970 = vmatpush.msra.mxu2 %v8596_v47  ;;  %3989 = vmatpush.msrb.mxu3 %v8613_v61  ;;  %v8656_v47 = vld [vmem:[%s15638_s8 + $0x270] sm:$0xff] }
0x1099   : > { %3931 = vmatpush.msrb.mxu0 %v8563_v31  ;;  %v8672_v61 = vld [vmem:[%s15638_s8 + $0x2f0] sm:$0xff] }
0x109a   : > { %3971 = vmatpush.msra.mxu2 %v8595_v0  ;;  %3990 = vmatpush.msrb.mxu3 %v8612_v1  ;;  %v8654_v0 = vld [vmem:[%s15638_s8 + $0x260] sm:$0xff] }
0x109b   : > { %3932 = vmatpush.msrb.mxu0 %v8562_v32  ;;  %v8670_v1 = vld [vmem:[%s15638_s8 + $0x2e0] sm:$0xff] }
0x109c   : > { %3972 = vmatpush.msra.mxu2 %v8594_v4  ;;  %3991 = vmatpush.msrb.mxu3 %v8611_v5  ;;  %v8653_v5 = vld [vmem:[%s15638_s8 + $0x258] sm:$0xff] }
0x109d   : > { %3933 = vmatpush.msrb.mxu0 %v8561_v33 }
0x109e   : > { %3973 = vmatpush.msra.mxu2 %v8593_v8  ;;  %3992 = vmatpush.msrb.mxu3 %v8610_v10  ;;  %v8652_v10 = vld [vmem:[%s15638_s8 + $0x250] sm:$0xff] }
0x109f   : > { %3934 = vmatpush.msrb.mxu0 %v8560_v34 }
0x10a0   : > { %3974 = vmatpush.msra.mxu2 %v8592_v11  ;;  %3993 = vmatpush.msrb.mxu3 %v8609_v13  ;;  %v8651_v11 = vld [vmem:[%s15638_s8 + $0x248] sm:$0xff] }
0x10a1   : > { %3999 = vmatpush.msra.mxu0 %v8639_v35  ;;  %v8667_v13 = vld [vmem:[%s15638_s8 + $0x2c8] sm:$0xff] }
0x10a2   : > { %3994 = vmatpush.msrb.mxu3 %v8608_v16  ;;  %4089 = vmatpush.msrb.mxu2 %v4057_v45  ;;  %v8666_v16 = vld [vmem:[%s15638_s8 + $0x2c0] sm:$0xff] }
0x10a3   : > { %4000 = vmatpush.msra.mxu0 %v8638_v39 }
0x10a4   : > { %4090 = vmatpush.msrb.mxu2 %v4055_v12 }
0x10a5   : > { %4001 = vmatpush.msra.mxu0 %v8637_v44  ;;  %v4056_v44 = vld [vmem:[#allocation2 + $0x170] sm:$0xff] }
0x10a6   : > { %4069 = vmatpush.msrb.mxu1 %v4056_v44  ;;  %4091 = vmatpush.msrb.mxu2 %v4053_v49  ;;  %v8800_v49 = vld [vmem:[%s15635_s5 + $0x1170] sm:$0xff] }
0x10a7   : > { %4002 = vmatpush.msra.mxu0 %v8636_v15  ;;  %v4052_v15 = vld [vmem:[#allocation2 + $0x150] sm:$0xff] }
0x10a8   : > { %4070 = vmatpush.msrb.mxu1 %v4054_v46  ;;  %4092 = vmatpush.msrb.mxu2 %v4051_v51  ;;  %v8804_v51 = vld [vmem:[%s15635_s5 + $0x1190] sm:$0xff] }
0x10a9   : > { %4003 = vmatpush.msra.mxu0 %v8635_v52  ;;  %v4048_v52 = vld [vmem:[#allocation2 + $0x130] sm:$0xff] }
0x10aa   : > { %4071 = vmatpush.msrb.mxu1 %v4052_v15  ;;  %4093 = vmatpush.msrb.mxu2 %v4049_v53  ;;  %v8782_v53 = vld [vmem:[%s15635_s5 + $0x10e0] sm:$0xff] }
0x10ab   : > { %4004 = vmatpush.msra.mxu0 %v8634_v42  ;;  %v4044_v42 = vld [vmem:[#allocation2 + $0x110] sm:$0xff] }
0x10ac   : > { %4072 = vmatpush.msrb.mxu1 %v4050_v50  ;;  %4094 = vmatpush.msrb.mxu2 %v4047_v55  ;;  %v8801_v50 = vld [vmem:[%s15635_s5 + $0x1178] sm:$0xff]  ;;  %v8786_v55 = vld [vmem:[%s15635_s5 + $0x1100] sm:$0xff] }
0x10ad   : > { %4005 = vmatpush.msra.mxu0 %v8633_v59  ;;  %v8657_v59 = vld [vmem:[%s15638_s8 + $0x278] sm:$0xff] }
0x10ae   : > { %4073 = vmatpush.msrb.mxu1 %v4048_v52  ;;  %4095 = vmatpush.msrb.mxu2 %v4045_v56  ;;  %v8805_v52 = vld [vmem:[%s15635_s5 + $0x1198] sm:$0xff]  ;;  %v8764_v56 = vld [vmem:[%s15635_s5 + $0x1050] sm:$0xff] }
0x10af   : > { %4006 = vmatpush.msra.mxu0 %v8632_v62  ;;  %v8655_v62 = vld [vmem:[%s15638_s8 + $0x268] sm:$0xff] }
0x10b0   : > { %4074 = vmatpush.msrb.mxu1 %v4046_v54  ;;  %4096 = vmatpush.msrb.mxu2 %v4043_v58  ;;  %v8783_v54 = vld [vmem:[%s15635_s5 + $0x10e8] sm:$0xff]  ;;  %v8768_v58 = vld [vmem:[%s15635_s5 + $0x1070] sm:$0xff] }
0x10b1   : > { %4007 = vmatpush.msra.mxu0 %v8631_v2 }
0x10b2   : > { %4075 = vmatpush.msrb.mxu1 %v4044_v42  ;;  %v8787_v42 = vld [vmem:[%s15635_s5 + $0x1108] sm:$0xff] }
0x10b3   : > { %4008 = vmatpush.msra.mxu0 %v8630_v7  ;;  %v8669_v7 = vld [vmem:[%s15638_s8 + $0x2d8] sm:$0xff] }
0x10b4   : > { %4076 = vmatpush.msrb.mxu1 %v4042_v57  ;;  %v8765_v57 = vld [vmem:[%s15635_s5 + $0x1058] sm:$0xff] }
0x10b5   : > { %4009 = vmatpush.msra.mxu0 %v8629_v3  ;;  %v8668_v3 = vld [vmem:[%s15638_s8 + $0x2d0] sm:$0xff] }
0x10b7   : > { %4010 = vmatpush.msra.mxu0 %v8628_v14  ;;  %v8650_v14 = vld [vmem:[%s15638_s8 + $0x240] sm:$0xff] }
0x10b9   : > { %4011 = vmatpush.msra.mxu0 %v8627_v9  ;;  %v8649_v9 = vld [vmem:[%s15638_s8 + $0x238] sm:$0xff] }
0x10bb   : > { %4012 = vmatpush.msra.mxu0 %v8626_v17  ;;  %v8665_v17 = vld [vmem:[%s15638_s8 + $0x2b8] sm:$0xff] }
0x10bd   : > { %4013 = vmatpush.msra.mxu0 %v8625_v18 }
0x10bf   : > { %4014 = vmatpush.msra.mxu0 %v8624_v19  ;;  %v8648_v19 = vld [vmem:[%s15638_s8 + $0x230] sm:$0xff] }
0x10ef   : > { %v3575_v20 = vpop.f32.mrf.mxu2 }
0x10f0   : > { %3935 = vmatmul.f32.vlgmr.msrb.gmra.mxu0 %v3575_v20  ;;  %v8664_v20 = vld [vmem:[%s15638_s8 + $0x2b0] sm:$0xff] }
0x10f1   : > { %4374 = vmatpush.msrb.mxu0 %v8801_v50  ;;  %v8701_v50 = vld [vmem:[%s15635_s5 + $0xe58] sm:$0xff] }
0x10f3   : > { %4375 = vmatpush.msrb.mxu0 %v8783_v54  ;;  %v8683_v54 = vld [vmem:[%s15635_s5 + $0xdc8] sm:$0xff] }
0x10f5   : > { %v3519_v21 = vpop.f32.mrf.mxu0  ;;  %4376 = vmatpush.msrb.mxu0 %v8765_v57 }
0x10f6   : > { %3915 = vmatmul.f32.vlgmr.msra.gmra.mxu3 %v3519_v21 }
0x10f7   : > { %4354 = vmatpush.msra.mxu3 %v8800_v49  ;;  %v8700_v49 = vld [vmem:[%s15635_s5 + $0xe50] sm:$0xff] }
0x10f9   : > { %4355 = vmatpush.msra.mxu3 %v8782_v53  ;;  %v8682_v53 = vld [vmem:[%s15635_s5 + $0xdc0] sm:$0xff] }
0x10fb   : > { %4356 = vmatpush.msra.mxu3 %v8764_v56 }
0x10fd   : > { %v3631_v22 = vpop.f32.mrf.mxu0 }
0x10fe   : > { %3955 = vmatmul.f32.vlgmr.msra.gmra.mxu1 %v3631_v22  ;;  %v8647_v22 = vld [vmem:[%s15638_s8 + $0x228] sm:$0xff] }
0x10ff   : > { %4136 = vmatpush.msra.mxu1 %v8657_v59  ;;  %v8769_v59 = vld [vmem:[%s15635_s5 + $0x1078] sm:$0xff] }
0x1101   : > { %4137 = vmatpush.msra.mxu1 %v8656_v47 }
0x1103   : > { %4138 = vmatpush.msra.mxu1 %v8655_v62 }
0x1104   : > { %v3687_v23 = vpop.f32.mrf.mxu2 }
0x1105   : > { %3975 = vmatmul.f32.vlgmr.msra.gmra.mxu2 %v3687_v23  ;;  %v3743_v24 = vpop.f32.mrf.mxu0  ;;  %4139 = vmatpush.msra.mxu1 %v8654_v0  ;;  %v8663_v23 = vld [vmem:[%s15638_s8 + $0x2a8] sm:$0xff]  ;;  %v8746_v0 = vld [vmem:[%s15635_s5 + $0xfc0] sm:$0xff] }
0x1106   : > { %3995 = vmatmul.f32.vlgmr.msrb.gmra.mxu3 %v3743_v24  ;;  %4156 = vmatpush.msra.mxu2 %v8673_v60 }
0x1107   : > { %4140 = vmatpush.msra.mxu1 %v8653_v5  ;;  %4357 = vmatpush.msra.mxu3 %v8746_v0  ;;  %v8728_v5 = vld [vmem:[%s15635_s5 + $0xf30] sm:$0xff] }
0x1108   : > { %4157 = vmatpush.msra.mxu2 %v8672_v61 }
0x1109   : > { %4141 = vmatpush.msra.mxu1 %v8652_v10  ;;  %4358 = vmatpush.msra.mxu3 %v8728_v5  ;;  %v8733_v10 = vld [vmem:[%s15635_s5 + $0xf58] sm:$0xff]  ;;  %v8788_v5 = vld [vmem:[%s15635_s5 + $0x1110] sm:$0xff] }
0x110a   : > { %4158 = vmatpush.msra.mxu2 %v8671_v63 }
0x110b   : > { %4142 = vmatpush.msra.mxu1 %v8651_v11  ;;  %v8711_v11 = vld [vmem:[%s15635_s5 + $0xea8] sm:$0xff] }
0x110c   : > { %v3799_v25 = vpop.f32.mrf.mxu2  ;;  %4159 = vmatpush.msra.mxu2 %v8670_v1  ;;  %v8747_v1 = vld [vmem:[%s15635_s5 + $0xfc8] sm:$0xff] }
0x110d   : > { %4015 = vmatmul.f32.vlgmr.msra.gmra.mxu0 %v3799_v25  ;;  %4143 = vmatpush.msra.mxu1 %v8650_v14  ;;  %v8646_v25 = vld [vmem:[%s15638_s8 + $0x220] sm:$0xff]  ;;  %v8715_v14 = vld [vmem:[%s15635_s5 + $0xec8] sm:$0xff] }
0x110e   : > { %4160 = vmatpush.msra.mxu2 %v8669_v7  ;;  %4377 = vmatpush.msrb.mxu0 %v8747_v1  ;;  %v8729_v7 = vld [vmem:[%s15635_s5 + $0xf38] sm:$0xff]  ;;  %v8806_v1 = vld [vmem:[%s15635_s5 + $0x11a0] sm:$0xff] }
0x110f   : > { %4144 = vmatpush.msra.mxu1 %v8649_v9  ;;  %v8693_v9 = vld [vmem:[%s15635_s5 + $0xe18] sm:$0xff] }
0x1110   : > { %4161 = vmatpush.msra.mxu2 %v8668_v3  ;;  %4378 = vmatpush.msrb.mxu0 %v8729_v7  ;;  %v8710_v3 = vld [vmem:[%s15635_s5 + $0xea0] sm:$0xff]  ;;  %v8789_v7 = vld [vmem:[%s15635_s5 + $0x1118] sm:$0xff] }
0x1111   : > { %4145 = vmatpush.msra.mxu1 %v8648_v19  ;;  %4359 = vmatpush.msra.mxu3 %v8710_v3  ;;  %v8674_v19 = vld [vmem:[%s15635_s5 + $0xd80] sm:$0xff] }
0x1112   : > { %4162 = vmatpush.msra.mxu2 %v8667_v13  ;;  %v8714_v13 = vld [vmem:[%s15635_s5 + $0xec0] sm:$0xff]  ;;  %4379 = vmatpush.msrb.mxu0 %v8711_v11  ;;  %v8771_v11 = vld [vmem:[%s15635_s5 + $0x1088] sm:$0xff] }
0x1113   : > { %4146 = vmatpush.msra.mxu1 %v8647_v22  ;;  %v8679_v22 = vld [vmem:[%s15635_s5 + $0xda8] sm:$0xff]  ;;  %v8770_v3 = vld [vmem:[%s15635_s5 + $0x1080] sm:$0xff] }
0x1114   : > { %4163 = vmatpush.msra.mxu2 %v8666_v16  ;;  %v8692_v16 = vld [vmem:[%s15635_s5 + $0xe10] sm:$0xff]  ;;  %4380 = vmatpush.msrb.mxu0 %v8693_v9  ;;  %v8753_v9 = vld [vmem:[%s15635_s5 + $0xff8] sm:$0xff] }
0x1115   : > { %4147 = vmatpush.msra.mxu1 %v8646_v25  ;;  %4360 = vmatpush.msra.mxu3 %v8692_v16  ;;  %v8808_v25 = vld [vmem:[%s15635_s5 + $0x11b0] sm:$0xff] }
0x1116   : > { %4164 = vmatpush.msra.mxu2 %v8665_v17  ;;  %v8696_v17 = vld [vmem:[%s15635_s5 + $0xe30] sm:$0xff] }
0x1117   : > { %4361 = vmatpush.msra.mxu3 %v8674_v19  ;;  %v8752_v16 = vld [vmem:[%s15635_s5 + $0xff0] sm:$0xff]  ;;  %v8734_v19 = vld [vmem:[%s15635_s5 + $0xf60] sm:$0xff] }
0x1118   : > { %4165 = vmatpush.msra.mxu2 %v8664_v20  ;;  %v8675_v20 = vld [vmem:[%s15635_s5 + $0xd88] sm:$0xff] }
0x1119   : > { %4381 = vmatpush.msrb.mxu0 %v8675_v20  ;;  %v8735_v20 = vld [vmem:[%s15635_s5 + $0xf68] sm:$0xff] }
0x111a   : > { %4166 = vmatpush.msra.mxu2 %v8663_v23  ;;  %v8802_v23 = vld [vmem:[%s15635_s5 + $0x1180] sm:$0xff] }
0x111b   : > { %4394 = vmatpush.msrb.mxu3 %v8802_v23  ;;  %v8716_v23 = vld [vmem:[%s15635_s5 + $0xed0] sm:$0xff] }
0x116d   : > { %v3936_v28 = vpop.f32.mrf.mxu0 }
0x1179   : > { %v3916_v26 = vpop.f32.mrf.mxu3 }
0x117a   : > { %v3917_v27 = vadd.f32 %v3916_v26, %v12098_v6 }
0x117b   : > { %v3956_v30 = vpop.f32.mrf.mxu1 }
0x117c   : > { %v3937_v29 = vadd.f32 %v3936_v28, %v3917_v27  ;;  %v8645_v27 = vld [vmem:[%s15638_s8 + $0x218] sm:$0xff] }
0x117d   : > { %4148 = vmatpush.msra.mxu1 %v8645_v27  ;;  %v8784_v27 = vld [vmem:[%s15635_s5 + $0x10f0] sm:$0xff] }
0x117e   : > { %v3957_v31 = vadd.f32 %v3956_v30, %v3937_v29  ;;  %v8644_v29 = vld [vmem:[%s15638_s8 + $0x210] sm:$0xff]  ;;  %4395 = vmatpush.msrb.mxu3 %v8784_v27  ;;  %v8698_v27 = vld [vmem:[%s15635_s5 + $0xe40] sm:$0xff] }
0x117f   : > { %4149 = vmatpush.msra.mxu1 %v8644_v29  ;;  %v8790_v29 = vld [vmem:[%s15635_s5 + $0x1120] sm:$0xff] }
0x1188   : > { %v3976_v32 = vpop.f32.mrf.mxu2 }
0x1189   : > { %v3977_v33 = vadd.f32 %v3976_v32, %v3957_v31  ;;  %v3996_v34 = vpop.f32.mrf.mxu3 }
0x118a   : > { %v4016_v36 = vpop.f32.mrf.mxu0 }
0x118b   : > { %v3997_v35 = vadd.f32 %v3996_v34, %v3977_v33  ;;  %v8643_v33 = vld [vmem:[%s15638_s8 + $0x208] sm:$0xff]  ;;  %v8662_v34 = vld [vmem:[%s15638_s8 + $0x2a0] sm:$0xff] }
0x118c   : > { %4150 = vmatpush.msra.mxu1 %v8643_v33  ;;  %4167 = vmatpush.msra.mxu2 %v8662_v34  ;;  %v8772_v33 = vld [vmem:[%s15635_s5 + $0x1090] sm:$0xff]  ;;  %v8773_v34 = vld [vmem:[%s15635_s5 + $0x1098] sm:$0xff] }
0x118d   : > { %v4017_v37 = vadd.f32 %v4016_v36, %v3997_v35  ;;  %v8642_v35 = vld [vmem:[%s15638_s8 + $0x200] sm:$0xff]  ;;  %v8661_v36 = vld [vmem:[%s15638_s8 + $0x298] sm:$0xff] }
0x118e   : > { %4151 = vmatpush.msra.mxu1 %v8642_v35  ;;  %4168 = vmatpush.msra.mxu2 %v8661_v36  ;;  %v8748_v35 = vld [vmem:[%s15635_s5 + $0xfd0] sm:$0xff]  ;;  %v8749_v36 = vld [vmem:[%s15635_s5 + $0xfd8] sm:$0xff] }
0x118f   : > { %v4019_v38 = vsel %vm617_vm4, %v4017_v37, 0.0 }
0x1190   : > { %4020 = vadd.xlane.f32.xlu2 %v4019_v38  ;;  %v8659_v38 = vld [vmem:[%s15638_s8 + $0x288] sm:$0xff] }
0x1203   : > { %v4021_v39 = vpop.xlane.xlu2 %4020 }
0x1204   : > { %v4022_v40 = vmul.f32 %v4021_v39, %v10865_v48  ;;  %v8658_v39 = vld [vmem:[%s15638_s8 + $0x280] sm:$0xff] }
0x1206   : > { %v12716_v41 = vsub.f32 %v4017_v37, %v4022_v40  ;;  %v8660_v37 = vld [vmem:[%s15638_s8 + $0x290] sm:$0xff] }
0x1207   : > { %4169 = vmatpush.msra.mxu2 %v8660_v37  ;;  %v8754_v37 = vld [vmem:[%s15635_s5 + $0x1000] sm:$0xff] }
0x1208   : > { %v4024_v6 = vmul.f32 %v12716_v41, %v12716_v41 }
0x1209   : > { %4170 = vmatpush.msra.mxu2 %v8659_v38  ;;  %v8755_v38 = vld [vmem:[%s15635_s5 + $0x1008] sm:$0xff] }
0x120a   : > { %v4025_v43 = vsel %vm617_vm4, %v4024_v6, 0.0 }
0x120b   : > { %4026 = vadd.xlane.f32.xlu0 %v4025_v43  ;;  %4171 = vmatpush.msra.mxu2 %v8658_v39  ;;  %v8730_v39 = vld [vmem:[%s15635_s5 + $0xf40] sm:$0xff] }
0x127e   : > { %v4027_v2 = vpop.xlane.xlu0 %4026 }
0x127f   : > { %v4028_v4 = vmul.f32 %v4027_v2, %v10865_v48  ;;  %v8750_v2 = vld [vmem:[%s15635_s5 + $0xfe0] sm:$0xff] }
0x1281   : > { %v4029_v8 = vadd.f32 1e-05, %v4028_v4  ;;  %v8751_v4 = vld [vmem:[%s15635_s5 + $0xfe8] sm:$0xff] }
0x1283   : > { %9712 = vrsqrt.f32 %v4029_v8  ;;  %vm4036_vm6 = vweird.f32 %v4029_v8 }
0x1289   : > { %v9713_v18 = vpop.eup %9712 }
0x128a   : > { %v4031_v21 = vmul.f32 %v9713_v18, %v4029_v8  ;;  %vm4037_vm3 = vweird.f32 %v9713_v18  ;;  %v8732_v8 = vld [vmem:[%s15635_s5 + $0xf50] sm:$0xff] }
0x128b   : > { %vm4038_vm7 = vmor %vm4036_vm6, %vm4037_vm3 }
0x128c   : > { %v4032_v24 = vmul.f32 %v9713_v18, %v4031_v21  ;;  %v8678_v21 = vld [vmem:[%s15635_s5 + $0xda0] sm:$0xff] }
0x128e   : > { %v4033_v26 = vmul.f32 0.5, %v4032_v24  ;;  %v8803_v24 = vld [vmem:[%s15635_s5 + $0x1188] sm:$0xff] }
0x128f   : > { %4414 = vmatpush.msra.mxu0 %v8803_v24  ;;  %v8717_v24 = vld [vmem:[%s15635_s5 + $0xed8] sm:$0xff] }
0x1290   : > { %v4034_v28 = vsub.f32 1.5, %v4033_v26  ;;  %v8809_v26 = vld [vmem:[%s15635_s5 + $0x11b8] sm:$0xff] }
0x1292   : > { %v4035_v30 = vmul.f32 %v9713_v18, %v4034_v28  ;;  %v8785_v28 = vld [vmem:[%s15635_s5 + $0x10f8] sm:$0xff] }
0x1293   : > { %4415 = vmatpush.msra.mxu0 %v8785_v28  ;;  %v8699_v28 = vld [vmem:[%s15635_s5 + $0xe48] sm:$0xff] }
0x1294   : > { %v4039_v31 = vsel %vm4038_vm7, %v9713_v18, %v4035_v30  ;;  %v8697_v18 = vld [vmem:[%s15635_s5 + $0xe38] sm:$0xff]  ;;  %v8791_v30 = vld [vmem:[%s15635_s5 + $0x1128] sm:$0xff] }
0x1295   : > { %v4040_v32 = vmul.f32 %v4039_v31, %v12716_v41  ;;  %v8766_v31 = vld [vmem:[%s15635_s5 + $0x1060] sm:$0xff] }
0x1296   : > { %4396 = vmatpush.msrb.mxu3 %v8766_v31  ;;  %v8680_v31 = vld [vmem:[%s15635_s5 + $0xdb0] sm:$0xff] }
0x1297   : > { %8640 = vmatmul.msk.f32.vlgmr.msrb.gmra.mxu1 %vm617_vm4, %v4040_v32  ;;  %8641 = vmatmul.msk.f32.vlgmr.msrb.gmra.mxu2 %vm617_vm4, %v4040_v32 }
0x1298   : > { %4434 = vmatpush.msrb.mxu1 %v8804_v51  ;;  %4454 = vmatpush.msrb.mxu2 %v8805_v52  ;;  %v8676_v51 = vld [vmem:[%s15635_s5 + $0xd90] sm:$0xff]  ;;  %v8677_v52 = vld [vmem:[%s15635_s5 + $0xd98] sm:$0xff] }
0x1299   : > { %4397 = vmatpush.msrb.mxu3 %v8748_v35  ;;  %v8810_v35 = vld [vmem:[%s15635_s5 + $0x11c0] sm:$0xff] }
0x129a   : > { %4435 = vmatpush.msrb.mxu1 %v8786_v55  ;;  %4455 = vmatpush.msrb.mxu2 %v8787_v42 }
0x129b   : > { %4398 = vmatpush.msrb.mxu3 %v8730_v39  ;;  %v8792_v39 = vld [vmem:[%s15635_s5 + $0x1130] sm:$0xff] }
0x129c   : > { %4436 = vmatpush.msrb.mxu1 %v8768_v58  ;;  %4456 = vmatpush.msrb.mxu2 %v8769_v59 }
0x129e   : > { %4437 = vmatpush.msrb.mxu1 %v8750_v2  ;;  %4457 = vmatpush.msrb.mxu2 %v8751_v4  ;;  %v8807_v2 = vld [vmem:[%s15635_s5 + $0x11a8] sm:$0xff]  ;;  %v8812_v4 = vld [vmem:[%s15635_s5 + $0x11d0] sm:$0xff] }
0x12a0   : > { %4438 = vmatpush.msrb.mxu1 %v8732_v8  ;;  %4458 = vmatpush.msrb.mxu2 %v8733_v10  ;;  %v8794_v8 = vld [vmem:[%s15635_s5 + $0x1140] sm:$0xff]  ;;  %v8795_v10 = vld [vmem:[%s15635_s5 + $0x1148] sm:$0xff] }
0x12a2   : > { %4439 = vmatpush.msrb.mxu1 %v8714_v13  ;;  %4459 = vmatpush.msrb.mxu2 %v8715_v14  ;;  %v8776_v13 = vld [vmem:[%s15635_s5 + $0x10b0] sm:$0xff]  ;;  %v8777_v14 = vld [vmem:[%s15635_s5 + $0x10b8] sm:$0xff] }
0x12a4   : > { %4440 = vmatpush.msrb.mxu1 %v8696_v17  ;;  %4460 = vmatpush.msrb.mxu2 %v8697_v18  ;;  %v8758_v17 = vld [vmem:[%s15635_s5 + $0x1020] sm:$0xff]  ;;  %v8759_v18 = vld [vmem:[%s15635_s5 + $0x1028] sm:$0xff] }
0x12a6   : > { %4441 = vmatpush.msrb.mxu1 %v8678_v21  ;;  %4461 = vmatpush.msrb.mxu2 %v8679_v22  ;;  %v8740_v21 = vld [vmem:[%s15635_s5 + $0xf90] sm:$0xff]  ;;  %v8741_v22 = vld [vmem:[%s15635_s5 + $0xf98] sm:$0xff] }
0x1314   : > { %v4078_v40 = vpop.f32.mrf.mxu1 }
0x1315   : > { %v4101_v41 = vmax.f32 %v4078_v40, 0.0  ;;  %v8731_v40 = vld [vmem:[%s15635_s5 + $0xf48] sm:$0xff] }
0x1317   : > { %4152 = vmatmul.f32.vlgmr.msra.gmra.mxu1 %v4101_v41  ;;  %v8736_v41 = vld [vmem:[%s15635_s5 + $0xf70] sm:$0xff] }
0x1318   : > { %4514 = vmatpush.msra.mxu1 %v8808_v25  ;;  %v8722_v25 = vld [vmem:[%s15635_s5 + $0xf00] sm:$0xff] }
0x131a   : > { %v4098_v6 = vpop.f32.mrf.mxu2  ;;  %4515 = vmatpush.msra.mxu1 %v8790_v29  ;;  %v8704_v29 = vld [vmem:[%s15635_s5 + $0xe70] sm:$0xff] }
0x131b   : > { %v4102_v43 = vmax.f32 %v4098_v6, 0.0  ;;  %v8737_v6 = vld [vmem:[%s15635_s5 + $0xf78] sm:$0xff] }
0x131c   : > { %4516 = vmatpush.msra.mxu1 %v8772_v33  ;;  %v8686_v33 = vld [vmem:[%s15635_s5 + $0xde0] sm:$0xff] }
0x131d   : > { %4172 = vmatmul.f32.vlgmr.msra.gmra.mxu2 %v4102_v43  ;;  %v8712_v43 = vld [vmem:[%s15635_s5 + $0xeb0] sm:$0xff] }
0x131e   : > { %4534 = vmatpush.msra.mxu2 %v8809_v26  ;;  %4517 = vmatpush.msra.mxu1 %v8754_v37  ;;  %v8723_v26 = vld [vmem:[%s15635_s5 + $0xf08] sm:$0xff]  ;;  %v8816_v37 = vld [vmem:[%s15635_s5 + $0x11f0] sm:$0xff] }
0x131f   : > { %4399 = vmatpush.msrb.mxu3 %v8712_v43  ;;  %v8774_v43 = vld [vmem:[%s15635_s5 + $0x10a0] sm:$0xff] }
0x1320   : > { %4535 = vmatpush.msra.mxu2 %v8791_v30  ;;  %4518 = vmatpush.msra.mxu1 %v8736_v41  ;;  %v8705_v30 = vld [vmem:[%s15635_s5 + $0xe78] sm:$0xff]  ;;  %v8798_v41 = vld [vmem:[%s15635_s5 + $0x1160] sm:$0xff] }
0x1322   : > { %4536 = vmatpush.msra.mxu2 %v8773_v34  ;;  %v8687_v34 = vld [vmem:[%s15635_s5 + $0xde8] sm:$0xff] }
0x1324   : > { %4537 = vmatpush.msra.mxu2 %v8755_v38  ;;  %v8817_v38 = vld [vmem:[%s15635_s5 + $0x11f8] sm:$0xff] }
0x1326   : > { %4538 = vmatpush.msra.mxu2 %v8737_v6  ;;  %v8799_v6 = vld [vmem:[%s15635_s5 + $0x1168] sm:$0xff] }
0x1394   : > { %v4153_v44 = vpop.f32.mrf.mxu1 }
0x1395   : > { %v4154_v45 = vadd.f32 %v4153_v44, %v4040_v32  ;;  %v8767_v32 = vld [vmem:[%s15635_s5 + $0x1068] sm:$0xff]  ;;  %v8713_v44 = vld [vmem:[%s15635_s5 + $0xeb8] sm:$0xff] }
0x1396   : > { %4416 = vmatpush.msra.mxu0 %v8767_v32  ;;  %v8681_v32 = vld [vmem:[%s15635_s5 + $0xdb8] sm:$0xff] }
0x1398   : > { %4417 = vmatpush.msra.mxu0 %v8749_v36  ;;  %v8811_v36 = vld [vmem:[%s15635_s5 + $0x11c8] sm:$0xff] }
0x139a   : > { %4418 = vmatpush.msra.mxu0 %v8731_v40  ;;  %v8793_v40 = vld [vmem:[%s15635_s5 + $0x1138] sm:$0xff] }
0x139c   : > { %4419 = vmatpush.msra.mxu0 %v8713_v44  ;;  %v8775_v44 = vld [vmem:[%s15635_s5 + $0x10a8] sm:$0xff] }
0x13a0   : > { %v4173_v46 = vpop.f32.mrf.mxu2 }
0x13a1   : > { %v4174_v12 = vadd.f32 %v4173_v46, %v4154_v45  ;;  %v8718_v45 = vld [vmem:[%s15635_s5 + $0xee0] sm:$0xff]  ;;  %v8719_v46 = vld [vmem:[%s15635_s5 + $0xee8] sm:$0xff] }
0x13a2   : > { %4519 = vmatpush.msra.mxu1 %v8718_v45  ;;  %4539 = vmatpush.msra.mxu2 %v8719_v46  ;;  %v8780_v45 = vld [vmem:[%s15635_s5 + $0x10d0] sm:$0xff]  ;;  %v8781_v46 = vld [vmem:[%s15635_s5 + $0x10d8] sm:$0xff] }
0x13a3   : > { %v4176_v15 = vsel %vm617_vm4, %v4174_v12, 0.0 }
0x13a4   : > { %4177 = vadd.xlane.f32.xlu1 %v4176_v15  ;;  %v8695_v15 = vld [vmem:[%s15635_s5 + $0xe28] sm:$0xff]  ;;  %4520 = vmatpush.msra.mxu1 %v8700_v49  ;;  %v8762_v49 = vld [vmem:[%s15635_s5 + $0x1040] sm:$0xff] }
0x13a5   : > { %4420 = vmatpush.msra.mxu0 %v8695_v15  ;;  %4540 = vmatpush.msra.mxu2 %v8701_v50  ;;  %v8757_v15 = vld [vmem:[%s15635_s5 + $0x1018] sm:$0xff]  ;;  %v8763_v50 = vld [vmem:[%s15635_s5 + $0x1048] sm:$0xff] }
0x13a6   : > { %4521 = vmatpush.msra.mxu1 %v8682_v53  ;;  %v8744_v53 = vld [vmem:[%s15635_s5 + $0xfb0] sm:$0xff] }
0x13a7   : > { %4421 = vmatpush.msra.mxu0 %v8677_v52  ;;  %4541 = vmatpush.msra.mxu2 %v8683_v54  ;;  %v8739_v52 = vld [vmem:[%s15635_s5 + $0xf88] sm:$0xff]  ;;  %v8745_v54 = vld [vmem:[%s15635_s5 + $0xfb8] sm:$0xff] }
0x1417   : > { %v4178_v60 = vpop.xlane.xlu1 %4177 }
0x1418   : > { %v4179_v47 = vmul.f32 %v4178_v60, %v10865_v48 }
0x141a   : > { %v12859_v61 = vsub.f32 %v4174_v12, %v4179_v47  ;;  %v8694_v12 = vld [vmem:[%s15635_s5 + $0xe20] sm:$0xff] }
0x141b   : > { %4400 = vmatpush.msrb.mxu3 %v8694_v12  ;;  %v8756_v12 = vld [vmem:[%s15635_s5 + $0x1010] sm:$0xff] }
0x141c   : > { %v4181_v62 = vmul.f32 %v12859_v61, %v12859_v61 }
0x141d   : > { %4401 = vmatpush.msrb.mxu3 %v8676_v51  ;;  %v8738_v51 = vld [vmem:[%s15635_s5 + $0xf80] sm:$0xff] }
0x141e   : > { %v4182_v63 = vsel %vm617_vm4, %v4181_v62, 0.0 }
0x141f   : > { %4183 = vadd.xlane.f32.xlu2 %v4182_v63 }
0x1492   : > { %v4184_v55 = vpop.xlane.xlu2 %4183 }
0x1493   : > { %v4185_v42 = vmul.f32 %v4184_v55, %v10865_v48  ;;  %v8720_v55 = vld [vmem:[%s15635_s5 + $0xef0] sm:$0xff] }
0x1495   : > { %v4186_v56 = vadd.f32 1e-05, %v4185_v42  ;;  %v8721_v42 = vld [vmem:[%s15635_s5 + $0xef8] sm:$0xff] }
0x1497   : > { %9714 = vrsqrt.f32 %v4186_v56  ;;  %vm4193_vm9 = vweird.f32 %v4186_v56 }
0x149d   : > { %v9715_v57 = vpop.eup %9714 }
0x149e   : > { %v4188_v58 = vmul.f32 %v9715_v57, %v4186_v56  ;;  %vm4194_vm8 = vweird.f32 %v9715_v57  ;;  %v8726_v56 = vld [vmem:[%s15635_s5 + $0xf20] sm:$0xff] }
0x149f   : > { %vm4195_vm10 = vmor %vm4193_vm9, %vm4194_vm8 }
0x14a0   : > { %v4189_v59 = vmul.f32 %v9715_v57, %v4188_v58  ;;  %v8702_v58 = vld [vmem:[%s15635_s5 + $0xe60] sm:$0xff] }
0x14a2   : > { %v4190_v60 = vmul.f32 0.5, %v4189_v59  ;;  %v8703_v59 = vld [vmem:[%s15635_s5 + $0xe68] sm:$0xff] }
0x14a4   : > { %v4191_v47 = vsub.f32 1.5, %v4190_v60  ;;  %v8708_v60 = vld [vmem:[%s15635_s5 + $0xe90] sm:$0xff] }
0x14a6   : > { %v4192_v62 = vmul.f32 %v9715_v57, %v4191_v47  ;;  %v8709_v47 = vld [vmem:[%s15635_s5 + $0xe98] sm:$0xff] }
0x14a8   : > { %v4196_v63 = vsel %vm4195_vm10, %v9715_v57, %v4192_v62  ;;  %v8727_v57 = vld [vmem:[%s15635_s5 + $0xf28] sm:$0xff]  ;;  %v8684_v62 = vld [vmem:[%s15635_s5 + $0xdd0] sm:$0xff] }
0x14a9   : > { %v13022_v0 = vmul.f32 %v4196_v63, %v12859_v61  ;;  %v8813_v61 = vld [vmem:[%s15635_s5 + $0x11d8] sm:$0xff] }
0x14aa   : > { %v8685_v63 = vld [vmem:[%s15635_s5 + $0xdd8] sm:$0xff] }
0x14ab   : > { %8818 = vmatmul.msk.f32.vlgmr.msra.gmra.mxu3 %vm617_vm4, %v13022_v0  ;;  %8819 = vmatmul.msk.f32.vlgmr.msrb.gmra.mxu0 %vm617_vm4, %v13022_v0 }
0x14ac   : > { %8822 = vmatmul.msk.f32.vlgmr.msrb.gmra.mxu1 %vm617_vm4, %v13022_v0  ;;  %8823 = vmatmul.msk.f32.vlgmr.msrb.gmra.mxu2 %vm617_vm4, %v13022_v0 }
0x14ad   : > { %4474 = vmatpush.msra.mxu3 %v8806_v1  ;;  %4494 = vmatpush.msrb.mxu0 %v8807_v2  ;;  %v8690_v1 = vld [vmem:[%s15635_s5 + $0xe00] sm:$0xff]  ;;  %v8691_v2 = vld [vmem:[%s15635_s5 + $0xe08] sm:$0xff] }
0x14ae   : > { %4594 = vmatpush.msrb.mxu1 %v8812_v4  ;;  %4614 = vmatpush.msrb.mxu2 %v8813_v61  ;;  %v8814_v4 = vld [vmem:[%s15635_s5 + $0x11e0] sm:$0xff]  ;;  %v8815_v61 = vld [vmem:[%s15635_s5 + $0x11e8] sm:$0xff] }
0x14af   : > { %4475 = vmatpush.msra.mxu3 %v8788_v5  ;;  %4495 = vmatpush.msrb.mxu0 %v8789_v7  ;;  %v8796_v5 = vld [vmem:[%s15635_s5 + $0x1150] sm:$0xff]  ;;  %v8797_v7 = vld [vmem:[%s15635_s5 + $0x1158] sm:$0xff] }
0x14b0   : > { %4595 = vmatpush.msrb.mxu1 %v8794_v8  ;;  %4615 = vmatpush.msrb.mxu2 %v8795_v10  ;;  %v8778_v8 = vld [vmem:[%s15635_s5 + $0x10c0] sm:$0xff]  ;;  %v8779_v10 = vld [vmem:[%s15635_s5 + $0x10c8] sm:$0xff] }
0x14b1   : > { %4476 = vmatpush.msra.mxu3 %v8770_v3  ;;  %4496 = vmatpush.msrb.mxu0 %v8771_v11  ;;  %v8760_v3 = vld [vmem:[%s15635_s5 + $0x1030] sm:$0xff]  ;;  %v8761_v11 = vld [vmem:[%s15635_s5 + $0x1038] sm:$0xff] }
0x14b2   : > { %4596 = vmatpush.msrb.mxu1 %v8776_v13  ;;  %4616 = vmatpush.msrb.mxu2 %v8777_v14  ;;  %v8742_v13 = vld [vmem:[%s15635_s5 + $0xfa0] sm:$0xff]  ;;  %v8743_v14 = vld [vmem:[%s15635_s5 + $0xfa8] sm:$0xff] }
0x14b3   : > { %4477 = vmatpush.msra.mxu3 %v8752_v16  ;;  %4497 = vmatpush.msrb.mxu0 %v8753_v9  ;;  %v8724_v16 = vld [vmem:[%s15635_s5 + $0xf10] sm:$0xff]  ;;  %v8725_v9 = vld [vmem:[%s15635_s5 + $0xf18] sm:$0xff] }
0x14b4   : > { %4597 = vmatpush.msrb.mxu1 %v8758_v17  ;;  %4617 = vmatpush.msrb.mxu2 %v8759_v18  ;;  %v8706_v17 = vld [vmem:[%s15635_s5 + $0xe80] sm:$0xff]  ;;  %v8707_v18 = vld [vmem:[%s15635_s5 + $0xe88] sm:$0xff] }
0x14b5   : > { %8820 = vmatmul.msk.f32.vlgmr.msrb.gmra.mxu3 %vm617_vm4, %v13022_v0  ;;  %8821 = vmatmul.msk.f32.vlgmr.msra.gmra.mxu0 %vm617_vm4, %v13022_v0 }
0x14b6   : > { %4478 = vmatpush.msra.mxu3 %v8734_v19  ;;  %4498 = vmatpush.msrb.mxu0 %v8735_v20  ;;  %v8688_v19 = vld [vmem:[%s15635_s5 + $0xdf0] sm:$0xff]  ;;  %v8689_v20 = vld [vmem:[%s15635_s5 + $0xdf8] sm:$0xff] }
0x14b7   : > { %8826 = vmatmul.msk.f32.vlgmr.msra.gmra.mxu1 %vm617_vm4, %v13022_v0  ;;  %8827 = vmatmul.msk.f32.vlgmr.msra.gmra.mxu2 %vm617_vm4, %v13022_v0 }
0x14b8   : > { %4598 = vmatpush.msrb.mxu1 %v8740_v21  ;;  %4618 = vmatpush.msrb.mxu2 %v8741_v22 }
0x14b9   : > { %4479 = vmatpush.msra.mxu3 %v8716_v23  ;;  %4499 = vmatpush.msrb.mxu0 %v8717_v24 }
0x14ba   : > { %4599 = vmatpush.msrb.mxu1 %v8722_v25  ;;  %4619 = vmatpush.msrb.mxu2 %v8723_v26 }
0x14bb   : > { %4480 = vmatpush.msra.mxu3 %v8698_v27  ;;  %4500 = vmatpush.msrb.mxu0 %v8699_v28 }
0x14bc   : > { %4600 = vmatpush.msrb.mxu1 %v8704_v29  ;;  %4620 = vmatpush.msrb.mxu2 %v8705_v30 }
0x14bd   : > { %4481 = vmatpush.msra.mxu3 %v8680_v31  ;;  %4501 = vmatpush.msrb.mxu0 %v8681_v32 }
0x14be   : > { %4601 = vmatpush.msrb.mxu1 %v8686_v33  ;;  %4621 = vmatpush.msrb.mxu2 %v8687_v34 }
0x14bf   : > { %4554 = vmatpush.msrb.mxu3 %v8810_v35  ;;  %4574 = vmatpush.msra.mxu0 %v8811_v36 }
0x14c0   : > { %4674 = vmatpush.msra.mxu1 %v8816_v37  ;;  %4694 = vmatpush.msra.mxu2 %v8817_v38 }
0x14c1   : > { %8824 = vmatmul.msk.f32.vlgmr.msra.gmra.mxu3 %vm617_vm4, %v13022_v0  ;;  %8825 = vmatmul.msk.f32.vlgmr.msrb.gmra.mxu0 %vm617_vm4, %v13022_v0 }
0x14c2   : > { %8830 = vmatmul.msk.f32.vlgmr.msrb.gmra.mxu1 %vm617_vm4, %v13022_v0  ;;  %8831 = vmatmul.msk.f32.vlgmr.msrb.gmra.mxu2 %vm617_vm4, %v13022_v0 }
0x14c3   : > { %4555 = vmatpush.msrb.mxu3 %v8792_v39  ;;  %4575 = vmatpush.msra.mxu0 %v8793_v40 }
0x14c4   : > { %4675 = vmatpush.msra.mxu1 %v8798_v41  ;;  %4695 = vmatpush.msra.mxu2 %v8799_v6 }
0x14c5   : > { %4556 = vmatpush.msrb.mxu3 %v8774_v43  ;;  %4576 = vmatpush.msra.mxu0 %v8775_v44 }
0x14c6   : > { %4676 = vmatpush.msra.mxu1 %v8780_v45  ;;  %4696 = vmatpush.msra.mxu2 %v8781_v46 }
0x14c7   : > { %4557 = vmatpush.msrb.mxu3 %v8756_v12  ;;  %4577 = vmatpush.msra.mxu0 %v8757_v15 }
0x14c8   : > { %4677 = vmatpush.msra.mxu1 %v8762_v49  ;;  %4697 = vmatpush.msra.mxu2 %v8763_v50 }
0x14c9   : > { %4558 = vmatpush.msrb.mxu3 %v8738_v51  ;;  %4578 = vmatpush.msra.mxu0 %v8739_v52 }
0x14ca   : > { %4678 = vmatpush.msra.mxu1 %v8744_v53  ;;  %4698 = vmatpush.msra.mxu2 %v8745_v54 }
0x14cb   : > { %4559 = vmatpush.msrb.mxu3 %v8720_v55  ;;  %4579 = vmatpush.msra.mxu0 %v8721_v42 }
0x14cc   : > { %4679 = vmatpush.msra.mxu1 %v8726_v56  ;;  %4699 = vmatpush.msra.mxu2 %v8727_v57 }
0x14cd   : > { %4560 = vmatpush.msrb.mxu3 %v8702_v58  ;;  %4580 = vmatpush.msra.mxu0 %v8703_v59 }
0x14ce   : > { %4680 = vmatpush.msra.mxu1 %v8708_v60  ;;  %4700 = vmatpush.msra.mxu2 %v8709_v47 }
0x14cf   : > { %4561 = vmatpush.msrb.mxu3 %v8684_v62  ;;  %4581 = vmatpush.msra.mxu0 %v8685_v63 }
0x14d0   : > { %4681 = vmatpush.msra.mxu1 %v8690_v1  ;;  %4701 = vmatpush.msra.mxu2 %v8691_v2 }
0x14d1   : > { %8828 = vmatmul.msk.f32.vlgmr.msrb.gmra.mxu3 %vm617_vm4, %v13022_v0  ;;  %8829 = vmatmul.msk.f32.vlgmr.msra.gmra.mxu0 %vm617_vm4, %v13022_v0 }
0x14d2   : > { %4634 = vmatpush.msra.mxu3 %v8814_v4  ;;  %4654 = vmatpush.msrb.mxu0 %v8815_v61 }
0x14d3   : > { %8834 = vmatmul.msk.f32.vlgmr.msra.gmra.mxu1 %vm617_vm4, %v13022_v0  ;;  %8835 = vmatmul.msk.f32.vlgmr.msra.gmra.mxu2 %vm617_vm4, %v13022_v0 }
0x14d4   : > { %4635 = vmatpush.msra.mxu3 %v8796_v5  ;;  %4655 = vmatpush.msrb.mxu0 %v8797_v7 }
0x14d6   : > { %4636 = vmatpush.msra.mxu3 %v8778_v8  ;;  %4656 = vmatpush.msrb.mxu0 %v8779_v10 }
0x14d8   : > { %4637 = vmatpush.msra.mxu3 %v8760_v3  ;;  %4657 = vmatpush.msrb.mxu0 %v8761_v11 }
0x14da   : > { %4638 = vmatpush.msra.mxu3 %v8742_v13  ;;  %4658 = vmatpush.msrb.mxu0 %v8743_v14 }
0x14dc   : > { %4639 = vmatpush.msra.mxu3 %v8724_v16  ;;  %4659 = vmatpush.msrb.mxu0 %v8725_v9 }
0x14de   : > { %4640 = vmatpush.msra.mxu3 %v8706_v17  ;;  %4660 = vmatpush.msrb.mxu0 %v8707_v18 }
0x14e0   : > { %4641 = vmatpush.msra.mxu3 %v8688_v19  ;;  %4661 = vmatpush.msrb.mxu0 %v8689_v20 }
0x14e1   : > { %8832 = vmatmul.msk.f32.vlgmr.msra.gmra.mxu3 %vm617_vm4, %v13022_v0  ;;  %8833 = vmatmul.msk.f32.vlgmr.msrb.gmra.mxu0 %vm617_vm4, %v13022_v0 }
0x1528   : > { %v4383_v21 = vpop.f32.mrf.mxu0 }
0x1529   : > { %v4443_v22 = vpop.f32.mrf.mxu1 }
0x152e   : > { %v4363_v23 = vpop.f32.mrf.mxu3 }
0x152f   : > { %v4463_v24 = vpop.f32.mrf.mxu2 }
0x1532   : > { %v4423_v25 = vpop.f32.mrf.mxu0 }
0x1534   : > { %v4523_v26 = vpop.f32.mrf.mxu1 }
0x1538   : > { %v4403_v27 = vpop.f32.mrf.mxu3 }
0x153a   : > { %v4543_v28 = vpop.f32.mrf.mxu2 }
0x153e   : > { %v4503_v29 = vpop.f32.mrf.mxu0 }
0x153f   : > { %v4603_v30 = vpop.f32.mrf.mxu1  ;;  %4777 = vmatpush.xpose.msrb.mxu1 %v4503_v29  ;;  %v8855_v29 = vld [vmem:[%s15636_s6 + $0x968] sm:$0xff] }
0x1540   : > { %4757 = vmatpush.msra.mxu0 %v4603_v30 }
0x1542   : > { %4778 = vmatmul.f32.vlgmr.msrb.gmra.mxu1 %v4383_v21 }
0x1543   : > { %4889 = vmatpush.xpose.msra.mxu1 %v4543_v28 }
0x1544   : > { %v4483_v31 = vpop.f32.mrf.mxu3 }
0x1545   : > { %v4623_v32 = vpop.f32.mrf.mxu2  ;;  %4721 = vmatpush.xpose.msrb.mxu3 %v4483_v31  ;;  %v8854_v31 = vld [vmem:[%s15636_s6 + $0x960] sm:$0xff] }
0x1546   : > { %4813 = vmatpush.msrb.mxu2 %v4623_v32 }
0x1548   : > { %4722 = vmatmul.f32.vlgmr.msrb.gmra.mxu3 %v4363_v23 }
0x1549   : > { %4833 = vmatpush.xpose.msra.mxu3 %v4523_v26  ;;  %v8857_v26 = vld [vmem:[%s15636_s6 + $0x978] sm:$0xff] }
0x154a   : > { %4890 = vmatmul.f32.vlgmr.msra.gmra.mxu1 %v4423_v25 }
0x154e   : > { %v4583_v33 = vpop.f32.mrf.mxu0 }
0x154f   : > { %5001 = vmatpush.xpose.msrb.mxu1 %v4583_v33  ;;  %v8853_v33 = vld [vmem:[%s15636_s6 + $0x958] sm:$0xff] }
0x1550   : > { %4834 = vmatmul.f32.vlgmr.msra.gmra.mxu3 %v4403_v27  ;;  %v13300_v37 = vpop.f32.mrf.mxu1  ;;  %v8856_v27 = vld [vmem:[%s15636_s6 + $0x970] sm:$0xff] }
0x1552   : > { %5002 = vmatmul.f32.vlgmr.msrb.gmra.mxu1 %v4463_v24 }
0x1554   : > { %v4563_v34 = vpop.f32.mrf.mxu3 }
0x1555   : > { %4945 = vmatpush.xpose.msrb.mxu3 %v4563_v34  ;;  %v8852_v34 = vld [vmem:[%s15636_s6 + $0x950] sm:$0xff] }
0x1556   : > { %v4703_v30 = vpop.f32.mrf.mxu2 }
0x1558   : > { %4946 = vmatmul.f32.vlgmr.msrb.gmra.mxu3 %v4443_v22 }
0x1559   : > { %5139 = vmatpush.msra.mxu3 %v8857_v26  ;;  %v8861_v26 = vld [vmem:[%s15636_s6 + $0x998] sm:$0xff] }
0x155b   : > { %5140 = vmatpush.msra.mxu3 %v8856_v27  ;;  %v8860_v27 = vld [vmem:[%s15636_s6 + $0x990] sm:$0xff] }
0x155d   : > { %5141 = vmatpush.msra.mxu3 %v8855_v29  ;;  %v8858_v29 = vld [vmem:[%s15636_s6 + $0x980] sm:$0xff] }
0x155e   : > { %v4663_v35 = vpop.f32.mrf.mxu0 }
0x155f   : > { %4925 = vmatpush.msra.mxu2 %v4663_v35  ;;  %5142 = vmatpush.msra.mxu3 %v8854_v31  ;;  %v8889_v35 = vld [vmem:[%s15636_s6 + $0xa78] sm:$0xff] }
0x1560   : > { %5179 = vmatpush.msra.mxu1 %v8889_v35  ;;  %v8881_v31 = vld [vmem:[%s15636_s6 + $0xa38] sm:$0xff]  ;;  %v8880_v35 = vld [vmem:[%s15636_s6 + $0xa30] sm:$0xff] }
0x1561   : > { %5143 = vmatpush.msra.mxu3 %v8853_v33  ;;  %v8917_v33 = vld [vmem:[%s15636_s6 + $0xb58] sm:$0xff] }
0x1563   : > { %5144 = vmatpush.msra.mxu3 %v8852_v34  ;;  %v8936_v34 = vld [vmem:[%s15636_s6 + $0xbf0] sm:$0xff] }
0x1564   : > { %v4643_v36 = vpop.f32.mrf.mxu3 }
0x1565   : > { %4869 = vmatpush.msrb.mxu0 %v4643_v36  ;;  %v8851_v36 = vld [vmem:[%s15636_s6 + $0x948] sm:$0xff] }
0x1566   : > { %5145 = vmatpush.msra.mxu3 %v8851_v36  ;;  %v8899_v36 = vld [vmem:[%s15636_s6 + $0xac8] sm:$0xff] }
0x15bf   : > { %v4779_v38 = vpop.f32.mrf.mxu1 }
0x15c0   : > { %v4782_v39 = vmul.f32 0.088388346, %v4779_v38  ;;  %v8888_v38 = vld [vmem:[%s15636_s6 + $0xa70] sm:$0xff] }
0x15c1   : > { %5180 = vmatpush.msra.mxu1 %v8888_v38  ;;  %v8916_v38 = vld [vmem:[%s15636_s6 + $0xb50] sm:$0xff] }
0x15c2   : > { %v4783_v40 = vsel %vm1002_vm5, %v4782_v39, -inf }
0x15c3   : > { %4784 = vmax.xlane.f32.xlu1 %v4783_v40  ;;  %v8850_v40 = vld [vmem:[%s15636_s6 + $0x940] sm:$0xff] }
0x15c4   : > { %5146 = vmatpush.msra.mxu3 %v8850_v40  ;;  %v8879_v40 = vld [vmem:[%s15636_s6 + $0xa28] sm:$0xff] }
0x15c7   : > { %v4891_v43 = vpop.f32.mrf.mxu1 }
0x15c8   : > { %v4894_v45 = vmul.f32 0.088388346, %v4891_v43 }
0x15ca   : > { %v4895_v49 = vsel %vm1002_vm5, %v4894_v45, -inf }
0x15cb   : > { %v4723_v41 = vpop.f32.mrf.mxu3 }
0x15cc   : > { %v4726_v6 = vmul.f32 0.088388346, %v4723_v41  ;;  %v8887_v41 = vld [vmem:[%s15636_s6 + $0xa68] sm:$0xff] }
0x15cd   : > { %5181 = vmatpush.msra.mxu1 %v8887_v41  ;;  %v8898_v41 = vld [vmem:[%s15636_s6 + $0xac0] sm:$0xff] }
0x15ce   : > { %v4727_v44 = vsel %vm1002_vm5, %v4726_v6, -inf }
0x15cf   : > { %4728 = vmax.xlane.f32.xlu0 %v4727_v44  ;;  %v5003_v50 = vpop.f32.mrf.mxu1 }
0x15d0   : > { %v5006_v51 = vmul.f32 0.088388346, %v5003_v50  ;;  %v8884_v50 = vld [vmem:[%s15636_s6 + $0xa50] sm:$0xff] }
0x15d2   : > { %v5007_v55 = vsel %vm1002_vm5, %v5006_v51, -inf }
0x15d3   : > { %v4835_v46 = vpop.f32.mrf.mxu3 }
0x15d4   : > { %v4838_v12 = vmul.f32 0.088388346, %v4835_v46  ;;  %v8886_v46 = vld [vmem:[%s15636_s6 + $0xa60] sm:$0xff] }
0x15d5   : > { %5182 = vmatpush.msra.mxu1 %v8886_v46  ;;  %v8914_v46 = vld [vmem:[%s15636_s6 + $0xb40] sm:$0xff] }
0x15d6   : > { %v4839_v15 = vsel %vm1002_vm5, %v4838_v12, -inf }
0x15d7   : > { %4840 = vmax.xlane.f32.xlu2 %v4839_v15  ;;  %4896 = vmax.xlane.f32.xlu0 %v4895_v49  ;;  %v8885_v15 = vld [vmem:[%s15636_s6 + $0xa58] sm:$0xff]  ;;  %v8847_v49 = vld [vmem:[%s15636_s6 + $0x928] sm:$0xff] }
0x15d8   : > { %5183 = vmatpush.msra.mxu1 %v8885_v15  ;;  %v8877_v15 = vld [vmem:[%s15636_s6 + $0xa18] sm:$0xff] }
0x15da   : > { %5184 = vmatpush.msra.mxu1 %v8884_v50  ;;  %v8913_v50 = vld [vmem:[%s15636_s6 + $0xb38] sm:$0xff] }
0x15db   : > { %v4947_v52 = vpop.f32.mrf.mxu3 }
0x15dc   : > { %v4950_v53 = vmul.f32 0.088388346, %v4947_v52  ;;  %v8883_v52 = vld [vmem:[%s15636_s6 + $0xa48] sm:$0xff] }
0x15dd   : > { %5185 = vmatpush.msra.mxu1 %v8883_v52  ;;  %v8895_v52 = vld [vmem:[%s15636_s6 + $0xaa8] sm:$0xff] }
0x15de   : > { %v4951_v54 = vsel %vm1002_vm5, %v4950_v53, -inf }
0x15df   : > { %4952 = vmax.xlane.f32.xlu1 %v4951_v54  ;;  %5008 = vmax.xlane.f32.xlu2 %v5007_v55 }
0x1636   : > { %v4785_v42 = vpop.xlane.xlu1 %4784 }
0x1637   : > { %v4786_v56 = vsub.f32 %v4782_v39, %v4785_v42  ;;  %v8873_v42 = vld [vmem:[%s15636_s6 + $0x9f8] sm:$0xff] }
0x1639   : > { %v4787_v57 = vmul.f32 1.442695, %v4786_v56 }
0x163b   : > { %9716 = vpow2.f32 %v4787_v57 }
0x1641   : > { %v9717_v58 = vpop.eup %9716 }
0x1642   : > { %v4729_v59 = vpop.xlane.xlu0 %4728  ;;  %v4789_v60 = vsel %vm1002_vm5, %v9717_v58, 0.0 }
0x1643   : > { %v4730_v47 = vsub.f32 %v4726_v6, %v4729_v59  ;;  %4790 = vadd.xlane.f32.xlu1 %v4789_v60  ;;  %v8905_v59 = vld [vmem:[%s15636_s6 + $0xaf8] sm:$0xff]  ;;  %v8872_v60 = vld [vmem:[%s15636_s6 + $0x9f0] sm:$0xff] }
0x1645   : > { %v4731_v62 = vmul.f32 1.442695, %v4730_v47  ;;  %v8882_v47 = vld [vmem:[%s15636_s6 + $0xa40] sm:$0xff] }
0x1646   : > { %5186 = vmatpush.msra.mxu1 %v8882_v47  ;;  %v8929_v47 = vld [vmem:[%s15636_s6 + $0xbb8] sm:$0xff] }
0x1647   : > { %9718 = vpow2.f32 %v4731_v62  ;;  %v8844_v62 = vld [vmem:[%s15636_s6 + $0x910] sm:$0xff] }
0x1648   : > { %5187 = vmatpush.msra.mxu1 %v8881_v31 }
0x164a   : > { %v4841_v63 = vpop.xlane.xlu2 %4840  ;;  %v4897_v1 = vpop.xlane.xlu0 %4896  ;;  %5188 = vmatpush.msra.mxu1 %v8880_v35 }
0x164b   : > { %v4842_v2 = vsub.f32 %v4838_v12, %v4841_v63  ;;  %v4898_v4 = vsub.f32 %v4894_v45, %v4897_v1  ;;  %v8849_v45 = vld [vmem:[%s15636_s6 + $0x938] sm:$0xff]  ;;  %v8848_v12 = vld [vmem:[%s15636_s6 + $0x930] sm:$0xff]  ;;  %v8871_v1 = vld [vmem:[%s15636_s6 + $0x9e8] sm:$0xff] }
0x164c   : > { %5147 = vmatpush.msra.mxu3 %v8849_v45  ;;  %v8904_v63 = vld [vmem:[%s15636_s6 + $0xaf0] sm:$0xff]  ;;  %5189 = vmatpush.msra.mxu1 %v8879_v40  ;;  %v8897_v45 = vld [vmem:[%s15636_s6 + $0xab8] sm:$0xff] }
0x164d   : > { %v9719_v61 = vpop.eup %9718  ;;  %v4843_v5 = vmul.f32 1.442695, %v4842_v2  ;;  %v4899_v7 = vmul.f32 1.442695, %v4898_v4  ;;  %v8843_v2 = vld [vmem:[%s15636_s6 + $0x908] sm:$0xff]  ;;  %v5297_v40 = vld [vmem:[#allocation2 + $0x1f8] sm:$0xff] }
0x164e   : > { %v4733_v8 = vsel %vm1002_vm5, %v9719_v61, 0.0  ;;  %5148 = vmatpush.msra.mxu3 %v8848_v12  ;;  %v8903_v4 = vld [vmem:[%s15636_s6 + $0xae8] sm:$0xff]  ;;  %v8933_v12 = vld [vmem:[%s15636_s6 + $0xbd8] sm:$0xff] }
0x164f   : > { %9720 = vpow2.f32 %v4843_v5  ;;  %4734 = vadd.xlane.f32.xlu0 %v4733_v8 }
0x1650   : > { %9722 = vpow2.f32 %v4899_v7  ;;  %5149 = vmatpush.msra.mxu3 %v8847_v49  ;;  %v8842_v7 = vld [vmem:[%s15636_s6 + $0x900] sm:$0xff]  ;;  %v8896_v49 = vld [vmem:[%s15636_s6 + $0xab0] sm:$0xff] }
0x1652   : > { %v4953_v10 = vpop.xlane.xlu1 %4952  ;;  %v5009_v3 = vpop.xlane.xlu2 %5008 }
0x1653   : > { %v4954_v11 = vsub.f32 %v4950_v53, %v4953_v10  ;;  %v5010_v13 = vsub.f32 %v5006_v51, %v5009_v3  ;;  %v8846_v51 = vld [vmem:[%s15636_s6 + $0x920] sm:$0xff]  ;;  %v8869_v3 = vld [vmem:[%s15636_s6 + $0x9d8] sm:$0xff] }
0x1654   : > { %5150 = vmatpush.msra.mxu3 %v8846_v51  ;;  %v8876_v51 = vld [vmem:[%s15636_s6 + $0xa10] sm:$0xff] }
0x1655   : > { %v13310_v14 = vpop.eup %9720  ;;  %v4955_v16 = vmul.f32 1.442695, %v4954_v11  ;;  %v5011_v9 = vmul.f32 1.442695, %v5010_v13  ;;  %v8921_v13 = vld [vmem:[%s15636_s6 + $0xb78] sm:$0xff] }
0x1656   : > { %v13312_v17 = vpop.eup %9722  ;;  %v4845_v18 = vsel %vm1002_vm5, %v13310_v14, 0.0 }
0x1657   : > { %9724 = vpow2.f32 %v4955_v16  ;;  %4846 = vadd.xlane.f32.xlu2 %v4845_v18  ;;  %v4901_v19 = vsel %vm1002_vm5, %v13312_v17, 0.0  ;;  %v8868_v16 = vld [vmem:[%s15636_s6 + $0x9d0] sm:$0xff]  ;;  %v8867_v18 = vld [vmem:[%s15636_s6 + $0x9c8] sm:$0xff] }
0x1658   : > { %9726 = vpow2.f32 %v5011_v9  ;;  %4902 = vadd.xlane.f32.xlu0 %v4901_v19  ;;  %v8920_v9 = vld [vmem:[%s15636_s6 + $0xb70] sm:$0xff]  ;;  %v8919_v19 = vld [vmem:[%s15636_s6 + $0xb68] sm:$0xff] }
0x165d   : > { %v13318_v20 = vpop.eup %9724 }
0x165e   : > { %v13320_v21 = vpop.eup %9726  ;;  %v4957_v22 = vsel %vm1002_vm5, %v13318_v20, 0.0 }
0x165f   : > { %4958 = vadd.xlane.f32.xlu1 %v4957_v22  ;;  %v5013_v23 = vsel %vm1002_vm5, %v13320_v21, 0.0  ;;  %v8865_v22 = vld [vmem:[%s15636_s6 + $0x9b8] sm:$0xff] }
0x1660   : > { %5014 = vadd.xlane.f32.xlu2 %v5013_v23  ;;  %v8864_v23 = vld [vmem:[%s15636_s6 + $0x9b0] sm:$0xff] }
0x16b6   : > { %v4791_v24 = vpop.xlane.xlu1 %4790 }
0x16b7   : > { %9728 = vrcp.f32 %v4791_v24  ;;  %v8863_v24 = vld [vmem:[%s15636_s6 + $0x9a8] sm:$0xff] }
0x16bd   : > { %v9729_v25 = vpop.eup %9728 }
0x16be   : > { %v4793_v28 = vmul.f32 %v9729_v25, %v9717_v58  ;;  %v8845_v58 = vld [vmem:[%s15636_s6 + $0x918] sm:$0xff]  ;;  %v8862_v25 = vld [vmem:[%s15636_s6 + $0x9a0] sm:$0xff] }
0x16bf   : > { %5151 = vmatpush.msra.mxu3 %v8845_v58  ;;  %v8874_v58 = vld [vmem:[%s15636_s6 + $0xa00] sm:$0xff] }
0x16c0   : > { %4794 = vst.msk [vmem:[%s10550_s27 + $0x98] sm:$0xff] %vm1002_vm5, %v4793_v28  ;;  %8837 = vmatmul.msk.f32.vlgmr.msrb.gmra.mxu2 %vm1002_vm5, %v4793_v28  ;;  %v8859_v28 = vld [vmem:[%s15636_s6 + $0x988] sm:$0xff] }
0x16c1   : > { %5037 = vmatpush.msrb.mxu2 %v4703_v30  ;;  %5152 = vmatpush.msra.mxu3 %v8844_v62  ;;  %v8937_v30 = vld [vmem:[%s15636_s6 + $0xbf8] sm:$0xff]  ;;  %v8892_v62 = vld [vmem:[%s15636_s6 + $0xa90] sm:$0xff] }
0x16c2   : > { %v4735_v32 = vpop.xlane.xlu0 %4734 }
0x16c3   : > { %9730 = vrcp.f32 %v4735_v32  ;;  %5153 = vmatpush.msra.mxu3 %v8843_v2  ;;  %v8900_v32 = vld [vmem:[%s15636_s6 + $0xad0] sm:$0xff]  ;;  %v8891_v2 = vld [vmem:[%s15636_s6 + $0xa88] sm:$0xff] }
0x16c5   : > { %5154 = vmatpush.msra.mxu3 %v8842_v7  ;;  %v8907_v7 = vld [vmem:[%s15636_s6 + $0xb08] sm:$0xff] }
0x16c7   : > { %5219 = vmatpush.msrb.mxu3 %v8921_v13  ;;  %v8923_v13 = vld [vmem:[%s15636_s6 + $0xb88] sm:$0xff] }
0x16c9   : > { %v9731_v39 = vpop.eup %9730  ;;  %5220 = vmatpush.msrb.mxu3 %v8920_v9 }
0x16ca   : > { %v4737_v6 = vmul.f32 %v9731_v39, %v9719_v61  ;;  %v4847_v43 = vpop.xlane.xlu2 %4846  ;;  %v8870_v61 = vld [vmem:[%s15636_s6 + $0x9e0] sm:$0xff]  ;;  %v8935_v39 = vld [vmem:[%s15636_s6 + $0xbe8] sm:$0xff] }
0x16cb   : > { %9732 = vrcp.f32 %v4847_v43  ;;  %v4903_v44 = vpop.xlane.xlu0 %4902  ;;  %5221 = vmatpush.msrb.mxu3 %v8919_v19  ;;  %v8934_v43 = vld [vmem:[%s15636_s6 + $0xbe0] sm:$0xff] }
0x16cc   : > { %4738 = vst.msk [vmem:[%s10550_s27 + $0x90] sm:$0xff] %vm1002_vm5, %v4737_v6  ;;  %9734 = vrcp.f32 %v4903_v44  ;;  %8836 = vmatmul.msk.f32.vlgmr.msra.gmra.mxu0 %vm1002_vm5, %v4737_v6  ;;  %v8915_v6 = vld [vmem:[%s15636_s6 + $0xb48] sm:$0xff]  ;;  %v8878_v44 = vld [vmem:[%s15636_s6 + $0xa20] sm:$0xff] }
0x16cd   : > { %4981 = vmatpush.msra.mxu0 %v13300_v37  ;;  %5190 = vmatpush.msra.mxu1 %v8878_v44  ;;  %v5293_v44 = vld [vmem:[#allocation2 + $0x1d8] sm:$0xff] }
0x16cf   : > { %5191 = vmatpush.msra.mxu1 %v8877_v15  ;;  %v5289_v15 = vld [vmem:[#allocation2 + $0x1b8] sm:$0xff] }
0x16d1   : > { %v9733_v37 = vpop.eup %9732  ;;  %5192 = vmatpush.msra.mxu1 %v8876_v51  ;;  %v5285_v51 = vld [vmem:[#allocation2 + $0x198] sm:$0xff] }
0x16d2   : > { %v9735_v53 = vpop.eup %9734  ;;  %v4849_v54 = vmul.f32 %v9733_v37, %v13310_v14  ;;  %v4959_v55 = vpop.xlane.xlu1 %4958  ;;  %v8902_v14 = vld [vmem:[%s15636_s6 + $0xae0] sm:$0xff]  ;;  %v8932_v37 = vld [vmem:[%s15636_s6 + $0xbd0] sm:$0xff] }
0x16d3   : > { %v4905_v56 = vmul.f32 %v9735_v53, %v13312_v17  ;;  %9736 = vrcp.f32 %v4959_v55  ;;  %v5015_v57 = vpop.xlane.xlu2 %5014  ;;  %v8901_v17 = vld [vmem:[%s15636_s6 + $0xad8] sm:$0xff]  ;;  %v8912_v53 = vld [vmem:[%s15636_s6 + $0xb30] sm:$0xff]  ;;  %v8875_v55 = vld [vmem:[%s15636_s6 + $0xa08] sm:$0xff] }
0x16d4   : > { %4850 = vst.msk [vmem:[%s10550_s27 + $0xa0] sm:$0xff] %vm1002_vm5, %v4849_v54  ;;  %9738 = vrcp.f32 %v5015_v57  ;;  %8838 = vmatmul.msk.f32.vlgmr.msrb.gmra.mxu0 %vm1002_vm5, %v4849_v54  ;;  %v8931_v54 = vld [vmem:[%s15636_s6 + $0xbc8] sm:$0xff]  ;;  %v8930_v57 = vld [vmem:[%s15636_s6 + $0xbc0] sm:$0xff]  ;;  %5193 = vmatpush.msra.mxu1 %v8875_v55  ;;  %v8971_v55 = vld [vmem:[%s15638_s8 + $0x3f8] sm:$0xff] }
0x16d5   : > { %4906 = vst.msk [vmem:[%s10550_s27 + $0xa8] sm:$0xff] %vm1002_vm5, %v4905_v56  ;;  %8839 = vmatmul.msk.f32.vlgmr.msra.gmra.mxu2 %vm1002_vm5, %v4905_v56  ;;  %5159 = vmatpush.msrb.mxu0 %v8873_v42  ;;  %v8894_v42 = vld [vmem:[%s15636_s6 + $0xaa0] sm:$0xff]  ;;  %v8911_v56 = vld [vmem:[%s15636_s6 + $0xb28] sm:$0xff] }
0x16d6   : > { %5199 = vmatpush.msra.mxu2 %v8905_v59  ;;  %v8893_v59 = vld [vmem:[%s15636_s6 + $0xa98] sm:$0xff]  ;;  %5194 = vmatpush.msra.mxu1 %v8874_v58  ;;  %v8969_v58 = vld [vmem:[%s15638_s8 + $0x3e8] sm:$0xff] }
0x16d7   : > { %5160 = vmatpush.msrb.mxu0 %v8872_v60  ;;  %v8910_v60 = vld [vmem:[%s15636_s6 + $0xb20] sm:$0xff] }
0x16d8   : > { %5200 = vmatpush.msra.mxu2 %v8904_v63  ;;  %v8909_v63 = vld [vmem:[%s15636_s6 + $0xb18] sm:$0xff] }
0x16d9   : > { %v9737_v5 = vpop.eup %9736  ;;  %5161 = vmatpush.msrb.mxu0 %v8871_v1  ;;  %v8928_v1 = vld [vmem:[%s15636_s6 + $0xbb0] sm:$0xff] }
0x16da   : > { %v9739_v8 = vpop.eup %9738  ;;  %v4961_v10 = vmul.f32 %v9737_v5, %v13318_v20  ;;  %5201 = vmatpush.msra.mxu2 %v8903_v4  ;;  %v8866_v20 = vld [vmem:[%s15636_s6 + $0x9c0] sm:$0xff]  ;;  %v8908_v4 = vld [vmem:[%s15636_s6 + $0xb10] sm:$0xff] }
0x16db   : > { %v5017_v11 = vmul.f32 %v9739_v8, %v13320_v21  ;;  %5162 = vmatpush.msrb.mxu0 %v8870_v61  ;;  %v8918_v21 = vld [vmem:[%s15636_s6 + $0xb60] sm:$0xff]  ;;  %v8927_v61 = vld [vmem:[%s15636_s6 + $0xba8] sm:$0xff] }
0x16dc   : > { %4962 = vst.msk [vmem:[%s10550_s27 + $0xb0] sm:$0xff] %vm1002_vm5, %v4961_v10  ;;  %8840 = vmatmul.msk.f32.vlgmr.msra.gmra.mxu0 %vm1002_vm5, %v4961_v10  ;;  %5202 = vmatpush.msra.mxu2 %v8902_v14  ;;  %v8890_v5 = vld [vmem:[%s15636_s6 + $0xa80] sm:$0xff] }
0x16dd   : > { %5018 = vst.msk [vmem:[%s10550_s27 + $0xb8] sm:$0xff] %vm1002_vm5, %v5017_v11  ;;  %8841 = vmatmul.msk.f32.vlgmr.msrb.gmra.mxu2 %vm1002_vm5, %v5017_v11  ;;  %5163 = vmatpush.msrb.mxu0 %v8869_v3  ;;  %v8926_v8 = vld [vmem:[%s15636_s6 + $0xba0] sm:$0xff]  ;;  %v8925_v3 = vld [vmem:[%s15636_s6 + $0xb98] sm:$0xff]  ;;  %v8924_v11 = vld [vmem:[%s15636_s6 + $0xb90] sm:$0xff] }
0x16de   : > { %5203 = vmatpush.msra.mxu2 %v8901_v17  ;;  %5222 = vmatpush.msrb.mxu3 %v8918_v21  ;;  %v8906_v10 = vld [vmem:[%s15636_s6 + $0xb00] sm:$0xff] }
0x16df   : > { %5164 = vmatpush.msrb.mxu0 %v8868_v16  ;;  %v8922_v14 = vld [vmem:[%s15636_s6 + $0xb80] sm:$0xff] }
0x16e0   : > { %5204 = vmatpush.msra.mxu2 %v8900_v32  ;;  %5223 = vmatpush.msrb.mxu3 %v8917_v33 }
0x16e1   : > { %5165 = vmatpush.msrb.mxu0 %v8867_v18 }
0x16e2   : > { %5205 = vmatpush.msra.mxu2 %v8899_v36  ;;  %5224 = vmatpush.msrb.mxu3 %v8916_v38 }
0x16e3   : > { %5166 = vmatpush.msrb.mxu0 %v8866_v20 }
0x16e4   : > { %5206 = vmatpush.msra.mxu2 %v8898_v41  ;;  %5225 = vmatpush.msrb.mxu3 %v8915_v6  ;;  %v5294_v41 = vld [vmem:[#allocation2 + $0x1e0] sm:$0xff]  ;;  %v5295_v6 = vld [vmem:[#allocation2 + $0x1e8] sm:$0xff] }
0x16e5   : > { %5167 = vmatpush.msrb.mxu0 %v8865_v22 }
0x16e6   : > { %5207 = vmatpush.msra.mxu2 %v8897_v45  ;;  %5226 = vmatpush.msrb.mxu3 %v8914_v46  ;;  %v5290_v45 = vld [vmem:[#allocation2 + $0x1c0] sm:$0xff]  ;;  %v5291_v46 = vld [vmem:[#allocation2 + $0x1c8] sm:$0xff] }
0x16e7   : > { %5168 = vmatpush.msrb.mxu0 %v8864_v23 }
0x16e8   : > { %5208 = vmatpush.msra.mxu2 %v8896_v49  ;;  %5227 = vmatpush.msrb.mxu3 %v8913_v50  ;;  %v5286_v49 = vld [vmem:[#allocation2 + $0x1a0] sm:$0xff]  ;;  %v5287_v50 = vld [vmem:[#allocation2 + $0x1a8] sm:$0xff] }
0x16e9   : > { %5169 = vmatpush.msrb.mxu0 %v8863_v24 }
0x16ea   : > { %5209 = vmatpush.msra.mxu2 %v8895_v52  ;;  %5228 = vmatpush.msrb.mxu3 %v8912_v53  ;;  %v5282_v52 = vld [vmem:[#allocation2 + $0x180] sm:$0xff]  ;;  %v5283_v53 = vld [vmem:[#allocation2 + $0x188] sm:$0xff] }
0x16eb   : > { %5170 = vmatpush.msrb.mxu0 %v8862_v25 }
0x16ec   : > { %5210 = vmatpush.msra.mxu2 %v8894_v42  ;;  %5229 = vmatpush.msrb.mxu3 %v8911_v56  ;;  %v8954_v42 = vld [vmem:[%s15638_s8 + $0x370] sm:$0xff] }
0x16ed   : > { %5171 = vmatpush.msrb.mxu0 %v8861_v26  ;;  %v8970_v56 = vld [vmem:[%s15638_s8 + $0x3f0] sm:$0xff] }
0x16ee   : > { %5211 = vmatpush.msra.mxu2 %v8893_v59  ;;  %5230 = vmatpush.msrb.mxu3 %v8910_v60  ;;  %v8952_v59 = vld [vmem:[%s15638_s8 + $0x360] sm:$0xff] }
0x16ef   : > { %5172 = vmatpush.msrb.mxu0 %v8860_v27  ;;  %v8968_v60 = vld [vmem:[%s15638_s8 + $0x3e0] sm:$0xff] }
0x16f0   : > { %5212 = vmatpush.msra.mxu2 %v8892_v62  ;;  %5231 = vmatpush.msrb.mxu3 %v8909_v63  ;;  %v8951_v63 = vld [vmem:[%s15638_s8 + $0x358] sm:$0xff] }
0x16f1   : > { %5173 = vmatpush.msrb.mxu0 %v8859_v28 }
0x16f2   : > { %5213 = vmatpush.msra.mxu2 %v8891_v2  ;;  %5232 = vmatpush.msrb.mxu3 %v8908_v4  ;;  %v8950_v4 = vld [vmem:[%s15638_s8 + $0x350] sm:$0xff] }
0x16f3   : > { %5174 = vmatpush.msrb.mxu0 %v8858_v29 }
0x16f4   : > { %5214 = vmatpush.msra.mxu2 %v8890_v5  ;;  %5233 = vmatpush.msrb.mxu3 %v8907_v7  ;;  %v8949_v5 = vld [vmem:[%s15638_s8 + $0x348] sm:$0xff] }
0x16f5   : > { %5239 = vmatpush.msra.mxu0 %v8937_v30  ;;  %v8965_v7 = vld [vmem:[%s15638_s8 + $0x3c8] sm:$0xff] }
0x16f6   : > { %5234 = vmatpush.msrb.mxu3 %v8906_v10  ;;  %5329 = vmatpush.msrb.mxu2 %v5297_v40  ;;  %v8964_v10 = vld [vmem:[%s15638_s8 + $0x3c0] sm:$0xff] }
0x16f7   : > { %5240 = vmatpush.msra.mxu0 %v8936_v34 }
0x16f8   : > { %5330 = vmatpush.msrb.mxu2 %v5295_v6 }
0x16f9   : > { %5241 = vmatpush.msra.mxu0 %v8935_v39  ;;  %v5296_v39 = vld [vmem:[#allocation2 + $0x1f0] sm:$0xff] }
0x16fa   : > { %5309 = vmatpush.msrb.mxu1 %v5296_v39  ;;  %5331 = vmatpush.msrb.mxu2 %v5293_v44  ;;  %v9098_v44 = vld [vmem:[%s15635_s5 + $0x15f0] sm:$0xff] }
0x16fb   : > { %5242 = vmatpush.msra.mxu0 %v8934_v43  ;;  %v5292_v43 = vld [vmem:[#allocation2 + $0x1d0] sm:$0xff] }
0x16fc   : > { %5310 = vmatpush.msrb.mxu1 %v5294_v41  ;;  %5332 = vmatpush.msrb.mxu2 %v5291_v46  ;;  %v9102_v46 = vld [vmem:[%s15635_s5 + $0x1610] sm:$0xff] }
0x16fd   : > { %5243 = vmatpush.msra.mxu0 %v8933_v12  ;;  %v5288_v12 = vld [vmem:[#allocation2 + $0x1b0] sm:$0xff] }
0x16fe   : > { %5311 = vmatpush.msrb.mxu1 %v5292_v43  ;;  %5333 = vmatpush.msrb.mxu2 %v5289_v15  ;;  %v9080_v15 = vld [vmem:[%s15635_s5 + $0x1560] sm:$0xff] }
0x16ff   : > { %5244 = vmatpush.msra.mxu0 %v8932_v37  ;;  %v5284_v37 = vld [vmem:[#allocation2 + $0x190] sm:$0xff] }
0x1700   : > { %5312 = vmatpush.msrb.mxu1 %v5290_v45  ;;  %5334 = vmatpush.msrb.mxu2 %v5287_v50  ;;  %v9099_v45 = vld [vmem:[%s15635_s5 + $0x15f8] sm:$0xff]  ;;  %v9084_v50 = vld [vmem:[%s15635_s5 + $0x1580] sm:$0xff] }
0x1701   : > { %5245 = vmatpush.msra.mxu0 %v8931_v54  ;;  %v8955_v54 = vld [vmem:[%s15638_s8 + $0x378] sm:$0xff] }
0x1702   : > { %5313 = vmatpush.msrb.mxu1 %v5288_v12  ;;  %5335 = vmatpush.msrb.mxu2 %v5285_v51  ;;  %v9103_v12 = vld [vmem:[%s15635_s5 + $0x1618] sm:$0xff]  ;;  %v9062_v51 = vld [vmem:[%s15635_s5 + $0x14d0] sm:$0xff] }
0x1703   : > { %5246 = vmatpush.msra.mxu0 %v8930_v57  ;;  %v8953_v57 = vld [vmem:[%s15638_s8 + $0x368] sm:$0xff] }
0x1704   : > { %5314 = vmatpush.msrb.mxu1 %v5286_v49  ;;  %5336 = vmatpush.msrb.mxu2 %v5283_v53  ;;  %v9081_v49 = vld [vmem:[%s15635_s5 + $0x1568] sm:$0xff]  ;;  %v9066_v53 = vld [vmem:[%s15635_s5 + $0x14f0] sm:$0xff] }
0x1705   : > { %5247 = vmatpush.msra.mxu0 %v8929_v47 }
0x1706   : > { %5315 = vmatpush.msrb.mxu1 %v5284_v37  ;;  %v9085_v37 = vld [vmem:[%s15635_s5 + $0x1588] sm:$0xff] }
0x1707   : > { %5248 = vmatpush.msra.mxu0 %v8928_v1  ;;  %v8967_v1 = vld [vmem:[%s15638_s8 + $0x3d8] sm:$0xff] }
0x1708   : > { %5316 = vmatpush.msrb.mxu1 %v5282_v52  ;;  %v9063_v52 = vld [vmem:[%s15635_s5 + $0x14d8] sm:$0xff] }
0x1709   : > { %5249 = vmatpush.msra.mxu0 %v8927_v61  ;;  %v8966_v61 = vld [vmem:[%s15638_s8 + $0x3d0] sm:$0xff] }
0x170b   : > { %5250 = vmatpush.msra.mxu0 %v8926_v8  ;;  %v8948_v8 = vld [vmem:[%s15638_s8 + $0x340] sm:$0xff] }
0x170d   : > { %5251 = vmatpush.msra.mxu0 %v8925_v3  ;;  %v8947_v3 = vld [vmem:[%s15638_s8 + $0x338] sm:$0xff] }
0x170f   : > { %5252 = vmatpush.msra.mxu0 %v8924_v11  ;;  %v8963_v11 = vld [vmem:[%s15638_s8 + $0x3b8] sm:$0xff] }
0x1711   : > { %5253 = vmatpush.msra.mxu0 %v8923_v13 }
0x1713   : > { %5254 = vmatpush.msra.mxu0 %v8922_v14  ;;  %v8946_v14 = vld [vmem:[%s15638_s8 + $0x330] sm:$0xff] }
0x1743   : > { %v4815_v16 = vpop.f32.mrf.mxu2 }
0x1744   : > { %5175 = vmatmul.f32.vlgmr.msrb.gmra.mxu0 %v4815_v16  ;;  %v8962_v16 = vld [vmem:[%s15638_s8 + $0x3b0] sm:$0xff] }
0x1745   : > { %5614 = vmatpush.msrb.mxu0 %v9099_v45  ;;  %v8999_v45 = vld [vmem:[%s15635_s5 + $0x12d8] sm:$0xff] }
0x1747   : > { %5615 = vmatpush.msrb.mxu0 %v9081_v49  ;;  %v8981_v49 = vld [vmem:[%s15635_s5 + $0x1248] sm:$0xff] }
0x1749   : > { %v4759_v9 = vpop.f32.mrf.mxu0  ;;  %5616 = vmatpush.msrb.mxu0 %v9063_v52 }
0x174a   : > { %5155 = vmatmul.f32.vlgmr.msra.gmra.mxu3 %v4759_v9 }
0x174b   : > { %5594 = vmatpush.msra.mxu3 %v9098_v44  ;;  %v8998_v44 = vld [vmem:[%s15635_s5 + $0x12d0] sm:$0xff] }
0x174d   : > { %5595 = vmatpush.msra.mxu3 %v9080_v15  ;;  %v8980_v15 = vld [vmem:[%s15635_s5 + $0x1240] sm:$0xff] }
0x174f   : > { %5596 = vmatpush.msra.mxu3 %v9062_v51 }
0x1751   : > { %v4871_v17 = vpop.f32.mrf.mxu0 }
0x1752   : > { %5195 = vmatmul.f32.vlgmr.msra.gmra.mxu1 %v4871_v17  ;;  %v8945_v17 = vld [vmem:[%s15638_s8 + $0x328] sm:$0xff] }
0x1753   : > { %5376 = vmatpush.msra.mxu1 %v8955_v54  ;;  %v9067_v54 = vld [vmem:[%s15635_s5 + $0x14f8] sm:$0xff] }
0x1755   : > { %5377 = vmatpush.msra.mxu1 %v8954_v42 }
0x1757   : > { %5378 = vmatpush.msra.mxu1 %v8953_v57 }
0x1758   : > { %v4927_v18 = vpop.f32.mrf.mxu2 }
0x1759   : > { %5215 = vmatmul.f32.vlgmr.msra.gmra.mxu2 %v4927_v18  ;;  %v4983_v19 = vpop.f32.mrf.mxu0  ;;  %5379 = vmatpush.msra.mxu1 %v8952_v59  ;;  %v8961_v18 = vld [vmem:[%s15638_s8 + $0x3a8] sm:$0xff]  ;;  %v9044_v59 = vld [vmem:[%s15635_s5 + $0x1440] sm:$0xff] }
0x175a   : > { %5235 = vmatmul.f32.vlgmr.msrb.gmra.mxu3 %v4983_v19  ;;  %5396 = vmatpush.msra.mxu2 %v8971_v55 }
0x175b   : > { %5380 = vmatpush.msra.mxu1 %v8951_v63  ;;  %5597 = vmatpush.msra.mxu3 %v9044_v59  ;;  %v9026_v63 = vld [vmem:[%s15635_s5 + $0x13b0] sm:$0xff] }
0x175c   : > { %5397 = vmatpush.msra.mxu2 %v8970_v56 }
0x175d   : > { %5381 = vmatpush.msra.mxu1 %v8950_v4  ;;  %5598 = vmatpush.msra.mxu3 %v9026_v63  ;;  %v9031_v4 = vld [vmem:[%s15635_s5 + $0x13d8] sm:$0xff]  ;;  %v9086_v63 = vld [vmem:[%s15635_s5 + $0x1590] sm:$0xff] }
0x175e   : > { %5398 = vmatpush.msra.mxu2 %v8969_v58 }
0x175f   : > { %5382 = vmatpush.msra.mxu1 %v8949_v5  ;;  %v9009_v5 = vld [vmem:[%s15635_s5 + $0x1328] sm:$0xff] }
0x1760   : > { %v5039_v20 = vpop.f32.mrf.mxu2  ;;  %5399 = vmatpush.msra.mxu2 %v8968_v60  ;;  %v9045_v60 = vld [vmem:[%s15635_s5 + $0x1448] sm:$0xff] }
0x1761   : > { %5255 = vmatmul.f32.vlgmr.msra.gmra.mxu0 %v5039_v20  ;;  %5383 = vmatpush.msra.mxu1 %v8948_v8  ;;  %v8944_v20 = vld [vmem:[%s15638_s8 + $0x320] sm:$0xff]  ;;  %v9013_v8 = vld [vmem:[%s15635_s5 + $0x1348] sm:$0xff] }
0x1762   : > { %5400 = vmatpush.msra.mxu2 %v8967_v1  ;;  %5617 = vmatpush.msrb.mxu0 %v9045_v60  ;;  %v9027_v1 = vld [vmem:[%s15635_s5 + $0x13b8] sm:$0xff]  ;;  %v9104_v60 = vld [vmem:[%s15635_s5 + $0x1620] sm:$0xff] }
0x1763   : > { %5384 = vmatpush.msra.mxu1 %v8947_v3  ;;  %v8991_v3 = vld [vmem:[%s15635_s5 + $0x1298] sm:$0xff] }
0x1764   : > { %5401 = vmatpush.msra.mxu2 %v8966_v61  ;;  %5618 = vmatpush.msrb.mxu0 %v9027_v1  ;;  %v9008_v61 = vld [vmem:[%s15635_s5 + $0x1320] sm:$0xff]  ;;  %v9087_v1 = vld [vmem:[%s15635_s5 + $0x1598] sm:$0xff] }
0x1765   : > { %5385 = vmatpush.msra.mxu1 %v8946_v14  ;;  %5599 = vmatpush.msra.mxu3 %v9008_v61  ;;  %v8972_v14 = vld [vmem:[%s15635_s5 + $0x1200] sm:$0xff] }
0x1766   : > { %5402 = vmatpush.msra.mxu2 %v8965_v7  ;;  %v9012_v7 = vld [vmem:[%s15635_s5 + $0x1340] sm:$0xff]  ;;  %5619 = vmatpush.msrb.mxu0 %v9009_v5  ;;  %v9069_v5 = vld [vmem:[%s15635_s5 + $0x1508] sm:$0xff] }
0x1767   : > { %5386 = vmatpush.msra.mxu1 %v8945_v17  ;;  %v8977_v17 = vld [vmem:[%s15635_s5 + $0x1228] sm:$0xff]  ;;  %v9068_v61 = vld [vmem:[%s15635_s5 + $0x1500] sm:$0xff] }
0x1768   : > { %5403 = vmatpush.msra.mxu2 %v8964_v10  ;;  %v8990_v10 = vld [vmem:[%s15635_s5 + $0x1290] sm:$0xff]  ;;  %5620 = vmatpush.msrb.mxu0 %v8991_v3  ;;  %v9051_v3 = vld [vmem:[%s15635_s5 + $0x1478] sm:$0xff] }
0x1769   : > { %5387 = vmatpush.msra.mxu1 %v8944_v20  ;;  %5600 = vmatpush.msra.mxu3 %v8990_v10  ;;  %v9106_v20 = vld [vmem:[%s15635_s5 + $0x1630] sm:$0xff] }
0x176a   : > { %5404 = vmatpush.msra.mxu2 %v8963_v11  ;;  %v8994_v11 = vld [vmem:[%s15635_s5 + $0x12b0] sm:$0xff] }
0x176b   : > { %5601 = vmatpush.msra.mxu3 %v8972_v14  ;;  %v9050_v10 = vld [vmem:[%s15635_s5 + $0x1470] sm:$0xff]  ;;  %v9032_v14 = vld [vmem:[%s15635_s5 + $0x13e0] sm:$0xff] }
0x176c   : > { %5405 = vmatpush.msra.mxu2 %v8962_v16  ;;  %v8973_v16 = vld [vmem:[%s15635_s5 + $0x1208] sm:$0xff] }
0x176d   : > { %5621 = vmatpush.msrb.mxu0 %v8973_v16  ;;  %v9033_v16 = vld [vmem:[%s15635_s5 + $0x13e8] sm:$0xff] }
0x176e   : > { %5406 = vmatpush.msra.mxu2 %v8961_v18  ;;  %v9100_v18 = vld [vmem:[%s15635_s5 + $0x1600] sm:$0xff] }
0x176f   : > { %5634 = vmatpush.msrb.mxu3 %v9100_v18  ;;  %v9014_v18 = vld [vmem:[%s15635_s5 + $0x1350] sm:$0xff] }
0x17c1   : > { %v5176_v23 = vpop.f32.mrf.mxu0 }
0x17cd   : > { %v5156_v21 = vpop.f32.mrf.mxu3 }
0x17ce   : > { %v5157_v22 = vadd.f32 %v5156_v21, %v13022_v0 }
0x17cf   : > { %v5196_v25 = vpop.f32.mrf.mxu1 }
0x17d0   : > { %v5177_v24 = vadd.f32 %v5176_v23, %v5157_v22  ;;  %v8943_v22 = vld [vmem:[%s15638_s8 + $0x318] sm:$0xff] }
0x17d1   : > { %5388 = vmatpush.msra.mxu1 %v8943_v22  ;;  %v9082_v22 = vld [vmem:[%s15635_s5 + $0x1570] sm:$0xff] }
0x17d2   : > { %v5197_v26 = vadd.f32 %v5196_v25, %v5177_v24  ;;  %v8942_v24 = vld [vmem:[%s15638_s8 + $0x310] sm:$0xff]  ;;  %5635 = vmatpush.msrb.mxu3 %v9082_v22  ;;  %v8996_v22 = vld [vmem:[%s15635_s5 + $0x12c0] sm:$0xff] }
0x17d3   : > { %5389 = vmatpush.msra.mxu1 %v8942_v24  ;;  %v9088_v24 = vld [vmem:[%s15635_s5 + $0x15a0] sm:$0xff] }
0x17dc   : > { %v5216_v27 = vpop.f32.mrf.mxu2 }
0x17dd   : > { %v5217_v28 = vadd.f32 %v5216_v27, %v5197_v26  ;;  %v5236_v29 = vpop.f32.mrf.mxu3 }
0x17de   : > { %v5256_v31 = vpop.f32.mrf.mxu0 }
0x17df   : > { %v5237_v30 = vadd.f32 %v5236_v29, %v5217_v28  ;;  %v8941_v28 = vld [vmem:[%s15638_s8 + $0x308] sm:$0xff]  ;;  %v8960_v29 = vld [vmem:[%s15638_s8 + $0x3a0] sm:$0xff] }
0x17e0   : > { %5390 = vmatpush.msra.mxu1 %v8941_v28  ;;  %5407 = vmatpush.msra.mxu2 %v8960_v29  ;;  %v9070_v28 = vld [vmem:[%s15635_s5 + $0x1510] sm:$0xff]  ;;  %v9071_v29 = vld [vmem:[%s15635_s5 + $0x1518] sm:$0xff] }
0x17e1   : > { %v5257_v32 = vadd.f32 %v5256_v31, %v5237_v30  ;;  %v8940_v30 = vld [vmem:[%s15638_s8 + $0x300] sm:$0xff]  ;;  %v8959_v31 = vld [vmem:[%s15638_s8 + $0x398] sm:$0xff] }
0x17e2   : > { %5391 = vmatpush.msra.mxu1 %v8940_v30  ;;  %5408 = vmatpush.msra.mxu2 %v8959_v31  ;;  %v9046_v30 = vld [vmem:[%s15635_s5 + $0x1450] sm:$0xff]  ;;  %v9047_v31 = vld [vmem:[%s15635_s5 + $0x1458] sm:$0xff] }
0x17e3   : > { %v5259_v33 = vsel %vm617_vm4, %v5257_v32, 0.0 }
0x17e4   : > { %5260 = vadd.xlane.f32.xlu0 %v5259_v33  ;;  %v8957_v33 = vld [vmem:[%s15638_s8 + $0x388] sm:$0xff] }
0x1857   : > { %v5261_v34 = vpop.xlane.xlu0 %5260 }
0x1858   : > { %v5262_v35 = vmul.f32 %v5261_v34, %v10865_v48  ;;  %v8956_v34 = vld [vmem:[%s15638_s8 + $0x380] sm:$0xff] }
0x185a   : > { %v13640_v36 = vsub.f32 %v5257_v32, %v5262_v35  ;;  %v8958_v32 = vld [vmem:[%s15638_s8 + $0x390] sm:$0xff] }
0x185b   : > { %5409 = vmatpush.msra.mxu2 %v8958_v32  ;;  %v9052_v32 = vld [vmem:[%s15635_s5 + $0x1480] sm:$0xff] }
0x185c   : > { %v5264_v0 = vmul.f32 %v13640_v36, %v13640_v36 }
0x185d   : > { %5410 = vmatpush.msra.mxu2 %v8957_v33  ;;  %v9053_v33 = vld [vmem:[%s15635_s5 + $0x1488] sm:$0xff] }
0x185e   : > { %v5265_v38 = vsel %vm617_vm4, %v5264_v0, 0.0 }
0x185f   : > { %5266 = vadd.xlane.f32.xlu1 %v5265_v38  ;;  %5411 = vmatpush.msra.mxu2 %v8956_v34  ;;  %v9028_v34 = vld [vmem:[%s15635_s5 + $0x13c0] sm:$0xff] }
0x18d2   : > { %v5267_v47 = vpop.xlane.xlu1 %5266 }
0x18d3   : > { %v5268_v62 = vmul.f32 %v5267_v47, %v10865_v48  ;;  %v9048_v47 = vld [vmem:[%s15635_s5 + $0x1460] sm:$0xff] }
0x18d5   : > { %v5269_v2 = vadd.f32 1e-05, %v5268_v62  ;;  %v9049_v62 = vld [vmem:[%s15635_s5 + $0x1468] sm:$0xff] }
0x18d7   : > { %9740 = vrsqrt.f32 %v5269_v2  ;;  %vm5276_vm12 = vweird.f32 %v5269_v2 }
0x18dd   : > { %v9741_v13 = vpop.eup %9740 }
0x18de   : > { %v5271_v9 = vmul.f32 %v9741_v13, %v5269_v2  ;;  %vm5277_vm11 = vweird.f32 %v9741_v13  ;;  %v9030_v2 = vld [vmem:[%s15635_s5 + $0x13d0] sm:$0xff] }
0x18df   : > { %vm5278_vm13 = vmor %vm5276_vm12, %vm5277_vm11 }
0x18e0   : > { %v5272_v19 = vmul.f32 %v9741_v13, %v5271_v9  ;;  %v8976_v9 = vld [vmem:[%s15635_s5 + $0x1220] sm:$0xff] }
0x18e2   : > { %v5273_v21 = vmul.f32 0.5, %v5272_v19  ;;  %v9101_v19 = vld [vmem:[%s15635_s5 + $0x1608] sm:$0xff] }
0x18e3   : > { %5654 = vmatpush.msra.mxu0 %v9101_v19  ;;  %v9015_v19 = vld [vmem:[%s15635_s5 + $0x1358] sm:$0xff] }
0x18e4   : > { %v5274_v23 = vsub.f32 1.5, %v5273_v21  ;;  %v9107_v21 = vld [vmem:[%s15635_s5 + $0x1638] sm:$0xff] }
0x18e6   : > { %v5275_v25 = vmul.f32 %v9741_v13, %v5274_v23  ;;  %v9083_v23 = vld [vmem:[%s15635_s5 + $0x1578] sm:$0xff] }
0x18e7   : > { %5655 = vmatpush.msra.mxu0 %v9083_v23  ;;  %v8997_v23 = vld [vmem:[%s15635_s5 + $0x12c8] sm:$0xff] }
0x18e8   : > { %v5279_v26 = vsel %vm5278_vm13, %v9741_v13, %v5275_v25  ;;  %v8995_v13 = vld [vmem:[%s15635_s5 + $0x12b8] sm:$0xff]  ;;  %v9089_v25 = vld [vmem:[%s15635_s5 + $0x15a8] sm:$0xff] }
0x18e9   : > { %v5280_v27 = vmul.f32 %v5279_v26, %v13640_v36  ;;  %v9064_v26 = vld [vmem:[%s15635_s5 + $0x14e0] sm:$0xff] }
0x18ea   : > { %5636 = vmatpush.msrb.mxu3 %v9064_v26  ;;  %v8978_v26 = vld [vmem:[%s15635_s5 + $0x1230] sm:$0xff] }
0x18eb   : > { %8938 = vmatmul.msk.f32.vlgmr.msrb.gmra.mxu1 %vm617_vm4, %v5280_v27  ;;  %8939 = vmatmul.msk.f32.vlgmr.msrb.gmra.mxu2 %vm617_vm4, %v5280_v27 }
0x18ec   : > { %5674 = vmatpush.msrb.mxu1 %v9102_v46  ;;  %5694 = vmatpush.msrb.mxu2 %v9103_v12  ;;  %v8974_v46 = vld [vmem:[%s15635_s5 + $0x1210] sm:$0xff]  ;;  %v8975_v12 = vld [vmem:[%s15635_s5 + $0x1218] sm:$0xff] }
0x18ed   : > { %5637 = vmatpush.msrb.mxu3 %v9046_v30  ;;  %v9108_v30 = vld [vmem:[%s15635_s5 + $0x1640] sm:$0xff] }
0x18ee   : > { %5675 = vmatpush.msrb.mxu1 %v9084_v50  ;;  %5695 = vmatpush.msrb.mxu2 %v9085_v37 }
0x18ef   : > { %5638 = vmatpush.msrb.mxu3 %v9028_v34  ;;  %v9090_v34 = vld [vmem:[%s15635_s5 + $0x15b0] sm:$0xff] }
0x18f0   : > { %5676 = vmatpush.msrb.mxu1 %v9066_v53  ;;  %5696 = vmatpush.msrb.mxu2 %v9067_v54 }
0x18f2   : > { %5677 = vmatpush.msrb.mxu1 %v9048_v47  ;;  %5697 = vmatpush.msrb.mxu2 %v9049_v62  ;;  %v9105_v47 = vld [vmem:[%s15635_s5 + $0x1628] sm:$0xff]  ;;  %v9110_v62 = vld [vmem:[%s15635_s5 + $0x1650] sm:$0xff] }
0x18f4   : > { %5678 = vmatpush.msrb.mxu1 %v9030_v2  ;;  %5698 = vmatpush.msrb.mxu2 %v9031_v4  ;;  %v9092_v2 = vld [vmem:[%s15635_s5 + $0x15c0] sm:$0xff]  ;;  %v9093_v4 = vld [vmem:[%s15635_s5 + $0x15c8] sm:$0xff] }
0x18f6   : > { %5679 = vmatpush.msrb.mxu1 %v9012_v7  ;;  %5699 = vmatpush.msrb.mxu2 %v9013_v8  ;;  %v9074_v7 = vld [vmem:[%s15635_s5 + $0x1530] sm:$0xff]  ;;  %v9075_v8 = vld [vmem:[%s15635_s5 + $0x1538] sm:$0xff] }
0x18f8   : > { %5680 = vmatpush.msrb.mxu1 %v8994_v11  ;;  %5700 = vmatpush.msrb.mxu2 %v8995_v13  ;;  %v9056_v11 = vld [vmem:[%s15635_s5 + $0x14a0] sm:$0xff]  ;;  %v9057_v13 = vld [vmem:[%s15635_s5 + $0x14a8] sm:$0xff] }
0x18fa   : > { %5681 = vmatpush.msrb.mxu1 %v8976_v9  ;;  %5701 = vmatpush.msrb.mxu2 %v8977_v17  ;;  %v9038_v9 = vld [vmem:[%s15635_s5 + $0x1410] sm:$0xff]  ;;  %v9039_v17 = vld [vmem:[%s15635_s5 + $0x1418] sm:$0xff] }
0x1968   : > { %v5318_v35 = vpop.f32.mrf.mxu1 }
0x1969   : > { %v5341_v36 = vmax.f32 %v5318_v35, 0.0  ;;  %v9029_v35 = vld [vmem:[%s15635_s5 + $0x13c8] sm:$0xff] }
0x196b   : > { %5392 = vmatmul.f32.vlgmr.msra.gmra.mxu1 %v5341_v36  ;;  %v9034_v36 = vld [vmem:[%s15635_s5 + $0x13f0] sm:$0xff] }
0x196c   : > { %5754 = vmatpush.msra.mxu1 %v9106_v20  ;;  %v9020_v20 = vld [vmem:[%s15635_s5 + $0x1380] sm:$0xff] }
0x196e   : > { %v5338_v0 = vpop.f32.mrf.mxu2  ;;  %5755 = vmatpush.msra.mxu1 %v9088_v24  ;;  %v9002_v24 = vld [vmem:[%s15635_s5 + $0x12f0] sm:$0xff] }
0x196f   : > { %v5342_v38 = vmax.f32 %v5338_v0, 0.0  ;;  %v9035_v0 = vld [vmem:[%s15635_s5 + $0x13f8] sm:$0xff] }
0x1970   : > { %5756 = vmatpush.msra.mxu1 %v9070_v28  ;;  %v8984_v28 = vld [vmem:[%s15635_s5 + $0x1260] sm:$0xff] }
0x1971   : > { %5412 = vmatmul.f32.vlgmr.msra.gmra.mxu2 %v5342_v38  ;;  %v9010_v38 = vld [vmem:[%s15635_s5 + $0x1330] sm:$0xff] }
0x1972   : > { %5774 = vmatpush.msra.mxu2 %v9107_v21  ;;  %5757 = vmatpush.msra.mxu1 %v9052_v32  ;;  %v9021_v21 = vld [vmem:[%s15635_s5 + $0x1388] sm:$0xff]  ;;  %v9114_v32 = vld [vmem:[%s15635_s5 + $0x1670] sm:$0xff] }
0x1973   : > { %5639 = vmatpush.msrb.mxu3 %v9010_v38  ;;  %v9072_v38 = vld [vmem:[%s15635_s5 + $0x1520] sm:$0xff] }
0x1974   : > { %5775 = vmatpush.msra.mxu2 %v9089_v25  ;;  %5758 = vmatpush.msra.mxu1 %v9034_v36  ;;  %v9003_v25 = vld [vmem:[%s15635_s5 + $0x12f8] sm:$0xff]  ;;  %v9096_v36 = vld [vmem:[%s15635_s5 + $0x15e0] sm:$0xff] }
0x1976   : > { %5776 = vmatpush.msra.mxu2 %v9071_v29  ;;  %v8985_v29 = vld [vmem:[%s15635_s5 + $0x1268] sm:$0xff] }
0x1978   : > { %5777 = vmatpush.msra.mxu2 %v9053_v33  ;;  %v9115_v33 = vld [vmem:[%s15635_s5 + $0x1678] sm:$0xff] }
0x197a   : > { %5778 = vmatpush.msra.mxu2 %v9035_v0  ;;  %v9097_v0 = vld [vmem:[%s15635_s5 + $0x15e8] sm:$0xff] }
0x19e8   : > { %v5393_v39 = vpop.f32.mrf.mxu1 }
0x19e9   : > { %v5394_v40 = vadd.f32 %v5393_v39, %v5280_v27  ;;  %v9065_v27 = vld [vmem:[%s15635_s5 + $0x14e8] sm:$0xff]  ;;  %v9011_v39 = vld [vmem:[%s15635_s5 + $0x1338] sm:$0xff] }
0x19ea   : > { %5656 = vmatpush.msra.mxu0 %v9065_v27  ;;  %v8979_v27 = vld [vmem:[%s15635_s5 + $0x1238] sm:$0xff] }
0x19ec   : > { %5657 = vmatpush.msra.mxu0 %v9047_v31  ;;  %v9109_v31 = vld [vmem:[%s15635_s5 + $0x1648] sm:$0xff] }
0x19ee   : > { %5658 = vmatpush.msra.mxu0 %v9029_v35  ;;  %v9091_v35 = vld [vmem:[%s15635_s5 + $0x15b8] sm:$0xff] }
0x19f0   : > { %5659 = vmatpush.msra.mxu0 %v9011_v39  ;;  %v9073_v39 = vld [vmem:[%s15635_s5 + $0x1528] sm:$0xff] }
0x19f4   : > { %v5413_v41 = vpop.f32.mrf.mxu2 }
0x19f5   : > { %v5414_v6 = vadd.f32 %v5413_v41, %v5394_v40  ;;  %v9016_v40 = vld [vmem:[%s15635_s5 + $0x1360] sm:$0xff]  ;;  %v9017_v41 = vld [vmem:[%s15635_s5 + $0x1368] sm:$0xff] }
0x19f6   : > { %5759 = vmatpush.msra.mxu1 %v9016_v40  ;;  %5779 = vmatpush.msra.mxu2 %v9017_v41  ;;  %v9078_v40 = vld [vmem:[%s15635_s5 + $0x1550] sm:$0xff]  ;;  %v9079_v41 = vld [vmem:[%s15635_s5 + $0x1558] sm:$0xff] }
0x19f7   : > { %v5416_v43 = vsel %vm617_vm4, %v5414_v6, 0.0 }
0x19f8   : > { %5417 = vadd.xlane.f32.xlu2 %v5416_v43  ;;  %v8993_v43 = vld [vmem:[%s15635_s5 + $0x12a8] sm:$0xff]  ;;  %5760 = vmatpush.msra.mxu1 %v8998_v44  ;;  %v9060_v44 = vld [vmem:[%s15635_s5 + $0x14c0] sm:$0xff] }
0x19f9   : > { %5660 = vmatpush.msra.mxu0 %v8993_v43  ;;  %5780 = vmatpush.msra.mxu2 %v8999_v45  ;;  %v9055_v43 = vld [vmem:[%s15635_s5 + $0x1498] sm:$0xff]  ;;  %v9061_v45 = vld [vmem:[%s15635_s5 + $0x14c8] sm:$0xff] }
0x19fa   : > { %5761 = vmatpush.msra.mxu1 %v8980_v15  ;;  %v9042_v15 = vld [vmem:[%s15635_s5 + $0x1430] sm:$0xff] }
0x19fb   : > { %5661 = vmatpush.msra.mxu0 %v8975_v12  ;;  %5781 = vmatpush.msra.mxu2 %v8981_v49  ;;  %v9037_v12 = vld [vmem:[%s15635_s5 + $0x1408] sm:$0xff]  ;;  %v9043_v49 = vld [vmem:[%s15635_s5 + $0x1438] sm:$0xff] }
0x1a6b   : > { %v5418_v55 = vpop.xlane.xlu2 %5417 }
0x1a6c   : > { %v5419_v42 = vmul.f32 %v5418_v55, %v10865_v48 }
0x1a6e   : > { %v13783_v56 = vsub.f32 %v5414_v6, %v5419_v42  ;;  %v8992_v6 = vld [vmem:[%s15635_s5 + $0x12a0] sm:$0xff] }
0x1a6f   : > { %5640 = vmatpush.msrb.mxu3 %v8992_v6  ;;  %v9054_v6 = vld [vmem:[%s15635_s5 + $0x1490] sm:$0xff] }
0x1a70   : > { %v5421_v57 = vmul.f32 %v13783_v56, %v13783_v56 }
0x1a71   : > { %5641 = vmatpush.msrb.mxu3 %v8974_v46  ;;  %v9036_v46 = vld [vmem:[%s15635_s5 + $0x1400] sm:$0xff] }
0x1a72   : > { %v5422_v58 = vsel %vm617_vm4, %v5421_v57, 0.0 }
0x1a73   : > { %5423 = vadd.xlane.f32.xlu0 %v5422_v58 }
0x1ae6   : > { %v5424_v50 = vpop.xlane.xlu0 %5423 }
0x1ae7   : > { %v5425_v37 = vmul.f32 %v5424_v50, %v10865_v48  ;;  %v9018_v50 = vld [vmem:[%s15635_s5 + $0x1370] sm:$0xff] }
0x1ae9   : > { %v5426_v51 = vadd.f32 1e-05, %v5425_v37  ;;  %v9019_v37 = vld [vmem:[%s15635_s5 + $0x1378] sm:$0xff] }
0x1aeb   : > { %9742 = vrsqrt.f32 %v5426_v51  ;;  %vm5433_vm15 = vweird.f32 %v5426_v51 }
0x1af1   : > { %v9743_v52 = vpop.eup %9742 }
0x1af2   : > { %v5428_v53 = vmul.f32 %v9743_v52, %v5426_v51  ;;  %vm5434_vm14 = vweird.f32 %v9743_v52  ;;  %v9024_v51 = vld [vmem:[%s15635_s5 + $0x13a0] sm:$0xff] }
0x1af3   : > { %vm5435_vm0 = vmor %vm5433_vm15, %vm5434_vm14 }
0x1af4   : > { %v5429_v54 = vmul.f32 %v9743_v52, %v5428_v53  ;;  %v9000_v53 = vld [vmem:[%s15635_s5 + $0x12e0] sm:$0xff] }
0x1af6   : > { %v5430_v55 = vmul.f32 0.5, %v5429_v54  ;;  %v9001_v54 = vld [vmem:[%s15635_s5 + $0x12e8] sm:$0xff] }
0x1af8   : > { %v5431_v42 = vsub.f32 1.5, %v5430_v55  ;;  %v9006_v55 = vld [vmem:[%s15635_s5 + $0x1310] sm:$0xff] }
0x1afa   : > { %v5432_v57 = vmul.f32 %v9743_v52, %v5431_v42  ;;  %v9007_v42 = vld [vmem:[%s15635_s5 + $0x1318] sm:$0xff] }
0x1afc   : > { %v5436_v58 = vsel %vm5435_vm0, %v9743_v52, %v5432_v57  ;;  %v9025_v52 = vld [vmem:[%s15635_s5 + $0x13a8] sm:$0xff]  ;;  %v8982_v57 = vld [vmem:[%s15635_s5 + $0x1250] sm:$0xff] }
0x1afd   : > { %v13946_v59 = vmul.f32 %v5436_v58, %v13783_v56  ;;  %v9111_v56 = vld [vmem:[%s15635_s5 + $0x1658] sm:$0xff] }
0x1afe   : > { %v8983_v58 = vld [vmem:[%s15635_s5 + $0x1258] sm:$0xff] }
0x1aff   : > { %9116 = vmatmul.msk.f32.vlgmr.msra.gmra.mxu3 %vm617_vm4, %v13946_v59  ;;  %9117 = vmatmul.msk.f32.vlgmr.msrb.gmra.mxu0 %vm617_vm4, %v13946_v59 }
0x1b00   : > { %9120 = vmatmul.msk.f32.vlgmr.msrb.gmra.mxu1 %vm617_vm4, %v13946_v59  ;;  %9121 = vmatmul.msk.f32.vlgmr.msrb.gmra.mxu2 %vm617_vm4, %v13946_v59 }
0x1b01   : > { %5714 = vmatpush.msra.mxu3 %v9104_v60  ;;  %5734 = vmatpush.msrb.mxu0 %v9105_v47  ;;  %v8988_v60 = vld [vmem:[%s15635_s5 + $0x1280] sm:$0xff]  ;;  %v8989_v47 = vld [vmem:[%s15635_s5 + $0x1288] sm:$0xff] }
0x1b02   : > { %5834 = vmatpush.msrb.mxu1 %v9110_v62  ;;  %5854 = vmatpush.msrb.mxu2 %v9111_v56  ;;  %v9112_v62 = vld [vmem:[%s15635_s5 + $0x1660] sm:$0xff]  ;;  %v9113_v56 = vld [vmem:[%s15635_s5 + $0x1668] sm:$0xff] }
0x1b03   : > { %5715 = vmatpush.msra.mxu3 %v9086_v63  ;;  %5735 = vmatpush.msrb.mxu0 %v9087_v1  ;;  %v9094_v63 = vld [vmem:[%s15635_s5 + $0x15d0] sm:$0xff]  ;;  %v9095_v1 = vld [vmem:[%s15635_s5 + $0x15d8] sm:$0xff] }
0x1b04   : > { %5835 = vmatpush.msrb.mxu1 %v9092_v2  ;;  %5855 = vmatpush.msrb.mxu2 %v9093_v4  ;;  %v9076_v2 = vld [vmem:[%s15635_s5 + $0x1540] sm:$0xff]  ;;  %v9077_v4 = vld [vmem:[%s15635_s5 + $0x1548] sm:$0xff] }
0x1b05   : > { %5716 = vmatpush.msra.mxu3 %v9068_v61  ;;  %5736 = vmatpush.msrb.mxu0 %v9069_v5  ;;  %v9058_v61 = vld [vmem:[%s15635_s5 + $0x14b0] sm:$0xff]  ;;  %v9059_v5 = vld [vmem:[%s15635_s5 + $0x14b8] sm:$0xff] }
0x1b06   : > { %5836 = vmatpush.msrb.mxu1 %v9074_v7  ;;  %5856 = vmatpush.msrb.mxu2 %v9075_v8  ;;  %v9040_v7 = vld [vmem:[%s15635_s5 + $0x1420] sm:$0xff]  ;;  %v9041_v8 = vld [vmem:[%s15635_s5 + $0x1428] sm:$0xff] }
0x1b07   : > { %5717 = vmatpush.msra.mxu3 %v9050_v10  ;;  %5737 = vmatpush.msrb.mxu0 %v9051_v3  ;;  %v9022_v10 = vld [vmem:[%s15635_s5 + $0x1390] sm:$0xff]  ;;  %v9023_v3 = vld [vmem:[%s15635_s5 + $0x1398] sm:$0xff] }
0x1b08   : > { %5837 = vmatpush.msrb.mxu1 %v9056_v11  ;;  %5857 = vmatpush.msrb.mxu2 %v9057_v13  ;;  %v9004_v11 = vld [vmem:[%s15635_s5 + $0x1300] sm:$0xff]  ;;  %v9005_v13 = vld [vmem:[%s15635_s5 + $0x1308] sm:$0xff] }
0x1b09   : > { %9118 = vmatmul.msk.f32.vlgmr.msrb.gmra.mxu3 %vm617_vm4, %v13946_v59  ;;  %9119 = vmatmul.msk.f32.vlgmr.msra.gmra.mxu0 %vm617_vm4, %v13946_v59 }
0x1b0a   : > { %5718 = vmatpush.msra.mxu3 %v9032_v14  ;;  %5738 = vmatpush.msrb.mxu0 %v9033_v16  ;;  %v8986_v14 = vld [vmem:[%s15635_s5 + $0x1270] sm:$0xff]  ;;  %v8987_v16 = vld [vmem:[%s15635_s5 + $0x1278] sm:$0xff] }
0x1b0b   : > { %9124 = vmatmul.msk.f32.vlgmr.msra.gmra.mxu1 %vm617_vm4, %v13946_v59  ;;  %9125 = vmatmul.msk.f32.vlgmr.msra.gmra.mxu2 %vm617_vm4, %v13946_v59 }
0x1b0c   : > { %5838 = vmatpush.msrb.mxu1 %v9038_v9  ;;  %5858 = vmatpush.msrb.mxu2 %v9039_v17 }
0x1b0d   : > { %5719 = vmatpush.msra.mxu3 %v9014_v18  ;;  %5739 = vmatpush.msrb.mxu0 %v9015_v19 }
0x1b0e   : > { %5839 = vmatpush.msrb.mxu1 %v9020_v20  ;;  %5859 = vmatpush.msrb.mxu2 %v9021_v21 }
0x1b0f   : > { %5720 = vmatpush.msra.mxu3 %v8996_v22  ;;  %5740 = vmatpush.msrb.mxu0 %v8997_v23 }
0x1b10   : > { %5840 = vmatpush.msrb.mxu1 %v9002_v24  ;;  %5860 = vmatpush.msrb.mxu2 %v9003_v25 }
0x1b11   : > { %5721 = vmatpush.msra.mxu3 %v8978_v26  ;;  %5741 = vmatpush.msrb.mxu0 %v8979_v27 }
0x1b12   : > { %5841 = vmatpush.msrb.mxu1 %v8984_v28  ;;  %5861 = vmatpush.msrb.mxu2 %v8985_v29 }
0x1b13   : > { %5794 = vmatpush.msrb.mxu3 %v9108_v30  ;;  %5814 = vmatpush.msra.mxu0 %v9109_v31 }
0x1b14   : > { %5914 = vmatpush.msra.mxu1 %v9114_v32  ;;  %5934 = vmatpush.msra.mxu2 %v9115_v33 }
0x1b15   : > { %9122 = vmatmul.msk.f32.vlgmr.msra.gmra.mxu3 %vm617_vm4, %v13946_v59  ;;  %9123 = vmatmul.msk.f32.vlgmr.msrb.gmra.mxu0 %vm617_vm4, %v13946_v59 }
0x1b16   : > { %9128 = vmatmul.msk.f32.vlgmr.msrb.gmra.mxu1 %vm617_vm4, %v13946_v59  ;;  %9129 = vmatmul.msk.f32.vlgmr.msrb.gmra.mxu2 %vm617_vm4, %v13946_v59 }
0x1b17   : > { %5795 = vmatpush.msrb.mxu3 %v9090_v34  ;;  %5815 = vmatpush.msra.mxu0 %v9091_v35 }
0x1b18   : > { %5915 = vmatpush.msra.mxu1 %v9096_v36  ;;  %5935 = vmatpush.msra.mxu2 %v9097_v0 }
0x1b19   : > { %5796 = vmatpush.msrb.mxu3 %v9072_v38  ;;  %5816 = vmatpush.msra.mxu0 %v9073_v39 }
0x1b1a   : > { %5916 = vmatpush.msra.mxu1 %v9078_v40  ;;  %5936 = vmatpush.msra.mxu2 %v9079_v41 }
0x1b1b   : > { %5797 = vmatpush.msrb.mxu3 %v9054_v6  ;;  %5817 = vmatpush.msra.mxu0 %v9055_v43 }
0x1b1c   : > { %5917 = vmatpush.msra.mxu1 %v9060_v44  ;;  %5937 = vmatpush.msra.mxu2 %v9061_v45 }
0x1b1d   : > { %5798 = vmatpush.msrb.mxu3 %v9036_v46  ;;  %5818 = vmatpush.msra.mxu0 %v9037_v12 }
0x1b1e   : > { %5918 = vmatpush.msra.mxu1 %v9042_v15  ;;  %5938 = vmatpush.msra.mxu2 %v9043_v49 }
0x1b1f   : > { %5799 = vmatpush.msrb.mxu3 %v9018_v50  ;;  %5819 = vmatpush.msra.mxu0 %v9019_v37 }
0x1b20   : > { %5919 = vmatpush.msra.mxu1 %v9024_v51  ;;  %5939 = vmatpush.msra.mxu2 %v9025_v52 }
0x1b21   : > { %5800 = vmatpush.msrb.mxu3 %v9000_v53  ;;  %5820 = vmatpush.msra.mxu0 %v9001_v54 }
0x1b22   : > { %5920 = vmatpush.msra.mxu1 %v9006_v55  ;;  %5940 = vmatpush.msra.mxu2 %v9007_v42 }
0x1b23   : > { %5801 = vmatpush.msrb.mxu3 %v8982_v57  ;;  %5821 = vmatpush.msra.mxu0 %v8983_v58 }
0x1b24   : > { %5921 = vmatpush.msra.mxu1 %v8988_v60  ;;  %5941 = vmatpush.msra.mxu2 %v8989_v47 }
0x1b25   : > { %9126 = vmatmul.msk.f32.vlgmr.msrb.gmra.mxu3 %vm617_vm4, %v13946_v59  ;;  %9127 = vmatmul.msk.f32.vlgmr.msra.gmra.mxu0 %vm617_vm4, %v13946_v59 }
0x1b26   : > { %5874 = vmatpush.msra.mxu3 %v9112_v62  ;;  %5894 = vmatpush.msrb.mxu0 %v9113_v56 }
0x1b27   : > { %9132 = vmatmul.msk.f32.vlgmr.msra.gmra.mxu1 %vm617_vm4, %v13946_v59  ;;  %9133 = vmatmul.msk.f32.vlgmr.msra.gmra.mxu2 %vm617_vm4, %v13946_v59 }
0x1b28   : > { %5875 = vmatpush.msra.mxu3 %v9094_v63  ;;  %5895 = vmatpush.msrb.mxu0 %v9095_v1 }
0x1b2a   : > { %5876 = vmatpush.msra.mxu3 %v9076_v2  ;;  %5896 = vmatpush.msrb.mxu0 %v9077_v4 }
0x1b2c   : > { %5877 = vmatpush.msra.mxu3 %v9058_v61  ;;  %5897 = vmatpush.msrb.mxu0 %v9059_v5 }
0x1b2e   : > { %5878 = vmatpush.msra.mxu3 %v9040_v7  ;;  %5898 = vmatpush.msrb.mxu0 %v9041_v8 }
0x1b30   : > { %5879 = vmatpush.msra.mxu3 %v9022_v10  ;;  %5899 = vmatpush.msrb.mxu0 %v9023_v3 }
0x1b32   : > { %5880 = vmatpush.msra.mxu3 %v9004_v11  ;;  %5900 = vmatpush.msrb.mxu0 %v9005_v13 }
0x1b34   : > { %5881 = vmatpush.msra.mxu3 %v8986_v14  ;;  %5901 = vmatpush.msrb.mxu0 %v8987_v16 }
0x1b35   : > { %9130 = vmatmul.msk.f32.vlgmr.msra.gmra.mxu3 %vm617_vm4, %v13946_v59  ;;  %9131 = vmatmul.msk.f32.vlgmr.msrb.gmra.mxu0 %vm617_vm4, %v13946_v59 }
0x1b7c   : > { %v5623_v9 = vpop.f32.mrf.mxu0 }
0x1b7d   : > { %v5683_v17 = vpop.f32.mrf.mxu1 }
0x1b82   : > { %v5603_v18 = vpop.f32.mrf.mxu3 }
0x1b83   : > { %v5703_v19 = vpop.f32.mrf.mxu2 }
0x1b86   : > { %v5663_v20 = vpop.f32.mrf.mxu0 }
0x1b88   : > { %v5763_v21 = vpop.f32.mrf.mxu1 }
0x1b8c   : > { %v5643_v22 = vpop.f32.mrf.mxu3 }
0x1b8e   : > { %v5783_v23 = vpop.f32.mrf.mxu2 }
0x1b92   : > { %v5743_v24 = vpop.f32.mrf.mxu0 }
0x1b93   : > { %v5843_v25 = vpop.f32.mrf.mxu1  ;;  %6017 = vmatpush.xpose.msrb.mxu1 %v5743_v24  ;;  %v9153_v24 = vld [vmem:[%s15636_s6 + $0xc68] sm:$0xff] }
0x1b94   : > { %5997 = vmatpush.msra.mxu0 %v5843_v25 }
0x1b96   : > { %6018 = vmatmul.f32.vlgmr.msrb.gmra.mxu1 %v5623_v9 }
0x1b97   : > { %6129 = vmatpush.xpose.msra.mxu1 %v5783_v23 }
0x1b98   : > { %v5723_v26 = vpop.f32.mrf.mxu3 }
0x1b99   : > { %v5863_v27 = vpop.f32.mrf.mxu2  ;;  %5961 = vmatpush.xpose.msrb.mxu3 %v5723_v26  ;;  %v9152_v26 = vld [vmem:[%s15636_s6 + $0xc60] sm:$0xff] }
0x1b9a   : > { %6053 = vmatpush.msrb.mxu2 %v5863_v27 }
0x1b9c   : > { %5962 = vmatmul.f32.vlgmr.msrb.gmra.mxu3 %v5603_v18 }
0x1b9d   : > { %6073 = vmatpush.xpose.msra.mxu3 %v5763_v21  ;;  %v9155_v21 = vld [vmem:[%s15636_s6 + $0xc78] sm:$0xff] }
0x1b9e   : > { %6130 = vmatmul.f32.vlgmr.msra.gmra.mxu1 %v5663_v20 }
0x1ba2   : > { %v5823_v28 = vpop.f32.mrf.mxu0 }
0x1ba3   : > { %6241 = vmatpush.xpose.msrb.mxu1 %v5823_v28  ;;  %v9151_v28 = vld [vmem:[%s15636_s6 + $0xc58] sm:$0xff] }
0x1ba4   : > { %6074 = vmatmul.f32.vlgmr.msra.gmra.mxu3 %v5643_v22  ;;  %v14224_v32 = vpop.f32.mrf.mxu1  ;;  %v9154_v22 = vld [vmem:[%s15636_s6 + $0xc70] sm:$0xff] }
0x1ba6   : > { %6242 = vmatmul.f32.vlgmr.msrb.gmra.mxu1 %v5703_v19 }
0x1ba8   : > { %v5803_v29 = vpop.f32.mrf.mxu3 }
0x1ba9   : > { %6185 = vmatpush.xpose.msrb.mxu3 %v5803_v29  ;;  %v9150_v29 = vld [vmem:[%s15636_s6 + $0xc50] sm:$0xff] }
0x1baa   : > { %v5943_v25 = vpop.f32.mrf.mxu2 }
0x1bac   : > { %6186 = vmatmul.f32.vlgmr.msrb.gmra.mxu3 %v5683_v17 }
0x1bad   : > { %6379 = vmatpush.msra.mxu3 %v9155_v21  ;;  %v9159_v21 = vld [vmem:[%s15636_s6 + $0xc98] sm:$0xff] }
0x1baf   : > { %6380 = vmatpush.msra.mxu3 %v9154_v22  ;;  %v9158_v22 = vld [vmem:[%s15636_s6 + $0xc90] sm:$0xff] }
0x1bb1   : > { %6381 = vmatpush.msra.mxu3 %v9153_v24  ;;  %v9156_v24 = vld [vmem:[%s15636_s6 + $0xc80] sm:$0xff] }
0x1bb2   : > { %v5903_v30 = vpop.f32.mrf.mxu0 }
0x1bb3   : > { %6165 = vmatpush.msra.mxu2 %v5903_v30  ;;  %6382 = vmatpush.msra.mxu3 %v9152_v26  ;;  %v9187_v30 = vld [vmem:[%s15636_s6 + $0xd78] sm:$0xff] }
0x1bb4   : > { %6419 = vmatpush.msra.mxu1 %v9187_v30  ;;  %v9179_v26 = vld [vmem:[%s15636_s6 + $0xd38] sm:$0xff]  ;;  %v9178_v30 = vld [vmem:[%s15636_s6 + $0xd30] sm:$0xff] }
0x1bb5   : > { %6383 = vmatpush.msra.mxu3 %v9151_v28  ;;  %v9215_v28 = vld [vmem:[%s15636_s6 + $0xe58] sm:$0xff] }
0x1bb7   : > { %6384 = vmatpush.msra.mxu3 %v9150_v29  ;;  %v9234_v29 = vld [vmem:[%s15636_s6 + $0xef0] sm:$0xff] }
0x1bb8   : > { %v5883_v31 = vpop.f32.mrf.mxu3 }
0x1bb9   : > { %6109 = vmatpush.msrb.mxu0 %v5883_v31  ;;  %v9149_v31 = vld [vmem:[%s15636_s6 + $0xc48] sm:$0xff] }
0x1bba   : > { %6385 = vmatpush.msra.mxu3 %v9149_v31  ;;  %v9197_v31 = vld [vmem:[%s15636_s6 + $0xdc8] sm:$0xff] }
0x1c13   : > { %v6019_v33 = vpop.f32.mrf.mxu1 }
0x1c14   : > { %v6022_v34 = vmul.f32 0.088388346, %v6019_v33  ;;  %v9186_v33 = vld [vmem:[%s15636_s6 + $0xd70] sm:$0xff] }
0x1c15   : > { %6420 = vmatpush.msra.mxu1 %v9186_v33  ;;  %v9214_v33 = vld [vmem:[%s15636_s6 + $0xe50] sm:$0xff] }
0x1c16   : > { %v6023_v35 = vsel %vm1002_vm5, %v6022_v34, -inf }
0x1c17   : > { %6024 = vmax.xlane.f32.xlu2 %v6023_v35  ;;  %v9148_v35 = vld [vmem:[%s15636_s6 + $0xc40] sm:$0xff] }
0x1c18   : > { %6386 = vmatpush.msra.mxu3 %v9148_v35  ;;  %v9177_v35 = vld [vmem:[%s15636_s6 + $0xd28] sm:$0xff] }
0x1c1b   : > { %v6131_v38 = vpop.f32.mrf.mxu1 }
0x1c1c   : > { %v6134_v40 = vmul.f32 0.088388346, %v6131_v38 }
0x1c1e   : > { %v6135_v44 = vsel %vm1002_vm5, %v6134_v40, -inf }
0x1c1f   : > { %v5963_v36 = vpop.f32.mrf.mxu3 }
0x1c20   : > { %v5966_v0 = vmul.f32 0.088388346, %v5963_v36  ;;  %v9185_v36 = vld [vmem:[%s15636_s6 + $0xd68] sm:$0xff] }
0x1c21   : > { %6421 = vmatpush.msra.mxu1 %v9185_v36  ;;  %v9196_v36 = vld [vmem:[%s15636_s6 + $0xdc0] sm:$0xff] }
0x1c22   : > { %v5967_v39 = vsel %vm1002_vm5, %v5966_v0, -inf }
0x1c23   : > { %5968 = vmax.xlane.f32.xlu1 %v5967_v39  ;;  %v6243_v45 = vpop.f32.mrf.mxu1 }
0x1c24   : > { %v6246_v46 = vmul.f32 0.088388346, %v6243_v45  ;;  %v9182_v45 = vld [vmem:[%s15636_s6 + $0xd50] sm:$0xff] }
0x1c26   : > { %v6247_v50 = vsel %vm1002_vm5, %v6246_v46, -inf }
0x1c27   : > { %v6075_v41 = vpop.f32.mrf.mxu3 }
0x1c28   : > { %v6078_v6 = vmul.f32 0.088388346, %v6075_v41  ;;  %v9184_v41 = vld [vmem:[%s15636_s6 + $0xd60] sm:$0xff] }
0x1c29   : > { %6422 = vmatpush.msra.mxu1 %v9184_v41  ;;  %v9212_v41 = vld [vmem:[%s15636_s6 + $0xe40] sm:$0xff] }
0x1c2a   : > { %v6079_v43 = vsel %vm1002_vm5, %v6078_v6, -inf }
0x1c2b   : > { %6080 = vmax.xlane.f32.xlu0 %v6079_v43  ;;  %6136 = vmax.xlane.f32.xlu1 %v6135_v44  ;;  %v9183_v43 = vld [vmem:[%s15636_s6 + $0xd58] sm:$0xff]  ;;  %v9145_v44 = vld [vmem:[%s15636_s6 + $0xc28] sm:$0xff] }
0x1c2c   : > { %6423 = vmatpush.msra.mxu1 %v9183_v43  ;;  %v9175_v43 = vld [vmem:[%s15636_s6 + $0xd18] sm:$0xff] }
0x1c2e   : > { %6424 = vmatpush.msra.mxu1 %v9182_v45  ;;  %v9211_v45 = vld [vmem:[%s15636_s6 + $0xe38] sm:$0xff] }
0x1c2f   : > { %v6187_v12 = vpop.f32.mrf.mxu3 }
0x1c30   : > { %v6190_v15 = vmul.f32 0.088388346, %v6187_v12  ;;  %v9181_v12 = vld [vmem:[%s15636_s6 + $0xd48] sm:$0xff] }
0x1c31   : > { %6425 = vmatpush.msra.mxu1 %v9181_v12  ;;  %v9193_v12 = vld [vmem:[%s15636_s6 + $0xda8] sm:$0xff] }
0x1c32   : > { %v6191_v49 = vsel %vm1002_vm5, %v6190_v15, -inf }
0x1c33   : > { %6192 = vmax.xlane.f32.xlu2 %v6191_v49  ;;  %6248 = vmax.xlane.f32.xlu0 %v6247_v50 }
0x1c8a   : > { %v6025_v37 = vpop.xlane.xlu2 %6024 }
0x1c8b   : > { %v6026_v51 = vsub.f32 %v6022_v34, %v6025_v37  ;;  %v9171_v37 = vld [vmem:[%s15636_s6 + $0xcf8] sm:$0xff] }
0x1c8d   : > { %v6027_v52 = vmul.f32 1.442695, %v6026_v51 }
0x1c8f   : > { %9744 = vpow2.f32 %v6027_v52 }
0x1c95   : > { %v9745_v53 = vpop.eup %9744 }
0x1c96   : > { %v5969_v54 = vpop.xlane.xlu1 %5968  ;;  %v6029_v55 = vsel %vm1002_vm5, %v9745_v53, 0.0 }
0x1c97   : > { %v5970_v42 = vsub.f32 %v5966_v0, %v5969_v54  ;;  %6030 = vadd.xlane.f32.xlu2 %v6029_v55  ;;  %v9203_v54 = vld [vmem:[%s15636_s6 + $0xdf8] sm:$0xff]  ;;  %v9170_v55 = vld [vmem:[%s15636_s6 + $0xcf0] sm:$0xff] }
0x1c99   : > { %v5971_v57 = vmul.f32 1.442695, %v5970_v42  ;;  %v9180_v42 = vld [vmem:[%s15636_s6 + $0xd40] sm:$0xff] }
0x1c9a   : > { %6426 = vmatpush.msra.mxu1 %v9180_v42  ;;  %v9227_v42 = vld [vmem:[%s15636_s6 + $0xeb8] sm:$0xff] }
0x1c9b   : > { %9746 = vpow2.f32 %v5971_v57  ;;  %v9142_v57 = vld [vmem:[%s15636_s6 + $0xc10] sm:$0xff] }
0x1c9c   : > { %6427 = vmatpush.msra.mxu1 %v9179_v26 }
0x1c9e   : > { %v6081_v58 = vpop.xlane.xlu0 %6080  ;;  %v6137_v60 = vpop.xlane.xlu1 %6136  ;;  %6428 = vmatpush.msra.mxu1 %v9178_v30 }
0x1c9f   : > { %v6082_v47 = vsub.f32 %v6078_v6, %v6081_v58  ;;  %v6138_v62 = vsub.f32 %v6134_v40, %v6137_v60  ;;  %v9147_v40 = vld [vmem:[%s15636_s6 + $0xc38] sm:$0xff]  ;;  %v9146_v6 = vld [vmem:[%s15636_s6 + $0xc30] sm:$0xff]  ;;  %v9169_v60 = vld [vmem:[%s15636_s6 + $0xce8] sm:$0xff] }
0x1ca0   : > { %6387 = vmatpush.msra.mxu3 %v9147_v40  ;;  %v9202_v58 = vld [vmem:[%s15636_s6 + $0xdf0] sm:$0xff]  ;;  %6429 = vmatpush.msra.mxu1 %v9177_v35  ;;  %v9195_v40 = vld [vmem:[%s15636_s6 + $0xdb8] sm:$0xff] }
0x1ca1   : > { %v9747_v56 = vpop.eup %9746  ;;  %v6083_v63 = vmul.f32 1.442695, %v6082_v47  ;;  %v6139_v1 = vmul.f32 1.442695, %v6138_v62  ;;  %v9141_v47 = vld [vmem:[%s15636_s6 + $0xc08] sm:$0xff]  ;;  %v6537_v35 = vld [vmem:[#allocation2 + $0x278] sm:$0xff] }
0x1ca2   : > { %v5973_v2 = vsel %vm1002_vm5, %v9747_v56, 0.0  ;;  %6388 = vmatpush.msra.mxu3 %v9146_v6  ;;  %v9201_v62 = vld [vmem:[%s15636_s6 + $0xde8] sm:$0xff]  ;;  %v9231_v6 = vld [vmem:[%s15636_s6 + $0xed8] sm:$0xff] }
0x1ca3   : > { %9748 = vpow2.f32 %v6083_v63  ;;  %5974 = vadd.xlane.f32.xlu1 %v5973_v2 }
0x1ca4   : > { %9750 = vpow2.f32 %v6139_v1  ;;  %6389 = vmatpush.msra.mxu3 %v9145_v44  ;;  %v9140_v1 = vld [vmem:[%s15636_s6 + $0xc00] sm:$0xff]  ;;  %v9194_v44 = vld [vmem:[%s15636_s6 + $0xdb0] sm:$0xff] }
0x1ca6   : > { %v6193_v4 = vpop.xlane.xlu2 %6192  ;;  %v6249_v61 = vpop.xlane.xlu0 %6248 }
0x1ca7   : > { %v6194_v5 = vsub.f32 %v6190_v15, %v6193_v4  ;;  %v6250_v7 = vsub.f32 %v6246_v46, %v6249_v61  ;;  %v9144_v46 = vld [vmem:[%s15636_s6 + $0xc20] sm:$0xff]  ;;  %v9167_v61 = vld [vmem:[%s15636_s6 + $0xcd8] sm:$0xff] }
0x1ca8   : > { %6390 = vmatpush.msra.mxu3 %v9144_v46  ;;  %v9174_v46 = vld [vmem:[%s15636_s6 + $0xd10] sm:$0xff] }
0x1ca9   : > { %v14234_v8 = vpop.eup %9748  ;;  %v6195_v10 = vmul.f32 1.442695, %v6194_v5  ;;  %v6251_v3 = vmul.f32 1.442695, %v6250_v7  ;;  %v9219_v7 = vld [vmem:[%s15636_s6 + $0xe78] sm:$0xff] }
0x1caa   : > { %v14236_v11 = vpop.eup %9750  ;;  %v6085_v13 = vsel %vm1002_vm5, %v14234_v8, 0.0 }
0x1cab   : > { %9752 = vpow2.f32 %v6195_v10  ;;  %6086 = vadd.xlane.f32.xlu0 %v6085_v13  ;;  %v6141_v14 = vsel %vm1002_vm5, %v14236_v11, 0.0  ;;  %v9166_v10 = vld [vmem:[%s15636_s6 + $0xcd0] sm:$0xff]  ;;  %v9165_v13 = vld [vmem:[%s15636_s6 + $0xcc8] sm:$0xff] }
0x1cac   : > { %9754 = vpow2.f32 %v6251_v3  ;;  %6142 = vadd.xlane.f32.xlu1 %v6141_v14  ;;  %v9218_v3 = vld [vmem:[%s15636_s6 + $0xe70] sm:$0xff]  ;;  %v9217_v14 = vld [vmem:[%s15636_s6 + $0xe68] sm:$0xff] }
0x1cb1   : > { %v14242_v16 = vpop.eup %9752 }
0x1cb2   : > { %v14244_v9 = vpop.eup %9754  ;;  %v6197_v17 = vsel %vm1002_vm5, %v14242_v16, 0.0 }
0x1cb3   : > { %6198 = vadd.xlane.f32.xlu2 %v6197_v17  ;;  %v6253_v18 = vsel %vm1002_vm5, %v14244_v9, 0.0  ;;  %v9163_v17 = vld [vmem:[%s15636_s6 + $0xcb8] sm:$0xff] }
0x1cb4   : > { %6254 = vadd.xlane.f32.xlu0 %v6253_v18  ;;  %v9162_v18 = vld [vmem:[%s15636_s6 + $0xcb0] sm:$0xff] }
0x1d0a   : > { %v6031_v19 = vpop.xlane.xlu2 %6030 }
0x1d0b   : > { %9756 = vrcp.f32 %v6031_v19  ;;  %v9161_v19 = vld [vmem:[%s15636_s6 + $0xca8] sm:$0xff] }
0x1d11   : > { %v9757_v20 = vpop.eup %9756 }
0x1d12   : > { %v6033_v23 = vmul.f32 %v9757_v20, %v9745_v53  ;;  %v9143_v53 = vld [vmem:[%s15636_s6 + $0xc18] sm:$0xff]  ;;  %v9160_v20 = vld [vmem:[%s15636_s6 + $0xca0] sm:$0xff] }
0x1d13   : > { %6391 = vmatpush.msra.mxu3 %v9143_v53  ;;  %v9172_v53 = vld [vmem:[%s15636_s6 + $0xd00] sm:$0xff] }
0x1d14   : > { %6034 = vst.msk [vmem:[%s10550_s27 + $0xc8] sm:$0xff] %vm1002_vm5, %v6033_v23  ;;  %9135 = vmatmul.msk.f32.vlgmr.msrb.gmra.mxu2 %vm1002_vm5, %v6033_v23  ;;  %v9157_v23 = vld [vmem:[%s15636_s6 + $0xc88] sm:$0xff] }
0x1d15   : > { %6277 = vmatpush.msrb.mxu2 %v5943_v25  ;;  %6392 = vmatpush.msra.mxu3 %v9142_v57  ;;  %v9235_v25 = vld [vmem:[%s15636_s6 + $0xef8] sm:$0xff]  ;;  %v9190_v57 = vld [vmem:[%s15636_s6 + $0xd90] sm:$0xff] }
0x1d16   : > { %v5975_v27 = vpop.xlane.xlu1 %5974 }
0x1d17   : > { %9758 = vrcp.f32 %v5975_v27  ;;  %6393 = vmatpush.msra.mxu3 %v9141_v47  ;;  %v9198_v27 = vld [vmem:[%s15636_s6 + $0xdd0] sm:$0xff]  ;;  %v9189_v47 = vld [vmem:[%s15636_s6 + $0xd88] sm:$0xff] }
0x1d19   : > { %6394 = vmatpush.msra.mxu3 %v9140_v1  ;;  %v9205_v1 = vld [vmem:[%s15636_s6 + $0xe08] sm:$0xff] }
0x1d1b   : > { %6459 = vmatpush.msrb.mxu3 %v9219_v7  ;;  %v9221_v7 = vld [vmem:[%s15636_s6 + $0xe88] sm:$0xff] }
0x1d1d   : > { %v9759_v34 = vpop.eup %9758  ;;  %6460 = vmatpush.msrb.mxu3 %v9218_v3 }
0x1d1e   : > { %v5977_v0 = vmul.f32 %v9759_v34, %v9747_v56  ;;  %v6087_v38 = vpop.xlane.xlu0 %6086  ;;  %v9168_v56 = vld [vmem:[%s15636_s6 + $0xce0] sm:$0xff]  ;;  %v9233_v34 = vld [vmem:[%s15636_s6 + $0xee8] sm:$0xff] }
0x1d1f   : > { %9760 = vrcp.f32 %v6087_v38  ;;  %v6143_v39 = vpop.xlane.xlu1 %6142  ;;  %6461 = vmatpush.msrb.mxu3 %v9217_v14  ;;  %v9232_v38 = vld [vmem:[%s15636_s6 + $0xee0] sm:$0xff] }
0x1d20   : > { %5978 = vst.msk [vmem:[%s10550_s27 + $0xc0] sm:$0xff] %vm1002_vm5, %v5977_v0  ;;  %9762 = vrcp.f32 %v6143_v39  ;;  %9134 = vmatmul.msk.f32.vlgmr.msra.gmra.mxu0 %vm1002_vm5, %v5977_v0  ;;  %v9213_v0 = vld [vmem:[%s15636_s6 + $0xe48] sm:$0xff]  ;;  %v9176_v39 = vld [vmem:[%s15636_s6 + $0xd20] sm:$0xff] }
0x1d21   : > { %6221 = vmatpush.msra.mxu0 %v14224_v32  ;;  %6430 = vmatpush.msra.mxu1 %v9176_v39  ;;  %v6533_v39 = vld [vmem:[#allocation2 + $0x258] sm:$0xff] }
0x1d23   : > { %6431 = vmatpush.msra.mxu1 %v9175_v43  ;;  %v6529_v43 = vld [vmem:[#allocation2 + $0x238] sm:$0xff] }
0x1d25   : > { %v9761_v32 = vpop.eup %9760  ;;  %6432 = vmatpush.msra.mxu1 %v9174_v46  ;;  %v6525_v46 = vld [vmem:[#allocation2 + $0x218] sm:$0xff] }
0x1d26   : > { %v9763_v15 = vpop.eup %9762  ;;  %v6089_v49 = vmul.f32 %v9761_v32, %v14234_v8  ;;  %v6199_v50 = vpop.xlane.xlu2 %6198  ;;  %v9200_v8 = vld [vmem:[%s15636_s6 + $0xde0] sm:$0xff]  ;;  %v9230_v32 = vld [vmem:[%s15636_s6 + $0xed0] sm:$0xff] }
0x1d27   : > { %v6145_v51 = vmul.f32 %v9763_v15, %v14236_v11  ;;  %9764 = vrcp.f32 %v6199_v50  ;;  %v6255_v52 = vpop.xlane.xlu0 %6254  ;;  %v9199_v11 = vld [vmem:[%s15636_s6 + $0xdd8] sm:$0xff]  ;;  %v9210_v15 = vld [vmem:[%s15636_s6 + $0xe30] sm:$0xff]  ;;  %v9173_v50 = vld [vmem:[%s15636_s6 + $0xd08] sm:$0xff] }
0x1d28   : > { %6090 = vst.msk [vmem:[%s10550_s27 + $0xd0] sm:$0xff] %vm1002_vm5, %v6089_v49  ;;  %9766 = vrcp.f32 %v6255_v52  ;;  %9136 = vmatmul.msk.f32.vlgmr.msrb.gmra.mxu0 %vm1002_vm5, %v6089_v49  ;;  %v9229_v49 = vld [vmem:[%s15636_s6 + $0xec8] sm:$0xff]  ;;  %v9228_v52 = vld [vmem:[%s15636_s6 + $0xec0] sm:$0xff]  ;;  %6433 = vmatpush.msra.mxu1 %v9173_v50  ;;  %v9269_v50 = vld [vmem:[%s15638_s8 + $0x4f8] sm:$0xff] }
0x1d29   : > { %6146 = vst.msk [vmem:[%s10550_s27 + $0xd8] sm:$0xff] %vm1002_vm5, %v6145_v51  ;;  %9137 = vmatmul.msk.f32.vlgmr.msra.gmra.mxu2 %vm1002_vm5, %v6145_v51  ;;  %6399 = vmatpush.msrb.mxu0 %v9171_v37  ;;  %v9192_v37 = vld [vmem:[%s15636_s6 + $0xda0] sm:$0xff]  ;;  %v9209_v51 = vld [vmem:[%s15636_s6 + $0xe28] sm:$0xff] }
0x1d2a   : > { %6439 = vmatpush.msra.mxu2 %v9203_v54  ;;  %v9191_v54 = vld [vmem:[%s15636_s6 + $0xd98] sm:$0xff]  ;;  %6434 = vmatpush.msra.mxu1 %v9172_v53  ;;  %v9267_v53 = vld [vmem:[%s15638_s8 + $0x4e8] sm:$0xff] }
0x1d2b   : > { %6400 = vmatpush.msrb.mxu0 %v9170_v55  ;;  %v9208_v55 = vld [vmem:[%s15636_s6 + $0xe20] sm:$0xff] }
0x1d2c   : > { %6440 = vmatpush.msra.mxu2 %v9202_v58  ;;  %v9207_v58 = vld [vmem:[%s15636_s6 + $0xe18] sm:$0xff] }
0x1d2d   : > { %v9765_v63 = vpop.eup %9764  ;;  %6401 = vmatpush.msrb.mxu0 %v9169_v60  ;;  %v9226_v60 = vld [vmem:[%s15636_s6 + $0xeb0] sm:$0xff] }
0x1d2e   : > { %v9767_v2 = vpop.eup %9766  ;;  %v6201_v4 = vmul.f32 %v9765_v63, %v14242_v16  ;;  %6441 = vmatpush.msra.mxu2 %v9201_v62  ;;  %v9164_v16 = vld [vmem:[%s15636_s6 + $0xcc0] sm:$0xff]  ;;  %v9206_v62 = vld [vmem:[%s15636_s6 + $0xe10] sm:$0xff] }
0x1d2f   : > { %v6257_v5 = vmul.f32 %v9767_v2, %v14244_v9  ;;  %6402 = vmatpush.msrb.mxu0 %v9168_v56  ;;  %v9216_v9 = vld [vmem:[%s15636_s6 + $0xe60] sm:$0xff]  ;;  %v9225_v56 = vld [vmem:[%s15636_s6 + $0xea8] sm:$0xff] }
0x1d30   : > { %6202 = vst.msk [vmem:[%s10550_s27 + $0xe0] sm:$0xff] %vm1002_vm5, %v6201_v4  ;;  %9138 = vmatmul.msk.f32.vlgmr.msra.gmra.mxu0 %vm1002_vm5, %v6201_v4  ;;  %6442 = vmatpush.msra.mxu2 %v9200_v8  ;;  %v9188_v63 = vld [vmem:[%s15636_s6 + $0xd80] sm:$0xff] }
0x1d31   : > { %6258 = vst.msk [vmem:[%s10550_s27 + $0xe8] sm:$0xff] %vm1002_vm5, %v6257_v5  ;;  %9139 = vmatmul.msk.f32.vlgmr.msrb.gmra.mxu2 %vm1002_vm5, %v6257_v5  ;;  %6403 = vmatpush.msrb.mxu0 %v9167_v61  ;;  %v9224_v2 = vld [vmem:[%s15636_s6 + $0xea0] sm:$0xff]  ;;  %v9223_v61 = vld [vmem:[%s15636_s6 + $0xe98] sm:$0xff]  ;;  %v9222_v5 = vld [vmem:[%s15636_s6 + $0xe90] sm:$0xff] }
0x1d32   : > { %6443 = vmatpush.msra.mxu2 %v9199_v11  ;;  %6462 = vmatpush.msrb.mxu3 %v9216_v9  ;;  %v9204_v4 = vld [vmem:[%s15636_s6 + $0xe00] sm:$0xff] }
0x1d33   : > { %6404 = vmatpush.msrb.mxu0 %v9166_v10  ;;  %v9220_v8 = vld [vmem:[%s15636_s6 + $0xe80] sm:$0xff] }
0x1d34   : > { %6444 = vmatpush.msra.mxu2 %v9198_v27  ;;  %6463 = vmatpush.msrb.mxu3 %v9215_v28 }
0x1d35   : > { %6405 = vmatpush.msrb.mxu0 %v9165_v13 }
0x1d36   : > { %6445 = vmatpush.msra.mxu2 %v9197_v31  ;;  %6464 = vmatpush.msrb.mxu3 %v9214_v33 }
0x1d37   : > { %6406 = vmatpush.msrb.mxu0 %v9164_v16 }
0x1d38   : > { %6446 = vmatpush.msra.mxu2 %v9196_v36  ;;  %6465 = vmatpush.msrb.mxu3 %v9213_v0  ;;  %v6534_v36 = vld [vmem:[#allocation2 + $0x260] sm:$0xff]  ;;  %v6535_v0 = vld [vmem:[#allocation2 + $0x268] sm:$0xff] }
0x1d39   : > { %6407 = vmatpush.msrb.mxu0 %v9163_v17 }
0x1d3a   : > { %6447 = vmatpush.msra.mxu2 %v9195_v40  ;;  %6466 = vmatpush.msrb.mxu3 %v9212_v41  ;;  %v6530_v40 = vld [vmem:[#allocation2 + $0x240] sm:$0xff]  ;;  %v6531_v41 = vld [vmem:[#allocation2 + $0x248] sm:$0xff] }
0x1d3b   : > { %6408 = vmatpush.msrb.mxu0 %v9162_v18 }
0x1d3c   : > { %6448 = vmatpush.msra.mxu2 %v9194_v44  ;;  %6467 = vmatpush.msrb.mxu3 %v9211_v45  ;;  %v6526_v44 = vld [vmem:[#allocation2 + $0x220] sm:$0xff]  ;;  %v6527_v45 = vld [vmem:[#allocation2 + $0x228] sm:$0xff] }
0x1d3d   : > { %6409 = vmatpush.msrb.mxu0 %v9161_v19 }
0x1d3e   : > { %6449 = vmatpush.msra.mxu2 %v9193_v12  ;;  %6468 = vmatpush.msrb.mxu3 %v9210_v15  ;;  %v6522_v12 = vld [vmem:[#allocation2 + $0x200] sm:$0xff]  ;;  %v6523_v15 = vld [vmem:[#allocation2 + $0x208] sm:$0xff] }
0x1d3f   : > { %6410 = vmatpush.msrb.mxu0 %v9160_v20 }
0x1d40   : > { %6450 = vmatpush.msra.mxu2 %v9192_v37  ;;  %6469 = vmatpush.msrb.mxu3 %v9209_v51  ;;  %v9252_v37 = vld [vmem:[%s15638_s8 + $0x470] sm:$0xff] }
0x1d41   : > { %6411 = vmatpush.msrb.mxu0 %v9159_v21  ;;  %v9268_v51 = vld [vmem:[%s15638_s8 + $0x4f0] sm:$0xff] }
0x1d42   : > { %6451 = vmatpush.msra.mxu2 %v9191_v54  ;;  %6470 = vmatpush.msrb.mxu3 %v9208_v55  ;;  %v9250_v54 = vld [vmem:[%s15638_s8 + $0x460] sm:$0xff] }
0x1d43   : > { %6412 = vmatpush.msrb.mxu0 %v9158_v22  ;;  %v9266_v55 = vld [vmem:[%s15638_s8 + $0x4e0] sm:$0xff] }
0x1d44   : > { %6452 = vmatpush.msra.mxu2 %v9190_v57  ;;  %6471 = vmatpush.msrb.mxu3 %v9207_v58  ;;  %v9249_v58 = vld [vmem:[%s15638_s8 + $0x458] sm:$0xff] }
0x1d45   : > { %6413 = vmatpush.msrb.mxu0 %v9157_v23 }
0x1d46   : > { %6453 = vmatpush.msra.mxu2 %v9189_v47  ;;  %6472 = vmatpush.msrb.mxu3 %v9206_v62  ;;  %v9248_v62 = vld [vmem:[%s15638_s8 + $0x450] sm:$0xff] }
0x1d47   : > { %6414 = vmatpush.msrb.mxu0 %v9156_v24 }
0x1d48   : > { %6454 = vmatpush.msra.mxu2 %v9188_v63  ;;  %6473 = vmatpush.msrb.mxu3 %v9205_v1  ;;  %v9247_v63 = vld [vmem:[%s15638_s8 + $0x448] sm:$0xff] }
0x1d49   : > { %6479 = vmatpush.msra.mxu0 %v9235_v25  ;;  %v9263_v1 = vld [vmem:[%s15638_s8 + $0x4c8] sm:$0xff] }
0x1d4a   : > { %6474 = vmatpush.msrb.mxu3 %v9204_v4  ;;  %6569 = vmatpush.msrb.mxu2 %v6537_v35  ;;  %v9262_v4 = vld [vmem:[%s15638_s8 + $0x4c0] sm:$0xff] }
0x1d4b   : > { %6480 = vmatpush.msra.mxu0 %v9234_v29 }
0x1d4c   : > { %6570 = vmatpush.msrb.mxu2 %v6535_v0 }
0x1d4d   : > { %6481 = vmatpush.msra.mxu0 %v9233_v34  ;;  %v6536_v34 = vld [vmem:[#allocation2 + $0x270] sm:$0xff] }
0x1d4e   : > { %6549 = vmatpush.msrb.mxu1 %v6536_v34  ;;  %6571 = vmatpush.msrb.mxu2 %v6533_v39  ;;  %v9396_v39 = vld [vmem:[%s15635_s5 + $0x1a70] sm:$0xff] }
0x1d4f   : > { %6482 = vmatpush.msra.mxu0 %v9232_v38  ;;  %v6532_v38 = vld [vmem:[#allocation2 + $0x250] sm:$0xff] }
0x1d50   : > { %6550 = vmatpush.msrb.mxu1 %v6534_v36  ;;  %6572 = vmatpush.msrb.mxu2 %v6531_v41  ;;  %v9400_v41 = vld [vmem:[%s15635_s5 + $0x1a90] sm:$0xff] }
0x1d51   : > { %6483 = vmatpush.msra.mxu0 %v9231_v6  ;;  %v6528_v6 = vld [vmem:[#allocation2 + $0x230] sm:$0xff] }
0x1d52   : > { %6551 = vmatpush.msrb.mxu1 %v6532_v38  ;;  %6573 = vmatpush.msrb.mxu2 %v6529_v43  ;;  %v9378_v43 = vld [vmem:[%s15635_s5 + $0x19e0] sm:$0xff] }
0x1d53   : > { %6484 = vmatpush.msra.mxu0 %v9230_v32  ;;  %v6524_v32 = vld [vmem:[#allocation2 + $0x210] sm:$0xff] }
0x1d54   : > { %6552 = vmatpush.msrb.mxu1 %v6530_v40  ;;  %6574 = vmatpush.msrb.mxu2 %v6527_v45  ;;  %v9397_v40 = vld [vmem:[%s15635_s5 + $0x1a78] sm:$0xff]  ;;  %v9382_v45 = vld [vmem:[%s15635_s5 + $0x1a00] sm:$0xff] }
0x1d55   : > { %6485 = vmatpush.msra.mxu0 %v9229_v49  ;;  %v9253_v49 = vld [vmem:[%s15638_s8 + $0x478] sm:$0xff] }
0x1d56   : > { %6553 = vmatpush.msrb.mxu1 %v6528_v6  ;;  %6575 = vmatpush.msrb.mxu2 %v6525_v46  ;;  %v9401_v6 = vld [vmem:[%s15635_s5 + $0x1a98] sm:$0xff]  ;;  %v9360_v46 = vld [vmem:[%s15635_s5 + $0x1950] sm:$0xff] }
0x1d57   : > { %6486 = vmatpush.msra.mxu0 %v9228_v52  ;;  %v9251_v52 = vld [vmem:[%s15638_s8 + $0x468] sm:$0xff] }
0x1d58   : > { %6554 = vmatpush.msrb.mxu1 %v6526_v44  ;;  %6576 = vmatpush.msrb.mxu2 %v6523_v15  ;;  %v9379_v44 = vld [vmem:[%s15635_s5 + $0x19e8] sm:$0xff]  ;;  %v9364_v15 = vld [vmem:[%s15635_s5 + $0x1970] sm:$0xff] }
0x1d59   : > { %6487 = vmatpush.msra.mxu0 %v9227_v42 }
0x1d5a   : > { %6555 = vmatpush.msrb.mxu1 %v6524_v32  ;;  %v9383_v32 = vld [vmem:[%s15635_s5 + $0x1a08] sm:$0xff] }
0x1d5b   : > { %6488 = vmatpush.msra.mxu0 %v9226_v60  ;;  %v9265_v60 = vld [vmem:[%s15638_s8 + $0x4d8] sm:$0xff] }
0x1d5c   : > { %6556 = vmatpush.msrb.mxu1 %v6522_v12  ;;  %v9361_v12 = vld [vmem:[%s15635_s5 + $0x1958] sm:$0xff] }
0x1d5d   : > { %6489 = vmatpush.msra.mxu0 %v9225_v56  ;;  %v9264_v56 = vld [vmem:[%s15638_s8 + $0x4d0] sm:$0xff] }
0x1d5f   : > { %6490 = vmatpush.msra.mxu0 %v9224_v2  ;;  %v9246_v2 = vld [vmem:[%s15638_s8 + $0x440] sm:$0xff] }
0x1d61   : > { %6491 = vmatpush.msra.mxu0 %v9223_v61  ;;  %v9245_v61 = vld [vmem:[%s15638_s8 + $0x438] sm:$0xff] }
0x1d63   : > { %6492 = vmatpush.msra.mxu0 %v9222_v5  ;;  %v9261_v5 = vld [vmem:[%s15638_s8 + $0x4b8] sm:$0xff] }
0x1d65   : > { %6493 = vmatpush.msra.mxu0 %v9221_v7 }
0x1d67   : > { %6494 = vmatpush.msra.mxu0 %v9220_v8  ;;  %v9244_v8 = vld [vmem:[%s15638_s8 + $0x430] sm:$0xff] }
0x1d97   : > { %v6055_v10 = vpop.f32.mrf.mxu2 }
0x1d98   : > { %6415 = vmatmul.f32.vlgmr.msrb.gmra.mxu0 %v6055_v10  ;;  %v9260_v10 = vld [vmem:[%s15638_s8 + $0x4b0] sm:$0xff] }
0x1d99   : > { %6854 = vmatpush.msrb.mxu0 %v9397_v40  ;;  %v9297_v40 = vld [vmem:[%s15635_s5 + $0x1758] sm:$0xff] }
0x1d9b   : > { %6855 = vmatpush.msrb.mxu0 %v9379_v44  ;;  %v9279_v44 = vld [vmem:[%s15635_s5 + $0x16c8] sm:$0xff] }
0x1d9d   : > { %v5999_v3 = vpop.f32.mrf.mxu0  ;;  %6856 = vmatpush.msrb.mxu0 %v9361_v12 }
0x1d9e   : > { %6395 = vmatmul.f32.vlgmr.msra.gmra.mxu3 %v5999_v3 }
0x1d9f   : > { %6834 = vmatpush.msra.mxu3 %v9396_v39  ;;  %v9296_v39 = vld [vmem:[%s15635_s5 + $0x1750] sm:$0xff] }
0x1da1   : > { %6835 = vmatpush.msra.mxu3 %v9378_v43  ;;  %v9278_v43 = vld [vmem:[%s15635_s5 + $0x16c0] sm:$0xff] }
0x1da3   : > { %6836 = vmatpush.msra.mxu3 %v9360_v46 }
0x1da5   : > { %v6111_v11 = vpop.f32.mrf.mxu0 }
0x1da6   : > { %6435 = vmatmul.f32.vlgmr.msra.gmra.mxu1 %v6111_v11  ;;  %v9243_v11 = vld [vmem:[%s15638_s8 + $0x428] sm:$0xff] }
0x1da7   : > { %6616 = vmatpush.msra.mxu1 %v9253_v49  ;;  %v9365_v49 = vld [vmem:[%s15635_s5 + $0x1978] sm:$0xff] }
0x1da9   : > { %6617 = vmatpush.msra.mxu1 %v9252_v37 }
0x1dab   : > { %6618 = vmatpush.msra.mxu1 %v9251_v52 }
0x1dac   : > { %v6167_v13 = vpop.f32.mrf.mxu2 }
0x1dad   : > { %6455 = vmatmul.f32.vlgmr.msra.gmra.mxu2 %v6167_v13  ;;  %v6223_v14 = vpop.f32.mrf.mxu0  ;;  %6619 = vmatpush.msra.mxu1 %v9250_v54  ;;  %v9259_v13 = vld [vmem:[%s15638_s8 + $0x4a8] sm:$0xff]  ;;  %v9342_v54 = vld [vmem:[%s15635_s5 + $0x18c0] sm:$0xff] }
0x1dae   : > { %6475 = vmatmul.f32.vlgmr.msrb.gmra.mxu3 %v6223_v14  ;;  %6636 = vmatpush.msra.mxu2 %v9269_v50 }
0x1daf   : > { %6620 = vmatpush.msra.mxu1 %v9249_v58  ;;  %6837 = vmatpush.msra.mxu3 %v9342_v54  ;;  %v9324_v58 = vld [vmem:[%s15635_s5 + $0x1830] sm:$0xff] }
0x1db0   : > { %6637 = vmatpush.msra.mxu2 %v9268_v51 }
0x1db1   : > { %6621 = vmatpush.msra.mxu1 %v9248_v62  ;;  %6838 = vmatpush.msra.mxu3 %v9324_v58  ;;  %v9329_v62 = vld [vmem:[%s15635_s5 + $0x1858] sm:$0xff]  ;;  %v9384_v58 = vld [vmem:[%s15635_s5 + $0x1a10] sm:$0xff] }
0x1db2   : > { %6638 = vmatpush.msra.mxu2 %v9267_v53 }
0x1db3   : > { %6622 = vmatpush.msra.mxu1 %v9247_v63  ;;  %v9307_v63 = vld [vmem:[%s15635_s5 + $0x17a8] sm:$0xff] }
0x1db4   : > { %v6279_v16 = vpop.f32.mrf.mxu2  ;;  %6639 = vmatpush.msra.mxu2 %v9266_v55  ;;  %v9343_v55 = vld [vmem:[%s15635_s5 + $0x18c8] sm:$0xff] }
0x1db5   : > { %6495 = vmatmul.f32.vlgmr.msra.gmra.mxu0 %v6279_v16  ;;  %6623 = vmatpush.msra.mxu1 %v9246_v2  ;;  %v9242_v16 = vld [vmem:[%s15638_s8 + $0x420] sm:$0xff]  ;;  %v9311_v2 = vld [vmem:[%s15635_s5 + $0x17c8] sm:$0xff] }
0x1db6   : > { %6640 = vmatpush.msra.mxu2 %v9265_v60  ;;  %6857 = vmatpush.msrb.mxu0 %v9343_v55  ;;  %v9325_v60 = vld [vmem:[%s15635_s5 + $0x1838] sm:$0xff]  ;;  %v9402_v55 = vld [vmem:[%s15635_s5 + $0x1aa0] sm:$0xff] }
0x1db7   : > { %6624 = vmatpush.msra.mxu1 %v9245_v61  ;;  %v9289_v61 = vld [vmem:[%s15635_s5 + $0x1718] sm:$0xff] }
0x1db8   : > { %6641 = vmatpush.msra.mxu2 %v9264_v56  ;;  %6858 = vmatpush.msrb.mxu0 %v9325_v60  ;;  %v9306_v56 = vld [vmem:[%s15635_s5 + $0x17a0] sm:$0xff]  ;;  %v9385_v60 = vld [vmem:[%s15635_s5 + $0x1a18] sm:$0xff] }
0x1db9   : > { %6625 = vmatpush.msra.mxu1 %v9244_v8  ;;  %6839 = vmatpush.msra.mxu3 %v9306_v56  ;;  %v9270_v8 = vld [vmem:[%s15635_s5 + $0x1680] sm:$0xff] }
0x1dba   : > { %6642 = vmatpush.msra.mxu2 %v9263_v1  ;;  %v9310_v1 = vld [vmem:[%s15635_s5 + $0x17c0] sm:$0xff]  ;;  %6859 = vmatpush.msrb.mxu0 %v9307_v63  ;;  %v9367_v63 = vld [vmem:[%s15635_s5 + $0x1988] sm:$0xff] }
0x1dbb   : > { %6626 = vmatpush.msra.mxu1 %v9243_v11  ;;  %v9275_v11 = vld [vmem:[%s15635_s5 + $0x16a8] sm:$0xff]  ;;  %v9366_v56 = vld [vmem:[%s15635_s5 + $0x1980] sm:$0xff] }
0x1dbc   : > { %6643 = vmatpush.msra.mxu2 %v9262_v4  ;;  %v9288_v4 = vld [vmem:[%s15635_s5 + $0x1710] sm:$0xff]  ;;  %6860 = vmatpush.msrb.mxu0 %v9289_v61  ;;  %v9349_v61 = vld [vmem:[%s15635_s5 + $0x18f8] sm:$0xff] }
0x1dbd   : > { %6627 = vmatpush.msra.mxu1 %v9242_v16  ;;  %6840 = vmatpush.msra.mxu3 %v9288_v4  ;;  %v9404_v16 = vld [vmem:[%s15635_s5 + $0x1ab0] sm:$0xff] }
0x1dbe   : > { %6644 = vmatpush.msra.mxu2 %v9261_v5  ;;  %v9292_v5 = vld [vmem:[%s15635_s5 + $0x1730] sm:$0xff] }
0x1dbf   : > { %6841 = vmatpush.msra.mxu3 %v9270_v8  ;;  %v9348_v4 = vld [vmem:[%s15635_s5 + $0x18f0] sm:$0xff]  ;;  %v9330_v8 = vld [vmem:[%s15635_s5 + $0x1860] sm:$0xff] }
0x1dc0   : > { %6645 = vmatpush.msra.mxu2 %v9260_v10  ;;  %v9271_v10 = vld [vmem:[%s15635_s5 + $0x1688] sm:$0xff] }
0x1dc1   : > { %6861 = vmatpush.msrb.mxu0 %v9271_v10  ;;  %v9331_v10 = vld [vmem:[%s15635_s5 + $0x1868] sm:$0xff] }
0x1dc2   : > { %6646 = vmatpush.msra.mxu2 %v9259_v13  ;;  %v9398_v13 = vld [vmem:[%s15635_s5 + $0x1a80] sm:$0xff] }
0x1dc3   : > { %6874 = vmatpush.msrb.mxu3 %v9398_v13  ;;  %v9312_v13 = vld [vmem:[%s15635_s5 + $0x17d0] sm:$0xff] }
0x1e15   : > { %v6416_v18 = vpop.f32.mrf.mxu0 }
0x1e21   : > { %v6396_v9 = vpop.f32.mrf.mxu3 }
0x1e22   : > { %v6397_v17 = vadd.f32 %v6396_v9, %v13946_v59 }
0x1e23   : > { %v6436_v20 = vpop.f32.mrf.mxu1 }
0x1e24   : > { %v6417_v19 = vadd.f32 %v6416_v18, %v6397_v17  ;;  %v9241_v17 = vld [vmem:[%s15638_s8 + $0x418] sm:$0xff] }
0x1e25   : > { %6628 = vmatpush.msra.mxu1 %v9241_v17  ;;  %v9380_v17 = vld [vmem:[%s15635_s5 + $0x19f0] sm:$0xff] }
0x1e26   : > { %v6437_v21 = vadd.f32 %v6436_v20, %v6417_v19  ;;  %v9240_v19 = vld [vmem:[%s15638_s8 + $0x410] sm:$0xff]  ;;  %6875 = vmatpush.msrb.mxu3 %v9380_v17  ;;  %v9294_v17 = vld [vmem:[%s15635_s5 + $0x1740] sm:$0xff] }
0x1e27   : > { %6629 = vmatpush.msra.mxu1 %v9240_v19  ;;  %v9386_v19 = vld [vmem:[%s15635_s5 + $0x1a20] sm:$0xff] }
0x1e30   : > { %v6456_v22 = vpop.f32.mrf.mxu2 }
0x1e31   : > { %v6457_v23 = vadd.f32 %v6456_v22, %v6437_v21  ;;  %v6476_v24 = vpop.f32.mrf.mxu3 }
0x1e32   : > { %v6496_v26 = vpop.f32.mrf.mxu0 }
0x1e33   : > { %v6477_v25 = vadd.f32 %v6476_v24, %v6457_v23  ;;  %v9239_v23 = vld [vmem:[%s15638_s8 + $0x408] sm:$0xff]  ;;  %v9258_v24 = vld [vmem:[%s15638_s8 + $0x4a0] sm:$0xff] }
0x1e34   : > { %6630 = vmatpush.msra.mxu1 %v9239_v23  ;;  %6647 = vmatpush.msra.mxu2 %v9258_v24  ;;  %v9368_v23 = vld [vmem:[%s15635_s5 + $0x1990] sm:$0xff]  ;;  %v9369_v24 = vld [vmem:[%s15635_s5 + $0x1998] sm:$0xff] }
0x1e35   : > { %v6497_v27 = vadd.f32 %v6496_v26, %v6477_v25  ;;  %v9238_v25 = vld [vmem:[%s15638_s8 + $0x400] sm:$0xff]  ;;  %v9257_v26 = vld [vmem:[%s15638_s8 + $0x498] sm:$0xff] }
0x1e36   : > { %6631 = vmatpush.msra.mxu1 %v9238_v25  ;;  %6648 = vmatpush.msra.mxu2 %v9257_v26  ;;  %v9344_v25 = vld [vmem:[%s15635_s5 + $0x18d0] sm:$0xff]  ;;  %v9345_v26 = vld [vmem:[%s15635_s5 + $0x18d8] sm:$0xff] }
0x1e37   : > { %v6499_v28 = vsel %vm617_vm4, %v6497_v27, 0.0 }
0x1e38   : > { %6500 = vadd.xlane.f32.xlu1 %v6499_v28  ;;  %v9255_v28 = vld [vmem:[%s15638_s8 + $0x488] sm:$0xff] }
0x1eab   : > { %v6501_v29 = vpop.xlane.xlu1 %6500 }
0x1eac   : > { %v6502_v30 = vmul.f32 %v6501_v29, %v10865_v48  ;;  %v9254_v29 = vld [vmem:[%s15638_s8 + $0x480] sm:$0xff] }
0x1eae   : > { %v14564_v31 = vsub.f32 %v6497_v27, %v6502_v30  ;;  %v9256_v27 = vld [vmem:[%s15638_s8 + $0x490] sm:$0xff] }
0x1eaf   : > { %6649 = vmatpush.msra.mxu2 %v9256_v27  ;;  %v9350_v27 = vld [vmem:[%s15635_s5 + $0x1900] sm:$0xff] }
0x1eb0   : > { %v6504_v59 = vmul.f32 %v14564_v31, %v14564_v31 }
0x1eb1   : > { %6650 = vmatpush.msra.mxu2 %v9255_v28  ;;  %v9351_v28 = vld [vmem:[%s15635_s5 + $0x1908] sm:$0xff] }
0x1eb2   : > { %v6505_v33 = vsel %vm617_vm4, %v6504_v59, 0.0 }
0x1eb3   : > { %6506 = vadd.xlane.f32.xlu2 %v6505_v33  ;;  %6651 = vmatpush.msra.mxu2 %v9254_v29  ;;  %v9326_v29 = vld [vmem:[%s15635_s5 + $0x1840] sm:$0xff] }
0x1f26   : > { %v6507_v42 = vpop.xlane.xlu2 %6506 }
0x1f27   : > { %v6508_v57 = vmul.f32 %v6507_v42, %v10865_v48  ;;  %v9346_v42 = vld [vmem:[%s15635_s5 + $0x18e0] sm:$0xff] }
0x1f29   : > { %v6509_v47 = vadd.f32 1e-05, %v6508_v57  ;;  %v9347_v57 = vld [vmem:[%s15635_s5 + $0x18e8] sm:$0xff] }
0x1f2b   : > { %9768 = vrsqrt.f32 %v6509_v47  ;;  %vm6516_vm2 = vweird.f32 %v6509_v47 }
0x1f31   : > { %v9769_v7 = vpop.eup %9768 }
0x1f32   : > { %v6511_v3 = vmul.f32 %v9769_v7, %v6509_v47  ;;  %vm6517_vm1 = vweird.f32 %v9769_v7  ;;  %v9328_v47 = vld [vmem:[%s15635_s5 + $0x1850] sm:$0xff] }
0x1f33   : > { %vm6518_vm3 = vmor %vm6516_vm2, %vm6517_vm1 }
0x1f34   : > { %v6512_v14 = vmul.f32 %v9769_v7, %v6511_v3  ;;  %v9274_v3 = vld [vmem:[%s15635_s5 + $0x16a0] sm:$0xff] }
0x1f36   : > { %v6513_v9 = vmul.f32 0.5, %v6512_v14  ;;  %v9399_v14 = vld [vmem:[%s15635_s5 + $0x1a88] sm:$0xff] }
0x1f37   : > { %6894 = vmatpush.msra.mxu0 %v9399_v14  ;;  %v9313_v14 = vld [vmem:[%s15635_s5 + $0x17d8] sm:$0xff] }
0x1f38   : > { %v6514_v18 = vsub.f32 1.5, %v6513_v9  ;;  %v9405_v9 = vld [vmem:[%s15635_s5 + $0x1ab8] sm:$0xff] }
0x1f3a   : > { %v6515_v20 = vmul.f32 %v9769_v7, %v6514_v18  ;;  %v9381_v18 = vld [vmem:[%s15635_s5 + $0x19f8] sm:$0xff] }
0x1f3b   : > { %6895 = vmatpush.msra.mxu0 %v9381_v18  ;;  %v9295_v18 = vld [vmem:[%s15635_s5 + $0x1748] sm:$0xff] }
0x1f3c   : > { %v6519_v21 = vsel %vm6518_vm3, %v9769_v7, %v6515_v20  ;;  %v9293_v7 = vld [vmem:[%s15635_s5 + $0x1738] sm:$0xff]  ;;  %v9387_v20 = vld [vmem:[%s15635_s5 + $0x1a28] sm:$0xff] }
0x1f3d   : > { %v6520_v22 = vmul.f32 %v6519_v21, %v14564_v31  ;;  %v9362_v21 = vld [vmem:[%s15635_s5 + $0x1960] sm:$0xff] }
0x1f3e   : > { %6876 = vmatpush.msrb.mxu3 %v9362_v21  ;;  %v9276_v21 = vld [vmem:[%s15635_s5 + $0x16b0] sm:$0xff] }
0x1f3f   : > { %9236 = vmatmul.msk.f32.vlgmr.msrb.gmra.mxu1 %vm617_vm4, %v6520_v22  ;;  %9237 = vmatmul.msk.f32.vlgmr.msrb.gmra.mxu2 %vm617_vm4, %v6520_v22 }
0x1f40   : > { %6914 = vmatpush.msrb.mxu1 %v9400_v41  ;;  %6934 = vmatpush.msrb.mxu2 %v9401_v6  ;;  %v9272_v41 = vld [vmem:[%s15635_s5 + $0x1690] sm:$0xff]  ;;  %v9273_v6 = vld [vmem:[%s15635_s5 + $0x1698] sm:$0xff] }
0x1f41   : > { %6877 = vmatpush.msrb.mxu3 %v9344_v25  ;;  %v9406_v25 = vld [vmem:[%s15635_s5 + $0x1ac0] sm:$0xff] }
0x1f42   : > { %6915 = vmatpush.msrb.mxu1 %v9382_v45  ;;  %6935 = vmatpush.msrb.mxu2 %v9383_v32 }
0x1f43   : > { %6878 = vmatpush.msrb.mxu3 %v9326_v29  ;;  %v9388_v29 = vld [vmem:[%s15635_s5 + $0x1a30] sm:$0xff] }
0x1f44   : > { %6916 = vmatpush.msrb.mxu1 %v9364_v15  ;;  %6936 = vmatpush.msrb.mxu2 %v9365_v49 }
0x1f46   : > { %6917 = vmatpush.msrb.mxu1 %v9346_v42  ;;  %6937 = vmatpush.msrb.mxu2 %v9347_v57  ;;  %v9403_v42 = vld [vmem:[%s15635_s5 + $0x1aa8] sm:$0xff]  ;;  %v9408_v57 = vld [vmem:[%s15635_s5 + $0x1ad0] sm:$0xff] }
0x1f48   : > { %6918 = vmatpush.msrb.mxu1 %v9328_v47  ;;  %6938 = vmatpush.msrb.mxu2 %v9329_v62  ;;  %v9390_v47 = vld [vmem:[%s15635_s5 + $0x1a40] sm:$0xff]  ;;  %v9391_v62 = vld [vmem:[%s15635_s5 + $0x1a48] sm:$0xff] }
0x1f4a   : > { %6919 = vmatpush.msrb.mxu1 %v9310_v1  ;;  %6939 = vmatpush.msrb.mxu2 %v9311_v2  ;;  %v9372_v1 = vld [vmem:[%s15635_s5 + $0x19b0] sm:$0xff]  ;;  %v9373_v2 = vld [vmem:[%s15635_s5 + $0x19b8] sm:$0xff] }
0x1f4c   : > { %6920 = vmatpush.msrb.mxu1 %v9292_v5  ;;  %6940 = vmatpush.msrb.mxu2 %v9293_v7  ;;  %v9354_v5 = vld [vmem:[%s15635_s5 + $0x1920] sm:$0xff]  ;;  %v9355_v7 = vld [vmem:[%s15635_s5 + $0x1928] sm:$0xff] }
0x1f4e   : > { %6921 = vmatpush.msrb.mxu1 %v9274_v3  ;;  %6941 = vmatpush.msrb.mxu2 %v9275_v11  ;;  %v9336_v3 = vld [vmem:[%s15635_s5 + $0x1890] sm:$0xff]  ;;  %v9337_v11 = vld [vmem:[%s15635_s5 + $0x1898] sm:$0xff] }
0x1fbc   : > { %v6558_v30 = vpop.f32.mrf.mxu1 }
0x1fbd   : > { %v6581_v31 = vmax.f32 %v6558_v30, 0.0  ;;  %v9327_v30 = vld [vmem:[%s15635_s5 + $0x1848] sm:$0xff] }
0x1fbf   : > { %6632 = vmatmul.f32.vlgmr.msra.gmra.mxu1 %v6581_v31  ;;  %v9332_v31 = vld [vmem:[%s15635_s5 + $0x1870] sm:$0xff] }
0x1fc0   : > { %6994 = vmatpush.msra.mxu1 %v9404_v16  ;;  %v9318_v16 = vld [vmem:[%s15635_s5 + $0x1800] sm:$0xff] }
0x1fc2   : > { %v6578_v59 = vpop.f32.mrf.mxu2  ;;  %6995 = vmatpush.msra.mxu1 %v9386_v19  ;;  %v9300_v19 = vld [vmem:[%s15635_s5 + $0x1770] sm:$0xff] }
0x1fc3   : > { %v6582_v33 = vmax.f32 %v6578_v59, 0.0  ;;  %v9333_v59 = vld [vmem:[%s15635_s5 + $0x1878] sm:$0xff] }
0x1fc4   : > { %6996 = vmatpush.msra.mxu1 %v9368_v23  ;;  %v9282_v23 = vld [vmem:[%s15635_s5 + $0x16e0] sm:$0xff] }
0x1fc5   : > { %6652 = vmatmul.f32.vlgmr.msra.gmra.mxu2 %v6582_v33  ;;  %v9308_v33 = vld [vmem:[%s15635_s5 + $0x17b0] sm:$0xff] }
0x1fc6   : > { %7014 = vmatpush.msra.mxu2 %v9405_v9  ;;  %6997 = vmatpush.msra.mxu1 %v9350_v27  ;;  %v9319_v9 = vld [vmem:[%s15635_s5 + $0x1808] sm:$0xff]  ;;  %v9412_v27 = vld [vmem:[%s15635_s5 + $0x1af0] sm:$0xff] }
0x1fc7   : > { %6879 = vmatpush.msrb.mxu3 %v9308_v33  ;;  %v9370_v33 = vld [vmem:[%s15635_s5 + $0x19a0] sm:$0xff] }
0x1fc8   : > { %7015 = vmatpush.msra.mxu2 %v9387_v20  ;;  %6998 = vmatpush.msra.mxu1 %v9332_v31  ;;  %v9301_v20 = vld [vmem:[%s15635_s5 + $0x1778] sm:$0xff]  ;;  %v9394_v31 = vld [vmem:[%s15635_s5 + $0x1a60] sm:$0xff] }
0x1fca   : > { %7016 = vmatpush.msra.mxu2 %v9369_v24  ;;  %v9283_v24 = vld [vmem:[%s15635_s5 + $0x16e8] sm:$0xff] }
0x1fcc   : > { %7017 = vmatpush.msra.mxu2 %v9351_v28  ;;  %v9413_v28 = vld [vmem:[%s15635_s5 + $0x1af8] sm:$0xff] }
0x1fce   : > { %7018 = vmatpush.msra.mxu2 %v9333_v59  ;;  %v9395_v59 = vld [vmem:[%s15635_s5 + $0x1a68] sm:$0xff] }
0x203c   : > { %v6633_v34 = vpop.f32.mrf.mxu1 }
0x203d   : > { %v6634_v35 = vadd.f32 %v6633_v34, %v6520_v22  ;;  %v9363_v22 = vld [vmem:[%s15635_s5 + $0x1968] sm:$0xff]  ;;  %v9309_v34 = vld [vmem:[%s15635_s5 + $0x17b8] sm:$0xff] }
0x203e   : > { %6896 = vmatpush.msra.mxu0 %v9363_v22  ;;  %v9277_v22 = vld [vmem:[%s15635_s5 + $0x16b8] sm:$0xff] }
0x2040   : > { %6897 = vmatpush.msra.mxu0 %v9345_v26  ;;  %v9407_v26 = vld [vmem:[%s15635_s5 + $0x1ac8] sm:$0xff] }
0x2042   : > { %6898 = vmatpush.msra.mxu0 %v9327_v30  ;;  %v9389_v30 = vld [vmem:[%s15635_s5 + $0x1a38] sm:$0xff] }
0x2044   : > { %6899 = vmatpush.msra.mxu0 %v9309_v34  ;;  %v9371_v34 = vld [vmem:[%s15635_s5 + $0x19a8] sm:$0xff] }
0x2048   : > { %v6653_v36 = vpop.f32.mrf.mxu2 }
0x2049   : > { %v6654_v0 = vadd.f32 %v6653_v36, %v6634_v35  ;;  %v9314_v35 = vld [vmem:[%s15635_s5 + $0x17e0] sm:$0xff]  ;;  %v9315_v36 = vld [vmem:[%s15635_s5 + $0x17e8] sm:$0xff] }
0x204a   : > { %6999 = vmatpush.msra.mxu1 %v9314_v35  ;;  %7019 = vmatpush.msra.mxu2 %v9315_v36  ;;  %v9376_v35 = vld [vmem:[%s15635_s5 + $0x19d0] sm:$0xff]  ;;  %v9377_v36 = vld [vmem:[%s15635_s5 + $0x19d8] sm:$0xff] }
0x204b   : > { %v6656_v38 = vsel %vm617_vm4, %v6654_v0, 0.0 }
0x204c   : > { %6657 = vadd.xlane.f32.xlu0 %v6656_v38  ;;  %v9291_v38 = vld [vmem:[%s15635_s5 + $0x1728] sm:$0xff]  ;;  %7000 = vmatpush.msra.mxu1 %v9296_v39  ;;  %v9358_v39 = vld [vmem:[%s15635_s5 + $0x1940] sm:$0xff] }
0x204d   : > { %6900 = vmatpush.msra.mxu0 %v9291_v38  ;;  %7020 = vmatpush.msra.mxu2 %v9297_v40  ;;  %v9353_v38 = vld [vmem:[%s15635_s5 + $0x1918] sm:$0xff]  ;;  %v9359_v40 = vld [vmem:[%s15635_s5 + $0x1948] sm:$0xff] }
0x204e   : > { %7001 = vmatpush.msra.mxu1 %v9278_v43  ;;  %v9340_v43 = vld [vmem:[%s15635_s5 + $0x18b0] sm:$0xff] }
0x204f   : > { %6901 = vmatpush.msra.mxu0 %v9273_v6  ;;  %7021 = vmatpush.msra.mxu2 %v9279_v44  ;;  %v9335_v6 = vld [vmem:[%s15635_s5 + $0x1888] sm:$0xff]  ;;  %v9341_v44 = vld [vmem:[%s15635_s5 + $0x18b8] sm:$0xff] }
0x20bf   : > { %v6658_v50 = vpop.xlane.xlu0 %6657 }
0x20c0   : > { %v6659_v37 = vmul.f32 %v6658_v50, %v10865_v48 }
0x20c2   : > { %v14707_v51 = vsub.f32 %v6654_v0, %v6659_v37  ;;  %v9290_v0 = vld [vmem:[%s15635_s5 + $0x1720] sm:$0xff] }
0x20c3   : > { %6880 = vmatpush.msrb.mxu3 %v9290_v0  ;;  %v9352_v0 = vld [vmem:[%s15635_s5 + $0x1910] sm:$0xff] }
0x20c4   : > { %v6661_v52 = vmul.f32 %v14707_v51, %v14707_v51 }
0x20c5   : > { %6881 = vmatpush.msrb.mxu3 %v9272_v41  ;;  %v9334_v41 = vld [vmem:[%s15635_s5 + $0x1880] sm:$0xff] }
0x20c6   : > { %v6662_v53 = vsel %vm617_vm4, %v6661_v52, 0.0 }
0x20c7   : > { %6663 = vadd.xlane.f32.xlu1 %v6662_v53 }
0x213a   : > { %v6664_v45 = vpop.xlane.xlu1 %6663 }
0x213b   : > { %v6665_v32 = vmul.f32 %v6664_v45, %v10865_v48  ;;  %v9316_v45 = vld [vmem:[%s15635_s5 + $0x17f0] sm:$0xff] }
0x213d   : > { %v6666_v46 = vadd.f32 1e-05, %v6665_v32  ;;  %v9317_v32 = vld [vmem:[%s15635_s5 + $0x17f8] sm:$0xff] }
0x213f   : > { %9770 = vrsqrt.f32 %v6666_v46  ;;  %vm6673_vm7 = vweird.f32 %v6666_v46 }
0x2145   : > { %v9771_v12 = vpop.eup %9770 }
0x2146   : > { %v6668_v15 = vmul.f32 %v9771_v12, %v6666_v46  ;;  %vm6674_vm6 = vweird.f32 %v9771_v12  ;;  %v9322_v46 = vld [vmem:[%s15635_s5 + $0x1820] sm:$0xff] }
0x2147   : > { %vm6675_vm8 = vmor %vm6673_vm7, %vm6674_vm6 }
0x2148   : > { %v6669_v49 = vmul.f32 %v9771_v12, %v6668_v15  ;;  %v9298_v15 = vld [vmem:[%s15635_s5 + $0x1760] sm:$0xff] }
0x214a   : > { %v6670_v50 = vmul.f32 0.5, %v6669_v49  ;;  %v9299_v49 = vld [vmem:[%s15635_s5 + $0x1768] sm:$0xff] }
0x214c   : > { %v6671_v37 = vsub.f32 1.5, %v6670_v50  ;;  %v9304_v50 = vld [vmem:[%s15635_s5 + $0x1790] sm:$0xff] }
0x214e   : > { %v6672_v52 = vmul.f32 %v9771_v12, %v6671_v37  ;;  %v9305_v37 = vld [vmem:[%s15635_s5 + $0x1798] sm:$0xff] }
0x2150   : > { %v6676_v53 = vsel %vm6675_vm8, %v9771_v12, %v6672_v52  ;;  %v9323_v12 = vld [vmem:[%s15635_s5 + $0x1828] sm:$0xff]  ;;  %v9280_v52 = vld [vmem:[%s15635_s5 + $0x16d0] sm:$0xff] }
0x2151   : > { %v14870_v54 = vmul.f32 %v6676_v53, %v14707_v51  ;;  %v9409_v51 = vld [vmem:[%s15635_s5 + $0x1ad8] sm:$0xff] }
0x2152   : > { %v9281_v53 = vld [vmem:[%s15635_s5 + $0x16d8] sm:$0xff] }
0x2153   : > { %9414 = vmatmul.msk.f32.vlgmr.msra.gmra.mxu3 %vm617_vm4, %v14870_v54  ;;  %9415 = vmatmul.msk.f32.vlgmr.msrb.gmra.mxu0 %vm617_vm4, %v14870_v54 }
0x2154   : > { %9418 = vmatmul.msk.f32.vlgmr.msrb.gmra.mxu1 %vm617_vm4, %v14870_v54  ;;  %9419 = vmatmul.msk.f32.vlgmr.msrb.gmra.mxu2 %vm617_vm4, %v14870_v54 }
0x2155   : > { %6954 = vmatpush.msra.mxu3 %v9402_v55  ;;  %6974 = vmatpush.msrb.mxu0 %v9403_v42  ;;  %v9286_v55 = vld [vmem:[%s15635_s5 + $0x1700] sm:$0xff]  ;;  %v9287_v42 = vld [vmem:[%s15635_s5 + $0x1708] sm:$0xff] }
0x2156   : > { %7074 = vmatpush.msrb.mxu1 %v9408_v57  ;;  %7094 = vmatpush.msrb.mxu2 %v9409_v51  ;;  %v9410_v57 = vld [vmem:[%s15635_s5 + $0x1ae0] sm:$0xff]  ;;  %v9411_v51 = vld [vmem:[%s15635_s5 + $0x1ae8] sm:$0xff] }
0x2157   : > { %6955 = vmatpush.msra.mxu3 %v9384_v58  ;;  %6975 = vmatpush.msrb.mxu0 %v9385_v60  ;;  %v9392_v58 = vld [vmem:[%s15635_s5 + $0x1a50] sm:$0xff]  ;;  %v9393_v60 = vld [vmem:[%s15635_s5 + $0x1a58] sm:$0xff] }
0x2158   : > { %7075 = vmatpush.msrb.mxu1 %v9390_v47  ;;  %7095 = vmatpush.msrb.mxu2 %v9391_v62  ;;  %v9374_v47 = vld [vmem:[%s15635_s5 + $0x19c0] sm:$0xff]  ;;  %v9375_v62 = vld [vmem:[%s15635_s5 + $0x19c8] sm:$0xff] }
0x2159   : > { %6956 = vmatpush.msra.mxu3 %v9366_v56  ;;  %6976 = vmatpush.msrb.mxu0 %v9367_v63  ;;  %v9356_v56 = vld [vmem:[%s15635_s5 + $0x1930] sm:$0xff]  ;;  %v9357_v63 = vld [vmem:[%s15635_s5 + $0x1938] sm:$0xff] }
0x215a   : > { %7076 = vmatpush.msrb.mxu1 %v9372_v1  ;;  %7096 = vmatpush.msrb.mxu2 %v9373_v2  ;;  %v9338_v1 = vld [vmem:[%s15635_s5 + $0x18a0] sm:$0xff]  ;;  %v9339_v2 = vld [vmem:[%s15635_s5 + $0x18a8] sm:$0xff] }
0x215b   : > { %6957 = vmatpush.msra.mxu3 %v9348_v4  ;;  %6977 = vmatpush.msrb.mxu0 %v9349_v61  ;;  %v9320_v4 = vld [vmem:[%s15635_s5 + $0x1810] sm:$0xff]  ;;  %v9321_v61 = vld [vmem:[%s15635_s5 + $0x1818] sm:$0xff] }
0x215c   : > { %7077 = vmatpush.msrb.mxu1 %v9354_v5  ;;  %7097 = vmatpush.msrb.mxu2 %v9355_v7  ;;  %v9302_v5 = vld [vmem:[%s15635_s5 + $0x1780] sm:$0xff]  ;;  %v9303_v7 = vld [vmem:[%s15635_s5 + $0x1788] sm:$0xff] }
0x215d   : > { %9416 = vmatmul.msk.f32.vlgmr.msrb.gmra.mxu3 %vm617_vm4, %v14870_v54  ;;  %9417 = vmatmul.msk.f32.vlgmr.msra.gmra.mxu0 %vm617_vm4, %v14870_v54 }
0x215e   : > { %6958 = vmatpush.msra.mxu3 %v9330_v8  ;;  %6978 = vmatpush.msrb.mxu0 %v9331_v10  ;;  %v9284_v8 = vld [vmem:[%s15635_s5 + $0x16f0] sm:$0xff]  ;;  %v9285_v10 = vld [vmem:[%s15635_s5 + $0x16f8] sm:$0xff] }
0x215f   : > { %9422 = vmatmul.msk.f32.vlgmr.msra.gmra.mxu1 %vm617_vm4, %v14870_v54  ;;  %9423 = vmatmul.msk.f32.vlgmr.msra.gmra.mxu2 %vm617_vm4, %v14870_v54 }
0x2160   : > { %7078 = vmatpush.msrb.mxu1 %v9336_v3  ;;  %7098 = vmatpush.msrb.mxu2 %v9337_v11 }
0x2161   : > { %6959 = vmatpush.msra.mxu3 %v9312_v13  ;;  %6979 = vmatpush.msrb.mxu0 %v9313_v14 }
0x2162   : > { %7079 = vmatpush.msrb.mxu1 %v9318_v16  ;;  %7099 = vmatpush.msrb.mxu2 %v9319_v9 }
0x2163   : > { %6960 = vmatpush.msra.mxu3 %v9294_v17  ;;  %6980 = vmatpush.msrb.mxu0 %v9295_v18 }
0x2164   : > { %7080 = vmatpush.msrb.mxu1 %v9300_v19  ;;  %7100 = vmatpush.msrb.mxu2 %v9301_v20 }
0x2165   : > { %6961 = vmatpush.msra.mxu3 %v9276_v21  ;;  %6981 = vmatpush.msrb.mxu0 %v9277_v22 }
0x2166   : > { %7081 = vmatpush.msrb.mxu1 %v9282_v23  ;;  %7101 = vmatpush.msrb.mxu2 %v9283_v24 }
0x2167   : > { %7034 = vmatpush.msrb.mxu3 %v9406_v25  ;;  %7054 = vmatpush.msra.mxu0 %v9407_v26 }
0x2168   : > { %7154 = vmatpush.msra.mxu1 %v9412_v27  ;;  %7174 = vmatpush.msra.mxu2 %v9413_v28 }
0x2169   : > { %9420 = vmatmul.msk.f32.vlgmr.msra.gmra.mxu3 %vm617_vm4, %v14870_v54  ;;  %9421 = vmatmul.msk.f32.vlgmr.msrb.gmra.mxu0 %vm617_vm4, %v14870_v54 }
0x216a   : > { %9426 = vmatmul.msk.f32.vlgmr.msrb.gmra.mxu1 %vm617_vm4, %v14870_v54  ;;  %9427 = vmatmul.msk.f32.vlgmr.msrb.gmra.mxu2 %vm617_vm4, %v14870_v54 }
0x216b   : > { %7035 = vmatpush.msrb.mxu3 %v9388_v29  ;;  %7055 = vmatpush.msra.mxu0 %v9389_v30 }
0x216c   : > { %7155 = vmatpush.msra.mxu1 %v9394_v31  ;;  %7175 = vmatpush.msra.mxu2 %v9395_v59 }
0x216d   : > { %7036 = vmatpush.msrb.mxu3 %v9370_v33  ;;  %7056 = vmatpush.msra.mxu0 %v9371_v34 }
0x216e   : > { %7156 = vmatpush.msra.mxu1 %v9376_v35  ;;  %7176 = vmatpush.msra.mxu2 %v9377_v36 }
0x216f   : > { %7037 = vmatpush.msrb.mxu3 %v9352_v0  ;;  %7057 = vmatpush.msra.mxu0 %v9353_v38 }
0x2170   : > { %7157 = vmatpush.msra.mxu1 %v9358_v39  ;;  %7177 = vmatpush.msra.mxu2 %v9359_v40 }
0x2171   : > { %7038 = vmatpush.msrb.mxu3 %v9334_v41  ;;  %7058 = vmatpush.msra.mxu0 %v9335_v6 }
0x2172   : > { %7158 = vmatpush.msra.mxu1 %v9340_v43  ;;  %7178 = vmatpush.msra.mxu2 %v9341_v44 }
0x2173   : > { %7039 = vmatpush.msrb.mxu3 %v9316_v45  ;;  %7059 = vmatpush.msra.mxu0 %v9317_v32 }
0x2174   : > { %7159 = vmatpush.msra.mxu1 %v9322_v46  ;;  %7179 = vmatpush.msra.mxu2 %v9323_v12 }
0x2175   : > { %7040 = vmatpush.msrb.mxu3 %v9298_v15  ;;  %7060 = vmatpush.msra.mxu0 %v9299_v49 }
0x2176   : > { %7160 = vmatpush.msra.mxu1 %v9304_v50  ;;  %7180 = vmatpush.msra.mxu2 %v9305_v37 }
0x2177   : > { %7041 = vmatpush.msrb.mxu3 %v9280_v52  ;;  %7061 = vmatpush.msra.mxu0 %v9281_v53 }
0x2178   : > { %7161 = vmatpush.msra.mxu1 %v9286_v55  ;;  %7181 = vmatpush.msra.mxu2 %v9287_v42 }
0x2179   : > { %9424 = vmatmul.msk.f32.vlgmr.msrb.gmra.mxu3 %vm617_vm4, %v14870_v54  ;;  %9425 = vmatmul.msk.f32.vlgmr.msra.gmra.mxu0 %vm617_vm4, %v14870_v54 }
0x217a   : > { %7114 = vmatpush.msra.mxu3 %v9410_v57  ;;  %7134 = vmatpush.msrb.mxu0 %v9411_v51 }
0x217b   : > { %9430 = vmatmul.msk.f32.vlgmr.msra.gmra.mxu1 %vm617_vm4, %v14870_v54  ;;  %9431 = vmatmul.msk.f32.vlgmr.msra.gmra.mxu2 %vm617_vm4, %v14870_v54 }
0x217c   : > { %7115 = vmatpush.msra.mxu3 %v9392_v58  ;;  %7135 = vmatpush.msrb.mxu0 %v9393_v60 }
0x217e   : > { %7116 = vmatpush.msra.mxu3 %v9374_v47  ;;  %7136 = vmatpush.msrb.mxu0 %v9375_v62 }
0x2180   : > { %7117 = vmatpush.msra.mxu3 %v9356_v56  ;;  %7137 = vmatpush.msrb.mxu0 %v9357_v63 }
0x2182   : > { %7118 = vmatpush.msra.mxu3 %v9338_v1  ;;  %7138 = vmatpush.msrb.mxu0 %v9339_v2 }
0x2184   : > { %7119 = vmatpush.msra.mxu3 %v9320_v4  ;;  %7139 = vmatpush.msrb.mxu0 %v9321_v61 }
0x2186   : > { %7120 = vmatpush.msra.mxu3 %v9302_v5  ;;  %7140 = vmatpush.msrb.mxu0 %v9303_v7 }
0x2188   : > { %7121 = vmatpush.msra.mxu3 %v9284_v8  ;;  %7141 = vmatpush.msrb.mxu0 %v9285_v10 }
0x2189   : > { %9428 = vmatmul.msk.f32.vlgmr.msra.gmra.mxu3 %vm617_vm4, %v14870_v54  ;;  %9429 = vmatmul.msk.f32.vlgmr.msrb.gmra.mxu0 %vm617_vm4, %v14870_v54 }
0x21d0   : > { %v6863_v3 = vpop.f32.mrf.mxu0 }
0x21d1   : > { %v6923_v11 = vpop.f32.mrf.mxu1 }
0x21d6   : > { %v6843_v13 = vpop.f32.mrf.mxu3 }
0x21d7   : > { %v6943_v14 = vpop.f32.mrf.mxu2 }
0x21da   : > { %v6903_v16 = vpop.f32.mrf.mxu0 }
0x21dc   : > { %v7003_v9 = vpop.f32.mrf.mxu1 }
0x21e0   : > { %v6883_v17 = vpop.f32.mrf.mxu3 }
0x21e2   : > { %v7023_v18 = vpop.f32.mrf.mxu2 }
0x21e6   : > { %v6983_v19 = vpop.f32.mrf.mxu0 }
0x21e7   : > { %v7083_v20 = vpop.f32.mrf.mxu1  ;;  %7257 = vmatpush.xpose.msrb.mxu1 %v6983_v19  ;;  %v9451_v19 = vld [vmem:[%s15636_s6 + $0xf68] sm:$0xff] }
0x21e8   : > { %7237 = vmatpush.msra.mxu0 %v7083_v20 }
0x21ea   : > { %7258 = vmatmul.f32.vlgmr.msrb.gmra.mxu1 %v6863_v3 }
0x21eb   : > { %7369 = vmatpush.xpose.msra.mxu1 %v7023_v18 }
0x21ec   : > { %v6963_v21 = vpop.f32.mrf.mxu3 }
0x21ed   : > { %v7103_v22 = vpop.f32.mrf.mxu2  ;;  %7201 = vmatpush.xpose.msrb.mxu3 %v6963_v21  ;;  %v9450_v21 = vld [vmem:[%s15636_s6 + $0xf60] sm:$0xff] }
0x21ee   : > { %7293 = vmatpush.msrb.mxu2 %v7103_v22 }
0x21f0   : > { %7202 = vmatmul.f32.vlgmr.msrb.gmra.mxu3 %v6843_v13 }
0x21f1   : > { %7313 = vmatpush.xpose.msra.mxu3 %v7003_v9  ;;  %v9453_v9 = vld [vmem:[%s15636_s6 + $0xf78] sm:$0xff] }
0x21f2   : > { %7370 = vmatmul.f32.vlgmr.msra.gmra.mxu1 %v6903_v16 }
0x21f6   : > { %v7063_v23 = vpop.f32.mrf.mxu0 }
0x21f7   : > { %7481 = vmatpush.xpose.msrb.mxu1 %v7063_v23  ;;  %v9449_v23 = vld [vmem:[%s15636_s6 + $0xf58] sm:$0xff] }
0x21f8   : > { %7314 = vmatmul.f32.vlgmr.msra.gmra.mxu3 %v6883_v17  ;;  %v15148_v27 = vpop.f32.mrf.mxu1  ;;  %v9452_v17 = vld [vmem:[%s15636_s6 + $0xf70] sm:$0xff] }
0x21fa   : > { %7482 = vmatmul.f32.vlgmr.msrb.gmra.mxu1 %v6943_v14 }
0x21fc   : > { %v7043_v24 = vpop.f32.mrf.mxu3 }
0x21fd   : > { %7425 = vmatpush.xpose.msrb.mxu3 %v7043_v24  ;;  %v9448_v24 = vld [vmem:[%s15636_s6 + $0xf50] sm:$0xff] }
0x21fe   : > { %v7183_v20 = vpop.f32.mrf.mxu2 }
0x2200   : > { %7426 = vmatmul.f32.vlgmr.msrb.gmra.mxu3 %v6923_v11 }
0x2201   : > { %7619 = vmatpush.msra.mxu3 %v9453_v9  ;;  %v9457_v9 = vld [vmem:[%s15636_s6 + $0xf98] sm:$0xff] }
0x2203   : > { %7620 = vmatpush.msra.mxu3 %v9452_v17  ;;  %v9456_v17 = vld [vmem:[%s15636_s6 + $0xf90] sm:$0xff] }
0x2205   : > { %7621 = vmatpush.msra.mxu3 %v9451_v19  ;;  %v9454_v19 = vld [vmem:[%s15636_s6 + $0xf80] sm:$0xff] }
0x2206   : > { %v7143_v25 = vpop.f32.mrf.mxu0 }
0x2207   : > { %7405 = vmatpush.msra.mxu2 %v7143_v25  ;;  %7622 = vmatpush.msra.mxu3 %v9450_v21  ;;  %v9485_v25 = vld [vmem:[%s15636_s6 + $0x1078] sm:$0xff] }
0x2208   : > { %7659 = vmatpush.msra.mxu1 %v9485_v25  ;;  %v9477_v21 = vld [vmem:[%s15636_s6 + $0x1038] sm:$0xff]  ;;  %v9476_v25 = vld [vmem:[%s15636_s6 + $0x1030] sm:$0xff] }
0x2209   : > { %7623 = vmatpush.msra.mxu3 %v9449_v23  ;;  %v9513_v23 = vld [vmem:[%s15636_s6 + $0x1158] sm:$0xff] }
0x220b   : > { %7624 = vmatpush.msra.mxu3 %v9448_v24  ;;  %v9532_v24 = vld [vmem:[%s15636_s6 + $0x11f0] sm:$0xff] }
0x220c   : > { %v7123_v26 = vpop.f32.mrf.mxu3 }
0x220d   : > { %7349 = vmatpush.msrb.mxu0 %v7123_v26  ;;  %v9447_v26 = vld [vmem:[%s15636_s6 + $0xf48] sm:$0xff] }
0x220e   : > { %7625 = vmatpush.msra.mxu3 %v9447_v26  ;;  %v9495_v26 = vld [vmem:[%s15636_s6 + $0x10c8] sm:$0xff] }
0x2267   : > { %v7259_v28 = vpop.f32.mrf.mxu1 }
0x2268   : > { %v7262_v29 = vmul.f32 0.088388346, %v7259_v28  ;;  %v9484_v28 = vld [vmem:[%s15636_s6 + $0x1070] sm:$0xff] }
0x2269   : > { %7660 = vmatpush.msra.mxu1 %v9484_v28  ;;  %v9512_v28 = vld [vmem:[%s15636_s6 + $0x1150] sm:$0xff] }
0x226a   : > { %v7263_v30 = vsel %vm1002_vm5, %v7262_v29, -inf }
0x226b   : > { %7264 = vmax.xlane.f32.xlu0 %v7263_v30  ;;  %v9446_v30 = vld [vmem:[%s15636_s6 + $0xf40] sm:$0xff] }
0x226c   : > { %7626 = vmatpush.msra.mxu3 %v9446_v30  ;;  %v9475_v30 = vld [vmem:[%s15636_s6 + $0x1028] sm:$0xff] }
0x226f   : > { %v7371_v33 = vpop.f32.mrf.mxu1 }
0x2270   : > { %v7374_v35 = vmul.f32 0.088388346, %v7371_v33 }
0x2272   : > { %v7375_v39 = vsel %vm1002_vm5, %v7374_v35, -inf }
0x2273   : > { %v7203_v31 = vpop.f32.mrf.mxu3 }
0x2274   : > { %v7206_v59 = vmul.f32 0.088388346, %v7203_v31  ;;  %v9483_v31 = vld [vmem:[%s15636_s6 + $0x1068] sm:$0xff] }
0x2275   : > { %7661 = vmatpush.msra.mxu1 %v9483_v31  ;;  %v9494_v31 = vld [vmem:[%s15636_s6 + $0x10c0] sm:$0xff] }
0x2276   : > { %v7207_v34 = vsel %vm1002_vm5, %v7206_v59, -inf }
0x2277   : > { %7208 = vmax.xlane.f32.xlu2 %v7207_v34  ;;  %v7483_v40 = vpop.f32.mrf.mxu1 }
0x2278   : > { %v7486_v41 = vmul.f32 0.088388346, %v7483_v40  ;;  %v9480_v40 = vld [vmem:[%s15636_s6 + $0x1050] sm:$0xff] }
0x227a   : > { %v7487_v45 = vsel %vm1002_vm5, %v7486_v41, -inf }
0x227b   : > { %v7315_v36 = vpop.f32.mrf.mxu3 }
0x227c   : > { %v7318_v0 = vmul.f32 0.088388346, %v7315_v36  ;;  %v9482_v36 = vld [vmem:[%s15636_s6 + $0x1060] sm:$0xff] }
0x227d   : > { %7662 = vmatpush.msra.mxu1 %v9482_v36  ;;  %v9510_v36 = vld [vmem:[%s15636_s6 + $0x1140] sm:$0xff] }
0x227e   : > { %v7319_v38 = vsel %vm1002_vm5, %v7318_v0, -inf }
0x227f   : > { %7320 = vmax.xlane.f32.xlu1 %v7319_v38  ;;  %7376 = vmax.xlane.f32.xlu2 %v7375_v39  ;;  %v9481_v38 = vld [vmem:[%s15636_s6 + $0x1058] sm:$0xff]  ;;  %v9443_v39 = vld [vmem:[%s15636_s6 + $0xf28] sm:$0xff] }
0x2280   : > { %7663 = vmatpush.msra.mxu1 %v9481_v38  ;;  %v9473_v38 = vld [vmem:[%s15636_s6 + $0x1018] sm:$0xff] }
0x2282   : > { %7664 = vmatpush.msra.mxu1 %v9480_v40  ;;  %v9509_v40 = vld [vmem:[%s15636_s6 + $0x1138] sm:$0xff] }
0x2283   : > { %v7427_v6 = vpop.f32.mrf.mxu3 }
0x2284   : > { %v7430_v43 = vmul.f32 0.088388346, %v7427_v6  ;;  %v9479_v6 = vld [vmem:[%s15636_s6 + $0x1048] sm:$0xff] }
0x2285   : > { %7665 = vmatpush.msra.mxu1 %v9479_v6  ;;  %v9491_v6 = vld [vmem:[%s15636_s6 + $0x10a8] sm:$0xff] }
0x2286   : > { %v7431_v44 = vsel %vm1002_vm5, %v7430_v43, -inf }
0x2287   : > { %7432 = vmax.xlane.f32.xlu0 %v7431_v44  ;;  %7488 = vmax.xlane.f32.xlu1 %v7487_v45 }
0x22de   : > { %v7265_v32 = vpop.xlane.xlu0 %7264 }
0x22df   : > { %v7266_v46 = vsub.f32 %v7262_v29, %v7265_v32  ;;  %v9469_v32 = vld [vmem:[%s15636_s6 + $0xff8] sm:$0xff] }
0x22e1   : > { %v7267_v12 = vmul.f32 1.442695, %v7266_v46 }
0x22e3   : > { %9772 = vpow2.f32 %v7267_v12 }
0x22e9   : > { %v9773_v15 = vpop.eup %9772 }
0x22ea   : > { %v7209_v49 = vpop.xlane.xlu2 %7208  ;;  %v7269_v50 = vsel %vm1002_vm5, %v9773_v15, 0.0 }
0x22eb   : > { %v7210_v37 = vsub.f32 %v7206_v59, %v7209_v49  ;;  %7270 = vadd.xlane.f32.xlu0 %v7269_v50  ;;  %v9501_v49 = vld [vmem:[%s15636_s6 + $0x10f8] sm:$0xff]  ;;  %v9468_v50 = vld [vmem:[%s15636_s6 + $0xff0] sm:$0xff] }
0x22ed   : > { %v7211_v52 = vmul.f32 1.442695, %v7210_v37  ;;  %v9478_v37 = vld [vmem:[%s15636_s6 + $0x1040] sm:$0xff] }
0x22ee   : > { %7666 = vmatpush.msra.mxu1 %v9478_v37  ;;  %v9525_v37 = vld [vmem:[%s15636_s6 + $0x11b8] sm:$0xff] }
0x22ef   : > { %9774 = vpow2.f32 %v7211_v52  ;;  %v9440_v52 = vld [vmem:[%s15636_s6 + $0xf10] sm:$0xff] }
0x22f0   : > { %7667 = vmatpush.msra.mxu1 %v9477_v21 }
0x22f2   : > { %v7321_v53 = vpop.xlane.xlu1 %7320  ;;  %v7377_v55 = vpop.xlane.xlu2 %7376  ;;  %7668 = vmatpush.msra.mxu1 %v9476_v25 }
0x22f3   : > { %v7322_v42 = vsub.f32 %v7318_v0, %v7321_v53  ;;  %v7378_v57 = vsub.f32 %v7374_v35, %v7377_v55  ;;  %v9445_v35 = vld [vmem:[%s15636_s6 + $0xf38] sm:$0xff]  ;;  %v9444_v0 = vld [vmem:[%s15636_s6 + $0xf30] sm:$0xff]  ;;  %v9467_v55 = vld [vmem:[%s15636_s6 + $0xfe8] sm:$0xff] }
0x22f4   : > { %7627 = vmatpush.msra.mxu3 %v9445_v35  ;;  %v9500_v53 = vld [vmem:[%s15636_s6 + $0x10f0] sm:$0xff]  ;;  %7669 = vmatpush.msra.mxu1 %v9475_v30  ;;  %v9493_v35 = vld [vmem:[%s15636_s6 + $0x10b8] sm:$0xff] }
0x22f5   : > { %v9775_v51 = vpop.eup %9774  ;;  %v7323_v58 = vmul.f32 1.442695, %v7322_v42  ;;  %v7379_v60 = vmul.f32 1.442695, %v7378_v57  ;;  %v9439_v42 = vld [vmem:[%s15636_s6 + $0xf08] sm:$0xff]  ;;  %v7777_v30 = vld [vmem:[#allocation2 + $0x2f8] sm:$0xff] }
0x22f6   : > { %v7213_v47 = vsel %vm1002_vm5, %v9775_v51, 0.0  ;;  %7628 = vmatpush.msra.mxu3 %v9444_v0  ;;  %v9499_v57 = vld [vmem:[%s15636_s6 + $0x10e8] sm:$0xff]  ;;  %v9529_v0 = vld [vmem:[%s15636_s6 + $0x11d8] sm:$0xff] }
0x22f7   : > { %9776 = vpow2.f32 %v7323_v58  ;;  %7214 = vadd.xlane.f32.xlu2 %v7213_v47 }
0x22f8   : > { %9778 = vpow2.f32 %v7379_v60  ;;  %7629 = vmatpush.msra.mxu3 %v9443_v39  ;;  %v9438_v60 = vld [vmem:[%s15636_s6 + $0xf00] sm:$0xff]  ;;  %v9492_v39 = vld [vmem:[%s15636_s6 + $0x10b0] sm:$0xff] }
0x22fa   : > { %v7433_v62 = vpop.xlane.xlu0 %7432  ;;  %v7489_v56 = vpop.xlane.xlu1 %7488 }
0x22fb   : > { %v7434_v63 = vsub.f32 %v7430_v43, %v7433_v62  ;;  %v7490_v1 = vsub.f32 %v7486_v41, %v7489_v56  ;;  %v9442_v41 = vld [vmem:[%s15636_s6 + $0xf20] sm:$0xff]  ;;  %v9465_v56 = vld [vmem:[%s15636_s6 + $0xfd8] sm:$0xff] }
0x22fc   : > { %7630 = vmatpush.msra.mxu3 %v9442_v41  ;;  %v9472_v41 = vld [vmem:[%s15636_s6 + $0x1010] sm:$0xff] }
0x22fd   : > { %v15158_v2 = vpop.eup %9776  ;;  %v7435_v4 = vmul.f32 1.442695, %v7434_v63  ;;  %v7491_v61 = vmul.f32 1.442695, %v7490_v1  ;;  %v9517_v1 = vld [vmem:[%s15636_s6 + $0x1178] sm:$0xff] }
0x22fe   : > { %v15160_v5 = vpop.eup %9778  ;;  %v7325_v7 = vsel %vm1002_vm5, %v15158_v2, 0.0 }
0x22ff   : > { %9780 = vpow2.f32 %v7435_v4  ;;  %7326 = vadd.xlane.f32.xlu1 %v7325_v7  ;;  %v7381_v8 = vsel %vm1002_vm5, %v15160_v5, 0.0  ;;  %v9464_v4 = vld [vmem:[%s15636_s6 + $0xfd0] sm:$0xff]  ;;  %v9463_v7 = vld [vmem:[%s15636_s6 + $0xfc8] sm:$0xff] }
0x2300   : > { %9782 = vpow2.f32 %v7491_v61  ;;  %7382 = vadd.xlane.f32.xlu2 %v7381_v8  ;;  %v9516_v61 = vld [vmem:[%s15636_s6 + $0x1170] sm:$0xff]  ;;  %v9515_v8 = vld [vmem:[%s15636_s6 + $0x1168] sm:$0xff] }
0x2305   : > { %v15166_v10 = vpop.eup %9780 }
0x2306   : > { %v15168_v3 = vpop.eup %9782  ;;  %v7437_v11 = vsel %vm1002_vm5, %v15166_v10, 0.0 }
0x2307   : > { %7438 = vadd.xlane.f32.xlu0 %v7437_v11  ;;  %v7493_v13 = vsel %vm1002_vm5, %v15168_v3, 0.0  ;;  %v9461_v11 = vld [vmem:[%s15636_s6 + $0xfb8] sm:$0xff] }
0x2308   : > { %7494 = vadd.xlane.f32.xlu1 %v7493_v13  ;;  %v9460_v13 = vld [vmem:[%s15636_s6 + $0xfb0] sm:$0xff] }
0x235e   : > { %v7271_v14 = vpop.xlane.xlu0 %7270 }
0x235f   : > { %9784 = vrcp.f32 %v7271_v14  ;;  %v9459_v14 = vld [vmem:[%s15636_s6 + $0xfa8] sm:$0xff] }
0x2365   : > { %v9785_v16 = vpop.eup %9784 }
0x2366   : > { %v7273_v18 = vmul.f32 %v9785_v16, %v9773_v15  ;;  %v9441_v15 = vld [vmem:[%s15636_s6 + $0xf18] sm:$0xff]  ;;  %v9458_v16 = vld [vmem:[%s15636_s6 + $0xfa0] sm:$0xff] }
0x2367   : > { %7631 = vmatpush.msra.mxu3 %v9441_v15  ;;  %v9470_v15 = vld [vmem:[%s15636_s6 + $0x1000] sm:$0xff] }
0x2368   : > { %7274 = vst.msk [vmem:[%s10550_s27 + $0xf8] sm:$0xff] %vm1002_vm5, %v7273_v18  ;;  %9433 = vmatmul.msk.f32.vlgmr.msrb.gmra.mxu2 %vm1002_vm5, %v7273_v18  ;;  %v9455_v18 = vld [vmem:[%s15636_s6 + $0xf88] sm:$0xff] }
0x2369   : > { %7517 = vmatpush.msrb.mxu2 %v7183_v20  ;;  %7632 = vmatpush.msra.mxu3 %v9440_v52  ;;  %v9533_v20 = vld [vmem:[%s15636_s6 + $0x11f8] sm:$0xff]  ;;  %v9488_v52 = vld [vmem:[%s15636_s6 + $0x1090] sm:$0xff] }
0x236a   : > { %v7215_v22 = vpop.xlane.xlu2 %7214 }
0x236b   : > { %9786 = vrcp.f32 %v7215_v22  ;;  %7633 = vmatpush.msra.mxu3 %v9439_v42  ;;  %v9496_v22 = vld [vmem:[%s15636_s6 + $0x10d0] sm:$0xff]  ;;  %v9487_v42 = vld [vmem:[%s15636_s6 + $0x1088] sm:$0xff] }
0x236d   : > { %7634 = vmatpush.msra.mxu3 %v9438_v60  ;;  %v9503_v60 = vld [vmem:[%s15636_s6 + $0x1108] sm:$0xff] }
0x236f   : > { %7699 = vmatpush.msrb.mxu3 %v9517_v1  ;;  %v9519_v1 = vld [vmem:[%s15636_s6 + $0x1188] sm:$0xff] }
0x2371   : > { %v9787_v29 = vpop.eup %9786  ;;  %7700 = vmatpush.msrb.mxu3 %v9516_v61 }
0x2372   : > { %v7217_v59 = vmul.f32 %v9787_v29, %v9775_v51  ;;  %v7327_v33 = vpop.xlane.xlu1 %7326  ;;  %v9466_v51 = vld [vmem:[%s15636_s6 + $0xfe0] sm:$0xff]  ;;  %v9531_v29 = vld [vmem:[%s15636_s6 + $0x11e8] sm:$0xff] }
0x2373   : > { %9788 = vrcp.f32 %v7327_v33  ;;  %v7383_v34 = vpop.xlane.xlu2 %7382  ;;  %7701 = vmatpush.msrb.mxu3 %v9515_v8  ;;  %v9530_v33 = vld [vmem:[%s15636_s6 + $0x11e0] sm:$0xff] }
0x2374   : > { %7218 = vst.msk [vmem:[%s10550_s27 + $0xf0] sm:$0xff] %vm1002_vm5, %v7217_v59  ;;  %9790 = vrcp.f32 %v7383_v34  ;;  %9432 = vmatmul.msk.f32.vlgmr.msra.gmra.mxu0 %vm1002_vm5, %v7217_v59  ;;  %v9511_v59 = vld [vmem:[%s15636_s6 + $0x1148] sm:$0xff]  ;;  %v9474_v34 = vld [vmem:[%s15636_s6 + $0x1020] sm:$0xff] }
0x2375   : > { %7461 = vmatpush.msra.mxu0 %v15148_v27  ;;  %7670 = vmatpush.msra.mxu1 %v9474_v34  ;;  %v7773_v34 = vld [vmem:[#allocation2 + $0x2d8] sm:$0xff] }
0x2377   : > { %7671 = vmatpush.msra.mxu1 %v9473_v38  ;;  %v7769_v38 = vld [vmem:[#allocation2 + $0x2b8] sm:$0xff] }
0x2379   : > { %v9789_v27 = vpop.eup %9788  ;;  %7672 = vmatpush.msra.mxu1 %v9472_v41  ;;  %v7765_v41 = vld [vmem:[#allocation2 + $0x298] sm:$0xff] }
0x237a   : > { %v9791_v43 = vpop.eup %9790  ;;  %v7329_v44 = vmul.f32 %v9789_v27, %v15158_v2  ;;  %v7439_v45 = vpop.xlane.xlu0 %7438  ;;  %v9498_v2 = vld [vmem:[%s15636_s6 + $0x10e0] sm:$0xff]  ;;  %v9528_v27 = vld [vmem:[%s15636_s6 + $0x11d0] sm:$0xff] }
0x237b   : > { %v7385_v46 = vmul.f32 %v9791_v43, %v15160_v5  ;;  %9792 = vrcp.f32 %v7439_v45  ;;  %v7495_v12 = vpop.xlane.xlu1 %7494  ;;  %v9497_v5 = vld [vmem:[%s15636_s6 + $0x10d8] sm:$0xff]  ;;  %v9508_v43 = vld [vmem:[%s15636_s6 + $0x1130] sm:$0xff]  ;;  %v9471_v45 = vld [vmem:[%s15636_s6 + $0x1008] sm:$0xff] }
0x237c   : > { %7330 = vst.msk [vmem:[%s10550_s27 + $0x100] sm:$0xff] %vm1002_vm5, %v7329_v44  ;;  %9794 = vrcp.f32 %v7495_v12  ;;  %9434 = vmatmul.msk.f32.vlgmr.msrb.gmra.mxu0 %vm1002_vm5, %v7329_v44  ;;  %v9527_v44 = vld [vmem:[%s15636_s6 + $0x11c8] sm:$0xff]  ;;  %v9526_v12 = vld [vmem:[%s15636_s6 + $0x11c0] sm:$0xff]  ;;  %7673 = vmatpush.msra.mxu1 %v9471_v45  ;;  %v9567_v45 = vld [vmem:[%s15638_s8 + $0x5f8] sm:$0xff] }
0x237d   : > { %7386 = vst.msk [vmem:[%s10550_s27 + $0x108] sm:$0xff] %vm1002_vm5, %v7385_v46  ;;  %9435 = vmatmul.msk.f32.vlgmr.msra.gmra.mxu2 %vm1002_vm5, %v7385_v46  ;;  %7639 = vmatpush.msrb.mxu0 %v9469_v32  ;;  %v9490_v32 = vld [vmem:[%s15636_s6 + $0x10a0] sm:$0xff]  ;;  %v9507_v46 = vld [vmem:[%s15636_s6 + $0x1128] sm:$0xff] }
0x237e   : > { %7679 = vmatpush.msra.mxu2 %v9501_v49  ;;  %v9489_v49 = vld [vmem:[%s15636_s6 + $0x1098] sm:$0xff]  ;;  %7674 = vmatpush.msra.mxu1 %v9470_v15  ;;  %v9565_v15 = vld [vmem:[%s15638_s8 + $0x5e8] sm:$0xff] }
0x237f   : > { %7640 = vmatpush.msrb.mxu0 %v9468_v50  ;;  %v9506_v50 = vld [vmem:[%s15636_s6 + $0x1120] sm:$0xff] }
0x2380   : > { %7680 = vmatpush.msra.mxu2 %v9500_v53  ;;  %v9505_v53 = vld [vmem:[%s15636_s6 + $0x1118] sm:$0xff] }
0x2381   : > { %v9793_v58 = vpop.eup %9792  ;;  %7641 = vmatpush.msrb.mxu0 %v9467_v55  ;;  %v9524_v55 = vld [vmem:[%s15636_s6 + $0x11b0] sm:$0xff] }
0x2382   : > { %v9795_v47 = vpop.eup %9794  ;;  %v7441_v62 = vmul.f32 %v9793_v58, %v15166_v10  ;;  %7681 = vmatpush.msra.mxu2 %v9499_v57  ;;  %v9462_v10 = vld [vmem:[%s15636_s6 + $0xfc0] sm:$0xff]  ;;  %v9504_v57 = vld [vmem:[%s15636_s6 + $0x1110] sm:$0xff] }
0x2383   : > { %v7497_v63 = vmul.f32 %v9795_v47, %v15168_v3  ;;  %7642 = vmatpush.msrb.mxu0 %v9466_v51  ;;  %v9514_v3 = vld [vmem:[%s15636_s6 + $0x1160] sm:$0xff]  ;;  %v9523_v51 = vld [vmem:[%s15636_s6 + $0x11a8] sm:$0xff] }
0x2384   : > { %7442 = vst.msk [vmem:[%s10550_s27 + $0x110] sm:$0xff] %vm1002_vm5, %v7441_v62  ;;  %9436 = vmatmul.msk.f32.vlgmr.msra.gmra.mxu0 %vm1002_vm5, %v7441_v62  ;;  %7682 = vmatpush.msra.mxu2 %v9498_v2  ;;  %v9486_v58 = vld [vmem:[%s15636_s6 + $0x1080] sm:$0xff] }
0x2385   : > { %7498 = vst.msk [vmem:[%s10550_s27 + $0x118] sm:$0xff] %vm1002_vm5, %v7497_v63  ;;  %9437 = vmatmul.msk.f32.vlgmr.msrb.gmra.mxu2 %vm1002_vm5, %v7497_v63  ;;  %7643 = vmatpush.msrb.mxu0 %v9465_v56  ;;  %v9522_v47 = vld [vmem:[%s15636_s6 + $0x11a0] sm:$0xff]  ;;  %v9521_v56 = vld [vmem:[%s15636_s6 + $0x1198] sm:$0xff]  ;;  %v9520_v63 = vld [vmem:[%s15636_s6 + $0x1190] sm:$0xff]  ;;  %s8045_s27 = sshll.u32 %s366_s7, 3 }
0x2386   : > { %7683 = vmatpush.msra.mxu2 %v9497_v5  ;;  %7702 = vmatpush.msrb.mxu3 %v9514_v3  ;;  %v9502_v62 = vld [vmem:[%s15636_s6 + $0x1100] sm:$0xff]  ;;  %s368_s18 = scalar_lea.vmem [#allocation5], %s8045_s27  ;;  %s9850_s27 = scalar_lea.hbm %s15639_s9, 16 }
0x2387   : > { %7644 = vmatpush.msrb.mxu0 %v9464_v4  ;;  %v9518_v2 = vld [vmem:[%s15636_s6 + $0x1180] sm:$0xff]  ;;  %s7937_s21 = sshll.u32 %s368_s18, 4  ;;  %p9852_p4 = scmp.lt.s32.totalorder %s9850_s27, %s9846_s12  ;;  %s7938_s21 = int_to_ptr.vmem [resolvable:$true] %s7937_s21 }
0x2388   : > { %7684 = vmatpush.msra.mxu2 %v9496_v22  ;;  %7703 = vmatpush.msrb.mxu3 %v9513_v23 }
0x2389   : > { %7645 = vmatpush.msrb.mxu0 %v9463_v7  ;;  %p9853_p7 = por %p9852_p4, %p9851_p3 }
0x238a   : > { %7685 = vmatpush.msra.mxu2 %v9495_v26  ;;  %7704 = vmatpush.msrb.mxu3 %v9512_v28 }
0x238b   : > { %7646 = vmatpush.msrb.mxu0 %v9462_v10  ;;  %p9854_p8 = pnand %p9853_p7, %p9849_p2 }
0x238c   : > { %7686 = vmatpush.msra.mxu2 %v9494_v31  ;;  %7705 = vmatpush.msrb.mxu3 %v9511_v59  ;;  %v7774_v31 = vld [vmem:[#allocation2 + $0x2e0] sm:$0xff]  ;;  %v7775_v59 = vld [vmem:[#allocation2 + $0x2e8] sm:$0xff] }
0x238d   : > { %7647 = vmatpush.msrb.mxu0 %v9461_v11 }
0x238e   : > { %7687 = vmatpush.msra.mxu2 %v9493_v35  ;;  %7706 = vmatpush.msrb.mxu3 %v9510_v36  ;;  %v7770_v35 = vld [vmem:[#allocation2 + $0x2c0] sm:$0xff]  ;;  %v7771_v36 = vld [vmem:[#allocation2 + $0x2c8] sm:$0xff] }
0x238f   : > { %7648 = vmatpush.msrb.mxu0 %v9460_v13 }
0x2390   : > { %7688 = vmatpush.msra.mxu2 %v9492_v39  ;;  %7707 = vmatpush.msrb.mxu3 %v9509_v40  ;;  %v7766_v39 = vld [vmem:[#allocation2 + $0x2a0] sm:$0xff]  ;;  %v7767_v40 = vld [vmem:[#allocation2 + $0x2a8] sm:$0xff] }
0x2391   : > { %7649 = vmatpush.msrb.mxu0 %v9459_v14 }
0x2392   : > { %7689 = vmatpush.msra.mxu2 %v9491_v6  ;;  %7708 = vmatpush.msrb.mxu3 %v9508_v43  ;;  %v7762_v6 = vld [vmem:[#allocation2 + $0x280] sm:$0xff]  ;;  %v7763_v43 = vld [vmem:[#allocation2 + $0x288] sm:$0xff] }
0x2393   : > { %7650 = vmatpush.msrb.mxu0 %v9458_v16 }
0x2394   : > { %7690 = vmatpush.msra.mxu2 %v9490_v32  ;;  %7709 = vmatpush.msrb.mxu3 %v9507_v46  ;;  %v9550_v32 = vld [vmem:[%s15638_s8 + $0x570] sm:$0xff] }
0x2395   : > { %7651 = vmatpush.msrb.mxu0 %v9457_v9  ;;  %v9566_v46 = vld [vmem:[%s15638_s8 + $0x5f0] sm:$0xff] }
0x2396   : > { %7691 = vmatpush.msra.mxu2 %v9489_v49  ;;  %7710 = vmatpush.msrb.mxu3 %v9506_v50  ;;  %v9548_v49 = vld [vmem:[%s15638_s8 + $0x560] sm:$0xff] }
0x2397   : > { %7652 = vmatpush.msrb.mxu0 %v9456_v17  ;;  %v9564_v50 = vld [vmem:[%s15638_s8 + $0x5e0] sm:$0xff] }
0x2398   : > { %7692 = vmatpush.msra.mxu2 %v9488_v52  ;;  %7711 = vmatpush.msrb.mxu3 %v9505_v53  ;;  %v9547_v53 = vld [vmem:[%s15638_s8 + $0x558] sm:$0xff] }
0x2399   : > { %7653 = vmatpush.msrb.mxu0 %v9455_v18 }
0x239a   : > { %7693 = vmatpush.msra.mxu2 %v9487_v42  ;;  %7712 = vmatpush.msrb.mxu3 %v9504_v57  ;;  %v9546_v57 = vld [vmem:[%s15638_s8 + $0x550] sm:$0xff] }
0x239b   : > { %7654 = vmatpush.msrb.mxu0 %v9454_v19 }
0x239c   : > { %7694 = vmatpush.msra.mxu2 %v9486_v58  ;;  %7713 = vmatpush.msrb.mxu3 %v9503_v60  ;;  %v9545_v58 = vld [vmem:[%s15638_s8 + $0x548] sm:$0xff] }
0x239d   : > { %7719 = vmatpush.msra.mxu0 %v9533_v20  ;;  %v9561_v60 = vld [vmem:[%s15638_s8 + $0x5c8] sm:$0xff] }
0x239e   : > { %7714 = vmatpush.msrb.mxu3 %v9502_v62  ;;  %7809 = vmatpush.msrb.mxu2 %v7777_v30  ;;  %v9560_v62 = vld [vmem:[%s15638_s8 + $0x5c0] sm:$0xff] }
0x239f   : > { %7720 = vmatpush.msra.mxu0 %v9532_v24 }
0x23a0   : > { %7810 = vmatpush.msrb.mxu2 %v7775_v59 }
0x23a1   : > { %7721 = vmatpush.msra.mxu0 %v9531_v29  ;;  %v7776_v29 = vld [vmem:[#allocation2 + $0x2f0] sm:$0xff] }
0x23a2   : > { %7789 = vmatpush.msrb.mxu1 %v7776_v29  ;;  %7811 = vmatpush.msrb.mxu2 %v7773_v34 }
0x23a3   : > { %7722 = vmatpush.msra.mxu0 %v9530_v33  ;;  %v7772_v33 = vld [vmem:[#allocation2 + $0x2d0] sm:$0xff] }
0x23a4   : > { %7790 = vmatpush.msrb.mxu1 %v7774_v31  ;;  %7812 = vmatpush.msrb.mxu2 %v7771_v36 }
0x23a5   : > { %7723 = vmatpush.msra.mxu0 %v9529_v0  ;;  %v7768_v0 = vld [vmem:[#allocation2 + $0x2b0] sm:$0xff] }
0x23a6   : > { %7791 = vmatpush.msrb.mxu1 %v7772_v33  ;;  %7813 = vmatpush.msrb.mxu2 %v7769_v38 }
0x23a7   : > { %7724 = vmatpush.msra.mxu0 %v9528_v27  ;;  %v7764_v27 = vld [vmem:[#allocation2 + $0x290] sm:$0xff] }
0x23a8   : > { %7792 = vmatpush.msrb.mxu1 %v7770_v35  ;;  %7814 = vmatpush.msrb.mxu2 %v7767_v40 }
0x23a9   : > { %7725 = vmatpush.msra.mxu0 %v9527_v44  ;;  %v9551_v44 = vld [vmem:[%s15638_s8 + $0x578] sm:$0xff] }
0x23aa   : > { %7793 = vmatpush.msrb.mxu1 %v7768_v0  ;;  %7815 = vmatpush.msrb.mxu2 %v7765_v41 }
0x23ab   : > { %7726 = vmatpush.msra.mxu0 %v9526_v12  ;;  %v9549_v12 = vld [vmem:[%s15638_s8 + $0x568] sm:$0xff] }
0x23ac   : > { %7794 = vmatpush.msrb.mxu1 %v7766_v39  ;;  %7816 = vmatpush.msrb.mxu2 %v7763_v43 }
0x23ad   : > { %7727 = vmatpush.msra.mxu0 %v9525_v37 }
0x23ae   : > { %7795 = vmatpush.msrb.mxu1 %v7764_v27 }
0x23af   : > { %7728 = vmatpush.msra.mxu0 %v9524_v55  ;;  %v9563_v55 = vld [vmem:[%s15638_s8 + $0x5d8] sm:$0xff] }
0x23b0   : > { %7796 = vmatpush.msrb.mxu1 %v7762_v6 }
0x23b1   : > { %7729 = vmatpush.msra.mxu0 %v9523_v51  ;;  %v9562_v51 = vld [vmem:[%s15638_s8 + $0x5d0] sm:$0xff] }
0x23b3   : > { %7730 = vmatpush.msra.mxu0 %v9522_v47  ;;  %v9544_v47 = vld [vmem:[%s15638_s8 + $0x540] sm:$0xff] }
0x23b5   : > { %7731 = vmatpush.msra.mxu0 %v9521_v56  ;;  %v9543_v56 = vld [vmem:[%s15638_s8 + $0x538] sm:$0xff] }
0x23b7   : > { %7732 = vmatpush.msra.mxu0 %v9520_v63  ;;  %v9559_v63 = vld [vmem:[%s15638_s8 + $0x5b8] sm:$0xff] }
0x23b9   : > { %7733 = vmatpush.msra.mxu0 %v9519_v1 }
0x23bb   : > { %7734 = vmatpush.msra.mxu0 %v9518_v2  ;;  %v9542_v2 = vld [vmem:[%s15638_s8 + $0x530] sm:$0xff] }
0x23eb   : > { %v7295_v4 = vpop.f32.mrf.mxu2 }
0x23ec   : > { %7655 = vmatmul.f32.vlgmr.msrb.gmra.mxu0 %v7295_v4  ;;  %v9558_v4 = vld [vmem:[%s15638_s8 + $0x5b0] sm:$0xff] }
0x23f1   : > { %v7239_v61 = vpop.f32.mrf.mxu0 }
0x23f2   : > { %7635 = vmatmul.f32.vlgmr.msra.gmra.mxu3 %v7239_v61 }
0x23f9   : > { %v7351_v5 = vpop.f32.mrf.mxu0 }
0x23fa   : > { %7675 = vmatmul.f32.vlgmr.msra.gmra.mxu1 %v7351_v5  ;;  %v9541_v5 = vld [vmem:[%s15638_s8 + $0x528] sm:$0xff] }
0x23fb   : > { %7856 = vmatpush.msra.mxu1 %v9551_v44 }
0x23fd   : > { %7857 = vmatpush.msra.mxu1 %v9550_v32 }
0x23ff   : > { %7858 = vmatpush.msra.mxu1 %v9549_v12 }
0x2400   : > { %v7407_v7 = vpop.f32.mrf.mxu2 }
0x2401   : > { %7695 = vmatmul.f32.vlgmr.msra.gmra.mxu2 %v7407_v7  ;;  %v7463_v8 = vpop.f32.mrf.mxu0  ;;  %7859 = vmatpush.msra.mxu1 %v9548_v49  ;;  %v9557_v7 = vld [vmem:[%s15638_s8 + $0x5a8] sm:$0xff] }
0x2402   : > { %7715 = vmatmul.f32.vlgmr.msrb.gmra.mxu3 %v7463_v8  ;;  %7876 = vmatpush.msra.mxu2 %v9567_v45 }
0x2403   : > { %7860 = vmatpush.msra.mxu1 %v9547_v53 }
0x2404   : > { %7877 = vmatpush.msra.mxu2 %v9566_v46 }
0x2405   : > { %7861 = vmatpush.msra.mxu1 %v9546_v57 }
0x2406   : > { %7878 = vmatpush.msra.mxu2 %v9565_v15 }
0x2407   : > { %7862 = vmatpush.msra.mxu1 %v9545_v58 }
0x2408   : > { %v7519_v10 = vpop.f32.mrf.mxu2  ;;  %7879 = vmatpush.msra.mxu2 %v9564_v50 }
0x2409   : > { %7735 = vmatmul.f32.vlgmr.msra.gmra.mxu0 %v7519_v10  ;;  %7863 = vmatpush.msra.mxu1 %v9544_v47  ;;  %v9540_v10 = vld [vmem:[%s15638_s8 + $0x520] sm:$0xff] }
0x240a   : > { %7880 = vmatpush.msra.mxu2 %v9563_v55 }
0x240b   : > { %7864 = vmatpush.msra.mxu1 %v9543_v56 }
0x240c   : > { %7881 = vmatpush.msra.mxu2 %v9562_v51 }
0x240d   : > { %7865 = vmatpush.msra.mxu1 %v9542_v2 }
0x240e   : > { %7882 = vmatpush.msra.mxu2 %v9561_v60 }
0x240f   : > { %7866 = vmatpush.msra.mxu1 %v9541_v5 }
0x2410   : > { %7883 = vmatpush.msra.mxu2 %v9560_v62 }
0x2411   : > { %7867 = vmatpush.msra.mxu1 %v9540_v10 }
0x2412   : > { %7884 = vmatpush.msra.mxu2 %v9559_v63 }
0x2414   : > { %7885 = vmatpush.msra.mxu2 %v9558_v4 }
0x2416   : > { %7886 = vmatpush.msra.mxu2 %v9557_v7 }
0x2469   : > { %v7656_v13 = vpop.f32.mrf.mxu0 }
0x2475   : > { %v7636_v3 = vpop.f32.mrf.mxu3 }
0x2476   : > { %v7637_v11 = vadd.f32 %v7636_v3, %v14870_v54 }
0x2477   : > { %v7676_v16 = vpop.f32.mrf.mxu1 }
0x2478   : > { %v7657_v14 = vadd.f32 %v7656_v13, %v7637_v11  ;;  %v9539_v11 = vld [vmem:[%s15638_s8 + $0x518] sm:$0xff] }
0x2479   : > { %7868 = vmatpush.msra.mxu1 %v9539_v11 }
0x247a   : > { %v7677_v9 = vadd.f32 %v7676_v16, %v7657_v14  ;;  %v9538_v14 = vld [vmem:[%s15638_s8 + $0x510] sm:$0xff] }
0x247b   : > { %7869 = vmatpush.msra.mxu1 %v9538_v14 }
0x2484   : > { %v7696_v17 = vpop.f32.mrf.mxu2 }
0x2485   : > { %v7697_v18 = vadd.f32 %v7696_v17, %v7677_v9  ;;  %v7716_v19 = vpop.f32.mrf.mxu3 }
0x2486   : > { %v7736_v21 = vpop.f32.mrf.mxu0 }
0x2487   : > { %v7717_v20 = vadd.f32 %v7716_v19, %v7697_v18  ;;  %v9537_v18 = vld [vmem:[%s15638_s8 + $0x508] sm:$0xff]  ;;  %v9556_v19 = vld [vmem:[%s15638_s8 + $0x5a0] sm:$0xff] }
0x2488   : > { %7870 = vmatpush.msra.mxu1 %v9537_v18  ;;  %7887 = vmatpush.msra.mxu2 %v9556_v19 }
0x2489   : > { %v7737_v22 = vadd.f32 %v7736_v21, %v7717_v20  ;;  %v9536_v20 = vld [vmem:[%s15638_s8 + $0x500] sm:$0xff]  ;;  %v9555_v21 = vld [vmem:[%s15638_s8 + $0x598] sm:$0xff] }
0x248a   : > { %7871 = vmatpush.msra.mxu1 %v9536_v20  ;;  %7888 = vmatpush.msra.mxu2 %v9555_v21 }
0x248b   : > { %v7739_v23 = vsel %vm617_vm4, %v7737_v22, 0.0 }
0x248c   : > { %7740 = vadd.xlane.f32.xlu2 %v7739_v23  ;;  %v9553_v23 = vld [vmem:[%s15638_s8 + $0x588] sm:$0xff] }
0x24ff   : > { %v7741_v24 = vpop.xlane.xlu2 %7740 }
0x2500   : > { %v7742_v25 = vmul.f32 %v7741_v24, %v10865_v48  ;;  %v9552_v24 = vld [vmem:[%s15638_s8 + $0x580] sm:$0xff] }
0x2502   : > { %v15488_v26 = vsub.f32 %v7737_v22, %v7742_v25  ;;  %v9554_v22 = vld [vmem:[%s15638_s8 + $0x590] sm:$0xff] }
0x2503   : > { %7889 = vmatpush.msra.mxu2 %v9554_v22 }
0x2504   : > { %v7744_v54 = vmul.f32 %v15488_v26, %v15488_v26 }
0x2505   : > { %7890 = vmatpush.msra.mxu2 %v9553_v23 }
0x2506   : > { %v7745_v28 = vsel %vm617_vm4, %v7744_v54, 0.0 }
0x2507   : > { %7746 = vadd.xlane.f32.xlu0 %v7745_v28  ;;  %7891 = vmatpush.msra.mxu2 %v9552_v24 }
0x257a   : > { %v7747_v37 = vpop.xlane.xlu0 %7746 }
0x257b   : > { %v7748_v52 = vmul.f32 %v7747_v37, %v10865_v48 }
0x257d   : > { %v7749_v42 = vadd.f32 1e-05, %v7748_v52 }
0x257f   : > { %9796 = vrsqrt.f32 %v7749_v42  ;;  %vm7756_vm9 = vweird.f32 %v7749_v42 }
0x2585   : > { %v9797_v1 = vpop.eup %9796 }
0x2586   : > { %v7751_v61 = vmul.f32 %v9797_v1, %v7749_v42  ;;  %vm7757_vm5 = vweird.f32 %v9797_v1 }
0x2587   : > { %vm7758_vm10 = vmor %vm7756_vm9, %vm7757_vm5 }
0x2588   : > { %v7752_v8 = vmul.f32 %v9797_v1, %v7751_v61 }
0x258a   : > { %v7753_v3 = vmul.f32 0.5, %v7752_v8 }
0x258c   : > { %v7754_v13 = vsub.f32 1.5, %v7753_v3 }
0x258e   : > { %v7755_v16 = vmul.f32 %v9797_v1, %v7754_v13 }
0x2590   : > { %v7759_v9 = vsel %vm7758_vm10, %v9797_v1, %v7755_v16 }
0x2591   : > { %v7760_v17 = vmul.f32 %v7759_v9, %v15488_v26 }
0x2593   : > { %9534 = vmatmul.msk.f32.vlgmr.msrb.gmra.mxu1 %vm617_vm4, %v7760_v17  ;;  %9535 = vmatmul.msk.f32.vlgmr.msrb.gmra.mxu2 %vm617_vm4, %v7760_v17 }
0x2610   : > { %v7798_v25 = vpop.f32.mrf.mxu1 }
0x2611   : > { %v7821_v26 = vmax.f32 %v7798_v25, 0.0 }
0x2613   : > { %7872 = vmatmul.f32.vlgmr.msra.gmra.mxu1 %v7821_v26 }
0x2616   : > { %v7818_v54 = vpop.f32.mrf.mxu2 }
0x2617   : > { %v7822_v28 = vmax.f32 %v7818_v54, 0.0 }
0x2619   : > { %7892 = vmatmul.f32.vlgmr.msra.gmra.mxu2 %v7822_v28 }
0x2690   : > { %v7873_v29 = vpop.f32.mrf.mxu1 }
0x2691   : > { %v7874_v30 = vadd.f32 %v7873_v29, %v7760_v17 }
0x269c   : > { %v7893_v31 = vpop.f32.mrf.mxu2 }
0x269d   : > { %v7894_v59 = vadd.f32 %v7893_v31, %v7874_v30 }
0x269f   : > { %v7896_v33 = vsel %vm617_vm4, %v7894_v59, 0.0 }
0x26a0   : > { %7897 = vadd.xlane.f32.xlu1 %v7896_v33 }
0x2713   : > { %v7898_v34 = vpop.xlane.xlu1 %7897 }
0x2714   : > { %v7899_v35 = vmul.f32 %v7898_v34, %v10865_v48 }
0x2716   : > { %v7900_v36 = vsub.f32 %v7894_v59, %v7899_v35 }
0x2718   : > { %v7901_v0 = vmul.f32 %v7900_v36, %v7900_v36 }
0x271a   : > { %v7902_v38 = vsel %vm617_vm4, %v7901_v0, 0.0 }
0x271b   : > { %7903 = vadd.xlane.f32.xlu2 %v7902_v38 }
0x278e   : > { %v7904_v39 = vpop.xlane.xlu2 %7903 }
0x278f   : > { %v7905_v40 = vmul.f32 %v7904_v39, %v10865_v48 }
0x2791   : > { %v7906_v27 = vadd.f32 1e-05, %v7905_v40 }
0x2793   : > { %9798 = vrsqrt.f32 %v7906_v27  ;;  %vm7913_vm12 = vweird.f32 %v7906_v27 }
0x2799   : > { %v9799_v41 = vpop.eup %9798 }
0x279a   : > { %v7908_v6 = vmul.f32 %v9799_v41, %v7906_v27  ;;  %vm7914_vm11 = vweird.f32 %v9799_v41 }
0x279b   : > { %vm7915_vm13 = vmor %vm7913_vm12, %vm7914_vm11 }
0x279c   : > { %v7909_v43 = vmul.f32 %v9799_v41, %v7908_v6 }
0x279e   : > { %v7910_v44 = vmul.f32 0.5, %v7909_v43 }
0x27a0   : > { %v7911_v45 = vsub.f32 1.5, %v7910_v44 }
0x27a2   : > { %v7912_v32 = vmul.f32 %v9799_v41, %v7911_v45 }
0x27a4   : > { %v7916_v48 = vsel %vm7915_vm13, %v9799_v41, %v7912_v32 }
0x27a5   : > { %v7917_v46 = vmul.f32 %v7916_v48, %v7900_v36 }
0x27a7   : > { %7918 = vst.msk [vmem:[%s368_s18] sm:$0xff] %vm617_vm4, %v7917_v46 }
0x27a8   : > { %9857 = shalt.err (!%p9854_p8)
}
0x27a9   : > { %9577 = dma.vmem_to_hbm [thread:$0]  (%p9995_p5), %s7938_s21, 128, %s7940_s25, %s7920_s17  }
0x27aa PF: > { %p9589_p9 = scmp.ge.s32.totalorder %s9896_s16, 2  ;;  %s7954_s7 = sand.u32 1, %s9884_s13  }
0x27ab   : > { %s7955_s20 = scalar_lea.sflag [#allocation4], %s7954_s7 }
0x27ac   : > { %p9584_p10 = pnand %p9589_p9, %p9999_p6 }
0x27ae   : > { %p9585_p11 = pneg %p9584_p10 }
0x27b0   : > { %9879 = dma.done.wait (%p9585_p11), %s7955_s20, 128  }
0x27b1   : > { %9881 = vsyncadd (%p9585_p11), %s7955_s20, 4294967168  ;;  %p22_p12 = scmp.ge.s32.totalorder %s9982_s19, 4   ;;  %s15645_s13 = smov %s9888_s14 }
0x27b2   : > { %s15646_s14 = smov %s9892_s15  ;;  %s15647_s15 = smov %s9993_s22 }
0x27b3   : > { %s15648_s16 = smov %s9982_s19  ;;  %24 = sbr.rel (!%p22_p12) target bundleno = 6 (0x6), region = 128 }
0x27b8   :  { %7969 = vsyncpa [#allocation3], 1 }
0x27b9   :  { %7971 = vsyncpa [#allocation3 + $0x1], 1 }
0x27ba   :  { %7972 = vsyncpa [#allocation4], 1 }
0x27bb   :  { %7974 = vsyncpa [#allocation4 + $0x1], 1 }

</bundles_post_ra>
